<compile_context>
chip_gen: v7x
topology: tpu7x:2x2x1
jax: 0.10.0
libtpu: 0.0.40
codegen_flags: <defaults>
</compile_context>

<pallas_src>
import functools

import jax
import jax.numpy as jnp
from jax.experimental import pallas as pl
from jax.experimental.pallas import tpu as pltpu


# ----------------------------------------------------------------------------
# Pallas kernels
# ----------------------------------------------------------------------------
def _conv_relu_pool_kernel(p_ref, w_ref, b_ref, o_ref):
    """relu(P @ W + b) followed by a 4-phase max (== 2x2 floor-mode max-pool).

    P rows are stacked as [phase00; phase01; phase10; phase11], each block of
    Mp rows enumerating the pooled output positions (b, ho, wo); phase (i, j)
    corresponds to conv-output position (2*ho + i, 2*wo + j).
    """
    mp = o_ref.shape[0]
    y = jnp.dot(p_ref[...], w_ref[...], preferred_element_type=jnp.float32)
    y = jnp.maximum(y + b_ref[...], 0.0)
    o_ref[...] = jnp.maximum(
        jnp.maximum(y[0 * mp:1 * mp], y[1 * mp:2 * mp]),
        jnp.maximum(y[2 * mp:3 * mp], y[3 * mp:4 * mp]),
    ).astype(o_ref.dtype)


def _mlp4_kernel(h_ref, w1, b1, w2, b2, w3, b3, w4, b4, o_ref):
    """Four fused Linear+ReLU layers (fc1..fc4), bf16 matmuls, f32 accumulate."""
    def layer(h, w_ref, b_ref):
        y = jnp.dot(h, w_ref[...], preferred_element_type=jnp.float32)
        return jnp.maximum(y + b_ref[...], 0.0)

    h = layer(h_ref[...], w1, b1).astype(jnp.bfloat16)
    h = layer(h, w2, b2).astype(jnp.bfloat16)
    h = layer(h, w3, b3).astype(jnp.bfloat16)
    o_ref[...] = layer(h, w4, b4).astype(o_ref.dtype)


# ----------------------------------------------------------------------------
# Wrappers
# ----------------------------------------------------------------------------
def _pooled_patches(x, K):
    """Build bf16 im2col patches in pool-phase row order.

    x: (B, H, W, Cin) NHWC.  Returns (P, (B, OHp, OWp)) where
    P: (4*Mp, K*K*Cin), Mp = B*OHp*OWp.  Row `phase*Mp + r` is the patch
    (feature order kh, kw, cin — matches (K, K, Cin, Cout) weight flattening)
    of conv-output position (2*ho + i, 2*wo + j), phase = 2*i + j, r over
    (b, ho, wo).  Only conv outputs that survive the floor-mode 2x2 pool are
    built (odd trailing row/col is skipped, matching nn.MaxPool2d(2)).
    """
    B, H, W, Cin = x.shape
    OH, OW = H - K + 1, W - K + 1
    OHp, OWp = OH // 2, OW // 2
    Mp = B * OHp * OWp
    blocks = []
    for i in (0, 1):
        for j in (0, 1):
            cols = [
                x[:, i + kh: i + kh + 2 * OHp - 1: 2,
                     j + kw: j + kw + 2 * OWp - 1: 2, :]
                for kh in range(K) for kw in range(K)
            ]
            ph = jnp.concatenate(cols, axis=-1)        # (B, OHp, OWp, K*K*Cin)
            blocks.append(ph.reshape(Mp, K * K * Cin))
    return jnp.concatenate(blocks, axis=0), (B, OHp, OWp)


def conv_relu_pool_layer(x_nhwc, w, b):
    """x_nhwc: (B,H,W,Cin) bf16; w: (K,K,Cin,Cout) bf16; b: (Cout,) f32.
    Returns maxpool2(relu(conv(x))) as (B, OHp, OWp, Cout) bf16."""
    K, _, _, Cout = w.shape
    patches, (B, OHp, OWp) = _pooled_patches(x_nhwc, K)
    Mp = B * OHp * OWp
    out = pl.pallas_call(
        _conv_relu_pool_kernel,
        out_shape=jax.ShapeDtypeStruct((Mp, Cout), jnp.bfloat16),
    )(patches, w.reshape(-1, Cout), b.reshape(1, Cout).astype(jnp.float32))
    return out.reshape(B, OHp, OWp, Cout)


def mlp4(h, params):
    """Fused fc1..fc4 (Linear + ReLU each).  h: (B, 1024) bf16 -> (B, 256) f32."""
    B = h.shape[0]
    latent = params["fc4_w"].shape[1]
    args = [h.astype(jnp.bfloat16)]
    for i in range(1, 5):
        args.append(params[f"fc{i}_w"])                                  # bf16
        args.append(params[f"fc{i}_b"].reshape(1, -1).astype(jnp.float32))
    return pl.pallas_call(
        _mlp4_kernel,
        out_shape=jax.ShapeDtypeStruct((B, latent), jnp.float32),
    )(*args)


# ----------------------------------------------------------------------------
# Shared.forward
# ----------------------------------------------------------------------------
def shared_forward(params, x):
    B = x.shape[0]
    # Single NCHW -> NHWC transpose; channels stay on the lane dim afterwards.
    h = jnp.transpose(x, (0, 2, 3, 1)).astype(jnp.bfloat16)
    h = conv_relu_pool_layer(h, params["conv1_w"], params["conv1_b"])  # drop1=id
    h = conv_relu_pool_layer(h, params["conv2_w"], params["conv2_b"])  # drop1=id
    h = conv_relu_pool_layer(h, params["conv3_w"], params["conv3_b"])  # drop2=id
    # Match PyTorch's NCHW .view(B, -1) feature ordering (tiny 4 KiB transpose).
    h = jnp.transpose(h, (0, 3, 1, 2)).reshape(B, -1)
    return mlp4(h, params)                                              # drop2=id


# ----------------------------------------------------------------------------
# Deterministic parameter initialization (synthetic, shapes from __init__)
# ----------------------------------------------------------------------------
def init_params(key, ncha, size, latent_dim):
    hiddens = [64, 128, 256, 1024, 1024, 512]          # cifar100 config
    k1, k2, k3 = size // 8, size // 10, 2
    s = (size - k1 + 1) // 2
    s = (s - k2 + 1) // 2
    s = (s - k3 + 1) // 2

    conv_dims = [(ncha, hiddens[0], k1),
                 (hiddens[0], hiddens[1], k2),
                 (hiddens[1], hiddens[2], k3)]
    fc_dims = [(hiddens[2] * s * s, hiddens[3]),
               (hiddens[3], hiddens[4]),
               (hiddens[4], hiddens[5]),
               (hiddens[5], latent_dim)]

    keys = jax.random.split(key, 14)
    params = {}
    ki = 0
    for idx, (ci, co, k) in enumerate(conv_dims, start=1):
        fan_in = ci * k * k
        # Stored as (K, K, Cin, Cout) in bf16 (torch layout permuted 2,3,1,0).
        w = jax.random.normal(keys[ki], (k, k, ci, co), jnp.float32) / jnp.sqrt(fan_in)
        params[f"conv{idx}_w"] = w.astype(jnp.bfloat16); ki += 1
        params[f"conv{idx}_b"] = (
            0.01 * jax.random.normal(keys[ki], (co,), jnp.float32)); ki += 1
    for idx, (din, dout) in enumerate(fc_dims, start=1):
        # Stored pre-transposed as (in, out) bf16 so the kernel computes x @ w.
        w = jax.random.normal(keys[ki], (din, dout), jnp.float32) / jnp.sqrt(din)
        params[f"fc{idx}_w"] = w.astype(jnp.bfloat16); ki += 1
        params[f"fc{idx}_b"] = (
            0.01 * jax.random.normal(keys[ki], (dout,), jnp.float32)); ki += 1
    return params


if __name__ == "__main__":
    B, ncha, size, latent_dim = 2, 3, 32, 256
    key = jax.random.PRNGKey(0)
    kp, kx = jax.random.split(key)
    params = init_params(kp, ncha, size, latent_dim)
    x = jax.random.normal(kx, (B, ncha, size, size), jnp.float32)

    fwd = jax.jit(functools.partial(shared_forward, params))
    out = jax.block_until_ready(fwd(x))

    assert out.shape == (B, latent_dim), out.shape
    assert out.dtype == jnp.float32
    assert bool(jnp.all(jnp.isfinite(out)))
    print("KERNEL_OK")
</pallas_src>

<mosaic_0001>
module attributes {stable_mosaic.version = 11 : i64} {
  func.func @_conv_relu_pool_kernel(%arg0: memref<1568x48xbf16, #tpu.memory_space<vmem>>, %arg1: memref<48x64xbf16, #tpu.memory_space<vmem>>, %arg2: memref<1x64xf32, #tpu.memory_space<vmem>>, %arg3: memref<392x64xbf16, #tpu.memory_space<vmem>>) attributes {dimension_semantics = [], scalar_prefetch = 0 : i64, scratch_operands = 0 : i64, tpu.core_type = #tpu.core_type<tc>} {
    %c0 = arith.constant 0 : index
    %c0_0 = arith.constant 0 : index
    %0 = vector.load %arg0[%c0, %c0_0] : memref<1568x48xbf16, #tpu.memory_space<vmem>>, vector<1568x48xbf16>
    %c0_1 = arith.constant 0 : index
    %c0_2 = arith.constant 0 : index
    %1 = vector.load %arg1[%c0_1, %c0_2] : memref<48x64xbf16, #tpu.memory_space<vmem>>, vector<48x64xbf16>
    %cst = arith.constant dense<0.000000e+00> : vector<1568x64xf32>
    %2 = tpu.matmul %0, %1, %cst {dimension_numbers = #tpu.dot_dimension_numbers<[1], [0], [0], [1], [0, 0, 1, 1], [], []>} : vector<1568x48xbf16>, vector<48x64xbf16>, vector<1568x64xf32> -> vector<1568x64xf32>
    %c0_3 = arith.constant 0 : index
    %c0_4 = arith.constant 0 : index
    %3 = vector.load %arg2[%c0_3, %c0_4] : memref<1x64xf32, #tpu.memory_space<vmem>>, vector<1x64xf32>
    %4 = vector.broadcast %3 : vector<1x64xf32> to vector<1568x64xf32>
    %5 = arith.addf %2, %4 : vector<1568x64xf32>
    %cst_5 = arith.constant 0.000000e+00 : f32
    %6 = vector.broadcast %cst_5 : f32 to vector<1568x64xf32>
    %7 = arith.maximumf %5, %6 : vector<1568x64xf32>
    %8 = vector.extract_strided_slice %7 {offsets = [0, 0], sizes = [392, 64], strides = [1, 1]} : vector<1568x64xf32> to vector<392x64xf32>
    %9 = vector.extract_strided_slice %7 {offsets = [392, 0], sizes = [392, 64], strides = [1, 1]} : vector<1568x64xf32> to vector<392x64xf32>
    %10 = arith.maximumf %8, %9 : vector<392x64xf32>
    %11 = vector.extract_strided_slice %7 {offsets = [784, 0], sizes = [392, 64], strides = [1, 1]} : vector<1568x64xf32> to vector<392x64xf32>
    %12 = vector.extract_strided_slice %7 {offsets = [1176, 0], sizes = [392, 64], strides = [1, 1]} : vector<1568x64xf32> to vector<392x64xf32>
    %13 = arith.maximumf %11, %12 : vector<392x64xf32>
    %14 = arith.maximumf %10, %13 : vector<392x64xf32>
    %15 = arith.truncf %14 : vector<392x64xf32> to vector<392x64xbf16>
    %c0_6 = arith.constant 0 : index
    %c0_7 = arith.constant 0 : index
    %16 = vector.load %arg3[%c0_6, %c0_7] : memref<392x64xbf16, #tpu.memory_space<vmem>>, vector<392x64xbf16>
    tpu.vector_store %arg3[%c0_6, %c0_7], %15 {strides = array<i32>} : memref<392x64xbf16, #tpu.memory_space<vmem>>, vector<392x64xbf16>,
    return
  }
}

module attributes {stable_mosaic.version = 11 : i64} {
  func.func @_conv_relu_pool_kernel(%arg0: memref<288x576xbf16, #tpu.memory_space<vmem>>, %arg1: memref<576x128xbf16, #tpu.memory_space<vmem>>, %arg2: memref<1x128xf32, #tpu.memory_space<vmem>>, %arg3: memref<72x128xbf16, #tpu.memory_space<vmem>>) attributes {dimension_semantics = [], scalar_prefetch = 0 : i64, scratch_operands = 0 : i64, tpu.core_type = #tpu.core_type<tc>} {
    %c0 = arith.constant 0 : index
    %c0_0 = arith.constant 0 : index
    %0 = vector.load %arg0[%c0, %c0_0] : memref<288x576xbf16, #tpu.memory_space<vmem>>, vector<288x576xbf16>
    %c0_1 = arith.constant 0 : index
    %c0_2 = arith.constant 0 : index
    %1 = vector.load %arg1[%c0_1, %c0_2] : memref<576x128xbf16, #tpu.memory_space<vmem>>, vector<576x128xbf16>
    %cst = arith.constant dense<0.000000e+00> : vector<288x128xf32>
    %2 = tpu.matmul %0, %1, %cst {dimension_numbers = #tpu.dot_dimension_numbers<[1], [0], [0], [1], [0, 0, 1, 1], [], []>} : vector<288x576xbf16>, vector<576x128xbf16>, vector<288x128xf32> -> vector<288x128xf32>
    %c0_3 = arith.constant 0 : index
    %c0_4 = arith.constant 0 : index
    %3 = vector.load %arg2[%c0_3, %c0_4] : memref<1x128xf32, #tpu.memory_space<vmem>>, vector<1x128xf32>
    %4 = vector.broadcast %3 : vector<1x128xf32> to vector<288x128xf32>
    %5 = arith.addf %2, %4 : vector<288x128xf32>
    %cst_5 = arith.constant 0.000000e+00 : f32
    %6 = vector.broadcast %cst_5 : f32 to vector<288x128xf32>
    %7 = arith.maximumf %5, %6 : vector<288x128xf32>
    %8 = vector.extract_strided_slice %7 {offsets = [0, 0], sizes = [72, 128], strides = [1, 1]} : vector<288x128xf32> to vector<72x128xf32>
    %9 = vector.extract_strided_slice %7 {offsets = [72, 0], sizes = [72, 128], strides = [1, 1]} : vector<288x128xf32> to vector<72x128xf32>
    %10 = arith.maximumf %8, %9 : vector<72x128xf32>
    %11 = vector.extract_strided_slice %7 {offsets = [144, 0], sizes = [72, 128], strides = [1, 1]} : vector<288x128xf32> to vector<72x128xf32>
    %12 = vector.extract_strided_slice %7 {offsets = [216, 0], sizes = [72, 128], strides = [1, 1]} : vector<288x128xf32> to vector<72x128xf32>
    %13 = arith.maximumf %11, %12 : vector<72x128xf32>
    %14 = arith.maximumf %10, %13 : vector<72x128xf32>
    %15 = arith.truncf %14 : vector<72x128xf32> to vector<72x128xbf16>
    %c0_6 = arith.constant 0 : index
    %c0_7 = arith.constant 0 : index
    %16 = vector.load %arg3[%c0_6, %c0_7] : memref<72x128xbf16, #tpu.memory_space<vmem>>, vector<72x128xbf16>
    tpu.vector_store %arg3[%c0_6, %c0_7], %15 {strides = array<i32>} : memref<72x128xbf16, #tpu.memory_space<vmem>>, vector<72x128xbf16>,
    return
  }
}

module attributes {stable_mosaic.version = 11 : i64} {
  func.func @_conv_relu_pool_kernel(%arg0: memref<32x512xbf16, #tpu.memory_space<vmem>>, %arg1: memref<512x256xbf16, #tpu.memory_space<vmem>>, %arg2: memref<1x256xf32, #tpu.memory_space<vmem>>, %arg3: memref<8x256xbf16, #tpu.memory_space<vmem>>) attributes {dimension_semantics = [], scalar_prefetch = 0 : i64, scratch_operands = 0 : i64, tpu.core_type = #tpu.core_type<tc>} {
    %c0 = arith.constant 0 : index
    %c0_0 = arith.constant 0 : index
    %0 = vector.load %arg0[%c0, %c0_0] : memref<32x512xbf16, #tpu.memory_space<vmem>>, vector<32x512xbf16>
    %c0_1 = arith.constant 0 : index
    %c0_2 = arith.constant 0 : index
    %1 = vector.load %arg1[%c0_1, %c0_2] : memref<512x256xbf16, #tpu.memory_space<vmem>>, vector<512x256xbf16>
    %cst = arith.constant dense<0.000000e+00> : vector<32x256xf32>
    %2 = tpu.matmul %0, %1, %cst {dimension_numbers = #tpu.dot_dimension_numbers<[1], [0], [0], [1], [0, 0, 1, 1], [], []>} : vector<32x512xbf16>, vector<512x256xbf16>, vector<32x256xf32> -> vector<32x256xf32>
    %c0_3 = arith.constant 0 : index
    %c0_4 = arith.constant 0 : index
    %3 = vector.load %arg2[%c0_3, %c0_4] : memref<1x256xf32, #tpu.memory_space<vmem>>, vector<1x256xf32>
    %4 = vector.broadcast %3 : vector<1x256xf32> to vector<32x256xf32>
    %5 = arith.addf %2, %4 : vector<32x256xf32>
    %cst_5 = arith.constant 0.000000e+00 : f32
    %6 = vector.broadcast %cst_5 : f32 to vector<32x256xf32>
    %7 = arith.maximumf %5, %6 : vector<32x256xf32>
    %8 = vector.extract_strided_slice %7 {offsets = [0, 0], sizes = [8, 256], strides = [1, 1]} : vector<32x256xf32> to vector<8x256xf32>
    %9 = vector.extract_strided_slice %7 {offsets = [8, 0], sizes = [8, 256], strides = [1, 1]} : vector<32x256xf32> to vector<8x256xf32>
    %10 = arith.maximumf %8, %9 : vector<8x256xf32>
    %11 = vector.extract_strided_slice %7 {offsets = [16, 0], sizes = [8, 256], strides = [1, 1]} : vector<32x256xf32> to vector<8x256xf32>
    %12 = vector.extract_strided_slice %7 {offsets = [24, 0], sizes = [8, 256], strides = [1, 1]} : vector<32x256xf32> to vector<8x256xf32>
    %13 = arith.maximumf %11, %12 : vector<8x256xf32>
    %14 = arith.maximumf %10, %13 : vector<8x256xf32>
    %15 = arith.truncf %14 : vector<8x256xf32> to vector<8x256xbf16>
    %c0_6 = arith.constant 0 : index
    %c0_7 = arith.constant 0 : index
    %16 = vector.load %arg3[%c0_6, %c0_7] : memref<8x256xbf16, #tpu.memory_space<vmem>>, vector<8x256xbf16>
    tpu.vector_store %arg3[%c0_6, %c0_7], %15 {strides = array<i32>} : memref<8x256xbf16, #tpu.memory_space<vmem>>, vector<8x256xbf16>,
    return
  }
}

module attributes {stable_mosaic.version = 11 : i64} {
  func.func @_mlp4_kernel(%arg0: memref<2x1024xbf16, #tpu.memory_space<vmem>>, %arg1: memref<1024x1024xbf16, #tpu.memory_space<vmem>>, %arg2: memref<1x1024xf32, #tpu.memory_space<vmem>>, %arg3: memref<1024x1024xbf16, #tpu.memory_space<vmem>>, %arg4: memref<1x1024xf32, #tpu.memory_space<vmem>>, %arg5: memref<1024x512xbf16, #tpu.memory_space<vmem>>, %arg6: memref<1x512xf32, #tpu.memory_space<vmem>>, %arg7: memref<512x256xbf16, #tpu.memory_space<vmem>>, %arg8: memref<1x256xf32, #tpu.memory_space<vmem>>, %arg9: memref<2x256xf32, #tpu.memory_space<vmem>>) attributes {dimension_semantics = [], scalar_prefetch = 0 : i64, scratch_operands = 0 : i64, tpu.core_type = #tpu.core_type<tc>} {
    %c0 = arith.constant 0 : index
    %c0_0 = arith.constant 0 : index
    %0 = vector.load %arg0[%c0, %c0_0] : memref<2x1024xbf16, #tpu.memory_space<vmem>>, vector<2x1024xbf16>
    %c0_1 = arith.constant 0 : index
    %c0_2 = arith.constant 0 : index
    %1 = vector.load %arg1[%c0_1, %c0_2] : memref<1024x1024xbf16, #tpu.memory_space<vmem>>, vector<1024x1024xbf16>
    %cst = arith.constant dense<0.000000e+00> : vector<2x1024xf32>
    %2 = tpu.matmul %0, %1, %cst {dimension_numbers = #tpu.dot_dimension_numbers<[1], [0], [0], [1], [0, 0, 1, 1], [], []>} : vector<2x1024xbf16>, vector<1024x1024xbf16>, vector<2x1024xf32> -> vector<2x1024xf32>
    %c0_3 = arith.constant 0 : index
    %c0_4 = arith.constant 0 : index
    %3 = vector.load %arg2[%c0_3, %c0_4] : memref<1x1024xf32, #tpu.memory_space<vmem>>, vector<1x1024xf32>
    %4 = vector.broadcast %3 : vector<1x1024xf32> to vector<2x1024xf32>
    %5 = arith.addf %2, %4 : vector<2x1024xf32>
    %cst_5 = arith.constant 0.000000e+00 : f32
    %6 = vector.broadcast %cst_5 : f32 to vector<2x1024xf32>
    %7 = arith.maximumf %5, %6 : vector<2x1024xf32>
    %8 = arith.truncf %7 : vector<2x1024xf32> to vector<2x1024xbf16>
    %c0_6 = arith.constant 0 : index
    %c0_7 = arith.constant 0 : index
    %9 = vector.load %arg3[%c0_6, %c0_7] : memref<1024x1024xbf16, #tpu.memory_space<vmem>>, vector<1024x1024xbf16>
    %cst_8 = arith.constant dense<0.000000e+00> : vector<2x1024xf32>
    %10 = tpu.matmul %8, %9, %cst_8 {dimension_numbers = #tpu.dot_dimension_numbers<[1], [0], [0], [1], [0, 0, 1, 1], [], []>} : vector<2x1024xbf16>, vector<1024x1024xbf16>, vector<2x1024xf32> -> vector<2x1024xf32>
    %c0_9 = arith.constant 0 : index
    %c0_10 = arith.constant 0 : index
    %11 = vector.load %arg4[%c0_9, %c0_10] : memref<1x1024xf32, #tpu.memory_space<vmem>>, vector<1x1024xf32>
    %12 = vector.broadcast %11 : vector<1x1024xf32> to vector<2x1024xf32>
    %13 = arith.addf %10, %12 : vector<2x1024xf32>
    %cst_11 = arith.constant 0.000000e+00 : f32
    %14 = vector.broadcast %cst_11 : f32 to vector<2x1024xf32>
    %15 = arith.maximumf %13, %14 : vector<2x1024xf32>
    %16 = arith.truncf %15 : vector<2x1024xf32> to vector<2x1024xbf16>
    %c0_12 = arith.constant 0 : index
    %c0_13 = arith.constant 0 : index
    %17 = vector.load %arg5[%c0_12, %c0_13] : memref<1024x512xbf16, #tpu.memory_space<vmem>>, vector<1024x512xbf16>
    %cst_14 = arith.constant dense<0.000000e+00> : vector<2x512xf32>
    %18 = tpu.matmul %16, %17, %cst_14 {dimension_numbers = #tpu.dot_dimension_numbers<[1], [0], [0], [1], [0, 0, 1, 1], [], []>} : vector<2x1024xbf16>, vector<1024x512xbf16>, vector<2x512xf32> -> vector<2x512xf32>
    %c0_15 = arith.constant 0 : index
    %c0_16 = arith.constant 0 : index
    %19 = vector.load %arg6[%c0_15, %c0_16] : memref<1x512xf32, #tpu.memory_space<vmem>>, vector<1x512xf32>
    %20 = vector.broadcast %19 : vector<1x512xf32> to vector<2x512xf32>
    %21 = arith.addf %18, %20 : vector<2x512xf32>
    %cst_17 = arith.constant 0.000000e+00 : f32
    %22 = vector.broadcast %cst_17 : f32 to vector<2x512xf32>
    %23 = arith.maximumf %21, %22 : vector<2x512xf32>
    %24 = arith.truncf %23 : vector<2x512xf32> to vector<2x512xbf16>
    %c0_18 = arith.constant 0 : index
    %c0_19 = arith.constant 0 : index
    %25 = vector.load %arg7[%c0_18, %c0_19] : memref<512x256xbf16, #tpu.memory_space<vmem>>, vector<512x256xbf16>
    %cst_20 = arith.constant dense<0.000000e+00> : vector<2x256xf32>
    %26 = tpu.matmul %24, %25, %cst_20 {dimension_numbers = #tpu.dot_dimension_numbers<[1], [0], [0], [1], [0, 0, 1, 1], [], []>} : vector<2x512xbf16>, vector<512x256xbf16>, vector<2x256xf32> -> vector<2x256xf32>
    %c0_21 = arith.constant 0 : index
    %c0_22 = arith.constant 0 : index
    %27 = vector.load %arg8[%c0_21, %c0_22] : memref<1x256xf32, #tpu.memory_space<vmem>>, vector<1x256xf32>
    %28 = vector.broadcast %27 : vector<1x256xf32> to vector<2x256xf32>
    %29 = arith.addf %26, %28 : vector<2x256xf32>
    %cst_23 = arith.constant 0.000000e+00 : f32
    %30 = vector.broadcast %cst_23 : f32 to vector<2x256xf32>
    %31 = arith.maximumf %29, %30 : vector<2x256xf32>
    %c0_24 = arith.constant 0 : index
    %c0_25 = arith.constant 0 : index
    %32 = vector.load %arg9[%c0_24, %c0_25] : memref<2x256xf32, #tpu.memory_space<vmem>>, vector<2x256xf32>
    tpu.vector_store %arg9[%c0_24, %c0_25], %31 {strides = array<i32>} : memref<2x256xf32, #tpu.memory_space<vmem>>, vector<2x256xf32>,
    return
  }
}

</mosaic_0001>

<bundles_post_ra>
// kernel: shared_forward.4
= control target key start
LH: loop header
LB: loop body
LE: loop exit
PB: predicated region body
PF: predicated region fallthrough
CT: control target
= control target key end

     0   :  { %vm732_vm0 = vcmask 392192   ;;  %vm2384_vm1 = vcmask 519168   ;;  %s4740_s1 = inlined_call_operand.vmem [shape: bf16[48,64], index: 1, kind: input, shape index: {}]   ;;  %s4741_s0 = inlined_call_operand.vmem [shape: bf16[1568,48], index: 0, kind: input, shape index: {}]   ;;  %s4742_s2 = inlined_call_operand.vmem [shape: f32[1,64], index: 2, kind: input, shape index: {}]   ;;  %s4743_s3 = inlined_call_operand.vmem [shape: bf16[392,64], index: 3, kind: output, shape index: {}]  }
   0x1   :  { %v3045_v0 = vld [vmem:[%s4740_s1] sm:$0xff]   ;;  %v3046_v1 = vld [vmem:[%s4740_s1 + $0x8] sm:$0xff]   ;;  %v3047_v2 = vld [vmem:[%s4740_s1 + $0x10] sm:$0xff]  }
   0x2   :  { %2837 = vmatprep.subr.bf16.mxu0 %v3045_v0  ;;  %3039 = vmatprep.subr.bf16.mxu1 %v3045_v0  ;;  %v3048_v3 = vld [vmem:[%s4741_s0] sm:$0xff]   ;;  %v3049_v4 = vld [vmem:[%s4741_s0 + $0x190] sm:$0xff]   ;;  %v3050_v5 = vld [vmem:[%s4741_s0 + $0x8] sm:$0xff]  }
   0x3   :  { %2838 = vmatpush3.bf16.msra.mxu0 %v3045_v0  ;;  %3042 = vmatpush3.bf16.msra.mxu1 %v3045_v0  ;;  %v3051_v6 = vld [vmem:[%s4741_s0 + $0x198] sm:$0xff]   ;;  %v3052_v7 = vld [vmem:[%s4741_s0 + $0x10] sm:$0xff]   ;;  %v3053_v8 = vld [vmem:[%s4741_s0 + $0x1a0] sm:$0xff]  }
   0x4   :  { %2839 = vmatprep.subr.bf16.mxu0 %v3046_v1  ;;  %3040 = vmatprep.subr.bf16.mxu1 %v3046_v1  ;;  %v3054_v9 = vld [vmem:[%s4741_s0 + $0x18] sm:$0xff]   ;;  %v3055_v10 = vld [vmem:[%s4741_s0 + $0x1a8] sm:$0xff]   ;;  %v3056_v11 = vld [vmem:[%s4741_s0 + $0x20] sm:$0xff]  }
   0x5   :  { %2843 = vmatprep.mubr.msk.bf16.mxu0 %vm732_vm0, %v3048_v3  ;;  %2943 = vmatprep.mubr.msk.bf16.mxu1 %vm732_vm0, %v3049_v4  ;;  %v3057_v12 = vld [vmem:[%s4741_s0 + $0x1b0] sm:$0xff]   ;;  %v3058_v13 = vld [vmem:[%s4741_s0 + $0x28] sm:$0xff]   ;;  %v3059_v14 = vld [vmem:[%s4741_s0 + $0x1b8] sm:$0xff]  }
   0x6   :  { %v3060_v15 = vld [vmem:[%s4741_s0 + $0x30] sm:$0xff]   ;;  %v3061_v16 = vld [vmem:[%s4741_s0 + $0x1c0] sm:$0xff]   ;;  %v3062_v17 = vld [vmem:[%s4741_s0 + $0x38] sm:$0xff]  }
   0x7   :  { %2840 = vmatpush3.bf16.msra.mxu0 %v3046_v1  ;;  %3043 = vmatpush3.bf16.msra.mxu1 %v3046_v1  ;;  %v3063_v18 = vld [vmem:[%s4741_s0 + $0x1c8] sm:$0xff]   ;;  %v3064_v19 = vld [vmem:[%s4741_s0 + $0x40] sm:$0xff]   ;;  %v3065_v20 = vld [vmem:[%s4741_s0 + $0x1d0] sm:$0xff]  }
   0x8   :  { %2841 = vmatprep.subr.bf16.mxu0 %v3047_v2  ;;  %3041 = vmatprep.subr.bf16.mxu1 %v3047_v2  ;;  %v3066_v21 = vld [vmem:[%s4741_s0 + $0x48] sm:$0xff]   ;;  %v3067_v22 = vld [vmem:[%s4741_s0 + $0x1d8] sm:$0xff]   ;;  %v3068_v23 = vld [vmem:[%s4741_s0 + $0x50] sm:$0xff]  }
   0x9   :  { %v3069_v24 = vld [vmem:[%s4741_s0 + $0x1e0] sm:$0xff]   ;;  %v3070_v25 = vld [vmem:[%s4741_s0 + $0x58] sm:$0xff]   ;;  %v3071_v26 = vld [vmem:[%s4741_s0 + $0x1e8] sm:$0xff]  }
   0xa   :  { %v3072_v27 = vld [vmem:[%s4741_s0 + $0x60] sm:$0xff]   ;;  %v3073_v28 = vld [vmem:[%s4741_s0 + $0x1f0] sm:$0xff]   ;;  %v3074_v29 = vld [vmem:[%s4741_s0 + $0x68] sm:$0xff]  }
   0xb   :  { %2842 = vmatpush3.bf16.msra.mxu0 %v3047_v2  ;;  %3044 = vmatpush3.bf16.msra.mxu1 %v3047_v2  ;;  %v3075_v30 = vld [vmem:[%s4741_s0 + $0x1f8] sm:$0xff]   ;;  %v3076_v31 = vld [vmem:[%s4741_s0 + $0x70] sm:$0xff]   ;;  %v3077_v32 = vld [vmem:[%s4741_s0 + $0x200] sm:$0xff]  }
   0xc   :  { %v3078_v33 = vld [vmem:[%s4741_s0 + $0x78] sm:$0xff]   ;;  %v3079_v34 = vld [vmem:[%s4741_s0 + $0x208] sm:$0xff]   ;;  %v3080_v35 = vld [vmem:[%s4741_s0 + $0x80] sm:$0xff]  }
   0xd   :  { %v3081_v36 = vld [vmem:[%s4741_s0 + $0x210] sm:$0xff]   ;;  %v3082_v37 = vld [vmem:[%s4741_s0 + $0x88] sm:$0xff]   ;;  %v3083_v38 = vld [vmem:[%s4741_s0 + $0x218] sm:$0xff]  }
   0xe   :  { %2844 = vmatmul.mubr.msk.bf16.vlgmr.msra.gmra.mrb[0].mxu0 %vm732_vm0, %v3050_v5  ;;  %2944 = vmatmul.mubr.msk.bf16.vlgmr.msra.gmra.mrb[0].mxu1 %vm732_vm0, %v3051_v6  ;;  %v3084_v39 = vld [vmem:[%s4741_s0 + $0x90] sm:$0xff]   ;;  %v3085_v40 = vld [vmem:[%s4741_s0 + $0x220] sm:$0xff]   ;;  %v3086_v41 = vld [vmem:[%s4741_s0 + $0x98] sm:$0xff]  }
   0xf   :  { %2847 = vmatprep.mubr.msk.bf16.mxu0 %vm732_vm0, %v3052_v7  ;;  %2947 = vmatprep.mubr.msk.bf16.mxu1 %vm732_vm0, %v3053_v8  ;;  %v3087_v42 = vld [vmem:[%s4741_s0 + $0x228] sm:$0xff]   ;;  %v3088_v43 = vld [vmem:[%s4741_s0 + $0xa0] sm:$0xff]   ;;  %v3089_v44 = vld [vmem:[%s4741_s0 + $0x230] sm:$0xff]  }
  0x10   :  { %v3090_v45 = vld [vmem:[%s4741_s0 + $0xa8] sm:$0xff]   ;;  %v3091_v46 = vld [vmem:[%s4741_s0 + $0x238] sm:$0xff]   ;;  %v3092_v47 = vld [vmem:[%s4741_s0 + $0xb0] sm:$0xff]  }
  0x11   :  { %v3093_v48 = vld [vmem:[%s4741_s0 + $0x240] sm:$0xff]   ;;  %v3094_v49 = vld [vmem:[%s4741_s0 + $0xb8] sm:$0xff]   ;;  %v3095_v50 = vld [vmem:[%s4741_s0 + $0x248] sm:$0xff]  }
  0x12   :  { %v3096_v51 = vld [vmem:[%s4741_s0 + $0xc0] sm:$0xff]   ;;  %v3097_v52 = vld [vmem:[%s4741_s0 + $0x250] sm:$0xff]   ;;  %v3098_v53 = vld [vmem:[%s4741_s0 + $0xc8] sm:$0xff]  }
  0x13   :  { %v3099_v54 = vld [vmem:[%s4741_s0 + $0x258] sm:$0xff]   ;;  %v3100_v55 = vld [vmem:[%s4741_s0 + $0xd0] sm:$0xff]   ;;  %v3101_v56 = vld [vmem:[%s4741_s0 + $0x260] sm:$0xff]  }
  0x14   :  { %v3102_v57 = vld [vmem:[%s4741_s0 + $0xd8] sm:$0xff]   ;;  %v3103_v58 = vld [vmem:[%s4741_s0 + $0x268] sm:$0xff]   ;;  %v3104_v59 = vld [vmem:[%s4741_s0 + $0xe0] sm:$0xff]  }
  0x15   :  { %v3105_v60 = vld [vmem:[%s4741_s0 + $0x270] sm:$0xff]   ;;  %v3106_v61 = vld [vmem:[%s4741_s0 + $0xe8] sm:$0xff]   ;;  %v3107_v62 = vld [vmem:[%s4741_s0 + $0x278] sm:$0xff]  }
  0x16   :  { %2848 = vmatmul.mubr.msk.bf16.gmra.mrb[4].mxu0 %vm732_vm0, %v3054_v9  ;;  %2948 = vmatmul.mubr.msk.bf16.gmra.mrb[4].mxu1 %vm732_vm0, %v3055_v10  ;;  %v3108_v63 = vld [vmem:[%s4741_s0 + $0xf0] sm:$0xff]   ;;  %v3109_v0 = vld [vmem:[%s4741_s0 + $0x280] sm:$0xff]   ;;  %v3110_v1 = vld [vmem:[%s4741_s0 + $0xf8] sm:$0xff]  }
  0x17   :  { %2851 = vmatprep.mubr.msk.bf16.mxu0 %vm732_vm0, %v3056_v11  ;;  %2951 = vmatprep.mubr.msk.bf16.mxu1 %vm732_vm0, %v3057_v12  ;;  %v3111_v2 = vld [vmem:[%s4741_s0 + $0x288] sm:$0xff]   ;;  %v3112_v3 = vld [vmem:[%s4741_s0 + $0x100] sm:$0xff]   ;;  %v3113_v4 = vld [vmem:[%s4741_s0 + $0x290] sm:$0xff]  }
  0x18   :  { %v3114_v5 = vld [vmem:[%s4741_s0 + $0x108] sm:$0xff]   ;;  %v3115_v6 = vld [vmem:[%s4741_s0 + $0x298] sm:$0xff]   ;;  %v3116_v7 = vld [vmem:[%s4741_s0 + $0x110] sm:$0xff]  }
  0x19   :  { %v3117_v8 = vld [vmem:[%s4741_s0 + $0x2a0] sm:$0xff]   ;;  %v3118_v9 = vld [vmem:[%s4741_s0 + $0x118] sm:$0xff]   ;;  %v3119_v10 = vld [vmem:[%s4741_s0 + $0x2a8] sm:$0xff]  }
  0x1a   :  { %v3120_v11 = vld [vmem:[%s4741_s0 + $0x120] sm:$0xff]   ;;  %v3121_v12 = vld [vmem:[%s4741_s0 + $0x2b0] sm:$0xff]  }
  0x1e   :  { %2852 = vmatmul.mubr.msk.bf16.gmra.mrb[8].mxu0 %vm732_vm0, %v3058_v13  ;;  %2952 = vmatmul.mubr.msk.bf16.gmra.mrb[8].mxu1 %vm732_vm0, %v3059_v14  ;;  %v3122_v13 = vld [vmem:[%s4741_s0 + $0x128] sm:$0xff]   ;;  %v3123_v14 = vld [vmem:[%s4741_s0 + $0x2b8] sm:$0xff]  }
  0x1f   :  { %2855 = vmatprep.mubr.msk.bf16.mxu0 %vm732_vm0, %v3060_v15  ;;  %2955 = vmatprep.mubr.msk.bf16.mxu1 %vm732_vm0, %v3061_v16  ;;  %v3124_v15 = vld [vmem:[%s4741_s0 + $0x130] sm:$0xff]   ;;  %v3125_v16 = vld [vmem:[%s4741_s0 + $0x2c0] sm:$0xff]  }
  0x26   :  { %2856 = vmatmul.mubr.msk.bf16.gmra.mrb[12].mxu0 %vm732_vm0, %v3062_v17  ;;  %2956 = vmatmul.mubr.msk.bf16.gmra.mrb[12].mxu1 %vm732_vm0, %v3063_v18  ;;  %v3126_v17 = vld [vmem:[%s4741_s0 + $0x138] sm:$0xff]   ;;  %v3127_v18 = vld [vmem:[%s4741_s0 + $0x2c8] sm:$0xff]  }
  0x27   :  { %2859 = vmatprep.mubr.msk.bf16.mxu0 %vm732_vm0, %v3064_v19  ;;  %2959 = vmatprep.mubr.msk.bf16.mxu1 %vm732_vm0, %v3065_v20  ;;  %v3128_v19 = vld [vmem:[%s4741_s0 + $0x140] sm:$0xff]   ;;  %v3129_v20 = vld [vmem:[%s4741_s0 + $0x2d0] sm:$0xff]  }
  0x2e   :  { %2860 = vmatmul.mubr.msk.bf16.gmra.mrb[16].mxu0 %vm732_vm0, %v3066_v21  ;;  %2960 = vmatmul.mubr.msk.bf16.gmra.mrb[16].mxu1 %vm732_vm0, %v3067_v22  ;;  %v3130_v21 = vld [vmem:[%s4741_s0 + $0x148] sm:$0xff]   ;;  %v3131_v22 = vld [vmem:[%s4741_s0 + $0x2d8] sm:$0xff]  }
  0x2f   :  { %2863 = vmatprep.mubr.msk.bf16.mxu0 %vm732_vm0, %v3068_v23  ;;  %2963 = vmatprep.mubr.msk.bf16.mxu1 %vm732_vm0, %v3069_v24  ;;  %v3132_v23 = vld [vmem:[%s4741_s0 + $0x150] sm:$0xff]   ;;  %v3133_v24 = vld [vmem:[%s4741_s0 + $0x2e0] sm:$0xff]  }
  0x36   :  { %2864 = vmatmul.mubr.msk.bf16.gmra.mrb[20].mxu0 %vm732_vm0, %v3070_v25  ;;  %2964 = vmatmul.mubr.msk.bf16.gmra.mrb[20].mxu1 %vm732_vm0, %v3071_v26  ;;  %v3134_v25 = vld [vmem:[%s4741_s0 + $0x158] sm:$0xff]   ;;  %v3135_v26 = vld [vmem:[%s4741_s0 + $0x2e8] sm:$0xff]  }
  0x37   :  { %2867 = vmatprep.mubr.msk.bf16.mxu0 %vm732_vm0, %v3072_v27  ;;  %2967 = vmatprep.mubr.msk.bf16.mxu1 %vm732_vm0, %v3073_v28  ;;  %v3136_v27 = vld [vmem:[%s4741_s0 + $0x160] sm:$0xff]   ;;  %v3137_v28 = vld [vmem:[%s4741_s0 + $0x2f0] sm:$0xff]  }
  0x3e   :  { %2868 = vmatmul.mubr.msk.bf16.gmra.mrb[24].mxu0 %vm732_vm0, %v3074_v29  ;;  %2968 = vmatmul.mubr.msk.bf16.gmra.mrb[24].mxu1 %vm732_vm0, %v3075_v30  ;;  %v3138_v29 = vld [vmem:[%s4741_s0 + $0x168] sm:$0xff]   ;;  %v3139_v30 = vld [vmem:[%s4741_s0 + $0x2f8] sm:$0xff]  }
  0x3f   :  { %2871 = vmatprep.mubr.msk.bf16.mxu0 %vm732_vm0, %v3076_v31  ;;  %2971 = vmatprep.mubr.msk.bf16.mxu1 %vm732_vm0, %v3077_v32  ;;  %v3140_v31 = vld [vmem:[%s4741_s0 + $0x170] sm:$0xff]   ;;  %v3141_v32 = vld [vmem:[%s4741_s0 + $0x300] sm:$0xff]  }
  0x46   :  { %2872 = vmatmul.mubr.msk.bf16.gmra.mrb[28].mxu0 %vm732_vm0, %v3078_v33  ;;  %2972 = vmatmul.mubr.msk.bf16.gmra.mrb[28].mxu1 %vm732_vm0, %v3079_v34  ;;  %v3142_v33 = vld [vmem:[%s4741_s0 + $0x178] sm:$0xff]   ;;  %v3143_v34 = vld [vmem:[%s4741_s0 + $0x308] sm:$0xff]  }
  0x47   :  { %2875 = vmatprep.mubr.msk.bf16.mxu0 %vm732_vm0, %v3080_v35  ;;  %2975 = vmatprep.mubr.msk.bf16.mxu1 %vm732_vm0, %v3081_v36  ;;  %v3144_v35 = vld [vmem:[%s4741_s0 + $0x180] sm:$0xff]   ;;  %v3145_v36 = vld [vmem:[%s4741_s0 + $0x188] sm:$0xff]  }
  0x4e   :  { %2876 = vmatmul.mubr.msk.bf16.gmra.mrb[32].mxu0 %vm732_vm0, %v3082_v37  ;;  %2976 = vmatmul.mubr.msk.bf16.gmra.mrb[32].mxu1 %vm732_vm0, %v3083_v38 }
  0x4f   :  { %2879 = vmatprep.mubr.msk.bf16.mxu0 %vm732_vm0, %v3084_v39  ;;  %2979 = vmatprep.mubr.msk.bf16.mxu1 %vm732_vm0, %v3085_v40 }
  0x56   :  { %2880 = vmatmul.mubr.msk.bf16.gmra.mrb[36].mxu0 %vm732_vm0, %v3086_v41  ;;  %2980 = vmatmul.mubr.msk.bf16.gmra.mrb[36].mxu1 %vm732_vm0, %v3087_v42 }
  0x57   :  { %2883 = vmatprep.mubr.msk.bf16.mxu0 %vm732_vm0, %v3088_v43  ;;  %2983 = vmatprep.mubr.msk.bf16.mxu1 %vm732_vm0, %v3089_v44 }
  0x5e   :  { %2884 = vmatmul.mubr.msk.bf16.gmra.mrb[40].mxu0 %vm732_vm0, %v3090_v45  ;;  %2984 = vmatmul.mubr.msk.bf16.gmra.mrb[40].mxu1 %vm732_vm0, %v3091_v46 }
  0x5f   :  { %2887 = vmatprep.mubr.msk.bf16.mxu0 %vm732_vm0, %v3092_v47  ;;  %2987 = vmatprep.mubr.msk.bf16.mxu1 %vm732_vm0, %v3093_v48 }
  0x66   :  { %2888 = vmatmul.mubr.msk.bf16.gmra.mrb[44].mxu0 %vm732_vm0, %v3094_v49  ;;  %2988 = vmatmul.mubr.msk.bf16.gmra.mrb[44].mxu1 %vm732_vm0, %v3095_v50 }
  0x67   :  { %2891 = vmatprep.mubr.msk.bf16.mxu0 %vm732_vm0, %v3096_v51  ;;  %2991 = vmatprep.mubr.msk.bf16.mxu1 %vm732_vm0, %v3097_v52 }
  0x6e   :  { %2892 = vmatmul.mubr.msk.bf16.gmra.mrb[48].mxu0 %vm732_vm0, %v3098_v53  ;;  %2992 = vmatmul.mubr.msk.bf16.gmra.mrb[48].mxu1 %vm732_vm0, %v3099_v54 }
  0x6f   :  { %2895 = vmatprep.mubr.msk.bf16.mxu0 %vm732_vm0, %v3100_v55  ;;  %2995 = vmatprep.mubr.msk.bf16.mxu1 %vm732_vm0, %v3101_v56 }
  0x76   :  { %2896 = vmatmul.mubr.msk.bf16.gmra.mrb[52].mxu0 %vm732_vm0, %v3102_v57  ;;  %2996 = vmatmul.mubr.msk.bf16.gmra.mrb[52].mxu1 %vm732_vm0, %v3103_v58 }
  0x77   :  { %2899 = vmatprep.mubr.msk.bf16.mxu0 %vm732_vm0, %v3104_v59  ;;  %2999 = vmatprep.mubr.msk.bf16.mxu1 %vm732_vm0, %v3105_v60 }
  0x7e   :  { %2900 = vmatmul.mubr.msk.bf16.gmra.mrb[56].mxu0 %vm732_vm0, %v3106_v61  ;;  %3000 = vmatmul.mubr.msk.bf16.gmra.mrb[56].mxu1 %vm732_vm0, %v3107_v62 }
  0x7f   :  { %2903 = vmatprep.mubr.msk.bf16.mxu0 %vm732_vm0, %v3108_v63  ;;  %3003 = vmatprep.mubr.msk.bf16.mxu1 %vm732_vm0, %v3109_v0 }
  0x86   :  { %2904 = vmatmul.mubr.msk.bf16.gmra.mrb[60].mxu0 %vm732_vm0, %v3110_v1  ;;  %3004 = vmatmul.mubr.msk.bf16.gmra.mrb[60].mxu1 %vm732_vm0, %v3111_v2 }
  0x87   :  { %2907 = vmatprep.mubr.msk.bf16.mxu0 %vm732_vm0, %v3112_v3  ;;  %3007 = vmatprep.mubr.msk.bf16.mxu1 %vm732_vm0, %v3113_v4 }
  0x8e   :  { %2908 = vmatmul.mubr.msk.bf16.gmra.mrb[64].mxu0 %vm732_vm0, %v3114_v5  ;;  %3008 = vmatmul.mubr.msk.bf16.gmra.mrb[64].mxu1 %vm732_vm0, %v3115_v6 }
  0x8f   :  { %2911 = vmatprep.mubr.msk.bf16.mxu0 %vm732_vm0, %v3116_v7  ;;  %3011 = vmatprep.mubr.msk.bf16.mxu1 %vm732_vm0, %v3117_v8 }
  0x96   :  { %2912 = vmatmul.mubr.msk.bf16.gmra.mrb[68].mxu0 %vm732_vm0, %v3118_v9  ;;  %3012 = vmatmul.mubr.msk.bf16.gmra.mrb[68].mxu1 %vm732_vm0, %v3119_v10 }
  0x97   :  { %2915 = vmatprep.mubr.msk.bf16.mxu0 %vm732_vm0, %v3120_v11  ;;  %3015 = vmatprep.mubr.msk.bf16.mxu1 %vm732_vm0, %v3121_v12 }
  0x9e   :  { %2916 = vmatmul.mubr.msk.bf16.gmra.mrb[72].mxu0 %vm732_vm0, %v3122_v13  ;;  %3016 = vmatmul.mubr.msk.bf16.gmra.mrb[72].mxu1 %vm732_vm0, %v3123_v14 }
  0x9f   :  { %2919 = vmatprep.mubr.msk.bf16.mxu0 %vm732_vm0, %v3124_v15  ;;  %3019 = vmatprep.mubr.msk.bf16.mxu1 %vm732_vm0, %v3125_v16 }
  0xa6   :  { %2920 = vmatmul.mubr.msk.bf16.gmra.mrb[76].mxu0 %vm732_vm0, %v3126_v17  ;;  %3020 = vmatmul.mubr.msk.bf16.gmra.mrb[76].mxu1 %vm732_vm0, %v3127_v18 }
  0xa7   :  { %2923 = vmatprep.mubr.msk.bf16.mxu0 %vm732_vm0, %v3128_v19  ;;  %3023 = vmatprep.mubr.msk.bf16.mxu1 %vm732_vm0, %v3129_v20 }
  0xae   :  { %2924 = vmatmul.mubr.msk.bf16.gmra.mrb[80].mxu0 %vm732_vm0, %v3130_v21  ;;  %3024 = vmatmul.mubr.msk.bf16.gmra.mrb[80].mxu1 %vm732_vm0, %v3131_v22 }
  0xaf   :  { %2927 = vmatprep.mubr.msk.bf16.mxu0 %vm732_vm0, %v3132_v23  ;;  %3027 = vmatprep.mubr.msk.bf16.mxu1 %vm732_vm0, %v3133_v24  ;;  %v3657_v23 = vld [vmem:[%s4742_s2] ss:$0 sm:$0xff] }
  0xb6   :  { %2928 = vmatmul.mubr.msk.bf16.gmra.mrb[84].mxu0 %vm732_vm0, %v3134_v25  ;;  %3028 = vmatmul.mubr.msk.bf16.gmra.mrb[84].mxu1 %vm732_vm0, %v3135_v26 }
  0xb7   :  { %2931 = vmatprep.mubr.msk.bf16.mxu0 %vm732_vm0, %v3136_v27  ;;  %3031 = vmatprep.mubr.msk.bf16.mxu1 %vm732_vm0, %v3137_v28 }
  0xbe   :  { %2932 = vmatmul.mubr.msk.bf16.gmra.mrb[88].mxu0 %vm732_vm0, %v3138_v29  ;;  %3032 = vmatmul.mubr.msk.bf16.gmra.mrb[88].mxu1 %vm732_vm0, %v3139_v30 }
  0xbf   :  { %2935 = vmatprep.mubr.msk.bf16.mxu0 %vm732_vm0, %v3140_v31  ;;  %3035 = vmatprep.mubr.msk.bf16.mxu1 %vm732_vm0, %v3141_v32 }
  0xc6   :  { %2936 = vmatmul.mubr.msk.bf16.gmra.mrb[92].mxu0 %vm732_vm0, %v3142_v33  ;;  %3036 = vmatmul.mubr.msk.bf16.gmra.mrb[92].mxu1 %vm732_vm0, %v3143_v34 }
  0xc7   :  { %2939 = vmatprep.mubr.msk.bf16.mxu0 %vm732_vm0, %v3144_v35 }
  0xce   :  { %2940 = vmatmul.mubr.msk.bf16.gmra.mrb[96].mxu0 %vm732_vm0, %v3145_v36 }
  0xe1   :  { %v2845_v37 = vpop.f32.mrb[0].mxu0  ;;  %v2945_v38 = vpop.f32.mrb[0].mxu1 }
  0xe2   :  { %v1061_v39 = vpop.f32.mrb[1].mxu0  ;;  %v1461_v40 = vpop.f32.mrb[1].mxu1  ;;  %v3672_v30 = vadd.f32 %v2845_v37, %v3657_v23  ;;  %v3675_v31 = vadd.f32 %v2945_v38, %v3657_v23 }
  0xe3   :  { %v2846_v41 = vpop.f32.mrb[2].mxu0  ;;  %v2946_v42 = vpop.f32.mrb[2].mxu1  ;;  %v3678_v32 = vadd.f32 %v3657_v23, %v1061_v39  ;;  %v3684_v34 = vadd.f32 %v3657_v23, %v1461_v40 }
  0xe4   :  { %v3568_v43 = vpop.f32.mrb[3].mxu0  ;;  %v3570_v44 = vpop.f32.mrb[3].mxu1  ;;  %4802 = vst [vmem:[#allocation3_spill] sm:$0xff] %v3672_v30  ;;  %4803 = vst [vmem:[#allocation4_spill] sm:$0xff] %v3675_v31  ;;  %v3681_v33 = vadd.f32 %v2846_v41, %v3657_v23  ;;  %v3687_v35 = vadd.f32 %v2946_v42, %v3657_v23 }
  0xe5   :  { %4804 = vst [vmem:[#allocation5_spill] sm:$0xff] %v3678_v32  ;;  %4806 = vst [vmem:[#allocation7_spill] sm:$0xff] %v3684_v34  ;;  %v3698_v41 = vadd.f32 %v3657_v23, %v3568_v43  ;;  %v3705_v42 = vadd.f32 %v3657_v23, %v3570_v44 }
  0xe6   :  { %4805 = vst [vmem:[#allocation6_spill] sm:$0xff] %v3681_v33  ;;  %4807 = vst [vmem:[#allocation8_spill] sm:$0xff] %v3687_v35 }
  0xe7   :  { %4809 = vst [vmem:[#allocation10_spill] sm:$0xff] %v3705_v42 }
  0xe9   :  { %v2849_v45 = vpop.f32.mrb[4].mxu0  ;;  %v3572_v46 = vpop.f32.mrb[4].mxu1 }
  0xea   :  { %v3574_v47 = vpop.f32.mrb[5].mxu0  ;;  %v3576_v48 = vpop.f32.mrb[5].mxu1  ;;  %v3701_v40 = vadd.f32 %v2849_v45, %v3657_v23  ;;  %v3716_v43 = vadd.f32 %v3572_v46, %v3657_v23 }
  0xeb   :  { %v3578_v49 = vpop.f32.mrb[6].mxu0  ;;  %v3580_v50 = vpop.f32.mrb[6].mxu1  ;;  %v3724_v44 = vadd.f32 %v3657_v23, %v3574_v47  ;;  %v3732_v31 = vadd.f32 %v3657_v23, %v3576_v48 }
  0xec   :  { %v3582_v51 = vpop.f32.mrb[7].mxu0  ;;  %v3584_v52 = vpop.f32.mrb[7].mxu1  ;;  %4808 = vst [vmem:[#allocation9_spill] sm:$0xff] %v3701_v40  ;;  %4811 = vst [vmem:[#allocation12_spill] sm:$0xff] %v3716_v43  ;;  %v3736_v46 = vadd.f32 %v3580_v50, %v3657_v23 }
  0xed   :  { %v3744_v47 = vadd.f32 %v3657_v23, %v3582_v51  ;;  %v3752_v48 = vadd.f32 %v3657_v23, %v3584_v52 }
  0xf1   :  { %v3586_v53 = vpop.f32.mrb[8].mxu0  ;;  %v3588_v54 = vpop.f32.mrb[8].mxu1 }
  0xf2   :  { %v3590_v55 = vpop.f32.mrb[9].mxu0  ;;  %v3592_v56 = vpop.f32.mrb[9].mxu1  ;;  %v3756_v50 = vadd.f32 %v3588_v54, %v3657_v23 }
  0xf3   :  { %v3594_v57 = vpop.f32.mrb[10].mxu0  ;;  %v3596_v58 = vpop.f32.mrb[10].mxu1  ;;  %v3763_v51 = vadd.f32 %v3657_v23, %v3590_v55  ;;  %v3772_v54 = vadd.f32 %v3657_v23, %v3592_v56 }
  0xf4   :  { %v3598_v59 = vpop.f32.mrb[11].mxu0  ;;  %v3600_v60 = vpop.f32.mrb[11].mxu1  ;;  %4813 = vst [vmem:[#allocation14_spill] sm:$0xff] %v3756_v50  ;;  %v3768_v52 = vadd.f32 %v3594_v57, %v3657_v23  ;;  %v3776_v35 = vadd.f32 %v3596_v58, %v3657_v23 }
  0xf5   :  { %4814 = vst [vmem:[#allocation15_spill] sm:$0xff] %v3763_v51  ;;  %4816 = vst [vmem:[#allocation17_spill] sm:$0xff] %v3772_v54  ;;  %v3793_v34 = vadd.f32 %v3657_v23, %v3598_v59  ;;  %v3801_v57 = vadd.f32 %v3657_v23, %v3600_v60 }
  0xf6   :  { %4815 = vst [vmem:[#allocation16_spill] sm:$0xff] %v3768_v52  ;;  %4817 = vst [vmem:[#allocation18_spill] sm:$0xff] %v3776_v35 }
  0xf9   :  { %v3602_v61 = vpop.f32.mrb[12].mxu0  ;;  %v3604_v62 = vpop.f32.mrb[12].mxu1 }
  0xfa   :  { %v3606_v63 = vpop.f32.mrb[13].mxu0  ;;  %v3608_v0 = vpop.f32.mrb[13].mxu1  ;;  %v3812_v59 = vadd.f32 %v3604_v62, %v3657_v23 }
  0xfb   :  { %v3610_v1 = vpop.f32.mrb[14].mxu0  ;;  %v3612_v2 = vpop.f32.mrb[14].mxu1  ;;  %v3820_v60 = vadd.f32 %v3657_v23, %v3606_v63  ;;  %v3828_v40 = vadd.f32 %v3657_v23, %v3608_v0 }
  0xfc   :  { %v3614_v3 = vpop.f32.mrb[15].mxu0  ;;  %v3616_v4 = vpop.f32.mrb[15].mxu1  ;;  %4819 = vst [vmem:[#allocation20_spill] sm:$0xff] %v3812_v59  ;;  %v3824_v50 = vadd.f32 %v3610_v1, %v3657_v23  ;;  %v3832_v62 = vadd.f32 %v3612_v2, %v3657_v23 }
  0xfd   :  { %v3840_v63 = vadd.f32 %v3657_v23, %v3614_v3  ;;  %v3848_v0 = vadd.f32 %v3657_v23, %v3616_v4 }
  0xfe   :  { %4820 = vst [vmem:[#allocation21_spill] sm:$0xff] %v3832_v62 }
 0x101   :  { %v3618_v5 = vpop.f32.mrb[16].mxu0  ;;  %v3620_v6 = vpop.f32.mrb[16].mxu1 }
 0x102   :  { %v3622_v7 = vpop.f32.mrb[17].mxu0  ;;  %v3624_v8 = vpop.f32.mrb[17].mxu1  ;;  %v3844_v1 = vadd.f32 %v3618_v5, %v3657_v23  ;;  %v3852_v2 = vadd.f32 %v3620_v6, %v3657_v23 }
 0x103   :  { %v3626_v9 = vpop.f32.mrb[18].mxu0  ;;  %v3628_v10 = vpop.f32.mrb[18].mxu1  ;;  %v3859_v3 = vadd.f32 %v3657_v23, %v3622_v7  ;;  %v3868_v6 = vadd.f32 %v3657_v23, %v3624_v8 }
 0x104   :  { %v3630_v11 = vpop.f32.mrb[19].mxu0  ;;  %v3632_v12 = vpop.f32.mrb[19].mxu1  ;;  %4821 = vst [vmem:[#allocation22_spill] sm:$0xff] %v3844_v1  ;;  %4822 = vst [vmem:[#allocation23_spill] sm:$0xff] %v3852_v2  ;;  %v3864_v4 = vadd.f32 %v3626_v9, %v3657_v23  ;;  %v3872_v35 = vadd.f32 %v3628_v10, %v3657_v23 }
 0x105   :  { %4823 = vst [vmem:[#allocation24_spill] sm:$0xff] %v3859_v3  ;;  %4825 = vst [vmem:[#allocation26_spill] sm:$0xff] %v3868_v6  ;;  %v3889_v54 = vadd.f32 %v3657_v23, %v3630_v11  ;;  %v3897_v9 = vadd.f32 %v3657_v23, %v3632_v12 }
 0x106   :  { %4824 = vst [vmem:[#allocation25_spill] sm:$0xff] %v3864_v4  ;;  %4826 = vst [vmem:[#allocation27_spill] sm:$0xff] %v3872_v35 }
 0x109   :  { %v3634_v13 = vpop.f32.mrb[20].mxu0  ;;  %v3636_v14 = vpop.f32.mrb[20].mxu1 }
 0x10a   :  { %v3638_v15 = vpop.f32.mrb[21].mxu0  ;;  %v3640_v16 = vpop.f32.mrb[21].mxu1  ;;  %v3893_v5 = vadd.f32 %v3634_v13, %v3657_v23  ;;  %v3908_v11 = vadd.f32 %v3636_v14, %v3657_v23 }
 0x10b   :  { %v3642_v17 = vpop.f32.mrb[22].mxu0  ;;  %v3644_v18 = vpop.f32.mrb[22].mxu1  ;;  %v3916_v12 = vadd.f32 %v3657_v23, %v3638_v15 }
 0x10c   :  { %v3646_v19 = vpop.f32.mrb[23].mxu0  ;;  %v3648_v20 = vpop.f32.mrb[23].mxu1  ;;  %4827 = vst [vmem:[#allocation28_spill] sm:$0xff] %v3893_v5  ;;  %4828 = vst [vmem:[#allocation29_spill] sm:$0xff] %v3908_v11  ;;  %v3920_v2 = vadd.f32 %v3642_v17, %v3657_v23  ;;  %v3928_v14 = vadd.f32 %v3644_v18, %v3657_v23 }
 0x10d   :  { %v3936_v15 = vadd.f32 %v3657_v23, %v3646_v19 }
 0x10e   :  { %4829 = vst [vmem:[#allocation30_spill] sm:$0xff] %v3920_v2  ;;  %4830 = vst [vmem:[#allocation31_spill] sm:$0xff] %v3928_v14 }
 0x111   :  { %v3650_v21 = vpop.f32.mrb[24].mxu0  ;;  %v3652_v22 = vpop.f32.mrb[24].mxu1 }
 0x112   :  { %v3659_v24 = vpop.f32.mrb[25].mxu0  ;;  %v3661_v25 = vpop.f32.mrb[25].mxu1  ;;  %v3940_v17 = vadd.f32 %v3650_v21, %v3657_v23  ;;  %v3948_v18 = vadd.f32 %v3652_v22, %v3657_v23 }
 0x113   :  { %v3663_v26 = vpop.f32.mrb[26].mxu0  ;;  %v3665_v27 = vpop.f32.mrb[26].mxu1  ;;  %v3955_v19 = vadd.f32 %v3657_v23, %v3659_v24  ;;  %v3964_v22 = vadd.f32 %v3657_v23, %v3661_v25 }
 0x114   :  { %v3667_v28 = vpop.f32.mrb[27].mxu0  ;;  %v3669_v29 = vpop.f32.mrb[27].mxu1  ;;  %4831 = vst [vmem:[#allocation32_spill] sm:$0xff] %v3940_v17  ;;  %4832 = vst [vmem:[#allocation33_spill] sm:$0xff] %v3948_v18  ;;  %v3968_v35 = vadd.f32 %v3665_v27, %v3657_v23 }
 0x115   :  { %4801 = vst [vmem:[#allocation2_spill] sm:$0xff] %v3669_v29  ;;  %4833 = vst [vmem:[#allocation34_spill] sm:$0xff] %v3955_v19  ;;  %v3981_v4 = vadd.f32 %v3657_v23, %v3667_v28 }
 0x116   :  { %4835 = vst [vmem:[#allocation36_spill] sm:$0xff] %v3964_v22  ;;  %4836 = vst [vmem:[#allocation37_spill] sm:$0xff] %v3968_v35 }
 0x119   :  { %v3691_v29 = vpop.f32.mrb[28].mxu0  ;;  %v3693_v38 = vpop.f32.mrb[28].mxu1 }
 0x11a   :  { %v3707_v36 = vpop.f32.mrb[29].mxu0  ;;  %v3709_v37 = vpop.f32.mrb[29].mxu1  ;;  %v3985_v6 = vadd.f32 %v3691_v29, %v3657_v23  ;;  %v3998_v28 = vadd.f32 %v3693_v38, %v3657_v23 }
 0x11b   :  { %4810 = vst [vmem:[#allocation11_spill] sm:$0xff] %v3709_v37  ;;  %v3718_v45 = vpop.f32.mrb[30].mxu0  ;;  %v3720_v32 = vpop.f32.mrb[30].mxu1  ;;  %v3728_v37 = vadd.f32 %v3578_v49, %v3657_v23  ;;  %v3748_v49 = vadd.f32 %v3586_v53, %v3657_v23  ;;  %v3797_v53 = vadd.f32 %v3602_v61, %v3657_v23  ;;  %v4002_v18 = vadd.f32 %v3657_v23, %v3707_v36 }
 0x11c   :  { %v3738_v39 = vpop.f32.mrb[31].mxu0  ;;  %v3740_v30 = vpop.f32.mrb[31].mxu1  ;;  %4837 = vst [vmem:[#allocation38_spill] sm:$0xff] %v3985_v6  ;;  %v4838_v21 = vld [vmem:[#allocation2_spill] sm:$0xff]  ;;  %v4014_v27 = vadd.f32 %v3720_v32, %v3657_v23 }
 0x11d   :  { %4812 = vst [vmem:[#allocation13_spill] sm:$0xff] %v3748_v49  ;;  %4818 = vst [vmem:[#allocation19_spill] sm:$0xff] %v3797_v53  ;;  %v3924_v53 = vadd.f32 %v3657_v23, %v3640_v16  ;;  %v3944_v16 = vadd.f32 %v3657_v23, %v3648_v20  ;;  %v3960_v20 = vadd.f32 %v3663_v26, %v3657_v23 }
 0x11e   :  { %v3989_v24 = vadd.f32 %v3657_v23, %v4838_v21  ;;  %4839 = vst [vmem:[#allocation2_spill] sm:$0xff] %v3998_v28  ;;  %v4006_v21 = vadd.f32 %v3718_v45, %v3657_v23  ;;  %v4022_v36 = vadd.f32 %v3657_v23, %v3738_v39 }
 0x11f   :  { %4834 = vst [vmem:[#allocation35_spill] sm:$0xff] %v3960_v20 }
 0x121   :  { %v3786_v42 = vpop.f32.mrb[32].mxu0  ;;  %v3788_v58 = vpop.f32.mrb[32].mxu1 }
 0x122   :  { %v3803_v55 = vpop.f32.mrb[33].mxu0  ;;  %v3805_v56 = vpop.f32.mrb[33].mxu1  ;;  %v4840_v17 = vld [vmem:[#allocation11_spill] sm:$0xff]  ;;  %v4026_v45 = vadd.f32 %v3786_v42, %v3657_v23  ;;  %v4034_v32 = vadd.f32 %v3788_v58, %v3657_v23 }
 0x123   :  { %v3814_v61 = vpop.f32.mrb[34].mxu0  ;;  %v3816_v51 = vpop.f32.mrb[34].mxu1  ;;  %v4010_v25 = vadd.f32 %v3657_v23, %v4840_v17  ;;  %v4030_v17 = vadd.f32 %v3657_v23, %v3740_v30  ;;  %v4041_v39 = vadd.f32 %v3657_v23, %v3803_v55  ;;  %v4050_v58 = vadd.f32 %v3657_v23, %v3805_v56 }
 0x124   :  { %v3834_v43 = vpop.f32.mrb[35].mxu0  ;;  %v3836_v33 = vpop.f32.mrb[35].mxu1  ;;  %4841 = vst [vmem:[#allocation11_spill] sm:$0xff] %v4026_v45  ;;  %4842 = vst [vmem:[#allocation39_spill] sm:$0xff] %v4034_v32  ;;  %v4046_v30 = vadd.f32 %v3814_v61, %v3657_v23  ;;  %v4054_v35 = vadd.f32 %v3816_v51, %v3657_v23 }
 0x125   :  { %4843 = vst [vmem:[#allocation40_spill] sm:$0xff] %v4041_v39  ;;  %4845 = vst [vmem:[#allocation42_spill] sm:$0xff] %v4050_v58  ;;  %v4067_v20 = vadd.f32 %v3657_v23, %v3834_v43  ;;  %v4075_v42 = vadd.f32 %v3657_v23, %v3836_v33 }
 0x126   :  { %4844 = vst [vmem:[#allocation41_spill] sm:$0xff] %v4046_v30  ;;  %4846 = vst [vmem:[#allocation43_spill] sm:$0xff] %v4054_v35 }
 0x129   :  { %v3882_v49 = vpop.f32.mrb[36].mxu0  ;;  %v3884_v10 = vpop.f32.mrb[36].mxu1 }
 0x12a   :  { %v3899_v7 = vpop.f32.mrb[37].mxu0  ;;  %v3901_v8 = vpop.f32.mrb[37].mxu1  ;;  %v4071_v22 = vadd.f32 %v3882_v49, %v3657_v23  ;;  %v4086_v43 = vadd.f32 %v3884_v10, %v3657_v23 }
 0x12b   :  { %v3910_v13 = vpop.f32.mrb[38].mxu0  ;;  %v3912_v3 = vpop.f32.mrb[38].mxu1  ;;  %v4094_v33 = vadd.f32 %v3657_v23, %v3899_v7  ;;  %v4102_v56 = vadd.f32 %v3657_v23, %v3901_v8 }
 0x12c   :  { %v3930_v59 = vpop.f32.mrb[39].mxu0  ;;  %v3932_v52 = vpop.f32.mrb[39].mxu1  ;;  %4847 = vst [vmem:[#allocation44_spill] sm:$0xff] %v4071_v22  ;;  %4848 = vst [vmem:[#allocation45_spill] sm:$0xff] %v4086_v43  ;;  %v4098_v39 = vadd.f32 %v3910_v13, %v3657_v23  ;;  %v4106_v10 = vadd.f32 %v3912_v3, %v3657_v23 }
 0x12d   :  { %4849 = vst [vmem:[#allocation46_spill] sm:$0xff] %v4094_v33  ;;  %4851 = vst [vmem:[#allocation48_spill] sm:$0xff] %v4102_v56  ;;  %v4114_v7 = vadd.f32 %v3657_v23, %v3930_v59  ;;  %v4121_v13 = vadd.f32 %v3657_v23, %v3932_v52 }
 0x12e   :  { %4850 = vst [vmem:[#allocation47_spill] sm:$0xff] %v4098_v39  ;;  %4852 = vst [vmem:[#allocation49_spill] sm:$0xff] %v4106_v10 }
 0x131   :  { %v2885_v1 = vpop.f32.mrb[40].mxu0  ;;  %v2985_v62 = vpop.f32.mrb[40].mxu1 }
 0x132   :  { %v1221_v26 = vpop.f32.mrb[41].mxu0  ;;  %v3991_v5 = vpop.f32.mrb[41].mxu1  ;;  %v4117_v35 = vadd.f32 %v2885_v1, %v3657_v23  ;;  %v4124_v8 = vadd.f32 %v2985_v62, %v3657_v23 }
 0x133   :  { %v2886_v19 = vpop.f32.mrb[42].mxu0  ;;  %v2986_v29 = vpop.f32.mrb[42].mxu1  ;;  %v4130_v32 = vadd.f32 %v3657_v23, %v1221_v26  ;;  %v4138_v52 = vadd.f32 %v3657_v23, %v3991_v5 }
 0x134   :  { %v4016_v38 = vpop.f32.mrb[43].mxu0  ;;  %v4018_v11 = vpop.f32.mrb[43].mxu1  ;;  %4853 = vst [vmem:[#allocation50_spill] sm:$0xff] %v4117_v35  ;;  %4854 = vst [vmem:[#allocation51_spill] sm:$0xff] %v4124_v8  ;;  %v4134_v1 = vadd.f32 %v2886_v19, %v3657_v23  ;;  %v4141_v62 = vadd.f32 %v2986_v29, %v3657_v23 }
 0x135   :  { %4855 = vst [vmem:[#allocation52_spill] sm:$0xff] %v4130_v32  ;;  %4857 = vst [vmem:[#allocation54_spill] sm:$0xff] %v4138_v52  ;;  %v4154_v3 = vadd.f32 %v3657_v23, %v4016_v38  ;;  %v4167_v29 = vadd.f32 %v3657_v23, %v4018_v11 }
 0x136   :  { %4856 = vst [vmem:[#allocation53_spill] sm:$0xff] %v4134_v1  ;;  %4858 = vst [vmem:[#allocation55_spill] sm:$0xff] %v4141_v62 }
 0x137   :  { %4859 = vst [vmem:[#allocation56_spill] sm:$0xff] %v4167_v29 }
 0x139   :  { %v2889_v14 = vpop.f32.mrb[44].mxu0  ;;  %v2989_v2 = vpop.f32.mrb[44].mxu1 }
 0x13a   :  { %v4077_v61 = vpop.f32.mrb[45].mxu0  ;;  %v4079_v55 = vpop.f32.mrb[45].mxu1  ;;  %v4172_v19 = vadd.f32 %v2889_v14, %v3657_v23  ;;  %v4175_v43 = vadd.f32 %v2989_v2, %v3657_v23  ;;  %v4874_v14 = vld [vmem:[#allocation7_spill] sm:$0xff] }
 0x13b   :  { %v4088_v49 = vpop.f32.mrb[46].mxu0  ;;  %v4090_v28 = vpop.f32.mrb[46].mxu1  ;;  %v4875_v56 = vmax.f32 %v4874_v14, 0.0 }
 0x13c   :  { %v4108_v6 = vpop.f32.mrb[47].mxu0  ;;  %v4110_v51 = vpop.f32.mrb[47].mxu1  ;;  %4860 = vst [vmem:[#allocation57_spill] sm:$0xff] %v4172_v19  ;;  %4861 = vst [vmem:[#allocation58_spill] sm:$0xff] %v4175_v43 }
 0x141   :  { %v2893_v22 = vpop.f32.mrb[48].mxu0  ;;  %v2993_v45 = vpop.f32.mrb[48].mxu1 }
 0x142   :  { %v1262_v30 = vadd.f32 %v2893_v22, %v3657_v23  ;;  %v1662_v26 = vadd.f32 %v2993_v45, %v3657_v23  ;;  %v4158_v58 = vpop.f32.mrb[49].mxu0  ;;  %v4160_v59 = vpop.f32.mrb[49].mxu1 }
 0x143   :  { %v2894_v38 = vpop.f32.mrb[50].mxu0  ;;  %v2994_v32 = vpop.f32.mrb[50].mxu1 }
 0x144   :  { %v1894_v8 = vmax.f32 %v1262_v30, 0.0  ;;  %v1994_v22 = vmax.f32 %v1662_v26, 0.0  ;;  %v1265_v45 = vadd.f32 %v2894_v38, %v3657_v23  ;;  %v1665_v35 = vadd.f32 %v2994_v32, %v3657_v23  ;;  %v1256_v10 = vpop.f32.mrb[51].mxu0  ;;  %v1656_v39 = vpop.f32.mrb[51].mxu1  ;;  %v4864_v38 = vld [vmem:[#allocation10_spill] sm:$0xff] }
 0x145   :  { %v1257_v11 = vadd.f32 %v3657_v23, %v1256_v10  ;;  %v1657_v5 = vadd.f32 %v3657_v23, %v1656_v39  ;;  %v4862_v30 = vmax.f32 %v3698_v41, 0.0  ;;  %v4865_v62 = vmax.f32 %v4864_v38, 0.0  ;;  %v4866_v39 = vld [vmem:[#allocation3_spill] sm:$0xff] }
 0x146   :  { %v1895_v1 = vmax.f32 %v1265_v45, 0.0  ;;  %v1995_v52 = vmax.f32 %v1665_v35, 0.0  ;;  %v4189_v10 = vadd.f32 %v3657_v23, %v4077_v61  ;;  %v4193_v41 = vadd.f32 %v3657_v23, %v4079_v55 }
 0x147   :  { %v4181_v26 = vmax.f32 %v4862_v30, %v1894_v8  ;;  %v2092_v32 = vmax.f32 %v4865_v62, %v1994_v22  ;;  %v1893_v33 = vmax.f32 %v1257_v11, 0.0  ;;  %v1993_v2 = vmax.f32 %v1657_v5, 0.0  ;;  %v4868_v62 = vld [vmem:[#allocation4_spill] sm:$0xff]  ;;  %v4871_v5 = vld [vmem:[#allocation5_spill] sm:$0xff] }
 0x148   :  { %v4867_v8 = vmax.f32 %v4866_v39, 0.0  ;;  %v4869_v22 = vmax.f32 %v4868_v62, 0.0  ;;  %v4202_v11 = vadd.f32 %v4088_v49, %v3657_v23  ;;  %v4872_v38 = vmax.f32 %v4871_v5, 0.0 }
 0x149   :  { %4863 = vst [vmem:[#allocation59_spill] sm:$0xff] %v4181_v26  ;;  %v2091_v55 = vmax.f32 %v4875_v56, %v1993_v2  ;;  %v2897_v26 = vpop.f32.mrb[52].mxu0  ;;  %v2997_v29 = vpop.f32.mrb[52].mxu1 }
 0x14a   :  { %v2042_v30 = vmax.f32 %v4867_v8, %v1895_v1  ;;  %v2093_v35 = vmax.f32 %v4869_v22, %v1995_v52  ;;  %4870 = vst [vmem:[#allocation10_spill] sm:$0xff] %v4202_v11  ;;  %v4206_v61 = vmax.f32 %v4872_v38, %v1893_v33  ;;  %v4213_v52 = vadd.f32 %v4090_v28, %v3657_v23  ;;  %v1269_v8 = vpop.f32.mrb[53].mxu0  ;;  %v1669_v62 = vpop.f32.mrb[53].mxu1 }
 0x14b   :  { %v1278_v39 = vadd.f32 %v2897_v26, %v3657_v23  ;;  %v1678_v49 = vadd.f32 %v2997_v29, %v3657_v23  ;;  %v4219_v33 = vadd.f32 %v3657_v23, %v4108_v6  ;;  %v1270_v56 = vadd.f32 %v3657_v23, %v1269_v8  ;;  %v2898_v22 = vpop.f32.mrb[54].mxu0  ;;  %v2998_v5 = vpop.f32.mrb[54].mxu1 }
 0x14c   :  { %4873 = vst [vmem:[#allocation3_spill] sm:$0xff] %v4206_v61  ;;  %4876 = vst [vmem:[#allocation4_spill] sm:$0xff] %v4213_v52  ;;  %v2140_v14 = vmax.f32 %v2042_v30, %v2091_v55  ;;  %v1670_v2 = vadd.f32 %v3657_v23, %v1669_v62  ;;  %v1281_v1 = vadd.f32 %v2898_v22, %v3657_v23  ;;  %v1272_v29 = vpop.f32.mrb[55].mxu0  ;;  %v1672_v45 = vpop.f32.mrb[55].mxu1  ;;  %v4877_v30 = vmax.f32 %v3744_v47, 0.0 }
 0x14d   :  { %v1898_v38 = vmax.f32 %v1278_v39, 0.0  ;;  %v1998_v28 = vmax.f32 %v1678_v49, 0.0  ;;  %v1681_v26 = vadd.f32 %v2998_v5, %v3657_v23  ;;  %v1896_v11 = vmax.f32 %v1270_v56, 0.0  ;;  %v4879_v49 = vld [vmem:[#allocation6_spill] sm:$0xff]  ;;  %v4881_v56 = vld [vmem:[#allocation8_spill] sm:$0xff] }
 0x14e   :  { %v2689_v61 = vpack.c.bf16 %v2140_v14, %v2140_v14  ;;  %v1996_v52 = vmax.f32 %v1670_v2, 0.0  ;;  %v1273_v6 = vadd.f32 %v3657_v23, %v1272_v29  ;;  %v4878_v8 = vmax.f32 %v3752_v48, 0.0 }
 0x14f   :  { %v2045_v55 = vmax.f32 %v4877_v30, %v1898_v38  ;;  %v1899_v43 = vmax.f32 %v1281_v1, 0.0  ;;  %v1999_v39 = vmax.f32 %v1681_v26, 0.0  ;;  %v4880_v22 = vmax.f32 %v4879_v49, 0.0  ;;  %v4883_v1 = vld [vmem:[#allocation9_spill] sm:$0xff]  ;;  %v4885_v30 = vld [vmem:[#allocation12_spill] sm:$0xff] }
 0x150   :  { %v2096_v62 = vmax.f32 %v4878_v8, %v1998_v28  ;;  %2387 = vst.msk [vmem:[%s4743_s3 + $0x8] sm:$0xf] %vm2384_vm1, %v2689_v61  ;;  %v4882_v2 = vmax.f32 %v4881_v56, 0.0  ;;  %v1897_v29 = vmax.f32 %v1273_v6, 0.0  ;;  %v1673_v47 = vadd.f32 %v3657_v23, %v1672_v45 }
 0x151   :  { %v2043_v14 = vmax.f32 %v4880_v22, %v1896_v11  ;;  %v1888_v38 = vmax.f32 %v4189_v10, 0.0  ;;  %v4884_v28 = vmax.f32 %v4883_v1, 0.0  ;;  %v4886_v8 = vmax.f32 %v4885_v30, 0.0  ;;  %v2901_v6 = vpop.f32.mrb[56].mxu0  ;;  %v3001_v56 = vpop.f32.mrb[56].mxu1 }
 0x152   :  { %v2094_v5 = vmax.f32 %v4882_v2, %v1996_v52  ;;  %v4887_v11 = vmax.f32 %v3724_v44, 0.0  ;;  %v1997_v52 = vmax.f32 %v1673_v47, 0.0  ;;  %v1889_v45 = vmax.f32 %v4219_v33, 0.0 }
 0x153   :  { %v2046_v26 = vmax.f32 %v4884_v28, %v1899_v43  ;;  %v4245_v19 = vmax.f32 %v4886_v8, %v1999_v39  ;;  %v2141_v61 = vmax.f32 %v2043_v14, %v2092_v32  ;;  %v4252_v2 = vadd.f32 %v3657_v23, %v4110_v51  ;;  %v1285_v39 = vpop.f32.mrb[57].mxu0  ;;  %v1685_v28 = vpop.f32.mrb[57].mxu1 }
 0x154   :  { %v2143_v49 = vmax.f32 %v2045_v55, %v2094_v5  ;;  %v2044_v22 = vmax.f32 %v4887_v11, %v1897_v29  ;;  %v1294_v43 = vadd.f32 %v2901_v6, %v3657_v23  ;;  %v1694_v1 = vadd.f32 %v3001_v56, %v3657_v23  ;;  %v2902_v29 = vpop.f32.mrb[58].mxu0  ;;  %v3002_v47 = vpop.f32.mrb[58].mxu1 }
 0x155   :  { %v2690_v32 = vpack.c.bf16 %v2141_v61, %v2141_v61  ;;  %v4888_v44 = vmax.f32 %v3732_v31, 0.0  ;;  %v1286_v11 = vadd.f32 %v3657_v23, %v1285_v39  ;;  %v1686_v51 = vadd.f32 %v3657_v23, %v1685_v28  ;;  %v1288_v48 = vpop.f32.mrb[59].mxu0  ;;  %v1688_v6 = vpop.f32.mrb[59].mxu1 }
 0x156   :  { %v2692_v55 = vpack.c.bf16 %v2143_v49, %v2143_v49  ;;  %v2142_v14 = vmax.f32 %v2044_v22, %v2093_v35  ;;  %v1902_v30 = vmax.f32 %v1294_v43, 0.0  ;;  %v2002_v8 = vmax.f32 %v1694_v1, 0.0 }
 0x157   :  { %v2095_v5 = vmax.f32 %v4888_v44, %v1997_v52  ;;  %2388 = vst.msk [vmem:[%s4743_s3 + $0xc] sm:$0xf] %vm2384_vm1, %v2690_v32  ;;  %v1297_v61 = vadd.f32 %v2902_v29, %v3657_v23  ;;  %v1697_v49 = vadd.f32 %v3002_v47, %v3657_v23  ;;  %v4889_v22 = vmax.f32 %v3793_v34, 0.0 }
 0x158   :  { %2390 = vst.msk [vmem:[%s4743_s3 + $0x14] sm:$0xf] %vm2384_vm1, %v2692_v55  ;;  %v2691_v31 = vpack.c.bf16 %v2142_v14, %v2142_v14  ;;  %v4890_v56 = vmax.f32 %v3801_v57, 0.0  ;;  %v1900_v1 = vmax.f32 %v1286_v11, 0.0  ;;  %v2000_v39 = vmax.f32 %v1686_v51, 0.0  ;;  %v4895_v11 = vld [vmem:[#allocation14_spill] sm:$0xff] }
 0x159   :  { %v2144_v35 = vmax.f32 %v2046_v26, %v2095_v5  ;;  %v2049_v52 = vmax.f32 %v4889_v22, %v1902_v30  ;;  %v1903_v32 = vmax.f32 %v1297_v61, 0.0  ;;  %v2003_v26 = vmax.f32 %v1697_v49, 0.0 }
 0x15a   :  { %v2100_v43 = vmax.f32 %v4890_v56, %v2002_v8  ;;  %2389 = vst.msk [vmem:[%s4743_s3 + $0x10] sm:$0xf] %vm2384_vm1, %v2691_v31  ;;  %v1289_v55 = vadd.f32 %v3657_v23, %v1288_v48  ;;  %v1989_v14 = vmax.f32 %v4252_v2, 0.0  ;;  %v4891_v34 = vmax.f32 %v3728_v37, 0.0  ;;  %v4893_v48 = vld [vmem:[#allocation13_spill] sm:$0xff]  ;;  %v2905_v31 = vpop.f32.mrb[60].mxu0 }
 0x15b   :  { %v2693_v28 = vpack.c.bf16 %v2144_v35, %v2144_v35  ;;  %v4892_v57 = vmax.f32 %v3736_v46, 0.0  ;;  %v1689_v29 = vadd.f32 %v3657_v23, %v1688_v6  ;;  %v4287_v47 = vadd.f32 %v3657_v23, %v4158_v58  ;;  %v3005_v35 = vpop.f32.mrb[60].mxu1  ;;  %v1301_v22 = vpop.f32.mrb[61].mxu0  ;;  %v5009_v2 = vld [vmem:[#allocation57_spill] sm:$0xff] }
 0x15c   :  { %v2047_v44 = vmax.f32 %v4891_v34, %v1900_v1  ;;  %v4894_v30 = vmax.f32 %v4893_v48, 0.0  ;;  %v4896_v37 = vmax.f32 %v4895_v11, 0.0  ;;  %v1901_v46 = vmax.f32 %v1289_v55, 0.0  ;;  %v1701_v56 = vpop.f32.mrb[61].mxu1  ;;  %v4897_v1 = vld [vmem:[#allocation15_spill] sm:$0xff] }
 0x15d   :  { %v2098_v5 = vmax.f32 %v4892_v57, %v2000_v39  ;;  %2391 = vst.msk [vmem:[%s4743_s3 + $0x18] sm:$0xf] %vm2384_vm1, %v2693_v28  ;;  %v2001_v49 = vmax.f32 %v1689_v29, 0.0  ;;  %v1310_v58 = vadd.f32 %v2905_v31, %v3657_v23  ;;  %v4898_v39 = vmax.f32 %v4897_v1, 0.0  ;;  %v2906_v57 = vpop.f32.mrb[62].mxu0  ;;  %v3006_v55 = vpop.f32.mrb[62].mxu1 }
 0x15e   :  { %v2050_v8 = vmax.f32 %v4894_v30, %v1903_v32  ;;  %v4297_v51 = vmax.f32 %v4896_v37, %v2003_v26  ;;  %v2145_v6 = vmax.f32 %v2047_v44, %v2096_v62  ;;  %v1710_v34 = vadd.f32 %v3005_v35, %v3657_v23  ;;  %v4899_v62 = vld [vmem:[#allocation17_spill] sm:$0xff]  ;;  %v1304_v29 = vpop.f32.mrb[63].mxu0  ;;  %v1704_v11 = vpop.f32.mrb[63].mxu1 }
 0x15f   :  { %v2147_v61 = vmax.f32 %v2049_v52, %v2098_v5  ;;  %v2048_v28 = vmax.f32 %v4898_v39, %v1901_v46  ;;  %v1302_v32 = vadd.f32 %v3657_v23, %v1301_v22  ;;  %v1702_v26 = vadd.f32 %v3657_v23, %v1701_v56  ;;  %v4903_v39 = vld [vmem:[#allocation16_spill] sm:$0xff] }
 0x160   :  { %v2694_v48 = vpack.c.bf16 %v2145_v6, %v2145_v6  ;;  %v4900_v52 = vmax.f32 %v4899_v62, 0.0  ;;  %v1906_v5 = vmax.f32 %v1310_v58, 0.0  ;;  %v2006_v31 = vmax.f32 %v1710_v34, 0.0 }
 0x161   :  { %v2696_v30 = vpack.c.bf16 %v2147_v61, %v2147_v61  ;;  %v2146_v37 = vmax.f32 %v2048_v28, %v4245_v19  ;;  %v1904_v46 = vmax.f32 %v1302_v32, 0.0  ;;  %v2004_v1 = vmax.f32 %v1702_v26, 0.0  ;;  %v4905_v32 = vld [vmem:[#allocation18_spill] sm:$0xff] }
 0x162   :  { %v2099_v44 = vmax.f32 %v4900_v52, %v2001_v49  ;;  %2392 = vst.msk [vmem:[%s4743_s3 + $0x1c] sm:$0xf] %vm2384_vm1, %v2694_v48  ;;  %v4901_v6 = vmax.f32 %v3840_v63, 0.0  ;;  %v1313_v49 = vadd.f32 %v2906_v57, %v3657_v23  ;;  %v1713_v19 = vadd.f32 %v3006_v55, %v3657_v23 }
 0x163   :  { %2394 = vst.msk [vmem:[%s4743_s3 + $0x24] sm:$0xf] %vm2384_vm1, %v2696_v30  ;;  %v2695_v58 = vpack.c.bf16 %v2146_v37, %v2146_v37  ;;  %v4902_v22 = vmax.f32 %v3848_v0, 0.0  ;;  %v4904_v28 = vmax.f32 %v4903_v39, 0.0  ;;  %v4906_v26 = vmax.f32 %v4905_v32, 0.0 }
 0x164   :  { %v2148_v35 = vmax.f32 %v2050_v8, %v2099_v44  ;;  %v2053_v61 = vmax.f32 %v4901_v6, %v1906_v5  ;;  %v1907_v30 = vmax.f32 %v1313_v49, 0.0  ;;  %v2007_v8 = vmax.f32 %v1713_v19, 0.0  ;;  %v2909_v44 = vpop.f32.mrb[64].mxu0  ;;  %v3009_v5 = vpop.f32.mrb[64].mxu1 }
 0x165   :  { %v2104_v56 = vmax.f32 %v4902_v22, %v2006_v31  ;;  %v2051_v34 = vmax.f32 %v4904_v28, %v1904_v46  ;;  %v2102_v48 = vmax.f32 %v4906_v26, %v2004_v1  ;;  %v1305_v63 = vadd.f32 %v3657_v23, %v1304_v29  ;;  %2393 = vst.msk [vmem:[%s4743_s3 + $0x20] sm:$0xf] %vm2384_vm1, %v2695_v58  ;;  %v4907_v29 = vld [vmem:[#allocation19_spill] sm:$0xff]  ;;  %v4909_v31 = vld [vmem:[#allocation20_spill] sm:$0xff]  ;;  %v1317_v6 = vpop.f32.mrb[65].mxu0 }
 0x166   :  { %v2697_v62 = vpack.c.bf16 %v2148_v35, %v2148_v35  ;;  %v4329_v57 = vadd.f32 %v3657_v23, %v4160_v59  ;;  %v1705_v52 = vadd.f32 %v3657_v23, %v1704_v11  ;;  %v4908_v37 = vmax.f32 %v4907_v29, 0.0  ;;  %v2910_v22 = vpop.f32.mrb[66].mxu0 }
 0x167   :  { %v2149_v0 = vmax.f32 %v2051_v34, %v2100_v43  ;;  %v2151_v55 = vmax.f32 %v2053_v61, %v2102_v48  ;;  %v4910_v46 = vmax.f32 %v4909_v31, 0.0  ;;  %v1905_v35 = vmax.f32 %v1305_v63, 0.0  ;;  %v1717_v61 = vpop.f32.mrb[65].mxu1 }
 0x168   :  { %2395 = vst.msk [vmem:[%s4743_s3 + $0x28] sm:$0xf] %vm2384_vm1, %v2697_v62  ;;  %v2054_v59 = vmax.f32 %v4908_v37, %v1907_v30  ;;  %v1326_v43 = vadd.f32 %v2909_v44, %v3657_v23  ;;  %v2005_v19 = vmax.f32 %v1705_v52, 0.0  ;;  %v1726_v58 = vadd.f32 %v3009_v5, %v3657_v23  ;;  %v3010_v39 = vpop.f32.mrb[66].mxu1  ;;  %v1320_v62 = vpop.f32.mrb[67].mxu0 }
 0x169   :  { %v4344_v1 = vmax.f32 %v4910_v46, %v2007_v8  ;;  %v2698_v11 = vpack.c.bf16 %v2149_v0, %v2149_v0  ;;  %v2700_v49 = vpack.c.bf16 %v2151_v55, %v2151_v55  ;;  %v4911_v28 = vmax.f32 %v3820_v60, 0.0  ;;  %v1720_v30 = vpop.f32.mrb[67].mxu1 }
 0x16a   :  { %v1910_v32 = vmax.f32 %v1326_v43, 0.0  ;;  %v1318_v26 = vadd.f32 %v3657_v23, %v1317_v6  ;;  %v1718_v48 = vadd.f32 %v3657_v23, %v1717_v61  ;;  %v4912_v60 = vmax.f32 %v3828_v40, 0.0 }
 0x16b   :  { %v2052_v34 = vmax.f32 %v4911_v28, %v1905_v35  ;;  %2396 = vst.msk [vmem:[%s4743_s3 + $0x2c] sm:$0xf] %vm2384_vm1, %v2698_v11  ;;  %2398 = vst.msk [vmem:[%s4743_s3 + $0x34] sm:$0xf] %vm2384_vm1, %v2700_v49  ;;  %v2010_v63 = vmax.f32 %v1726_v58, 0.0  ;;  %v1329_v0 = vadd.f32 %v2910_v22, %v3657_v23  ;;  %v1729_v55 = vadd.f32 %v3010_v39, %v3657_v23  ;;  %v4916_v49 = vld [vmem:[#allocation21_spill] sm:$0xff] }
 0x16c   :  { %v2103_v8 = vmax.f32 %v4912_v60, %v2005_v19  ;;  %v4913_v44 = vmax.f32 %v3889_v54, 0.0  ;;  %v1908_v29 = vmax.f32 %v1318_v26, 0.0  ;;  %v2008_v37 = vmax.f32 %v1718_v48, 0.0  ;;  %v4918_v54 = vld [vmem:[#allocation22_spill] sm:$0xff]  ;;  %v2913_v26 = vpop.f32.mrb[68].mxu0  ;;  %v3013_v48 = vpop.f32.mrb[68].mxu1 }
 0x16d   :  { %v2150_v52 = vmax.f32 %v2052_v34, %v4297_v51  ;;  %v4914_v46 = vmax.f32 %v3897_v9, 0.0  ;;  %v1911_v43 = vmax.f32 %v1329_v0, 0.0  ;;  %v2011_v6 = vmax.f32 %v1729_v55, 0.0  ;;  %v4920_v34 = vld [vmem:[#allocation23_spill] sm:$0xff]  ;;  %v1733_v0 = vpop.f32.mrb[69].mxu1 }
 0x16e   :  { %v2057_v5 = vmax.f32 %v4913_v44, %v1910_v32  ;;  %v2152_v31 = vmax.f32 %v2054_v59, %v2103_v8  ;;  %v4915_v61 = vmax.f32 %v3824_v50, 0.0  ;;  %v4917_v19 = vmax.f32 %v4916_v49, 0.0 }
 0x16f   :  { %v2108_v35 = vmax.f32 %v4914_v46, %v2010_v63  ;;  %v2699_v40 = vpack.c.bf16 %v2150_v52, %v2150_v52  ;;  %v1321_v51 = vadd.f32 %v3657_v23, %v1320_v62  ;;  %v4919_v39 = vmax.f32 %v4918_v54, 0.0  ;;  %v1333_v63 = vpop.f32.mrb[69].mxu0 }
 0x170   :  { %v2055_v11 = vmax.f32 %v4915_v61, %v1908_v29  ;;  %v2106_v58 = vmax.f32 %v4917_v19, %v2008_v37  ;;  %v2701_v22 = vpack.c.bf16 %v2152_v31, %v2152_v31  ;;  %v4921_v59 = vmax.f32 %v4920_v34, 0.0  ;;  %v2914_v29 = vpop.f32.mrb[70].mxu0  ;;  %v4922_v31 = vld [vmem:[#allocation24_spill] sm:$0xff] }
 0x171   :  { %v2058_v28 = vmax.f32 %v4919_v39, %v1911_v43  ;;  %v1721_v9 = vadd.f32 %v3657_v23, %v1720_v30  ;;  %2397 = vst.msk [vmem:[%s4743_s3 + $0x30] sm:$0xf] %vm2384_vm1, %v2699_v40  ;;  %v1909_v62 = vmax.f32 %v1321_v51, 0.0  ;;  %v1342_v8 = vadd.f32 %v2913_v26, %v3657_v23  ;;  %v1336_v40 = vpop.f32.mrb[71].mxu0 }
 0x172   :  { %v4378_v32 = vmax.f32 %v4921_v59, %v2011_v6  ;;  %v2153_v50 = vmax.f32 %v2055_v11, %v2104_v56  ;;  %v2155_v60 = vmax.f32 %v2057_v5, %v2106_v58  ;;  %2399 = vst.msk [vmem:[%s4743_s3 + $0x38] sm:$0xf] %vm2384_vm1, %v2701_v22  ;;  %v1742_v55 = vadd.f32 %v3013_v48, %v3657_v23  ;;  %v3014_v56 = vpop.f32.mrb[70].mxu1  ;;  %v4924_v11 = vld [vmem:[#allocation26_spill] sm:$0xff] }
 0x173   :  { %v2009_v30 = vmax.f32 %v1721_v9, 0.0  ;;  %v1334_v52 = vadd.f32 %v3657_v23, %v1333_v63  ;;  %v1734_v44 = vadd.f32 %v3657_v23, %v1733_v0  ;;  %v4923_v46 = vmax.f32 %v4922_v31, 0.0  ;;  %v1736_v61 = vpop.f32.mrb[71].mxu1  ;;  %v4930_v63 = vld [vmem:[#allocation27_spill] sm:$0xff] }
 0x174   :  { %v2702_v5 = vpack.c.bf16 %v2153_v50, %v2153_v50  ;;  %v2704_v37 = vpack.c.bf16 %v2155_v60, %v2155_v60  ;;  %v1914_v6 = vmax.f32 %v1342_v8, 0.0  ;;  %v4925_v49 = vmax.f32 %v4924_v11, 0.0  ;;  %v4928_v60 = vld [vmem:[#allocation25_spill] sm:$0xff] }
 0x175   :  { %v2056_v43 = vmax.f32 %v4923_v46, %v1909_v62  ;;  %v2014_v58 = vmax.f32 %v1742_v55, 0.0  ;;  %v1912_v51 = vmax.f32 %v1334_v52, 0.0  ;;  %v2012_v22 = vmax.f32 %v1734_v44, 0.0 }
 0x176   :  { %v2107_v19 = vmax.f32 %v4925_v49, %v2009_v30  ;;  %2400 = vst.msk [vmem:[%s4743_s3 + $0x3c] sm:$0xf] %vm2384_vm1, %v2702_v5  ;;  %2402 = vst.msk [vmem:[%s4743_s3 + $0x44] sm:$0xf] %vm2384_vm1, %v2704_v37  ;;  %v4926_v39 = vmax.f32 %v3936_v15, 0.0  ;;  %v1345_v59 = vadd.f32 %v2914_v29, %v3657_v23  ;;  %v1745_v9 = vadd.f32 %v3014_v56, %v3657_v23  ;;  %v3017_v37 = vpop.f32.mrb[72].mxu1 }
 0x177   :  { %v2154_v54 = vmax.f32 %v2056_v43, %v4344_v1  ;;  %v4927_v48 = vmax.f32 %v3944_v16, 0.0  ;;  %v4929_v62 = vmax.f32 %v4928_v60, 0.0  ;;  %v4931_v0 = vmax.f32 %v4930_v63, 0.0  ;;  %v4932_v16 = vld [vmem:[#allocation28_spill] sm:$0xff]  ;;  %v4934_v43 = vld [vmem:[#allocation29_spill] sm:$0xff] }
 0x178   :  { %v2061_v34 = vmax.f32 %v4926_v39, %v1914_v6  ;;  %v2156_v26 = vmax.f32 %v2058_v28, %v2107_v19  ;;  %v1915_v52 = vmax.f32 %v1345_v59, 0.0  ;;  %v2015_v1 = vmax.f32 %v1745_v9, 0.0  ;;  %v2917_v28 = vpop.f32.mrb[72].mxu0  ;;  %v1749_v19 = vpop.f32.mrb[73].mxu1 }
 0x179   :  { %v2112_v50 = vmax.f32 %v4927_v48, %v2014_v58  ;;  %v2059_v8 = vmax.f32 %v4929_v62, %v1912_v51  ;;  %v2110_v30 = vmax.f32 %v4931_v0, %v2012_v22  ;;  %v2703_v55 = vpack.c.bf16 %v2154_v54, %v2154_v54  ;;  %v1349_v49 = vpop.f32.mrb[73].mxu0  ;;  %v3018_v39 = vpop.f32.mrb[74].mxu1 }
 0x17a   :  { %v1337_v15 = vadd.f32 %v3657_v23, %v1336_v40  ;;  %v2705_v44 = vpack.c.bf16 %v2156_v26, %v2156_v26  ;;  %v1737_v56 = vadd.f32 %v3657_v23, %v1736_v61  ;;  %v4933_v31 = vmax.f32 %v4932_v16, 0.0  ;;  %v2918_v54 = vpop.f32.mrb[74].mxu0  ;;  %v1752_v62 = vpop.f32.mrb[75].mxu1  ;;  %v4940_v16 = vld [vmem:[#allocation30_spill] sm:$0xff] }
 0x17b   :  { %v2157_v5 = vmax.f32 %v2059_v8, %v2108_v35  ;;  %v2159_v29 = vmax.f32 %v2061_v34, %v2110_v30  ;;  %2401 = vst.msk [vmem:[%s4743_s3 + $0x40] sm:$0xf] %vm2384_vm1, %v2703_v55  ;;  %v4935_v6 = vmax.f32 %v4934_v43, 0.0  ;;  %v1358_v35 = vadd.f32 %v2917_v28, %v3657_v23  ;;  %v1352_v60 = vpop.f32.mrb[75].mxu0 }
 0x17c   :  { %v2062_v46 = vmax.f32 %v4933_v31, %v1915_v52  ;;  %v1913_v40 = vmax.f32 %v1337_v15, 0.0  ;;  %2403 = vst.msk [vmem:[%s4743_s3 + $0x48] sm:$0xf] %vm2384_vm1, %v2705_v44  ;;  %v2013_v51 = vmax.f32 %v1737_v56, 0.0  ;;  %v1758_v22 = vadd.f32 %v3017_v37, %v3657_v23 }
 0x17d   :  { %v4426_v11 = vmax.f32 %v4935_v6, %v2015_v1  ;;  %v2706_v61 = vpack.c.bf16 %v2157_v5, %v2157_v5  ;;  %v2708_v58 = vpack.c.bf16 %v2159_v29, %v2159_v29  ;;  %v4936_v34 = vmax.f32 %v3916_v12, 0.0  ;;  %v4942_v6 = vld [vmem:[#allocation31_spill] sm:$0xff] }
 0x17e   :  { %v1918_v9 = vmax.f32 %v1358_v35, 0.0  ;;  %v1350_v26 = vadd.f32 %v3657_v23, %v1349_v49  ;;  %v1750_v48 = vadd.f32 %v3657_v23, %v1749_v19  ;;  %v4937_v12 = vmax.f32 %v3924_v53, 0.0 }
 0x17f   :  { %v2060_v59 = vmax.f32 %v4936_v34, %v1913_v40  ;;  %2404 = vst.msk [vmem:[%s4743_s3 + $0x4c] sm:$0xf] %vm2384_vm1, %v2706_v61  ;;  %2406 = vst.msk [vmem:[%s4743_s3 + $0x54] sm:$0xf] %vm2384_vm1, %v2708_v58  ;;  %v2018_v63 = vmax.f32 %v1758_v22, 0.0  ;;  %v1361_v0 = vadd.f32 %v2918_v54, %v3657_v23  ;;  %v1761_v30 = vadd.f32 %v3018_v39, %v3657_v23  ;;  %v4946_v58 = vld [vmem:[#allocation33_spill] sm:$0xff] }
 0x180   :  { %v2111_v8 = vmax.f32 %v4937_v12, %v2013_v51  ;;  %v4938_v52 = vmax.f32 %v3981_v4, 0.0  ;;  %v1916_v15 = vmax.f32 %v1350_v26, 0.0  ;;  %v2016_v44 = vmax.f32 %v1750_v48, 0.0  ;;  %v4944_v4 = vld [vmem:[#allocation32_spill] sm:$0xff]  ;;  %v2921_v54 = vpop.f32.mrb[76].mxu0  ;;  %v3021_v39 = vpop.f32.mrb[76].mxu1 }
 0x181   :  { %v2158_v55 = vmax.f32 %v2060_v59, %v4378_v32  ;;  %v4939_v29 = vmax.f32 %v3989_v24, 0.0  ;;  %v1919_v28 = vmax.f32 %v1361_v0, 0.0  ;;  %v2019_v37 = vmax.f32 %v1761_v30, 0.0  ;;  %v4469_v24 = vld [vmem:[%s4742_s2] ss:$0 sm:$0xff]  ;;  %v1365_v26 = vpop.f32.mrb[77].mxu0 }
 0x182   :  { %v2065_v1 = vmax.f32 %v4938_v52, %v1918_v9  ;;  %v2160_v5 = vmax.f32 %v2062_v46, %v2111_v8  ;;  %v4941_v31 = vmax.f32 %v4940_v16, 0.0  ;;  %v4943_v40 = vmax.f32 %v4942_v6, 0.0  ;;  %v1765_v48 = vpop.f32.mrb[77].mxu1 }
 0x183   :  { %v2116_v56 = vmax.f32 %v4939_v29, %v2018_v63  ;;  %v2707_v53 = vpack.c.bf16 %v2158_v55, %v2158_v55  ;;  %v1353_v32 = vadd.f32 %v3657_v23, %v1352_v60  ;;  %v4945_v19 = vmax.f32 %v4944_v4, 0.0  ;;  %v2922_v63 = vpop.f32.mrb[78].mxu0  ;;  %v4948_v55 = vld [vmem:[#allocation34_spill] sm:$0xff]  ;;  %v4950_v29 = vld [vmem:[#allocation36_spill] sm:$0xff] }
 0x184   :  { %v2063_v43 = vmax.f32 %v4941_v31, %v1916_v15  ;;  %v2114_v35 = vmax.f32 %v4943_v40, %v2016_v44  ;;  %v2709_v49 = vpack.c.bf16 %v2160_v5, %v2160_v5  ;;  %v4947_v46 = vmax.f32 %v4946_v58, 0.0  ;;  %v1368_v44 = vpop.f32.mrb[79].mxu0  ;;  %v4954_v58 = vld [vmem:[#allocation35_spill] sm:$0xff] }
 0x185   :  { %v2066_v61 = vmax.f32 %v4945_v19, %v1919_v28  ;;  %v1753_v22 = vadd.f32 %v4469_v24, %v1752_v62  ;;  %2405 = vst.msk [vmem:[%s4743_s3 + $0x50] sm:$0xf] %vm2384_vm1, %v2707_v53  ;;  %v1917_v59 = vmax.f32 %v1353_v32, 0.0  ;;  %v1374_v9 = vadd.f32 %v4469_v24, %v2921_v54  ;;  %v4956_v54 = vld [vmem:[#allocation37_spill] sm:$0xff] }
 0x186   :  { %v4464_v51 = vmax.f32 %v4947_v46, %v2019_v37  ;;  %v2161_v23 = vmax.f32 %v2063_v43, %v2112_v50  ;;  %v2163_v34 = vmax.f32 %v2065_v1, %v2114_v35  ;;  %2407 = vst.msk [vmem:[%s4743_s3 + $0x58] sm:$0xf] %vm2384_vm1, %v2709_v49  ;;  %v1774_v62 = vadd.f32 %v4469_v24, %v3021_v39  ;;  %v3022_v50 = vpop.f32.mrb[78].mxu1 }
 0x187   :  { %v2017_v60 = vmax.f32 %v1753_v22, 0.0  ;;  %v1366_v12 = vadd.f32 %v4469_v24, %v1365_v26  ;;  %v1766_v8 = vadd.f32 %v4469_v24, %v1765_v48  ;;  %v4949_v52 = vmax.f32 %v4948_v55, 0.0  ;;  %v1768_v5 = vpop.f32.mrb[79].mxu1 }
 0x188   :  { %v2710_v0 = vpack.c.bf16 %v2161_v23, %v2161_v23  ;;  %v2712_v30 = vpack.c.bf16 %v2163_v34, %v2163_v34  ;;  %v1922_v15 = vmax.f32 %v1374_v9, 0.0  ;;  %v4951_v28 = vmax.f32 %v4950_v29, 0.0 }
 0x189   :  { %v2064_v1 = vmax.f32 %v4949_v52, %v1917_v59  ;;  %v2022_v53 = vmax.f32 %v1774_v62, 0.0  ;;  %v1920_v16 = vmax.f32 %v1366_v12, 0.0  ;;  %v2020_v31 = vmax.f32 %v1766_v8, 0.0  ;;  %v3025_v62 = vpop.f32.mrb[80].mxu1 }
 0x18a   :  { %v2115_v37 = vmax.f32 %v4951_v28, %v2017_v60  ;;  %2408 = vst.msk [vmem:[%s4743_s3 + $0x5c] sm:$0xf] %vm2384_vm1, %v2710_v0  ;;  %2410 = vst.msk [vmem:[%s4743_s3 + $0x64] sm:$0xf] %vm2384_vm1, %v2712_v30  ;;  %v4952_v6 = vmax.f32 %v4022_v36, 0.0  ;;  %v1377_v35 = vadd.f32 %v4469_v24, %v2922_v63  ;;  %v1777_v32 = vadd.f32 %v4469_v24, %v3022_v50  ;;  %v4960_v63 = vld [vmem:[#allocation2_spill] sm:$0xff] }
 0x18b   :  { %v2162_v43 = vmax.f32 %v2064_v1, %v4426_v11  ;;  %v4953_v4 = vmax.f32 %v4030_v17, 0.0  ;;  %v4955_v46 = vmax.f32 %v4954_v58, 0.0  ;;  %v4957_v39 = vmax.f32 %v4956_v54, 0.0  ;;  %v4958_v17 = vld [vmem:[#allocation38_spill] sm:$0xff]  ;;  %v1781_v52 = vpop.f32.mrb[81].mxu1 }
 0x18c   :  { %v2069_v40 = vmax.f32 %v4952_v6, %v1922_v15  ;;  %v2164_v49 = vmax.f32 %v2066_v61, %v2115_v37  ;;  %v1923_v59 = vmax.f32 %v1377_v35, 0.0  ;;  %v2023_v11 = vmax.f32 %v1777_v32, 0.0  ;;  %v2925_v61 = vpop.f32.mrb[80].mxu0  ;;  %v3026_v28 = vpop.f32.mrb[82].mxu1 }
 0x18d   :  { %v2120_v19 = vmax.f32 %v4953_v4, %v2022_v53  ;;  %v2067_v22 = vmax.f32 %v4955_v46, %v1920_v16  ;;  %v2118_v23 = vmax.f32 %v4957_v39, %v2020_v31  ;;  %v2711_v34 = vpack.c.bf16 %v2162_v43, %v2162_v43  ;;  %v1381_v55 = vpop.f32.mrb[81].mxu0 }
 0x18e   :  { %v1369_v36 = vadd.f32 %v4469_v24, %v1368_v44  ;;  %v2713_v9 = vpack.c.bf16 %v2164_v49, %v2164_v49  ;;  %v1769_v60 = vadd.f32 %v4469_v24, %v1768_v5  ;;  %v4959_v12 = vmax.f32 %v4958_v17, 0.0  ;;  %v2926_v29 = vpop.f32.mrb[82].mxu0 }
 0x18f   :  { %v2165_v26 = vmax.f32 %v2067_v22, %v2116_v56  ;;  %v2167_v48 = vmax.f32 %v2069_v40, %v2118_v23  ;;  %2409 = vst.msk [vmem:[%s4743_s3 + $0x60] sm:$0xf] %vm2384_vm1, %v2711_v34  ;;  %v4961_v50 = vmax.f32 %v4960_v63, 0.0  ;;  %v1390_v56 = vadd.f32 %v4469_v24, %v2925_v61  ;;  %v1384_v6 = vpop.f32.mrb[83].mxu0  ;;  %v1784_v40 = vpop.f32.mrb[83].mxu1 }
 0x190   :  { %v2070_v8 = vmax.f32 %v4959_v12, %v1923_v59  ;;  %v1921_v30 = vmax.f32 %v1369_v36, 0.0  ;;  %2411 = vst.msk [vmem:[%s4743_s3 + $0x68] sm:$0xf] %vm2384_vm1, %v2713_v9  ;;  %v2021_v44 = vmax.f32 %v1769_v60, 0.0  ;;  %v1790_v5 = vadd.f32 %v4469_v24, %v3025_v62  ;;  %v4970_v12 = vld [vmem:[#allocation39_spill] sm:$0xff] }
 0x191   :  { %v4517_v0 = vmax.f32 %v4961_v50, %v2023_v11  ;;  %v2714_v1 = vpack.c.bf16 %v2165_v26, %v2165_v26  ;;  %v2716_v15 = vpack.c.bf16 %v2167_v48, %v2167_v48  ;;  %v4962_v37 = vmax.f32 %v4002_v18, 0.0  ;;  %v2929_v50 = vpop.f32.mrb[84].mxu0 }
 0x192   :  { %v1926_v16 = vmax.f32 %v1390_v56, 0.0  ;;  %v1382_v31 = vadd.f32 %v4469_v24, %v1381_v55  ;;  %v1782_v43 = vadd.f32 %v4469_v24, %v1781_v52  ;;  %v4963_v18 = vmax.f32 %v4010_v25, 0.0  ;;  %v1397_v52 = vpop.f32.mrb[85].mxu0 }
 0x193   :  { %v2068_v53 = vmax.f32 %v4962_v37, %v1921_v30  ;;  %2412 = vst.msk [vmem:[%s4743_s3 + $0x6c] sm:$0xf] %vm2384_vm1, %v2714_v1  ;;  %2414 = vst.msk [vmem:[%s4743_s3 + $0x74] sm:$0xf] %vm2384_vm1, %v2716_v15  ;;  %v2026_v32 = vmax.f32 %v1790_v5, 0.0  ;;  %v1393_v49 = vadd.f32 %v4469_v24, %v2926_v29  ;;  %v1793_v4 = vadd.f32 %v4469_v24, %v3026_v28  ;;  %v3029_v30 = vpop.f32.mrb[84].mxu1 }
 0x194   :  { %v2119_v35 = vmax.f32 %v4963_v18, %v2021_v44  ;;  %v4964_v46 = vmax.f32 %v4067_v20, 0.0  ;;  %v1924_v54 = vmax.f32 %v1382_v31, 0.0  ;;  %v2024_v39 = vmax.f32 %v1782_v43, 0.0  ;;  %v4968_v20 = vld [vmem:[#allocation11_spill] sm:$0xff]  ;;  %v1797_v1 = vpop.f32.mrb[85].mxu1  ;;  %v2930_v28 = vpop.f32.mrb[86].mxu0 }
 0x195   :  { %v2166_v58 = vmax.f32 %v2068_v53, %v4464_v51  ;;  %v4965_v34 = vmax.f32 %v4075_v42, 0.0  ;;  %v1927_v11 = vmax.f32 %v1393_v49, 0.0  ;;  %v2027_v36 = vmax.f32 %v1793_v4, 0.0 }
 0x196   :  { %v2073_v22 = vmax.f32 %v4964_v46, %v1926_v16  ;;  %v2168_v23 = vmax.f32 %v2070_v8, %v2119_v35  ;;  %v4966_v9 = vmax.f32 %v4006_v21, 0.0  ;;  %v4967_v48 = vmax.f32 %v4014_v27, 0.0  ;;  %v4972_v16 = vld [vmem:[#allocation40_spill] sm:$0xff]  ;;  %v4974_v35 = vld [vmem:[#allocation42_spill] sm:$0xff] }
 0x197   :  { %v2124_v59 = vmax.f32 %v4965_v34, %v2026_v32  ;;  %v2715_v25 = vpack.c.bf16 %v2166_v58, %v2166_v58  ;;  %v1385_v51 = vadd.f32 %v4469_v24, %v1384_v6  ;;  %v4969_v62 = vmax.f32 %v4968_v20, 0.0 }
 0x198   :  { %v2071_v26 = vmax.f32 %v4966_v9, %v1924_v54  ;;  %v2122_v60 = vmax.f32 %v4967_v48, %v2024_v39  ;;  %v2717_v61 = vpack.c.bf16 %v2168_v23, %v2168_v23  ;;  %v4971_v8 = vmax.f32 %v4970_v12, 0.0  ;;  %v4978_v9 = vld [vmem:[#allocation41_spill] sm:$0xff] }
 0x199   :  { %v2074_v17 = vmax.f32 %v4969_v62, %v1927_v11  ;;  %v1785_v42 = vadd.f32 %v4469_v24, %v1784_v40  ;;  %2413 = vst.msk [vmem:[%s4743_s3 + $0x70] sm:$0xf] %vm2384_vm1, %v2715_v25  ;;  %v1925_v56 = vmax.f32 %v1385_v51, 0.0  ;;  %v1406_v55 = vadd.f32 %v4469_v24, %v2929_v50  ;;  %v1400_v40 = vpop.f32.mrb[87].mxu0 }
 0x19a   :  { %v4555_v63 = vmax.f32 %v4971_v8, %v2027_v36  ;;  %v2169_v27 = vmax.f32 %v2071_v26, %v2120_v19  ;;  %v2171_v21 = vmax.f32 %v2073_v22, %v2122_v60  ;;  %2415 = vst.msk [vmem:[%s4743_s3 + $0x78] sm:$0xf] %vm2384_vm1, %v2717_v61  ;;  %v1806_v44 = vadd.f32 %v4469_v24, %v3029_v30  ;;  %v3030_v19 = vpop.f32.mrb[86].mxu1  ;;  %v4980_v60 = vld [vmem:[#allocation43_spill] sm:$0xff] }
 0x19b   :  { %v2025_v15 = vmax.f32 %v1785_v42, 0.0  ;;  %v1398_v5 = vadd.f32 %v4469_v24, %v1397_v52  ;;  %v1798_v29 = vadd.f32 %v4469_v24, %v1797_v1  ;;  %v4973_v31 = vmax.f32 %v4972_v16, 0.0  ;;  %v1800_v18 = vpop.f32.mrb[87].mxu1  ;;  %v4986_v16 = vld [vmem:[#allocation46_spill] sm:$0xff] }
 0x19c   :  { %v2718_v37 = vpack.c.bf16 %v2169_v27, %v2169_v27  ;;  %v2720_v53 = vpack.c.bf16 %v2171_v21, %v2171_v21  ;;  %v1930_v6 = vmax.f32 %v1406_v55, 0.0  ;;  %v4975_v32 = vmax.f32 %v4974_v35, 0.0  ;;  %v3033_v30 = vpop.f32.mrb[88].mxu1 }
 0x19d   :  { %v2072_v43 = vmax.f32 %v4973_v31, %v1925_v56  ;;  %v2030_v4 = vmax.f32 %v1806_v44, 0.0  ;;  %v1928_v58 = vmax.f32 %v1398_v5, 0.0  ;;  %v2028_v46 = vmax.f32 %v1798_v29, 0.0  ;;  %v4984_v56 = vld [vmem:[#allocation45_spill] sm:$0xff]  ;;  %v1813_v44 = vpop.f32.mrb[89].mxu1 }
 0x19e   :  { %v2123_v49 = vmax.f32 %v4975_v32, %v2025_v15  ;;  %2416 = vst.msk [vmem:[%s4743_s3 + $0x7c] sm:$0xf] %vm2384_vm1, %v2718_v37  ;;  %2418 = vst.msk [vmem:[%s4743_s3 + $0x84] sm:$0xf] %vm2384_vm1, %v2720_v53  ;;  %v4976_v54 = vmax.f32 %v4114_v7, 0.0  ;;  %v1409_v23 = vadd.f32 %v4469_v24, %v2930_v28  ;;  %v1809_v34 = vadd.f32 %v4469_v24, %v3030_v19  ;;  %v3034_v53 = vpop.f32.mrb[90].mxu1 }
 0x19f   :  { %v2170_v22 = vmax.f32 %v2072_v43, %v4517_v0  ;;  %v4977_v36 = vmax.f32 %v4121_v13, 0.0  ;;  %v4979_v26 = vmax.f32 %v4978_v9, 0.0  ;;  %v4981_v51 = vmax.f32 %v4980_v60, 0.0  ;;  %v4982_v13 = vld [vmem:[#allocation44_spill] sm:$0xff]  ;;  %v1816_v32 = vpop.f32.mrb[91].mxu1 }
 0x1a0   :  { %v2077_v39 = vmax.f32 %v4976_v54, %v1930_v6  ;;  %v2172_v11 = vmax.f32 %v2074_v17, %v2123_v49  ;;  %v1931_v62 = vmax.f32 %v1409_v23, 0.0  ;;  %v2031_v0 = vmax.f32 %v1809_v34, 0.0  ;;  %v2933_v17 = vpop.f32.mrb[88].mxu0  ;;  %v4988_v49 = vld [vmem:[#allocation48_spill] sm:$0xff] }
 0x1a1   :  { %v2128_v25 = vmax.f32 %v4977_v36, %v2030_v4  ;;  %v2075_v48 = vmax.f32 %v4979_v26, %v1928_v58  ;;  %v2126_v61 = vmax.f32 %v4981_v51, %v2028_v46  ;;  %v2719_v20 = vpack.c.bf16 %v2170_v22, %v2170_v22  ;;  %v1413_v15 = vpop.f32.mrb[89].mxu0  ;;  %v4991_v26 = vld [vmem:[#allocation56_spill] sm:$0xff] }
 0x1a2   :  { %v1401_v7 = vadd.f32 %v4469_v24, %v1400_v40  ;;  %v2721_v12 = vpack.c.bf16 %v2172_v11, %v2172_v11  ;;  %v1801_v50 = vadd.f32 %v4469_v24, %v1800_v18  ;;  %v4983_v27 = vmax.f32 %v4982_v13, 0.0  ;;  %v2934_v37 = vpop.f32.mrb[90].mxu0  ;;  %v4999_v13 = vld [vmem:[#allocation51_spill] sm:$0xff] }
 0x1a3   :  { %v2173_v8 = vmax.f32 %v2075_v48, %v2124_v59  ;;  %v2175_v42 = vmax.f32 %v2077_v39, %v2126_v61  ;;  %2417 = vst.msk [vmem:[%s4743_s3 + $0x80] sm:$0xf] %vm2384_vm1, %v2719_v20  ;;  %v4985_v55 = vmax.f32 %v4984_v56, 0.0  ;;  %v1422_v59 = vadd.f32 %v4469_v24, %v2933_v17  ;;  %v1416_v35 = vpop.f32.mrb[91].mxu0 }
 0x1a4   :  { %v2078_v21 = vmax.f32 %v4983_v27, %v1931_v62  ;;  %v1929_v1 = vmax.f32 %v1401_v7, 0.0  ;;  %2419 = vst.msk [vmem:[%s4743_s3 + $0x88] sm:$0xf] %vm2384_vm1, %v2721_v12  ;;  %v2029_v28 = vmax.f32 %v1801_v50, 0.0  ;;  %v1822_v19 = vadd.f32 %v4469_v24, %v3033_v30  ;;  %v4993_v62 = vld [vmem:[#allocation47_spill] sm:$0xff]  ;;  %v4995_v12 = vld [vmem:[#allocation49_spill] sm:$0xff] }
 0x1a5   :  { %v4603_v52 = vmax.f32 %v4985_v55, %v2031_v0  ;;  %v2722_v5 = vpack.c.bf16 %v2173_v8, %v2173_v8  ;;  %v2724_v29 = vpack.c.bf16 %v2175_v42, %v2175_v42  ;;  %v4987_v31 = vmax.f32 %v4986_v16, 0.0  ;;  %v2937_v55 = vpop.f32.mrb[92].mxu0 }
 0x1a6   :  { %v1934_v6 = vmax.f32 %v1422_v59, 0.0  ;;  %v1414_v40 = vadd.f32 %v4469_v24, %v1413_v15  ;;  %v1814_v18 = vadd.f32 %v4469_v24, %v1813_v44  ;;  %v4989_v4 = vmax.f32 %v4988_v49, 0.0 }
 0x1a7   :  { %v2076_v43 = vmax.f32 %v4987_v31, %v1929_v1  ;;  %2420 = vst.msk [vmem:[%s4743_s3 + $0x8c] sm:$0xf] %vm2384_vm1, %v2722_v5  ;;  %2422 = vst.msk [vmem:[%s4743_s3 + $0x94] sm:$0xf] %vm2384_vm1, %v2724_v29  ;;  %v2034_v46 = vmax.f32 %v1822_v19, 0.0  ;;  %v1425_v22 = vadd.f32 %v4469_v24, %v2934_v37  ;;  %v1825_v54 = vadd.f32 %v4469_v24, %v3034_v53  ;;  %v3037_v1 = vpop.f32.mrb[92].mxu1 }
 0x1a8   :  { %v2127_v58 = vmax.f32 %v4989_v4, %v2029_v28  ;;  %v4990_v23 = vmax.f32 %v4154_v3, 0.0  ;;  %v1932_v11 = vmax.f32 %v1414_v40, 0.0  ;;  %v2032_v36 = vmax.f32 %v1814_v18, 0.0  ;;  %v4997_v3 = vld [vmem:[#allocation50_spill] sm:$0xff]  ;;  %v1429_v29 = vpop.f32.mrb[93].mxu0  ;;  %v1829_v28 = vpop.f32.mrb[93].mxu1 }
 0x1a9   :  { %v2174_v39 = vmax.f32 %v2076_v43, %v4555_v63  ;;  %v4992_v48 = vmax.f32 %v4991_v26, 0.0  ;;  %v1935_v51 = vmax.f32 %v1425_v22, 0.0  ;;  %v2035_v61 = vmax.f32 %v1825_v54, 0.0  ;;  %v2938_v31 = vpop.f32.mrb[94].mxu0  ;;  %v5001_v40 = vld [vmem:[#allocation52_spill] sm:$0xff] }
 0x1aa   :  { %v2081_v34 = vmax.f32 %v4990_v23, %v1934_v6  ;;  %v2176_v9 = vmax.f32 %v2078_v21, %v2127_v58  ;;  %v4994_v0 = vmax.f32 %v4993_v62, 0.0  ;;  %v4996_v8 = vmax.f32 %v4995_v12, 0.0  ;;  %v1432_v49 = vpop.f32.mrb[95].mxu0  ;;  %v5003_v58 = vld [vmem:[#allocation54_spill] sm:$0xff]  ;;  %v5007_v62 = vld [vmem:[#allocation55_spill] sm:$0xff] }
 0x1ab   :  { %v2132_v60 = vmax.f32 %v4992_v48, %v2034_v46  ;;  %v2723_v20 = vpack.c.bf16 %v2174_v39, %v2174_v39  ;;  %v1417_v63 = vadd.f32 %v4469_v24, %v1416_v35  ;;  %v4998_v17 = vmax.f32 %v4997_v3, 0.0  ;;  %v2941_v3 = vpop.f32.mrb[96].mxu0 }
 0x1ac   :  { %v2079_v7 = vmax.f32 %v4994_v0, %v1932_v11  ;;  %v2130_v42 = vmax.f32 %v4996_v8, %v2032_v36  ;;  %v2725_v50 = vpack.c.bf16 %v2176_v9, %v2176_v9  ;;  %v5000_v27 = vmax.f32 %v4999_v13, 0.0 }
 0x1ad   :  { %v2082_v30 = vmax.f32 %v4998_v17, %v1935_v51  ;;  %v1817_v56 = vadd.f32 %v4469_v24, %v1816_v32  ;;  %2421 = vst.msk [vmem:[%s4743_s3 + $0x90] sm:$0xf] %vm2384_vm1, %v2723_v20  ;;  %v1933_v44 = vmax.f32 %v1417_v63, 0.0  ;;  %v1438_v5 = vadd.f32 %v4469_v24, %v2937_v55  ;;  %v5005_v51 = vld [vmem:[#allocation53_spill] sm:$0xff] }
 0x1ae   :  { %v4641_v21 = vmax.f32 %v5000_v27, %v2035_v61  ;;  %v2177_v59 = vmax.f32 %v2079_v7, %v2128_v25  ;;  %v2179_v15 = vmax.f32 %v2081_v34, %v2130_v42  ;;  %2423 = vst.msk [vmem:[%s4743_s3 + $0x98] sm:$0xf] %vm2384_vm1, %v2725_v50  ;;  %v1838_v37 = vadd.f32 %v4469_v24, %v3037_v1  ;;  %v3038_v25 = vpop.f32.mrb[94].mxu1  ;;  %v1445_v1 = vpop.f32.mrb[97].mxu0 }
 0x1af   :  { %v2033_v19 = vmax.f32 %v1817_v56, 0.0  ;;  %v1430_v53 = vadd.f32 %v4469_v24, %v1429_v29  ;;  %v1830_v16 = vadd.f32 %v4469_v24, %v1829_v28  ;;  %v5002_v18 = vmax.f32 %v5001_v40, 0.0  ;;  %v1832_v4 = vpop.f32.mrb[95].mxu1  ;;  %v5013_v29 = vld [vmem:[#allocation4_spill] sm:$0xff] }
 0x1b0   :  { %v2726_v43 = vpack.c.bf16 %v2177_v59, %v2177_v59  ;;  %v2728_v6 = vpack.c.bf16 %v2179_v15, %v2179_v15  ;;  %v1938_v32 = vmax.f32 %v1438_v5, 0.0  ;;  %v5004_v46 = vmax.f32 %v5003_v58, 0.0  ;;  %v2942_v5 = vpop.f32.mrb[98].mxu0 }
 0x1b1   :  { %v2080_v35 = vmax.f32 %v5002_v18, %v1933_v44  ;;  %v2038_v54 = vmax.f32 %v1838_v37, 0.0  ;;  %v1936_v39 = vmax.f32 %v1430_v53, 0.0  ;;  %v2036_v23 = vmax.f32 %v1830_v16, 0.0  ;;  %v1448_v16 = vpop.f32.mrb[99].mxu0 }
 0x1b2   :  { %v2131_v22 = vmax.f32 %v5004_v46, %v2033_v19  ;;  %2424 = vst.msk [vmem:[%s4743_s3 + $0x9c] sm:$0xf] %vm2384_vm1, %v2726_v43  ;;  %2426 = vst.msk [vmem:[%s4743_s3 + $0xa4] sm:$0xf] %vm2384_vm1, %v2728_v6  ;;  %v2085_v11 = vmax.f32 %v1889_v45, %v1938_v32  ;;  %v1441_v36 = vadd.f32 %v4469_v24, %v2938_v31  ;;  %v5006_v61 = vmax.f32 %v5005_v51, 0.0  ;;  %v5014_v31 = vld [vmem:[#allocation10_spill] sm:$0xff] }
 0x1b3   :  { %v2178_v34 = vmax.f32 %v2080_v35, %v4603_v52  ;;  %v1841_v9 = vadd.f32 %v4469_v24, %v3038_v25  ;;  %v2136_v48 = vmax.f32 %v1989_v14, %v2038_v54  ;;  %v5008_v0 = vmax.f32 %v5007_v62, 0.0  ;;  %v5016_v54 = vld [vmem:[#allocation3_spill] sm:$0xff] }
 0x1b4   :  { %v2180_v26 = vmax.f32 %v2082_v30, %v2131_v22  ;;  %v2083_v20 = vmax.f32 %v5006_v61, %v1936_v39  ;;  %v1939_v8 = vmax.f32 %v1441_v36, 0.0  ;;  %v1433_v33 = vadd.f32 %v4469_v24, %v1432_v49  ;;  %v5011_v30 = vld [vmem:[#allocation58_spill] sm:$0xff] }
 0x1b5   :  { %v2134_v7 = vmax.f32 %v5008_v0, %v2036_v23  ;;  %v2727_v12 = vpack.c.bf16 %v2178_v34, %v2178_v34  ;;  %v2039_v52 = vmax.f32 %v1841_v9, 0.0  ;;  %v1833_v50 = vadd.f32 %v4469_v24, %v1832_v4 }
 0x1b6   :  { %v2729_v45 = vpack.c.bf16 %v2180_v26, %v2180_v26  ;;  %v2181_v42 = vmax.f32 %v2083_v20, %v2132_v60  ;;  %v5010_v14 = vmax.f32 %v5009_v2, 0.0  ;;  %v5012_v13 = vmax.f32 %v5011_v30, 0.0 }
 0x1b7   :  { %v2183_v63 = vmax.f32 %v2085_v11, %v2134_v7  ;;  %2425 = vst.msk [vmem:[%s4743_s3 + $0xa0] sm:$0xf] %vm2384_vm1, %v2727_v12  ;;  %v1937_v56 = vmax.f32 %v1433_v33, 0.0  ;;  %v1454_v55 = vadd.f32 %v4469_v24, %v2941_v3  ;;  %v2037_v15 = vmax.f32 %v1833_v50, 0.0 }
 0x1b8   :  { %v2086_v17 = vmax.f32 %v5010_v14, %v1939_v8  ;;  %v2137_v27 = vmax.f32 %v5012_v13, %v2039_v52  ;;  %2427 = vst.msk [vmem:[%s4743_s3 + $0xa8] sm:$0xf] %vm2384_vm1, %v2729_v45  ;;  %v2730_v60 = vpack.c.bf16 %v2181_v42, %v2181_v42  ;;  %v1446_v44 = vadd.f32 %v4469_v24, %v1445_v1 }
 0x1b9   :  { %v2732_v59 = vpack.c.bf16 %v2183_v63, %v2183_v63  ;;  %v1991_v28 = vmax.f32 %v5013_v29, 0.0  ;;  %v2084_v19 = vmax.f32 %v1888_v38, %v1937_v56  ;;  %v1942_v37 = vmax.f32 %v1454_v55, 0.0 }
 0x1ba   :  { %v1457_v53 = vadd.f32 %v4469_v24, %v2942_v5  ;;  %v1891_v25 = vmax.f32 %v5014_v31, 0.0  ;;  %2428 = vst.msk [vmem:[%s4743_s3 + $0xac] sm:$0xf] %vm2384_vm1, %v2730_v60  ;;  %v5015_v43 = vmax.f32 %v4193_v41, 0.0  ;;  %v1940_v38 = vmax.f32 %v1446_v44, 0.0 }
 0x1bb   :  { %2430 = vst.msk [vmem:[%s4743_s3 + $0xb4] sm:$0xf] %vm2384_vm1, %v2732_v59  ;;  %v1449_v6 = vadd.f32 %v4469_v24, %v1448_v16  ;;  %v1992_v40 = vmax.f32 %v4329_v57, 0.0  ;;  %v2182_v18 = vmax.f32 %v2084_v19, %v4641_v21  ;;  %v2089_v35 = vmax.f32 %v1942_v37, %v1991_v28  ;;  %v5017_v24 = vld [vmem:[#allocation59_spill] sm:$0xff] }
 0x1bc   :  { %v2135_v10 = vmax.f32 %v5015_v43, %v2037_v15  ;;  %v1943_v32 = vmax.f32 %v1457_v53, 0.0  ;;  %v1892_v49 = vmax.f32 %v4287_v47, 0.0  ;;  %v2087_v58 = vmax.f32 %v1891_v25, %v1940_v38 }
 0x1bd   :  { %v1941_v46 = vmax.f32 %v1449_v6, 0.0  ;;  %v2731_v22 = vpack.c.bf16 %v2182_v18, %v2182_v18  ;;  %v2138_v39 = vmax.f32 %v5016_v54, %v2089_v35 }
 0x1be   :  { %v2184_v4 = vmax.f32 %v2086_v17, %v2135_v10  ;;  %v2090_v23 = vmax.f32 %v1943_v32, %v1992_v40  ;;  %v2185_v34 = vmax.f32 %v2087_v58, %v2136_v48 }
 0x1bf   :  { %v2088_v11 = vmax.f32 %v1892_v49, %v1941_v46  ;;  %2429 = vst.msk [vmem:[%s4743_s3 + $0xb0] sm:$0xf] %vm2384_vm1, %v2731_v22  ;;  %v2687_v57 = vpack.c.bf16 %v2138_v39, %v2138_v39 }
 0x1c0   :  { %v2733_v41 = vpack.c.bf16 %v2184_v4, %v2184_v4  ;;  %v2139_v21 = vmax.f32 %v5017_v24, %v2090_v23  ;;  %v2734_v47 = vpack.c.bf16 %v2185_v34, %v2185_v34 }
 0x1c1   :  { %v2186_v36 = vmax.f32 %v2088_v11, %v2137_v27  ;;  %2385 = vst.msk [vmem:[%s4743_s3] sm:$0xf] %vm2384_vm1, %v2687_v57 }
 0x1c2   :  { %2431 = vst.msk [vmem:[%s4743_s3 + $0xb8] sm:$0xf] %vm2384_vm1, %v2733_v41  ;;  %v2688_v9 = vpack.c.bf16 %v2139_v21, %v2139_v21  ;;  %2432 = vst.msk [vmem:[%s4743_s3 + $0xbc] sm:$0xf] %vm2384_vm1, %v2734_v47 }
 0x1c3   :  { %v2735_v26 = vpack.c.bf16 %v2186_v36, %v2186_v36 }
 0x1c4   :  { %2386 = vst.msk [vmem:[%s4743_s3 + $0x4] sm:$0xf] %vm2384_vm1, %v2688_v9 }
 0x1c5   :  { %2433 = vst.msk [vmem:[%s4743_s3 + $0xc0] sm:$0xf] %vm2384_vm1, %v2735_v26 }

// kernel: shared_forward.5
= control target key start
LH: loop header
LB: loop body
LE: loop exit
PB: predicated region body
PF: predicated region fallthrough
CT: control target
= control target key end

     0   :  { %v2096_v0 = vmov 0   ;;  %vm868_vm0 = vcmask 523264   ;;  %s2897_s1 = inlined_call_operand.vmem [shape: bf16[576,128], index: 1, kind: input, shape index: {}]   ;;  %s2898_s0 = inlined_call_operand.vmem [shape: bf16[288,576], index: 0, kind: input, shape index: {}]   ;;  %s2899_s2 = inlined_call_operand.vmem [shape: f32[1,128], index: 2, kind: input, shape index: {}]   ;;  %s2900_s3 = inlined_call_operand.vmem [shape: bf16[72,128], index: 3, kind: output, shape index: {}]  }
   0x1   :  { %923 = vmatprep.subr.bf16.mxu0 %v2096_v0  ;;  %1819 = vmatprep.subr.bf16.mxu1 %v2096_v0  ;;  %v1934_v1 = vld [vmem:[%s2897_s1] sm:$0xff]   ;;  %v1936_v3 = vld [vmem:[%s2897_s1 + $0x8] sm:$0xff]   ;;  %v1938_v5 = vld [vmem:[%s2897_s1 + $0x10] sm:$0xff]  }
   0x2   :  { %v2125_v2 = vld [vmem:[%s2897_s1 + $0x80] sm:$0xff]   ;;  %924 = vmatpush1.bf16.msra.mxu0 %v1934_v1  ;;  %v2135_v4 = vld [vmem:[%s2897_s1 + $0x88] sm:$0xff]   ;;  %v2146_v6 = vld [vmem:[%s2897_s1 + $0x90] sm:$0xff]  }
   0x3   :  { %1835 = vmatpush1.bf16.msra.mxu1 %v2125_v2  ;;  %925 = vmatprep.subr.bf16.mxu0 %v2096_v0  ;;  %v1940_v7 = vld [vmem:[%s2897_s1 + $0x18] sm:$0xff]   ;;  %v1942_v9 = vld [vmem:[%s2897_s1 + $0x20] sm:$0xff]   ;;  %v1944_v11 = vld [vmem:[%s2897_s1 + $0x28] sm:$0xff]  }
   0x4   :  { %1820 = vmatprep.subr.bf16.mxu1 %v2096_v0  ;;  %v2157_v8 = vld [vmem:[%s2897_s1 + $0x98] sm:$0xff]   ;;  %v2168_v10 = vld [vmem:[%s2897_s1 + $0xa0] sm:$0xff]   ;;  %v2179_v12 = vld [vmem:[%s2897_s1 + $0xa8] sm:$0xff]  }
   0x5   :  { %v1946_v13 = vld [vmem:[%s2897_s1 + $0x30] sm:$0xff]   ;;  %v1948_v15 = vld [vmem:[%s2897_s1 + $0x38] sm:$0xff]   ;;  %v1950_v17 = vld [vmem:[%s2897_s1 + $0x40] sm:$0xff]  }
   0x6   :  { %926 = vmatpush1.bf16.msra.mxu0 %v1936_v3  ;;  %v2190_v14 = vld [vmem:[%s2897_s1 + $0xb0] sm:$0xff]   ;;  %v2201_v16 = vld [vmem:[%s2897_s1 + $0xb8] sm:$0xff]   ;;  %v2212_v18 = vld [vmem:[%s2897_s1 + $0xc0] sm:$0xff]  }
   0x7   :  { %1836 = vmatpush1.bf16.msra.mxu1 %v2135_v4  ;;  %927 = vmatprep.subr.bf16.mxu0 %v2096_v0  ;;  %v1968_v19 = vld [vmem:[%s2898_s0 + $0x4] ss:$20 sps:$4 sm:$0xff]   ;;  %v1952_v20 = vld [vmem:[%s2897_s1 + $0x48] sm:$0xff]   ;;  %v1954_v23 = vld [vmem:[%s2897_s1 + $0x50] sm:$0xff]  }
   0x8   :  { %1821 = vmatprep.subr.bf16.mxu1 %v2096_v0  ;;  %v1971_v21 = vld [vmem:[%s2898_s0 + $0xd4] ss:$20 sps:$4 sm:$0xff]   ;;  %955 = vmatprep.mubr.bf16.mxu0 %v1968_v19  ;;  %v1956_v25 = vld [vmem:[%s2897_s1 + $0x58] sm:$0xff]   ;;  %v1958_v27 = vld [vmem:[%s2897_s1 + $0x60] sm:$0xff]  }
   0x9   :  { %v2229_v22 = vld [vmem:[%s2897_s1 + $0xc8] sm:$0xff]   ;;  %1172 = vmatprep.mubr.bf16.mxu1 %v1971_v21  ;;  %v2240_v24 = vld [vmem:[%s2897_s1 + $0xd0] sm:$0xff]   ;;  %v2251_v26 = vld [vmem:[%s2897_s1 + $0xd8] sm:$0xff]  }
   0xa   :  { %928 = vmatpush1.bf16.msra.mxu0 %v1938_v5  ;;  %v2262_v28 = vld [vmem:[%s2897_s1 + $0xe0] sm:$0xff]   ;;  %v1960_v29 = vld [vmem:[%s2897_s1 + $0x68] sm:$0xff]   ;;  %v1962_v31 = vld [vmem:[%s2897_s1 + $0x70] sm:$0xff]  }
   0xb   :  { %1837 = vmatpush1.bf16.msra.mxu1 %v2146_v6  ;;  %929 = vmatprep.subr.bf16.mxu0 %v2096_v0  ;;  %v2273_v30 = vld [vmem:[%s2897_s1 + $0xe8] sm:$0xff]   ;;  %v2284_v32 = vld [vmem:[%s2897_s1 + $0xf0] sm:$0xff]   ;;  %v1964_v33 = vld [vmem:[%s2897_s1 + $0x78] sm:$0xff]  }
   0xc   :  { %1822 = vmatprep.subr.bf16.mxu1 %v2096_v0  ;;  %v2295_v34 = vld [vmem:[%s2897_s1 + $0xf8] sm:$0xff]   ;;  %v1978_v35 = vld [vmem:[%s2897_s1 + $0x100] sm:$0xff]   ;;  %v1997_v40 = vld [vmem:[%s2897_s1 + $0x108] sm:$0xff]  }
   0xd   :  { %v1966_v36 = vld [vmem:[%s2898_s0] ss:$20 sps:$4 sm:$0xff]   ;;  %v1969_v37 = vld [vmem:[%s2898_s0 + $0xd0] ss:$20 sps:$4 sm:$0xff]   ;;  %v1976_v41 = vld [vmem:[%s2898_s0 + $0x28] ss:$20 sps:$4 sm:$0xff]  }
   0xe   :  { %930 = vmatpush1.bf16.msra.mxu0 %v1940_v7  ;;  %v1972_v38 = vld [vmem:[%s2898_s0 + $0x2c] ss:$20 sps:$4 sm:$0xff]   ;;  %v1974_v39 = vld [vmem:[%s2898_s0 + $0xfc] ss:$20 sps:$4 sm:$0xff]   ;;  %v1979_v44 = vld [vmem:[%s2898_s0 + $0x54] ss:$20 sps:$4 sm:$0xff]  }
   0xf   :  { %1838 = vmatpush1.bf16.msra.mxu1 %v2157_v8  ;;  %931 = vmatprep.subr.bf16.mxu0 %v2096_v0  ;;  %v2016_v42 = vld [vmem:[%s2897_s1 + $0x110] sm:$0xff]   ;;  %v1977_v43 = vld [vmem:[%s2898_s0 + $0xf8] ss:$20 sps:$4 sm:$0xff]   ;;  %v1990_v52 = vld [vmem:[%s2898_s0 + $0x148] ss:$20 sps:$4 sm:$0xff]  }
  0x10   :  { %1823 = vmatprep.subr.bf16.mxu1 %v2096_v0  ;;  %v1981_v45 = vld [vmem:[%s2898_s0 + $0x124] ss:$20 sps:$4 sm:$0xff]   ;;  %v1984_v48 = vld [vmem:[%s2898_s0 + $0x120] ss:$20 sps:$4 sm:$0xff]   ;;  %v1985_v49 = vld [vmem:[%s2898_s0 + $0x7c] ss:$20 sps:$4 sm:$0xff]  }
  0x11   :  { %v2039_v46 = vld [vmem:[%s2897_s1 + $0x118] sm:$0xff]   ;;  %v1983_v47 = vld [vmem:[%s2898_s0 + $0x50] ss:$20 sps:$4 sm:$0xff]   ;;  %v1987_v50 = vld [vmem:[%s2898_s0 + $0x14c] ss:$20 sps:$4 sm:$0xff]  }
  0x12   :  { %932 = vmatpush1.bf16.msra.mxu0 %v1942_v9  ;;  %v1989_v51 = vld [vmem:[%s2898_s0 + $0x78] ss:$20 sps:$4 sm:$0xff]   ;;  %v1993_v54 = vld [vmem:[%s2898_s0 + $0x174] ss:$20 sps:$4 sm:$0xff]   ;;  %v1996_v56 = vld [vmem:[%s2898_s0 + $0x170] ss:$20 sps:$4 sm:$0xff]  }
  0x13   :  { %1839 = vmatpush1.bf16.msra.mxu1 %v2168_v10  ;;  %933 = vmatprep.subr.bf16.mxu0 %v2096_v0  ;;  %v1991_v53 = vld [vmem:[%s2898_s0 + $0xa4] ss:$20 sps:$4 sm:$0xff]   ;;  %v1995_v55 = vld [vmem:[%s2898_s0 + $0xa0] ss:$20 sps:$4 sm:$0xff]   ;;  %v2000_v58 = vld [vmem:[%s2898_s0 + $0x19c] ss:$20 sps:$4 sm:$0xff]  }
  0x14   :  { %1824 = vmatprep.subr.bf16.mxu1 %v2096_v0  ;;  %v1998_v57 = vld [vmem:[%s2898_s0 + $0xcc] ss:$20 sps:$4 sm:$0xff]   ;;  %v2002_v59 = vld [vmem:[%s2898_s0 + $0xc8] ss:$20 sps:$4 sm:$0xff]   ;;  %v2006_v62 = vld [vmem:[%s2898_s0 + $0x1c4] ss:$20 sps:$4 sm:$0xff]  }
  0x15   :  { %v2003_v60 = vld [vmem:[%s2898_s0 + $0x198] ss:$20 sps:$4 sm:$0xff]   ;;  %v2004_v61 = vld [vmem:[%s2898_s0 + $0xf4] ss:$20 sps:$4 sm:$0xff]   ;;  %v2008_v63 = vld [vmem:[%s2898_s0 + $0xf0] ss:$20 sps:$4 sm:$0xff]  }
  0x16   :  { %934 = vmatpush1.bf16.msra.mxu0 %v1944_v11  ;;  %v2009_v1 = vld [vmem:[%s2898_s0 + $0x1c0] ss:$20 sps:$4 sm:$0xff]   ;;  %v2015_v5 = vld [vmem:[%s2898_s0 + $0x1e8] ss:$20 sps:$4 sm:$0xff]   ;;  %v2022_v9 = vld [vmem:[%s2898_s0 + $0x210] ss:$20 sps:$4 sm:$0xff]  }
  0x17   :  { %1840 = vmatpush1.bf16.msra.mxu1 %v2179_v12  ;;  %935 = vmatprep.subr.bf16.mxu0 %v2096_v0  ;;  %v2012_v3 = vld [vmem:[%s2898_s0 + $0x1ec] ss:$20 sps:$4 sm:$0xff]   ;;  %v2019_v7 = vld [vmem:[%s2898_s0 + $0x214] ss:$20 sps:$4 sm:$0xff]   ;;  %v2025_v11 = vld [vmem:[%s2898_s0 + $0x23c] ss:$20 sps:$4 sm:$0xff]  }
  0x18   :  { %1825 = vmatprep.subr.bf16.mxu1 %v2096_v0  ;;  %v2040_v19 = vld [vmem:[%s2898_s0 + $0x1b8] ss:$20 sps:$4 sm:$0xff]  }
  0x19   :  { %v2042_v21 = vld [vmem:[%s2898_s0 + $0x1e4] ss:$20 sps:$4 sm:$0xff]  }
  0x1a   :  { %936 = vmatpush1.bf16.msra.mxu0 %v1946_v13  ;;  %v2029_v13 = vld [vmem:[%s2898_s0 + $0x194] ss:$20 sps:$4 sm:$0xff]  }
  0x1b   :  { %1841 = vmatpush1.bf16.msra.mxu1 %v2190_v14  ;;  %937 = vmatprep.subr.bf16.mxu0 %v2096_v0 }
  0x1c   :  { %1826 = vmatprep.subr.bf16.mxu1 %v2096_v0 }
  0x1e   :  { %938 = vmatpush1.bf16.msra.mxu0 %v1948_v15  ;;  %v2033_v15 = vld [vmem:[%s2898_s0 + $0x190] ss:$20 sps:$4 sm:$0xff]  }
  0x1f   :  { %1842 = vmatpush1.bf16.msra.mxu1 %v2201_v16  ;;  %939 = vmatprep.subr.bf16.mxu0 %v2096_v0 }
  0x20   :  { %1827 = vmatprep.subr.bf16.mxu1 %v2096_v0 }
  0x22   :  { %940 = vmatpush1.bf16.msra.mxu0 %v1950_v17  ;;  %v2035_v17 = vld [vmem:[%s2898_s0 + $0x1bc] ss:$20 sps:$4 sm:$0xff]  }
  0x23   :  { %1843 = vmatpush1.bf16.msra.mxu1 %v2212_v18  ;;  %941 = vmatprep.subr.bf16.mxu0 %v2096_v0 }
  0x24   :  { %1828 = vmatprep.subr.bf16.mxu1 %v2096_v0 }
  0x26   :  { %942 = vmatpush1.bf16.msra.mxu0 %v1952_v20  ;;  %v2041_v20 = vld [vmem:[%s2898_s0 + $0x288] ss:$20 sps:$4 sm:$0xff]  }
  0x27   :  { %1844 = vmatpush1.bf16.msra.mxu1 %v2229_v22  ;;  %943 = vmatprep.subr.bf16.mxu0 %v2096_v0 }
  0x28   :  { %1829 = vmatprep.subr.bf16.mxu1 %v2096_v0 }
  0x2a   :  { %944 = vmatpush1.bf16.msra.mxu0 %v1954_v23  ;;  %v2046_v23 = vld [vmem:[%s2898_s0 + $0x1e0] ss:$20 sps:$4 sm:$0xff]  }
  0x2b   :  { %1845 = vmatpush1.bf16.msra.mxu1 %v2240_v24  ;;  %945 = vmatprep.subr.bf16.mxu0 %v2096_v0 }
  0x2c   :  { %1830 = vmatprep.subr.bf16.mxu1 %v2096_v0 }
  0x2e   :  { %946 = vmatpush1.bf16.msra.mxu0 %v1956_v25  ;;  %v2048_v25 = vld [vmem:[%s2898_s0 + $0x20c] ss:$20 sps:$4 sm:$0xff]  }
  0x2f   :  { %1846 = vmatpush1.bf16.msra.mxu1 %v2251_v26  ;;  %947 = vmatprep.subr.bf16.mxu0 %v2096_v0 }
  0x30   :  { %1831 = vmatprep.subr.bf16.mxu1 %v2096_v0 }
  0x32   :  { %948 = vmatpush1.bf16.msra.mxu0 %v1958_v27  ;;  %v2051_v27 = vld [vmem:[%s2898_s0 + $0x208] ss:$20 sps:$4 sm:$0xff]  }
  0x33   :  { %1847 = vmatpush1.bf16.msra.mxu1 %v2262_v28  ;;  %949 = vmatprep.subr.bf16.mxu0 %v2096_v0 }
  0x34   :  { %1832 = vmatprep.subr.bf16.mxu1 %v2096_v0 }
  0x36   :  { %950 = vmatpush1.bf16.msra.mxu0 %v1960_v29  ;;  %v2053_v29 = vld [vmem:[%s2898_s0 + $0x234] ss:$20 sps:$4 sm:$0xff]  }
  0x37   :  { %1848 = vmatpush1.bf16.msra.mxu1 %v2273_v30  ;;  %951 = vmatprep.subr.bf16.mxu0 %v2096_v0 }
  0x38   :  { %1833 = vmatprep.subr.bf16.mxu1 %v2096_v0 }
  0x3a   :  { %952 = vmatpush1.bf16.msra.mxu0 %v1962_v31  ;;  %v2056_v31 = vld [vmem:[%s2898_s0 + $0x230] ss:$20 sps:$4 sm:$0xff]  }
  0x3b   :  { %1849 = vmatpush1.bf16.msra.mxu1 %v2284_v32  ;;  %953 = vmatprep.subr.bf16.mxu0 %v2096_v0 }
  0x3c   :  { %1834 = vmatprep.subr.bf16.mxu1 %v2096_v0 }
  0x3e   :  { %954 = vmatpush1.bf16.msra.mxu0 %v1964_v33  ;;  %v2058_v33 = vld [vmem:[%s2898_s0 + $0x25c] ss:$20 sps:$4 sm:$0xff]  }
  0x3f   :  { %1850 = vmatpush1.bf16.msra.mxu1 %v2295_v34  ;;  %1100 = vmatprep.subr.bf16.mxu0 %v2096_v0 }
  0x40   :  { %1775 = vmatprep.subr.bf16.mxu1 %v1978_v35 }
  0x41   :  { %956 = vmatmul.mubr.bf16.vlgmr.msra.gmra.mrb[0].mxu0 %v1966_v36  ;;  %v2062_v36 = vld [vmem:[%s2898_s0 + $0xd8] ss:$20 sps:$4 sm:$0xff]  }
  0x42   :  { %1173 = vmatmul.mubr.bf16.vlgmr.msra.gmra.mrb[0].mxu1 %v1969_v37  ;;  %1101 = vmatpush1.bf16.msra.mxu0 %v2125_v2  ;;  %v2010_v2 = vld [vmem:[%s2898_s0 + $0x11c] ss:$20 sps:$4 sm:$0xff]   ;;  %v2063_v37 = vld [vmem:[%s2898_s0 + $0x284] ss:$20 sps:$4 sm:$0xff]  }
  0x43   :  { %963 = vmatprep.mubr.bf16.mxu0 %v1972_v38  ;;  %1180 = vmatprep.mubr.bf16.mxu1 %v1974_v39  ;;  %v2065_v38 = vld [vmem:[%s2898_s0 + $0x100] ss:$20 sps:$4 sm:$0xff]  }
  0x44   :  { %1102 = vmatprep.subr.bf16.mxu0 %v2096_v0  ;;  %1776 = vmatpush3.bf16.msra.mxu1 %v1978_v35  ;;  %v2061_v35 = vld [vmem:[%s2898_s0 + $0x258] ss:$20 sps:$4 sm:$0xff]   ;;  %v2066_v39 = vld [vmem:[%s2898_s0 + $0x280] ss:$20 sps:$4 sm:$0xff]  }
  0x45   :  { %1777 = vmatprep.subr.bf16.mxu1 %v1997_v40 }
  0x46   :  { %1103 = vmatpush1.bf16.msra.mxu0 %v2135_v4  ;;  %v2014_v4 = vld [vmem:[%s2898_s0 + $0x118] ss:$20 sps:$4 sm:$0xff]  }
  0x47   :  { %1104 = vmatprep.subr.bf16.mxu0 %v2096_v0 }
  0x48   :  { %1778 = vmatpush3.bf16.msra.mxu1 %v1997_v40  ;;  %v2067_v40 = vld [vmem:[%s2898_s0 + $0x128] ss:$20 sps:$4 sm:$0xff]  }
  0x49   :  { %964 = vmatmul.mubr.bf16.gmra.mrb[4].mxu0 %v1976_v41  ;;  %1779 = vmatprep.subr.bf16.mxu1 %v2016_v42  ;;  %v2068_v41 = vld [vmem:[%s2898_s0 + $0x2ac] ss:$20 sps:$4 sm:$0xff]  }
  0x4a   :  { %1181 = vmatmul.mubr.bf16.gmra.mrb[4].mxu1 %v1977_v43  ;;  %971 = vmatprep.mubr.bf16.mxu0 %v1979_v44  ;;  %v2071_v43 = vld [vmem:[%s2898_s0 + $0x2a8] ss:$20 sps:$4 sm:$0xff]   ;;  %v2072_v44 = vld [vmem:[%s2898_s0 + $0x178] ss:$20 sps:$4 sm:$0xff]  }
  0x4b   :  { %1188 = vmatprep.mubr.bf16.mxu1 %v1981_v45  ;;  %1105 = vmatpush1.bf16.msra.mxu0 %v2146_v6  ;;  %v2017_v6 = vld [vmem:[%s2898_s0 + $0x144] ss:$20 sps:$4 sm:$0xff]   ;;  %v2075_v45 = vld [vmem:[%s2898_s0 + $0xc] ss:$20 sps:$4 sm:$0xff]  }
  0x4c   :  { %1106 = vmatprep.subr.bf16.mxu0 %v2096_v0  ;;  %1780 = vmatpush3.bf16.msra.mxu1 %v2016_v42  ;;  %v2070_v42 = vld [vmem:[%s2898_s0 + $0x150] ss:$20 sps:$4 sm:$0xff]  }
  0x4d   :  { %1781 = vmatprep.subr.bf16.mxu1 %v2039_v46 }
  0x4f   :  { %1107 = vmatpush1.bf16.msra.mxu0 %v2157_v8  ;;  %v2021_v8 = vld [vmem:[%s2898_s0 + $0x140] ss:$20 sps:$4 sm:$0xff]  }
  0x50   :  { %1108 = vmatprep.subr.bf16.mxu0 %v2096_v0  ;;  %1782 = vmatpush3.bf16.msra.mxu1 %v2039_v46  ;;  %v2076_v46 = vld [vmem:[%s2898_s0 + $0x1a0] ss:$20 sps:$4 sm:$0xff]  }
  0x51   :  { %972 = vmatmul.mubr.bf16.gmra.mrb[8].mxu0 %v1983_v47  ;;  %v2073_v47 = vld [vmem:[%s2898_s0 + $0x8] ss:$20 sps:$4 sm:$0xff]  }
  0x52   :  { %1189 = vmatmul.mubr.bf16.gmra.mrb[8].mxu1 %v1984_v48  ;;  %979 = vmatprep.mubr.bf16.mxu0 %v1985_v49  ;;  %v2077_v48 = vld [vmem:[%s2898_s0 + $0x1c8] ss:$20 sps:$4 sm:$0xff]  }
  0x53   :  { %1196 = vmatprep.mubr.bf16.mxu1 %v1987_v50  ;;  %1109 = vmatpush1.bf16.msra.mxu0 %v2168_v10  ;;  %v2023_v10 = vld [vmem:[%s2898_s0 + $0x16c] ss:$20 sps:$4 sm:$0xff]   ;;  %v2078_v49 = vld [vmem:[%s2898_s0 + $0x34] ss:$20 sps:$4 sm:$0xff]   ;;  %v2080_v50 = vld [vmem:[%s2898_s0 + $0x1f0] ss:$20 sps:$4 sm:$0xff]  }
  0x54   :  { %1110 = vmatprep.subr.bf16.mxu0 %v2096_v0 }
  0x57   :  { %1111 = vmatpush1.bf16.msra.mxu0 %v2179_v12  ;;  %v2028_v12 = vld [vmem:[%s2898_s0 + $0x238] ss:$20 sps:$4 sm:$0xff]  }
  0x58   :  { %1112 = vmatprep.subr.bf16.mxu0 %v2096_v0 }
  0x59   :  { %980 = vmatmul.mubr.bf16.gmra.mrb[12].mxu0 %v1989_v51  ;;  %v2081_v51 = vld [vmem:[%s2898_s0 + $0x30] ss:$20 sps:$4 sm:$0xff]  }
  0x5a   :  { %1197 = vmatmul.mubr.bf16.gmra.mrb[12].mxu1 %v1990_v52  ;;  %987 = vmatprep.mubr.bf16.mxu0 %v1991_v53  ;;  %v2082_v52 = vld [vmem:[%s2898_s0 + $0x218] ss:$20 sps:$4 sm:$0xff]   ;;  %v2083_v53 = vld [vmem:[%s2898_s0 + $0x5c] ss:$20 sps:$4 sm:$0xff]  }
  0x5b   :  { %1204 = vmatprep.mubr.bf16.mxu1 %v1993_v54  ;;  %1113 = vmatpush1.bf16.msra.mxu0 %v2190_v14  ;;  %v2031_v14 = vld [vmem:[%s2898_s0 + $0x264] ss:$20 sps:$4 sm:$0xff]   ;;  %v2085_v54 = vld [vmem:[%s2898_s0 + $0x240] ss:$20 sps:$4 sm:$0xff]  }
  0x5c   :  { %1114 = vmatprep.subr.bf16.mxu0 %v2096_v0 }
  0x5f   :  { %1115 = vmatpush1.bf16.msra.mxu0 %v2201_v16  ;;  %v2034_v16 = vld [vmem:[%s2898_s0 + $0x260] ss:$20 sps:$4 sm:$0xff]  }
  0x60   :  { %1116 = vmatprep.subr.bf16.mxu0 %v2096_v0 }
  0x61   :  { %988 = vmatmul.mubr.bf16.gmra.mrb[16].mxu0 %v1995_v55  ;;  %v2086_v55 = vld [vmem:[%s2898_s0 + $0x58] ss:$20 sps:$4 sm:$0xff]  }
  0x62   :  { %1205 = vmatmul.mubr.bf16.gmra.mrb[16].mxu1 %v1996_v56  ;;  %995 = vmatprep.mubr.bf16.mxu0 %v1998_v57  ;;  %v2087_v56 = vld [vmem:[%s2898_s0 + $0x268] ss:$20 sps:$4 sm:$0xff]   ;;  %v2088_v57 = vld [vmem:[%s2898_s0 + $0x84] ss:$20 sps:$4 sm:$0xff]  }
  0x63   :  { %1212 = vmatprep.mubr.bf16.mxu1 %v2000_v58  ;;  %1117 = vmatpush1.bf16.msra.mxu0 %v2212_v18  ;;  %v2037_v18 = vld [vmem:[%s2898_s0 + $0x28c] ss:$20 sps:$4 sm:$0xff]   ;;  %v2090_v58 = vld [vmem:[%s2898_s0 + $0x290] ss:$20 sps:$4 sm:$0xff]  }
  0x64   :  { %1118 = vmatprep.subr.bf16.mxu0 %v2096_v0 }
  0x67   :  { %1119 = vmatpush1.bf16.msra.mxu0 %v2229_v22  ;;  %v2044_v22 = vld [vmem:[%s2898_s0 + $0x2b4] ss:$20 sps:$4 sm:$0xff]  }
  0x68   :  { %1120 = vmatprep.subr.bf16.mxu0 %v2096_v0 }
  0x69   :  { %996 = vmatmul.mubr.bf16.gmra.mrb[20].mxu0 %v2002_v59  ;;  %v2091_v59 = vld [vmem:[%s2898_s0 + $0x80] ss:$20 sps:$4 sm:$0xff]  }
  0x6a   :  { %1213 = vmatmul.mubr.bf16.gmra.mrb[20].mxu1 %v2003_v60  ;;  %1003 = vmatprep.mubr.bf16.mxu0 %v2004_v61  ;;  %v2092_v60 = vld [vmem:[%s2898_s0 + $0x2b8] ss:$20 sps:$4 sm:$0xff]  }
  0x6b   :  { %1220 = vmatprep.mubr.bf16.mxu1 %v2006_v62  ;;  %1121 = vmatpush1.bf16.msra.mxu0 %v2240_v24  ;;  %v2047_v24 = vld [vmem:[%s2898_s0 + $0x2b0] ss:$20 sps:$4 sm:$0xff]   ;;  %v2093_v61 = vld [vmem:[%s2898_s0 + $0xac] ss:$20 sps:$4 sm:$0xff]   ;;  %v2095_v62 = vld [vmem:[%s2898_s0 + $0xa8] ss:$20 sps:$4 sm:$0xff]  }
  0x6c   :  { %1122 = vmatprep.subr.bf16.mxu0 %v2096_v0 }
  0x6f   :  { %1123 = vmatpush1.bf16.msra.mxu0 %v2251_v26  ;;  %v2050_v26 = vld [vmem:[%s2898_s0 + $0x10] ss:$20 sps:$4 sm:$0xff]  }
  0x70   :  { %1124 = vmatprep.subr.bf16.mxu0 %v2096_v0 }
  0x71   :  { %1004 = vmatmul.mubr.bf16.gmra.mrb[24].mxu0 %v2008_v63 }
  0x72   :  { %1221 = vmatmul.mubr.bf16.gmra.mrb[24].mxu1 %v2009_v1  ;;  %1011 = vmatprep.mubr.bf16.mxu0 %v2010_v2 }
  0x73   :  { %1228 = vmatprep.mubr.bf16.mxu1 %v2012_v3  ;;  %1125 = vmatpush1.bf16.msra.mxu0 %v2262_v28  ;;  %v2052_v28 = vld [vmem:[%s2898_s0 + $0x38] ss:$20 sps:$4 sm:$0xff]  }
  0x74   :  { %1126 = vmatprep.subr.bf16.mxu0 %v2096_v0 }
  0x77   :  { %1127 = vmatpush1.bf16.msra.mxu0 %v2273_v30  ;;  %v2055_v30 = vld [vmem:[%s2898_s0 + $0x60] ss:$20 sps:$4 sm:$0xff]  }
  0x78   :  { %1128 = vmatprep.subr.bf16.mxu0 %v2096_v0 }
  0x79   :  { %1012 = vmatmul.mubr.bf16.gmra.mrb[28].mxu0 %v2014_v4 }
  0x7a   :  { %1229 = vmatmul.mubr.bf16.gmra.mrb[28].mxu1 %v2015_v5  ;;  %1019 = vmatprep.mubr.bf16.mxu0 %v2017_v6 }
  0x7b   :  { %1236 = vmatprep.mubr.bf16.mxu1 %v2019_v7  ;;  %1129 = vmatpush1.bf16.msra.mxu0 %v2284_v32  ;;  %v2057_v32 = vld [vmem:[%s2898_s0 + $0x88] ss:$20 sps:$4 sm:$0xff]  }
  0x7c   :  { %1130 = vmatprep.subr.bf16.mxu0 %v2096_v0  ;;  %v2027_v0 = vld [vmem:[%s2898_s0 + $0x168] ss:$20 sps:$4 sm:$0xff]  }
  0x7f   :  { %1131 = vmatpush1.bf16.msra.mxu0 %v2295_v34  ;;  %v2060_v34 = vld [vmem:[%s2898_s0 + $0xb0] ss:$20 sps:$4 sm:$0xff]  }
  0x81   :  { %1020 = vmatmul.mubr.bf16.gmra.mrb[32].mxu0 %v2021_v8 }
  0x82   :  { %1237 = vmatmul.mubr.bf16.gmra.mrb[32].mxu1 %v2022_v9  ;;  %1027 = vmatprep.mubr.bf16.mxu0 %v2023_v10 }
  0x83   :  { %1244 = vmatprep.mubr.bf16.mxu1 %v2025_v11 }
  0x89   :  { %1028 = vmatmul.mubr.bf16.gmra.mrb[36].mxu0 %v2027_v0 }
  0x8a   :  { %1245 = vmatmul.mubr.bf16.gmra.mrb[36].mxu1 %v2028_v12  ;;  %1035 = vmatprep.mubr.bf16.mxu0 %v2029_v13 }
  0x8b   :  { %1252 = vmatprep.mubr.bf16.mxu1 %v2031_v14 }
  0x91   :  { %1036 = vmatmul.mubr.bf16.gmra.mrb[40].mxu0 %v2033_v15 }
  0x92   :  { %1253 = vmatmul.mubr.bf16.gmra.mrb[40].mxu1 %v2034_v16  ;;  %1043 = vmatprep.mubr.bf16.mxu0 %v2035_v17 }
  0x93   :  { %1260 = vmatprep.mubr.bf16.mxu1 %v2037_v18 }
  0x99   :  { %1044 = vmatmul.mubr.bf16.gmra.mrb[44].mxu0 %v2040_v19  ;;  %v2630_v19 = vld [vmem:[%s2899_s2] ss:$0 sm:$0xff] }
  0x9a   :  { %1261 = vmatmul.mubr.bf16.gmra.mrb[44].mxu1 %v2041_v20  ;;  %1051 = vmatprep.mubr.bf16.mxu0 %v2042_v21 }
  0x9b   :  { %1268 = vmatprep.mubr.bf16.mxu1 %v2044_v22 }
  0xa1   :  { %1052 = vmatmul.mubr.bf16.gmra.mrb[48].mxu0 %v2046_v23 }
  0xa2   :  { %1269 = vmatmul.mubr.bf16.gmra.mrb[48].mxu1 %v2047_v24  ;;  %1059 = vmatprep.mubr.bf16.mxu0 %v2048_v25 }
  0xa3   :  { %1783 = vmatprep.mubr.msk.bf16.mxu1 %vm868_vm0, %v2050_v26 }
  0xa9   :  { %1060 = vmatmul.mubr.bf16.gmra.mrb[52].mxu0 %v2051_v27 }
  0xaa   :  { %1784 = vmatmul.mubr.msk.bf16.vlgmr.msra.gmra.mrb[52].mxu1 %vm868_vm0, %v2052_v28  ;;  %1067 = vmatprep.mubr.bf16.mxu0 %v2053_v29 }
  0xab   :  { %1787 = vmatprep.mubr.msk.bf16.mxu1 %vm868_vm0, %v2055_v30 }
  0xb1   :  { %1068 = vmatmul.mubr.bf16.gmra.mrb[56].mxu0 %v2056_v31 }
  0xb2   :  { %1788 = vmatmul.mubr.msk.bf16.gmra.mrb[56].mxu1 %vm868_vm0, %v2057_v32  ;;  %1075 = vmatprep.mubr.bf16.mxu0 %v2058_v33 }
  0xb3   :  { %1791 = vmatprep.mubr.msk.bf16.mxu1 %vm868_vm0, %v2060_v34 }
  0xb9   :  { %1076 = vmatmul.mubr.bf16.gmra.mrb[60].mxu0 %v2061_v35 }
  0xba   :  { %1792 = vmatmul.mubr.msk.bf16.gmra.mrb[60].mxu1 %vm868_vm0, %v2062_v36  ;;  %1083 = vmatprep.mubr.bf16.mxu0 %v2063_v37 }
  0xbb   :  { %1795 = vmatprep.mubr.msk.bf16.mxu1 %vm868_vm0, %v2065_v38 }
  0xc1   :  { %1084 = vmatmul.mubr.bf16.gmra.mrb[64].mxu0 %v2066_v39 }
  0xc2   :  { %1796 = vmatmul.mubr.msk.bf16.gmra.mrb[64].mxu1 %vm868_vm0, %v2067_v40  ;;  %1091 = vmatprep.mubr.bf16.mxu0 %v2068_v41 }
  0xc3   :  { %1799 = vmatprep.mubr.msk.bf16.mxu1 %vm868_vm0, %v2070_v42 }
  0xc9   :  { %1092 = vmatmul.mubr.bf16.gmra.mrb[68].mxu0 %v2071_v43 }
  0xca   :  { %1800 = vmatmul.mubr.msk.bf16.gmra.mrb[68].mxu1 %vm868_vm0, %v2072_v44  ;;  %1132 = vmatprep.mubr.bf16.mxu0 %v2075_v45 }
  0xcb   :  { %1803 = vmatprep.mubr.msk.bf16.mxu1 %vm868_vm0, %v2076_v46 }
  0xd1   :  { %1133 = vmatmul.mubr.bf16.vlgmr.msra.gmra.mrb[0].mxu0 %v2073_v47 }
  0xd2   :  { %1804 = vmatmul.mubr.msk.bf16.gmra.mrb[72].mxu1 %vm868_vm0, %v2077_v48  ;;  %1140 = vmatprep.mubr.bf16.mxu0 %v2078_v49 }
  0xd3   :  { %1807 = vmatprep.mubr.msk.bf16.mxu1 %vm868_vm0, %v2080_v50 }
  0xd9   :  { %1141 = vmatmul.mubr.bf16.gmra.mrb[4].mxu0 %v2081_v51 }
  0xda   :  { %1808 = vmatmul.mubr.msk.bf16.gmra.mrb[76].mxu1 %vm868_vm0, %v2082_v52  ;;  %1148 = vmatprep.mubr.bf16.mxu0 %v2083_v53 }
  0xdb   :  { %1811 = vmatprep.mubr.msk.bf16.mxu1 %vm868_vm0, %v2085_v54 }
  0xe1   :  { %1149 = vmatmul.mubr.bf16.gmra.mrb[8].mxu0 %v2086_v55 }
  0xe2   :  { %1812 = vmatmul.mubr.msk.bf16.gmra.mrb[80].mxu1 %vm868_vm0, %v2087_v56  ;;  %1156 = vmatprep.mubr.bf16.mxu0 %v2088_v57 }
  0xe3   :  { %1815 = vmatprep.mubr.msk.bf16.mxu1 %vm868_vm0, %v2090_v58 }
  0xe9   :  { %1157 = vmatmul.mubr.bf16.gmra.mrb[12].mxu0 %v2091_v59 }
  0xea   :  { %1816 = vmatmul.mubr.msk.bf16.gmra.mrb[84].mxu1 %vm868_vm0, %v2092_v60  ;;  %1164 = vmatprep.mubr.bf16.mxu0 %v2093_v61 }
  0xf1   :  { %1165 = vmatmul.mubr.bf16.gmra.mrb[16].mxu0 %v2095_v62 }
 0x115   :  { %v1174_v63 = vpop.f32.mrb[0].mxu1 }
 0x116   :  { %v1176_v1 = vpop.f32.mrb[1].mxu1 }
 0x117   :  { %v1177_v2 = vpop.f32.mrb[2].mxu1 }
 0x118   :  { %v1179_v3 = vpop.f32.mrb[3].mxu1 }
 0x11d   :  { %v1182_v4 = vpop.f32.mrb[4].mxu1 }
 0x11e   :  { %v1184_v5 = vpop.f32.mrb[5].mxu1 }
 0x11f   :  { %v1185_v6 = vpop.f32.mrb[6].mxu1 }
 0x120   :  { %v1187_v7 = vpop.f32.mrb[7].mxu1 }
 0x125   :  { %v1190_v8 = vpop.f32.mrb[8].mxu1 }
 0x126   :  { %v1192_v9 = vpop.f32.mrb[9].mxu1 }
 0x127   :  { %v1193_v10 = vpop.f32.mrb[10].mxu1 }
 0x128   :  { %v1195_v11 = vpop.f32.mrb[11].mxu1 }
 0x12d   :  { %v1198_v0 = vpop.f32.mrb[12].mxu1 }
 0x12e   :  { %v1200_v12 = vpop.f32.mrb[13].mxu1 }
 0x12f   :  { %v1201_v13 = vpop.f32.mrb[14].mxu1 }
 0x130   :  { %v1203_v14 = vpop.f32.mrb[15].mxu1 }
 0x135   :  { %v2625_v15 = vpop.f32.mrb[16].mxu1 }
 0x136   :  { %v1208_v16 = vpop.f32.mrb[17].mxu1 }
 0x137   :  { %v1209_v17 = vpop.f32.mrb[18].mxu1 }
 0x138   :  { %v1211_v18 = vpop.f32.mrb[19].mxu1 }
 0x13c   :  { %v997_v20 = vpop.f32.mrb[20].mxu0 }
 0x13d   :  { %v998_v21 = vadd.f32 %v2630_v19, %v997_v20  ;;  %v999_v22 = vpop.f32.mrb[21].mxu0  ;;  %v2633_v23 = vpop.f32.mrb[20].mxu1 }
 0x13e   :  { %v1000_v24 = vpop.f32.mrb[22].mxu0  ;;  %v1216_v25 = vpop.f32.mrb[21].mxu1 }
 0x13f   :  { %v1001_v26 = vadd.f32 %v2630_v19, %v1000_v24  ;;  %v1002_v27 = vpop.f32.mrb[23].mxu0  ;;  %v2636_v28 = vpop.f32.mrb[22].mxu1  ;;  %v2638_v29 = vadd.f32 %v1174_v63, %v998_v21 }
 0x140   :  { %v1219_v30 = vpop.f32.mrb[23].mxu1 }
 0x141   :  { %v2640_v31 = vadd.f32 %v1177_v2, %v1001_v26 }
 0x144   :  { %v1005_v32 = vpop.f32.mrb[24].mxu0 }
 0x145   :  { %v1006_v33 = vadd.f32 %v2630_v19, %v1005_v32  ;;  %v1007_v34 = vpop.f32.mrb[25].mxu0  ;;  %v2643_v35 = vpop.f32.mrb[24].mxu1 }
 0x146   :  { %v1008_v36 = vpop.f32.mrb[26].mxu0  ;;  %v1224_v37 = vpop.f32.mrb[25].mxu1 }
 0x147   :  { %v1009_v38 = vadd.f32 %v2630_v19, %v1008_v36  ;;  %v1010_v39 = vpop.f32.mrb[27].mxu0  ;;  %v2646_v40 = vpop.f32.mrb[26].mxu1  ;;  %v2648_v41 = vadd.f32 %v1182_v4, %v1006_v33 }
 0x148   :  { %v1227_v42 = vpop.f32.mrb[27].mxu1 }
 0x149   :  { %v2650_v43 = vadd.f32 %v1185_v6, %v1009_v38 }
 0x14c   :  { %v1013_v44 = vpop.f32.mrb[28].mxu0 }
 0x14d   :  { %v1014_v45 = vadd.f32 %v2630_v19, %v1013_v44  ;;  %v1015_v46 = vpop.f32.mrb[29].mxu0  ;;  %v2653_v47 = vpop.f32.mrb[28].mxu1 }
 0x14e   :  { %v1016_v48 = vpop.f32.mrb[30].mxu0  ;;  %v1232_v49 = vpop.f32.mrb[29].mxu1 }
 0x14f   :  { %v1017_v50 = vadd.f32 %v2630_v19, %v1016_v48  ;;  %v1018_v51 = vpop.f32.mrb[31].mxu0  ;;  %v2656_v52 = vpop.f32.mrb[30].mxu1  ;;  %v2658_v53 = vadd.f32 %v1190_v8, %v1014_v45 }
 0x150   :  { %v1235_v54 = vpop.f32.mrb[31].mxu1 }
 0x151   :  { %v2660_v55 = vadd.f32 %v1193_v10, %v1017_v50 }
 0x154   :  { %v1021_v56 = vpop.f32.mrb[32].mxu0 }
 0x155   :  { %v1022_v57 = vadd.f32 %v2630_v19, %v1021_v56  ;;  %v1023_v58 = vpop.f32.mrb[33].mxu0  ;;  %v2663_v59 = vpop.f32.mrb[32].mxu1 }
 0x156   :  { %v1024_v60 = vpop.f32.mrb[34].mxu0  ;;  %v1240_v61 = vpop.f32.mrb[33].mxu1 }
 0x157   :  { %v1025_v62 = vadd.f32 %v2630_v19, %v1024_v60  ;;  %v1026_v63 = vpop.f32.mrb[35].mxu0  ;;  %v2666_v1 = vpop.f32.mrb[34].mxu1  ;;  %v2668_v2 = vadd.f32 %v1198_v0, %v1022_v57 }
 0x158   :  { %v1243_v3 = vpop.f32.mrb[35].mxu1 }
 0x159   :  { %v2670_v4 = vadd.f32 %v1201_v13, %v1025_v62 }
 0x15c   :  { %v1029_v5 = vpop.f32.mrb[36].mxu0 }
 0x15d   :  { %v1030_v6 = vadd.f32 %v2630_v19, %v1029_v5  ;;  %v1031_v7 = vpop.f32.mrb[37].mxu0  ;;  %v2673_v8 = vpop.f32.mrb[36].mxu1 }
 0x15e   :  { %v1032_v9 = vpop.f32.mrb[38].mxu0  ;;  %v1248_v10 = vpop.f32.mrb[37].mxu1 }
 0x15f   :  { %v1033_v11 = vadd.f32 %v2630_v19, %v1032_v9  ;;  %v1034_v12 = vpop.f32.mrb[39].mxu0  ;;  %v2676_v14 = vpop.f32.mrb[38].mxu1  ;;  %v2679_v16 = vadd.f32 %v2625_v15, %v1030_v6 }
 0x160   :  { %v1251_v0 = vpop.f32.mrb[39].mxu1 }
 0x161   :  { %v2681_v18 = vadd.f32 %v1209_v17, %v1033_v11 }
 0x164   :  { %v1037_v13 = vpop.f32.mrb[40].mxu0 }
 0x165   :  { %v1038_v20 = vadd.f32 %v2630_v19, %v1037_v13  ;;  %v1039_v21 = vpop.f32.mrb[41].mxu0  ;;  %v2684_v22 = vpop.f32.mrb[40].mxu1 }
 0x166   :  { %v1040_v24 = vpop.f32.mrb[42].mxu0  ;;  %v1256_v25 = vpop.f32.mrb[41].mxu1 }
 0x167   :  { %v1041_v26 = vadd.f32 %v2630_v19, %v1040_v24  ;;  %v1042_v27 = vpop.f32.mrb[43].mxu0  ;;  %v2687_v30 = vpop.f32.mrb[42].mxu1  ;;  %v2690_v32 = vadd.f32 %v2633_v23, %v1038_v20 }
 0x168   :  { %v1259_v15 = vpop.f32.mrb[43].mxu1 }
 0x169   :  { %v2693_v17 = vadd.f32 %v2636_v28, %v1041_v26 }
 0x16c   :  { %v1045_v33 = vpop.f32.mrb[44].mxu0 }
 0x16d   :  { %v1046_v34 = vadd.f32 %v2630_v19, %v1045_v33  ;;  %v1047_v36 = vpop.f32.mrb[45].mxu0  ;;  %v2696_v37 = vpop.f32.mrb[44].mxu1 }
 0x16e   :  { %v1048_v38 = vpop.f32.mrb[46].mxu0  ;;  %v1264_v39 = vpop.f32.mrb[45].mxu1 }
 0x16f   :  { %v1049_v42 = vadd.f32 %v2630_v19, %v1048_v38  ;;  %v1050_v44 = vpop.f32.mrb[47].mxu0  ;;  %v2699_v45 = vpop.f32.mrb[46].mxu1  ;;  %v2702_v23 = vadd.f32 %v2643_v35, %v1046_v34 }
 0x170   :  { %v1267_v46 = vpop.f32.mrb[47].mxu1 }
 0x171   :  { %v2705_v28 = vadd.f32 %v2646_v40, %v1049_v42 }
 0x174   :  { %v1053_v48 = vpop.f32.mrb[48].mxu0 }
 0x175   :  { %v1054_v49 = vadd.f32 %v2630_v19, %v1053_v48  ;;  %v1055_v50 = vpop.f32.mrb[49].mxu0  ;;  %v2708_v51 = vpop.f32.mrb[48].mxu1 }
 0x176   :  { %v1056_v54 = vpop.f32.mrb[50].mxu0  ;;  %v1272_v56 = vpop.f32.mrb[49].mxu1 }
 0x177   :  { %v1057_v57 = vadd.f32 %v2630_v19, %v1056_v54  ;;  %v1058_v58 = vpop.f32.mrb[51].mxu0  ;;  %v2711_v60 = vpop.f32.mrb[50].mxu1  ;;  %v2714_v35 = vadd.f32 %v2653_v47, %v1054_v49 }
 0x178   :  { %v1275_v61 = vpop.f32.mrb[51].mxu1 }
 0x179   :  { %v2717_v40 = vadd.f32 %v2656_v52, %v1057_v57 }
 0x17c   :  { %v1061_v62 = vpop.f32.mrb[52].mxu0 }
 0x17d   :  { %v1062_v63 = vadd.f32 %v2630_v19, %v1061_v62  ;;  %v1063_v3 = vpop.f32.mrb[53].mxu0  ;;  %v2720_v5 = vpop.f32.mrb[52].mxu1 }
 0x17e   :  { %v1064_v6 = vpop.f32.mrb[54].mxu0  ;;  %v2722_v7 = vpop.f32.mrb[53].mxu1 }
 0x17f   :  { %v1065_v9 = vadd.f32 %v2630_v19, %v1064_v6  ;;  %v1066_v10 = vpop.f32.mrb[55].mxu0  ;;  %v2725_v11 = vpop.f32.mrb[54].mxu1  ;;  %v2728_v47 = vadd.f32 %v2663_v59, %v1062_v63 }
 0x180   :  { %v2730_v12 = vpop.f32.mrb[55].mxu1 }
 0x181   :  { %v2733_v52 = vadd.f32 %v2666_v1, %v1065_v9 }
 0x184   :  { %v1069_v0 = vpop.f32.mrb[56].mxu0 }
 0x185   :  { %v1070_v13 = vadd.f32 %v2630_v19, %v1069_v0  ;;  %v1071_v20 = vpop.f32.mrb[57].mxu0  ;;  %v2736_v21 = vpop.f32.mrb[56].mxu1 }
 0x186   :  { %v1072_v24 = vpop.f32.mrb[58].mxu0  ;;  %v2738_v25 = vpop.f32.mrb[57].mxu1 }
 0x187   :  { %v1073_v26 = vadd.f32 %v2630_v19, %v1072_v24  ;;  %v1074_v27 = vpop.f32.mrb[59].mxu0  ;;  %v2741_v15 = vpop.f32.mrb[58].mxu1  ;;  %v2744_v59 = vadd.f32 %v2673_v8, %v1070_v13 }
 0x188   :  { %v2746_v33 = vpop.f32.mrb[59].mxu1 }
 0x189   :  { %v2749_v1 = vadd.f32 %v2676_v14, %v1073_v26 }
 0x18c   :  { %v1077_v34 = vpop.f32.mrb[60].mxu0 }
 0x18d   :  { %v1078_v36 = vadd.f32 %v2630_v19, %v1077_v34  ;;  %v1793_v38 = vpop.f32.mrb[60].mxu1  ;;  %v1079_v39 = vpop.f32.mrb[61].mxu0 }
 0x18e   :  { %v1352_v42 = vadd.f32 %v1793_v38, %v2638_v29  ;;  %v2753_v44 = vpop.f32.mrb[61].mxu1  ;;  %v1080_v46 = vpop.f32.mrb[62].mxu0 }
 0x18f   :  { %v1081_v48 = vadd.f32 %v2630_v19, %v1080_v46  ;;  %v1794_v49 = vpop.f32.mrb[62].mxu1  ;;  %v1082_v8 = vpop.f32.mrb[63].mxu0  ;;  %v2757_v50 = vadd.f32 %v2684_v22, %v1078_v36 }
 0x190   :  { %v2760_v14 = vadd.f32 %v1794_v49, %v2640_v31  ;;  %v2762_v54 = vpop.f32.mrb[63].mxu1 }
 0x191   :  { %v2765_v56 = vadd.f32 %v2687_v30, %v1081_v48 }
 0x194   :  { %v1085_v57 = vpop.f32.mrb[64].mxu0 }
 0x195   :  { %v1086_v29 = vadd.f32 %v2630_v19, %v1085_v57  ;;  %v1797_v58 = vpop.f32.mrb[64].mxu1  ;;  %v1087_v61 = vpop.f32.mrb[65].mxu0 }
 0x196   :  { %v2769_v62 = vadd.f32 %v1797_v58, %v2658_v53  ;;  %v1359_v63 = vpop.f32.mrb[65].mxu1  ;;  %v1088_v3 = vpop.f32.mrb[66].mxu0 }
 0x197   :  { %v2772_v22 = vadd.f32 %v1359_v63, %v2648_v41  ;;  %v1089_v31 = vadd.f32 %v2630_v19, %v1088_v3  ;;  %v1798_v6 = vpop.f32.mrb[66].mxu1  ;;  %v1090_v9 = vpop.f32.mrb[67].mxu0  ;;  %v2776_v30 = vadd.f32 %v2696_v37, %v1086_v29 }
 0x198   :  { %v2779_v10 = vadd.f32 %v1798_v6, %v2660_v55  ;;  %v1362_v0 = vpop.f32.mrb[67].mxu1  ;;  %v1464_v9 = vmax.f32 %v1352_v42, 0.0 }
 0x199   :  { %v2782_v13 = vadd.f32 %v1362_v0, %v2650_v43  ;;  %v2785_v53 = vadd.f32 %v2699_v45, %v1089_v31 }
 0x19c   :  { %v1093_v20 = vpop.f32.mrb[68].mxu0 }
 0x19d   :  { %v1094_v41 = vadd.f32 %v2630_v19, %v1093_v20  ;;  %v1801_v24 = vpop.f32.mrb[68].mxu1  ;;  %v1095_v26 = vpop.f32.mrb[69].mxu0 }
 0x19e   :  { %v1384_v27 = vadd.f32 %v1801_v24, %v2679_v16  ;;  %v1375_v34 = vpop.f32.mrb[69].mxu1  ;;  %v1096_v37 = vpop.f32.mrb[70].mxu0 }
 0x19f   :  { %v2790_v36 = vadd.f32 %v1375_v34, %v2668_v2  ;;  %v1097_v55 = vadd.f32 %v2630_v19, %v1096_v37  ;;  %v1802_v38 = vpop.f32.mrb[70].mxu1  ;;  %v1098_v43 = vpop.f32.mrb[71].mxu0  ;;  %v2794_v39 = vadd.f32 %v2708_v51, %v1094_v41 }
 0x1a0   :  { %v2797_v45 = vadd.f32 %v1802_v38, %v2681_v18  ;;  %v1378_v46 = vpop.f32.mrb[71].mxu1 }
 0x1a1   :  { %v2800_v48 = vadd.f32 %v1378_v46, %v2670_v4  ;;  %v2803_v16 = vadd.f32 %v2711_v60, %v1097_v55  ;;  %v1465_v46 = vmax.f32 %v2760_v14, 0.0 }
 0x1a4   :  { %v1134_v49 = vpop.f32.mrb[0].mxu0 }
 0x1a5   :  { %v1851_v2 = vadd.f32 %v2630_v19, %v1134_v49  ;;  %v1805_v8 = vpop.f32.mrb[72].mxu1  ;;  %v1136_v57 = vpop.f32.mrb[1].mxu0 }
 0x1a6   :  { %v2807_v29 = vadd.f32 %v1805_v8, %v2702_v23  ;;  %v1391_v51 = vpop.f32.mrb[73].mxu1  ;;  %v1137_v58 = vpop.f32.mrb[2].mxu0  ;;  %v1472_v8 = vmax.f32 %v1384_v27, 0.0  ;;  %v1467_v27 = vmax.f32 %v2782_v13, 0.0 }
 0x1a7   :  { %v2810_v18 = vadd.f32 %v1851_v2, %v2722_v7  ;;  %v2813_v61 = vadd.f32 %v1391_v51, %v2690_v32  ;;  %v1852_v4 = vadd.f32 %v2630_v19, %v1137_v58  ;;  %v1806_v60 = vpop.f32.mrb[74].mxu1  ;;  %v1139_v63 = vpop.f32.mrb[3].mxu0 }
 0x1a8   :  { %v2817_v3 = vadd.f32 %v1806_v60, %v2705_v28  ;;  %v1394_v31 = vpop.f32.mrb[75].mxu1 }
 0x1a9   :  { %v1315_v6 = vadd.f32 %v1852_v4, %v2730_v12  ;;  %v1395_v23 = vadd.f32 %v1394_v31, %v2693_v17  ;;  %v1468_v31 = vmax.f32 %v2769_v62, 0.0 }
 0x1ab   :  { %v1455_v0 = vmax.f32 %v1315_v6, 0.0 }
 0x1ac   :  { %v1142_v20 = vpop.f32.mrb[4].mxu0 }
 0x1ad   :  { %v2821_v7 = vmax.f32 %v1455_v0, %v1464_v9  ;;  %v1853_v32 = vadd.f32 %v2630_v19, %v1142_v20  ;;  %v1809_v41 = vpop.f32.mrb[76].mxu1  ;;  %v1144_v24 = vpop.f32.mrb[5].mxu0 }
 0x1ae   :  { %v2825_v26 = vadd.f32 %v1809_v41, %v2728_v47  ;;  %v1407_v34 = vpop.f32.mrb[77].mxu1  ;;  %v1145_v28 = vpop.f32.mrb[6].mxu0  ;;  %v1473_v41 = vmax.f32 %v2797_v45, 0.0  ;;  %v1475_v24 = vmax.f32 %v1395_v23, 0.0 }
 0x1af   :  { %v1320_v37 = vadd.f32 %v1853_v32, %v2720_v5  ;;  %v2829_v12 = vadd.f32 %v1407_v34, %v2714_v35  ;;  %v1854_v17 = vadd.f32 %v2630_v19, %v1145_v28  ;;  %v1810_v42 = vpop.f32.mrb[78].mxu1  ;;  %v1147_v55 = vpop.f32.mrb[7].mxu0  ;;  %v1466_v35 = vmax.f32 %v2772_v22, 0.0 }
 0x1b0   :  { %v1419_v38 = vadd.f32 %v1810_v42, %v2733_v52  ;;  %v1410_v43 = vpop.f32.mrb[79].mxu1 }
 0x1b1   :  { %v1456_v49 = vmax.f32 %v1320_v37, 0.0  ;;  %v1323_v47 = vadd.f32 %v1854_v17, %v2725_v11  ;;  %v2836_v2 = vadd.f32 %v1410_v43, %v2717_v40 }
 0x1b2   :  { %v1481_v5 = vmax.f32 %v1419_v38, 0.0 }
 0x1b3   :  { %v1492_v57 = vmax.f32 %v1456_v49, %v1465_v46  ;;  %v1457_v51 = vmax.f32 %v1323_v47, 0.0 }
 0x1b4   :  { %v2839_v58 = vmax.f32 %v1472_v8, %v1481_v5  ;;  %v1150_v4 = vpop.f32.mrb[8].mxu0 }
 0x1b5   :  { %v1493_v60 = vmax.f32 %v1457_v51, %v1466_v35  ;;  %v1855_v52 = vadd.f32 %v2630_v19, %v1150_v4  ;;  %v1813_v63 = vpop.f32.mrb[80].mxu1  ;;  %v1152_v14 = vpop.f32.mrb[9].mxu0 }
 0x1b6   :  { %v1432_v11 = vadd.f32 %v1813_v63, %v2757_v50  ;;  %v1423_v40 = vpop.f32.mrb[81].mxu1  ;;  %v1153_v6 = vpop.f32.mrb[10].mxu0 }
 0x1b7   :  { %v1328_v22 = vadd.f32 %v1855_v52, %v2738_v25  ;;  %v1424_v9 = vadd.f32 %v1423_v40, %v2744_v59  ;;  %v1856_v0 = vadd.f32 %v2630_v19, %v1153_v6  ;;  %v1814_v20 = vpop.f32.mrb[82].mxu1  ;;  %v1155_v32 = vpop.f32.mrb[11].mxu0  ;;  %v1476_v25 = vmax.f32 %v2807_v29, 0.0 }
 0x1b8   :  { %v1484_v34 = vmax.f32 %v1432_v11, 0.0  ;;  %v1435_v62 = vadd.f32 %v1814_v20, %v2765_v56  ;;  %v1426_v28 = vpop.f32.mrb[83].mxu1  ;;  %v1474_v59 = vmax.f32 %v2813_v61, 0.0  ;;  %v1469_v61 = vmax.f32 %v2779_v10, 0.0 }
 0x1b9   :  { %v1458_v50 = vmax.f32 %v1328_v22, 0.0  ;;  %v1482_v37 = vmax.f32 %v1424_v9, 0.0  ;;  %v1331_v17 = vadd.f32 %v1856_v0, %v2746_v33  ;;  %v1427_v13 = vadd.f32 %v1426_v28, %v2749_v1 }
 0x1ba   :  { %v1502_v42 = vmax.f32 %v1475_v24, %v1484_v34  ;;  %v1485_v55 = vmax.f32 %v1435_v62, 0.0  ;;  %v1477_v6 = vmax.f32 %v2817_v3, 0.0  ;;  %v1470_v24 = vmax.f32 %v2790_v36, 0.0 }
 0x1bb   :  { %v1494_v38 = vmax.f32 %v1458_v50, %v1467_v27  ;;  %v2854_v43 = vmax.f32 %v1473_v41, %v1482_v37  ;;  %v1459_v45 = vmax.f32 %v1331_v17, 0.0  ;;  %v1483_v23 = vmax.f32 %v1427_v13, 0.0 }
 0x1bc   :  { %v1511_v46 = vmax.f32 %v1493_v60, %v1502_v42  ;;  %v1503_v56 = vmax.f32 %v1476_v25, %v1485_v55  ;;  %v1158_v49 = vpop.f32.mrb[12].mxu0  ;;  %v1479_v27 = vmax.f32 %v2836_v2, 0.0  ;;  %v1478_v34 = vmax.f32 %v2829_v12, 0.0 }
 0x1bd   :  { %v1509_v47 = vmax.f32 %v2821_v7, %v2854_v43  ;;  %v1495_v33 = vmax.f32 %v1459_v45, %v1468_v31  ;;  %v1501_v8 = vmax.f32 %v1474_v59, %v1483_v23  ;;  %v1857_v1 = vadd.f32 %v2630_v19, %v1158_v49  ;;  %v1817_v29 = vpop.f32.mrb[84].mxu1  ;;  %v1160_v5 = vpop.f32.mrb[13].mxu0 }
 0x1be   :  { %v1512_v35 = vmax.f32 %v1494_v38, %v1503_v56  ;;  %v1448_v51 = vadd.f32 %v1817_v29, %v2794_v39  ;;  %v1439_v4 = vpop.f32.mrb[85].mxu1  ;;  %v1161_v52 = vpop.f32.mrb[14].mxu0  ;;  %v1471_v12 = vmax.f32 %v2800_v48, 0.0  ;;  %v1454_v56 = vmax.f32 %v2810_v18, 0.0 }
 0x1bf   :  { %v1510_v63 = vmax.f32 %v1492_v57, %v1501_v8  ;;  %v1336_v60 = vadd.f32 %v1857_v1, %v2736_v21  ;;  %v1440_v14 = vadd.f32 %v1439_v4, %v2776_v30  ;;  %v1858_v11 = vadd.f32 %v2630_v19, %v1161_v52  ;;  %v1818_v31 = vpop.f32.mrb[86].mxu1  ;;  %v1163_v40 = vpop.f32.mrb[15].mxu0 }
 0x1c0   :  { %v1488_v22 = vmax.f32 %v1448_v51, 0.0  ;;  %v1451_v10 = vadd.f32 %v1818_v31, %v2803_v16  ;;  %v1442_v9 = vpop.f32.mrb[87].mxu1  ;;  %v1480_v21 = vmax.f32 %v2825_v26, 0.0 }
 0x1c1   :  { %v1738_v39 = vpack.c.bf16 %v1511_v46, %v1510_v63  ;;  %v1460_v0 = vmax.f32 %v1336_v60, 0.0  ;;  %v1486_v20 = vmax.f32 %v1440_v14, 0.0  ;;  %v1339_v57 = vadd.f32 %v1858_v11, %v2741_v15 }
 0x1c2   :  { %v1506_v30 = vmax.f32 %v1479_v27, %v1488_v22  ;;  %v1489_v32 = vmax.f32 %v1451_v10, 0.0  ;;  %v1443_v41 = vadd.f32 %v1442_v9, %v2785_v53 }
 0x1c3   :  { %1750 = vst [vmem:[%s2900_s3 + $0x8] sm:$0xff] %v1738_v39   ;;  %v1496_v3 = vmax.f32 %v1460_v0, %v1469_v61  ;;  %v1504_v16 = vmax.f32 %v1477_v6, %v1486_v20  ;;  %v1461_v2 = vmax.f32 %v1339_v57, 0.0 }
 0x1c4   :  { %v1507_v62 = vmax.f32 %v1480_v21, %v1489_v32  ;;  %v1487_v28 = vmax.f32 %v1443_v41, 0.0  ;;  %v1166_v15 = vpop.f32.mrb[16].mxu0 }
 0x1c5   :  { %v1513_v50 = vmax.f32 %v1495_v33, %v1504_v16  ;;  %v1497_v26 = vmax.f32 %v1461_v2, %v1470_v24  ;;  %v1859_v37 = vadd.f32 %v2630_v19, %v1166_v15  ;;  %v1168_v17 = vpop.f32.mrb[17].mxu0 }
 0x1c6   :  { %v1505_v53 = vmax.f32 %v1478_v34, %v1487_v28  ;;  %v1169_v13 = vpop.f32.mrb[18].mxu0 }
 0x1c7   :  { %v1743_v36 = vpack.c.bf16 %v1513_v50, %v1512_v35  ;;  %v1515_v25 = vmax.f32 %v1497_v26, %v1506_v30  ;;  %v1344_v59 = vadd.f32 %v1859_v37, %v2753_v44  ;;  %v1860_v42 = vadd.f32 %v2630_v19, %v1169_v13  ;;  %v1171_v55 = vpop.f32.mrb[19].mxu0 }
 0x1c8   :  { %v1514_v38 = vmax.f32 %v1496_v3, %v1505_v53 }
 0x1c9   :  { %1751 = vst [vmem:[%s2900_s3 + $0x10] sm:$0xff] %v1743_v36   ;;  %v1462_v45 = vmax.f32 %v1344_v59, 0.0  ;;  %v1347_v23 = vadd.f32 %v1860_v42, %v2762_v54 }
 0x1ca   :  { %v1748_v46 = vpack.c.bf16 %v1515_v25, %v1514_v38 }
 0x1cb   :  { %v1498_v49 = vmax.f32 %v1462_v45, %v1471_v12  ;;  %v1463_v33 = vmax.f32 %v1347_v23, 0.0 }
 0x1cc   :  { %1752 = vst [vmem:[%s2900_s3 + $0x18] sm:$0xff] %v1748_v46  }
 0x1cd   :  { %v1516_v19 = vmax.f32 %v1498_v49, %v1507_v62  ;;  %v1490_v44 = vmax.f32 %v1454_v56, %v1463_v33 }
 0x1cf   :  { %v1729_v8 = vpack.c.bf16 %v1516_v19, %v1516_v19  ;;  %v1508_v48 = vmax.f32 %v1490_v44, %v2839_v58 }
 0x1d1   :  { %1562 = vst [vmem:[%s2900_s3 + $0x20] sm:$0xf] %v1729_v8  ;;  %v1733_v54 = vpack.c.bf16 %v1509_v47, %v1508_v48 }
 0x1d3   :  { %1734 = vst [vmem:[%s2900_s3] sm:$0xff] %v1733_v54  }

// kernel: shared_forward.6
= control target key start
LH: loop header
LB: loop body
LE: loop exit
PB: predicated region body
PF: predicated region fallthrough
CT: control target
= control target key end

     0   :  { %s1031_s1 = inlined_call_operand.vmem [shape: bf16[512,256], index: 1, kind: input, shape index: {}]   ;;  %s1032_s0 = inlined_call_operand.vmem [shape: bf16[32,512], index: 0, kind: input, shape index: {}]   ;;  %s1033_s2 = inlined_call_operand.vmem [shape: f32[1,256], index: 2, kind: input, shape index: {}]   ;;  %s1034_s3 = inlined_call_operand.vmem [shape: bf16[8,256], index: 3, kind: output, shape index: {}]  }
   0x1   :  { %v681_v0 = vld [vmem:[%s1031_s1 + $0x4] ss:$8 sps:$4 sm:$0xff]   ;;  %v685_v2 = vld [vmem:[%s1031_s1] ss:$8 sps:$4 sm:$0xff]   ;;  %v687_v4 = vld [vmem:[%s1031_s1 + $0x14] ss:$8 sps:$4 sm:$0xff]  }
   0x2   :  { %v683_v1 = vld [vmem:[%s1031_s1 + $0x104] ss:$8 sps:$4 sm:$0xff]   ;;  %458 = vmatprep.subr.bf16.mxu1 %v681_v0  ;;  %v686_v3 = vld [vmem:[%s1031_s1 + $0x100] ss:$8 sps:$4 sm:$0xff]   ;;  %v689_v5 = vld [vmem:[%s1031_s1 + $0x114] ss:$8 sps:$4 sm:$0xff]  }
   0x3   :  { %511 = vmatprep.subr.bf16.mxu0 %v683_v1  ;;  %459 = vmatpush1.bf16.msra.mxu1 %v685_v2  ;;  %v691_v6 = vld [vmem:[%s1031_s1 + $0x10] ss:$8 sps:$4 sm:$0xff]   ;;  %v693_v8 = vld [vmem:[%s1031_s1 + $0x24] ss:$8 sps:$4 sm:$0xff]   ;;  %v697_v10 = vld [vmem:[%s1031_s1 + $0x20] ss:$8 sps:$4 sm:$0xff]  }
   0x4   :  { %512 = vmatpush1.bf16.msra.mxu0 %v686_v3  ;;  %460 = vmatprep.subr.bf16.mxu1 %v687_v4  ;;  %v692_v7 = vld [vmem:[%s1031_s1 + $0x110] ss:$8 sps:$4 sm:$0xff]   ;;  %v695_v9 = vld [vmem:[%s1031_s1 + $0x124] ss:$8 sps:$4 sm:$0xff]   ;;  %v698_v11 = vld [vmem:[%s1031_s1 + $0x120] ss:$8 sps:$4 sm:$0xff]  }
   0x5   :  { %513 = vmatprep.subr.bf16.mxu0 %v689_v5  ;;  %v699_v12 = vld [vmem:[%s1031_s1 + $0x34] ss:$8 sps:$4 sm:$0xff]   ;;  %v703_v14 = vld [vmem:[%s1031_s1 + $0x30] ss:$8 sps:$4 sm:$0xff]   ;;  %v705_v16 = vld [vmem:[%s1031_s1 + $0x44] ss:$8 sps:$4 sm:$0xff]  }
   0x6   :  { %v701_v13 = vld [vmem:[%s1031_s1 + $0x134] ss:$8 sps:$4 sm:$0xff]   ;;  %v704_v15 = vld [vmem:[%s1031_s1 + $0x130] ss:$8 sps:$4 sm:$0xff]   ;;  %v707_v17 = vld [vmem:[%s1031_s1 + $0x144] ss:$8 sps:$4 sm:$0xff]  }
   0x7   :  { %461 = vmatpush1.bf16.msra.mxu1 %v691_v6  ;;  %v709_v18 = vld [vmem:[%s1031_s1 + $0x40] ss:$8 sps:$4 sm:$0xff]   ;;  %v711_v20 = vld [vmem:[%s1031_s1 + $0x54] ss:$8 sps:$4 sm:$0xff]   ;;  %v715_v22 = vld [vmem:[%s1031_s1 + $0x50] ss:$8 sps:$4 sm:$0xff]  }
   0x8   :  { %514 = vmatpush1.bf16.msra.mxu0 %v692_v7  ;;  %462 = vmatprep.subr.bf16.mxu1 %v693_v8  ;;  %v710_v19 = vld [vmem:[%s1031_s1 + $0x140] ss:$8 sps:$4 sm:$0xff]   ;;  %v713_v21 = vld [vmem:[%s1031_s1 + $0x154] ss:$8 sps:$4 sm:$0xff]   ;;  %v716_v23 = vld [vmem:[%s1031_s1 + $0x150] ss:$8 sps:$4 sm:$0xff]   ;;  %v88_v8 = vlaneseq }
   0x9   :  { %515 = vmatprep.subr.bf16.mxu0 %v695_v9  ;;  %v717_v24 = vld [vmem:[%s1031_s1 + $0x64] ss:$8 sps:$4 sm:$0xff]   ;;  %v721_v26 = vld [vmem:[%s1031_s1 + $0x60] ss:$8 sps:$4 sm:$0xff]   ;;  %v723_v28 = vld [vmem:[%s1031_s1 + $0x74] ss:$8 sps:$4 sm:$0xff]  }
   0xa   :  { %v719_v25 = vld [vmem:[%s1031_s1 + $0x164] ss:$8 sps:$4 sm:$0xff]   ;;  %v722_v27 = vld [vmem:[%s1031_s1 + $0x160] ss:$8 sps:$4 sm:$0xff]   ;;  %v725_v29 = vld [vmem:[%s1031_s1 + $0x174] ss:$8 sps:$4 sm:$0xff]  }
   0xb   :  { %463 = vmatpush1.bf16.msra.mxu1 %v697_v10  ;;  %v727_v30 = vld [vmem:[%s1031_s1 + $0x70] ss:$8 sps:$4 sm:$0xff]   ;;  %v729_v32 = vld [vmem:[%s1031_s1 + $0x84] ss:$8 sps:$4 sm:$0xff]   ;;  %v733_v34 = vld [vmem:[%s1031_s1 + $0x80] ss:$8 sps:$4 sm:$0xff]  }
   0xc   :  { %516 = vmatpush1.bf16.msra.mxu0 %v698_v11  ;;  %464 = vmatprep.subr.bf16.mxu1 %v699_v12  ;;  %v728_v31 = vld [vmem:[%s1031_s1 + $0x170] ss:$8 sps:$4 sm:$0xff]   ;;  %v731_v33 = vld [vmem:[%s1031_s1 + $0x184] ss:$8 sps:$4 sm:$0xff]   ;;  %v734_v35 = vld [vmem:[%s1031_s1 + $0x180] ss:$8 sps:$4 sm:$0xff]  }
   0xd   :  { %517 = vmatprep.subr.bf16.mxu0 %v701_v13  ;;  %v735_v36 = vld [vmem:[%s1031_s1 + $0x94] ss:$8 sps:$4 sm:$0xff]   ;;  %v739_v38 = vld [vmem:[%s1031_s1 + $0x90] ss:$8 sps:$4 sm:$0xff]   ;;  %v741_v40 = vld [vmem:[%s1031_s1 + $0xa4] ss:$8 sps:$4 sm:$0xff]  }
   0xe   :  { %v737_v37 = vld [vmem:[%s1031_s1 + $0x194] ss:$8 sps:$4 sm:$0xff]   ;;  %v740_v39 = vld [vmem:[%s1031_s1 + $0x190] ss:$8 sps:$4 sm:$0xff]   ;;  %v743_v41 = vld [vmem:[%s1031_s1 + $0x1a4] ss:$8 sps:$4 sm:$0xff]  }
   0xf   :  { %465 = vmatpush1.bf16.msra.mxu1 %v703_v14  ;;  %v745_v42 = vld [vmem:[%s1031_s1 + $0xa0] ss:$8 sps:$4 sm:$0xff]   ;;  %v747_v44 = vld [vmem:[%s1031_s1 + $0xb4] ss:$8 sps:$4 sm:$0xff]   ;;  %v751_v46 = vld [vmem:[%s1031_s1 + $0xb0] ss:$8 sps:$4 sm:$0xff]  }
  0x10   :  { %518 = vmatpush1.bf16.msra.mxu0 %v704_v15  ;;  %466 = vmatprep.subr.bf16.mxu1 %v705_v16  ;;  %v746_v43 = vld [vmem:[%s1031_s1 + $0x1a0] ss:$8 sps:$4 sm:$0xff]   ;;  %v749_v45 = vld [vmem:[%s1031_s1 + $0x1b4] ss:$8 sps:$4 sm:$0xff]   ;;  %v752_v47 = vld [vmem:[%s1031_s1 + $0x1b0] ss:$8 sps:$4 sm:$0xff]  }
  0x11   :  { %519 = vmatprep.subr.bf16.mxu0 %v707_v17  ;;  %v753_v48 = vld [vmem:[%s1031_s1 + $0xc4] ss:$8 sps:$4 sm:$0xff]   ;;  %v757_v52 = vld [vmem:[%s1031_s1 + $0xc0] ss:$8 sps:$4 sm:$0xff]   ;;  %v759_v54 = vld [vmem:[%s1031_s1 + $0xd4] ss:$8 sps:$4 sm:$0xff]  }
  0x12   :  { %v779_v49 = vld [vmem:[%s1032_s0 + $0x4] ss:$16 sps:$4 sm:$0xff]   ;;  %v782_v51 = vld [vmem:[%s1032_s0 + $0xc] ss:$16 sps:$4 sm:$0xff]   ;;  %v758_v53 = vld [vmem:[%s1031_s1 + $0x1c0] ss:$8 sps:$4 sm:$0xff]  }
  0x13   :  { %467 = vmatpush1.bf16.msra.mxu1 %v709_v18  ;;  %v755_v50 = vld [vmem:[%s1031_s1 + $0x1c4] ss:$8 sps:$4 sm:$0xff]   ;;  %490 = vmatprep.mubr.bf16.mxu1 %v779_v49  ;;  %v761_v55 = vld [vmem:[%s1031_s1 + $0x1d4] ss:$8 sps:$4 sm:$0xff]   ;;  %v763_v56 = vld [vmem:[%s1031_s1 + $0xd0] ss:$8 sps:$4 sm:$0xff]  }
  0x14   :  { %520 = vmatpush1.bf16.msra.mxu0 %v710_v19  ;;  %468 = vmatprep.subr.bf16.mxu1 %v711_v20  ;;  %v764_v57 = vld [vmem:[%s1031_s1 + $0x1d0] ss:$8 sps:$4 sm:$0xff]   ;;  %v765_v58 = vld [vmem:[%s1031_s1 + $0xe4] ss:$8 sps:$4 sm:$0xff]   ;;  %v769_v60 = vld [vmem:[%s1031_s1 + $0xe0] ss:$8 sps:$4 sm:$0xff]  }
  0x15   :  { %521 = vmatprep.subr.bf16.mxu0 %v713_v21  ;;  %543 = vmatprep.mubr.bf16.mxu0 %v782_v51  ;;  %v767_v59 = vld [vmem:[%s1031_s1 + $0x1e4] ss:$8 sps:$4 sm:$0xff]   ;;  %v770_v61 = vld [vmem:[%s1031_s1 + $0x1e0] ss:$8 sps:$4 sm:$0xff]   ;;  %v771_v62 = vld [vmem:[%s1031_s1 + $0xf4] ss:$8 sps:$4 sm:$0xff]  }
  0x16   :  { %v773_v63 = vld [vmem:[%s1031_s1 + $0x1f4] ss:$8 sps:$4 sm:$0xff]   ;;  %v775_v0 = vld [vmem:[%s1031_s1 + $0xf0] ss:$8 sps:$4 sm:$0xff]   ;;  %v89_v9 = vshrl.u32 %v88_v8, 7 }
  0x17   :  { %469 = vmatpush1.bf16.msra.mxu1 %v715_v22  ;;  %v776_v1 = vld [vmem:[%s1031_s1 + $0x1f0] ss:$8 sps:$4 sm:$0xff]   ;;  %v783_v4 = vld [vmem:[%s1032_s0 + $0x24] ss:$16 sps:$4 sm:$0xff]   ;;  %v785_v5 = vld [vmem:[%s1032_s0 + $0x2c] ss:$16 sps:$4 sm:$0xff]  }
  0x18   :  { %522 = vmatpush1.bf16.msra.mxu0 %v716_v23  ;;  %470 = vmatprep.subr.bf16.mxu1 %v717_v24  ;;  %v777_v2 = vld [vmem:[%s1032_s0] ss:$16 sps:$4 sm:$0xff]   ;;  %v780_v3 = vld [vmem:[%s1032_s0 + $0x8] ss:$16 sps:$4 sm:$0xff]   ;;  %v90_v10 = vsub.s32 0, %v89_v9  ;;  %v94_v12 = vsub.s32 1, %v89_v9 }
  0x19   :  { %523 = vmatprep.subr.bf16.mxu0 %v719_v25  ;;  %v787_v6 = vld [vmem:[%s1032_s0 + $0x20] ss:$16 sps:$4 sm:$0xff]   ;;  %v788_v7 = vld [vmem:[%s1032_s0 + $0x28] ss:$16 sps:$4 sm:$0xff]  }
  0x1a   :  { %v86_v11 = vld [vmem:[%s1033_s2] sm:$0x3] }
  0x1b   :  { %471 = vmatpush1.bf16.msra.mxu1 %v721_v26  ;;  %v91_v13 = vrot.slane %v86_v11, %v90_v10  ;;  %v95_v14 = vrot.slane %v86_v11, %v94_v12 }
  0x1c   :  { %524 = vmatpush1.bf16.msra.mxu0 %v722_v27  ;;  %472 = vmatprep.subr.bf16.mxu1 %v723_v28 }
  0x1d   :  { %525 = vmatprep.subr.bf16.mxu0 %v725_v29 }
  0x1f   :  { %473 = vmatpush1.bf16.msra.mxu1 %v727_v30 }
  0x20   :  { %526 = vmatpush1.bf16.msra.mxu0 %v728_v31  ;;  %474 = vmatprep.subr.bf16.mxu1 %v729_v32 }
  0x21   :  { %527 = vmatprep.subr.bf16.mxu0 %v731_v33 }
  0x23   :  { %475 = vmatpush1.bf16.msra.mxu1 %v733_v34 }
  0x24   :  { %528 = vmatpush1.bf16.msra.mxu0 %v734_v35  ;;  %476 = vmatprep.subr.bf16.mxu1 %v735_v36 }
  0x25   :  { %529 = vmatprep.subr.bf16.mxu0 %v737_v37 }
  0x27   :  { %477 = vmatpush1.bf16.msra.mxu1 %v739_v38 }
  0x28   :  { %530 = vmatpush1.bf16.msra.mxu0 %v740_v39  ;;  %478 = vmatprep.subr.bf16.mxu1 %v741_v40 }
  0x29   :  { %531 = vmatprep.subr.bf16.mxu0 %v743_v41 }
  0x2b   :  { %479 = vmatpush1.bf16.msra.mxu1 %v745_v42 }
  0x2c   :  { %532 = vmatpush1.bf16.msra.mxu0 %v746_v43  ;;  %480 = vmatprep.subr.bf16.mxu1 %v747_v44 }
  0x2d   :  { %533 = vmatprep.subr.bf16.mxu0 %v749_v45 }
  0x2f   :  { %481 = vmatpush1.bf16.msra.mxu1 %v751_v46 }
  0x30   :  { %534 = vmatpush1.bf16.msra.mxu0 %v752_v47  ;;  %482 = vmatprep.subr.bf16.mxu1 %v753_v48 }
  0x31   :  { %535 = vmatprep.subr.bf16.mxu0 %v755_v50 }
  0x33   :  { %483 = vmatpush1.bf16.msra.mxu1 %v757_v52 }
  0x34   :  { %536 = vmatpush1.bf16.msra.mxu0 %v758_v53  ;;  %484 = vmatprep.subr.bf16.mxu1 %v759_v54 }
  0x35   :  { %537 = vmatprep.subr.bf16.mxu0 %v761_v55 }
  0x37   :  { %485 = vmatpush1.bf16.msra.mxu1 %v763_v56 }
  0x38   :  { %538 = vmatpush1.bf16.msra.mxu0 %v764_v57  ;;  %486 = vmatprep.subr.bf16.mxu1 %v765_v58 }
  0x39   :  { %539 = vmatprep.subr.bf16.mxu0 %v767_v59 }
  0x3b   :  { %487 = vmatpush1.bf16.msra.mxu1 %v769_v60 }
  0x3c   :  { %540 = vmatpush1.bf16.msra.mxu0 %v770_v61  ;;  %488 = vmatprep.subr.bf16.mxu1 %v771_v62 }
  0x3d   :  { %541 = vmatprep.subr.bf16.mxu0 %v773_v63 }
  0x3f   :  { %489 = vmatpush1.bf16.msra.mxu1 %v775_v0 }
  0x40   :  { %542 = vmatpush1.bf16.msra.mxu0 %v776_v1 }
  0x42   :  { %491 = vmatmul.mubr.bf16.vlgmr.msra.gmra.mrb[0].mxu1 %v777_v2 }
  0x43   :  { %544 = vmatmul.mubr.bf16.vlgmr.msra.gmra.mrb[0].mxu0 %v780_v3  ;;  %500 = vmatprep.mubr.bf16.mxu1 %v783_v4 }
  0x44   :  { %553 = vmatprep.mubr.bf16.mxu0 %v785_v5 }
  0x4a   :  { %501 = vmatmul.mubr.bf16.gmra.mrb[4].mxu1 %v787_v6 }
  0x4b   :  { %554 = vmatmul.mubr.bf16.gmra.mrb[4].mxu0 %v788_v7 }
 0x115   :  { %v492_v15 = vpop.f32.mrb[0].mxu1 }
 0x116   :  { %v545_v16 = vpop.f32.mrb[0].mxu0  ;;  %v493_v17 = vadd.f32 %v492_v15, %v91_v13  ;;  %v494_v18 = vpop.f32.mrb[1].mxu1 }
 0x117   :  { %v547_v19 = vpop.f32.mrb[1].mxu0  ;;  %v495_v20 = vadd.f32 %v494_v18, %v95_v14  ;;  %v496_v21 = vpop.f32.mrb[2].mxu1 }
 0x118   :  { %v549_v22 = vpop.f32.mrb[2].mxu0  ;;  %v546_v23 = vadd.f32 %v545_v16, %v493_v17  ;;  %v497_v24 = vadd.f32 %v496_v21, %v91_v13  ;;  %v498_v25 = vpop.f32.mrb[3].mxu1 }
 0x119   :  { %v551_v26 = vpop.f32.mrb[3].mxu0  ;;  %v548_v27 = vadd.f32 %v547_v19, %v495_v20  ;;  %v499_v28 = vadd.f32 %v498_v25, %v95_v14 }
 0x11a   :  { %v550_v29 = vadd.f32 %v549_v22, %v497_v24  ;;  %v564_v31 = vmax.f32 %v546_v23, 0.0 }
 0x11b   :  { %v552_v30 = vadd.f32 %v551_v26, %v499_v28  ;;  %v565_v33 = vmax.f32 %v548_v27, 0.0 }
 0x11c   :  { %v566_v32 = vmax.f32 %v550_v29, 0.0 }
 0x11d   :  { %v567_v34 = vmax.f32 %v552_v30, 0.0  ;;  %v502_v35 = vpop.f32.mrb[4].mxu1 }
 0x11e   :  { %v555_v36 = vpop.f32.mrb[4].mxu0  ;;  %v572_v37 = vmax.f32 %v564_v31, %v566_v32  ;;  %v503_v38 = vadd.f32 %v502_v35, %v91_v13  ;;  %v504_v39 = vpop.f32.mrb[5].mxu1 }
 0x11f   :  { %v557_v40 = vpop.f32.mrb[5].mxu0  ;;  %v573_v41 = vmax.f32 %v565_v33, %v567_v34  ;;  %v505_v42 = vadd.f32 %v504_v39, %v95_v14  ;;  %v506_v43 = vpop.f32.mrb[6].mxu1 }
 0x120   :  { %v559_v44 = vpop.f32.mrb[6].mxu0  ;;  %v556_v45 = vadd.f32 %v555_v36, %v503_v38  ;;  %v507_v46 = vadd.f32 %v506_v43, %v91_v13  ;;  %v508_v47 = vpop.f32.mrb[7].mxu1 }
 0x121   :  { %v561_v48 = vpop.f32.mrb[7].mxu0  ;;  %v558_v49 = vadd.f32 %v557_v40, %v505_v42  ;;  %v509_v50 = vadd.f32 %v508_v47, %v95_v14 }
 0x122   :  { %v560_v51 = vadd.f32 %v559_v44, %v507_v46  ;;  %v568_v53 = vmax.f32 %v556_v45, 0.0 }
 0x123   :  { %v562_v52 = vadd.f32 %v561_v48, %v509_v50  ;;  %v569_v55 = vmax.f32 %v558_v49, 0.0 }
 0x124   :  { %v570_v54 = vmax.f32 %v560_v51, 0.0 }
 0x125   :  { %v571_v56 = vmax.f32 %v562_v52, 0.0 }
 0x126   :  { %v574_v57 = vmax.f32 %v568_v53, %v570_v54 }
 0x127   :  { %v575_v58 = vmax.f32 %v569_v55, %v571_v56 }
 0x128   :  { %v576_v59 = vmax.f32 %v572_v37, %v574_v57 }
 0x129   :  { %v577_v60 = vmax.f32 %v573_v41, %v575_v58 }
 0x12b   :  { %v664_v61 = vpack.c.bf16 %v577_v60, %v576_v59 }
 0x12d   :  { %586 = vst [vmem:[%s1034_s3] sm:$0xff] %v664_v61 }

// kernel: shared_forward.7
= control target key start
LH: loop header
LB: loop body
LE: loop exit
PB: predicated region body
PF: predicated region fallthrough
CT: control target
= control target key end

     0   :  { %v548_v32 = vlaneseq  ;;  %v12063_v33 = vmov 1966171168   ;;  %s16443_s0 = inlined_call_operand.vmem [shape: bf16[2,1024], index: 0, kind: input, shape index: {}]   ;;  %s16444_s1 = inlined_call_operand.vmem [shape: bf16[1024,1024], index: 1, kind: input, shape index: {}]   ;;  %s16445_s2 = inlined_call_operand.vmem [shape: f32[1,1024], index: 2, kind: input, shape index: {}]   ;;  %s16446_s3 = inlined_call_operand.vmem [shape: bf16[1024,1024], index: 3, kind: input, shape index: {}]   ;;  %s16447_s4 = inlined_call_operand.vmem [shape: f32[1,1024], index: 4, kind: input, shape index: {}]   ;;  %s16448_s5 = inlined_call_operand.vmem [shape: bf16[1024,512], index: 5, kind: input, shape index: {}]   ;;  %s16449_s6 = inlined_call_operand.vmem [shape: f32[1,512], index: 6, kind: input, shape index: {}]   ;;  %s16450_s7 = inlined_call_operand.vmem [shape: bf16[512,256], index: 7, kind: input, shape index: {}]   ;;  %s16451_s8 = inlined_call_operand.vmem [shape: f32[1,256], index: 8, kind: input, shape index: {}]   ;;  %s16452_s9 = inlined_call_operand.hbm [shape: f32[2,256], index: 9, kind: output, shape index: {}]  }
   0x1   :  { %v34_v0 = vld [vmem:[%s16444_s1] sm:$0xff]  ;;  %v591_v34 = vunpack.c.l.s4 %v12063_v33 }
   0x2   :  { %v38_v1 = vld [vmem:[%s16444_s1 + $0x20] sm:$0xff]  ;;  %v12181_v43 = vshrl.u32 %v548_v32, 7 }
   0x3   :  { %v162_v2 = vld [vmem:[%s16444_s1 + $0x400] sm:$0xff]  ;;  %v10065_v3 = vcombine.high %v34_v0, %v38_v1  ;;  %v10064_v5 = vcombine.low %v34_v0, %v38_v1  ;;  %v592_v44 = vunpack.c.0.s8 %v591_v34 }
   0x4   :  { %v166_v4 = vld [vmem:[%s16444_s1 + $0x420] sm:$0xff] }
   0x5   :  { %v42_v6 = vld [vmem:[%s16444_s1 + $0x40] sm:$0xff]  ;;  %v10193_v8 = vcombine.high %v162_v2, %v166_v4  ;;  %v10192_v9 = vcombine.low %v162_v2, %v166_v4  ;;  %3206 = vmatprep.subr.bf16.mxu1 %v10065_v3  ;;  %v12196_v53 = vsub.s32 %v592_v44, %v12181_v43 }
   0x6   :  { %v46_v7 = vld [vmem:[%s16444_s1 + $0x60] sm:$0xff]  ;;  %3207 = vmatpush1.bf16.msra.mxu1 %v10064_v5 }
   0x7   :  { %v10073_v10 = vcombine.high %v42_v6, %v46_v7  ;;  %v170_v11 = vld [vmem:[%s16444_s1 + $0x440] sm:$0xff]  ;;  %3247 = vmatprep.subr.bf16.mxu0 %v10193_v8  ;;  %v10072_v18 = vcombine.low %v42_v6, %v46_v7 }
   0x8   :  { %v174_v12 = vld [vmem:[%s16444_s1 + $0x460] sm:$0xff]  ;;  %3248 = vmatpush1.bf16.msra.mxu0 %v10192_v9 }
   0x9   :  { %v50_v13 = vld [vmem:[%s16444_s1 + $0x80] sm:$0xff]  ;;  %v10201_v14 = vcombine.high %v170_v11, %v174_v12  ;;  %3208 = vmatprep.subr.bf16.mxu1 %v10073_v10  ;;  %v10200_v19 = vcombine.low %v170_v11, %v174_v12 }
   0xa   :  { %v54_v15 = vld [vmem:[%s16444_s1 + $0xa0] sm:$0xff]  ;;  %3209 = vmatpush1.bf16.msra.mxu1 %v10072_v18 }
   0xb   :  { %v178_v16 = vld [vmem:[%s16444_s1 + $0x480] sm:$0xff]  ;;  %v10081_v20 = vcombine.high %v50_v13, %v54_v15  ;;  %3249 = vmatprep.subr.bf16.mxu0 %v10201_v14  ;;  %v10080_v26 = vcombine.low %v50_v13, %v54_v15 }
   0xc   :  { %v182_v17 = vld [vmem:[%s16444_s1 + $0x4a0] sm:$0xff]  ;;  %3250 = vmatpush1.bf16.msra.mxu0 %v10200_v19 }
   0xd   :  { %v10209_v21 = vcombine.high %v178_v16, %v182_v17  ;;  %v58_v22 = vld [vmem:[%s16444_s1 + $0xc0] sm:$0xff]  ;;  %3210 = vmatprep.subr.bf16.mxu1 %v10081_v20  ;;  %v10208_v27 = vcombine.low %v178_v16, %v182_v17 }
   0xe   :  { %v62_v23 = vld [vmem:[%s16444_s1 + $0xe0] sm:$0xff]  ;;  %3211 = vmatpush1.bf16.msra.mxu1 %v10080_v26 }
   0xf   :  { %v186_v24 = vld [vmem:[%s16444_s1 + $0x4c0] sm:$0xff]  ;;  %v10089_v28 = vcombine.high %v58_v22, %v62_v23  ;;  %3251 = vmatprep.subr.bf16.mxu0 %v10209_v21  ;;  %v10088_v37 = vcombine.low %v58_v22, %v62_v23 }
  0x10   :  { %v190_v25 = vld [vmem:[%s16444_s1 + $0x4e0] sm:$0xff]  ;;  %3252 = vmatpush1.bf16.msra.mxu0 %v10208_v27 }
  0x11   :  { %v10217_v29 = vcombine.high %v186_v24, %v190_v25  ;;  %v66_v30 = vld [vmem:[%s16444_s1 + $0x100] sm:$0xff]  ;;  %3212 = vmatprep.subr.bf16.mxu1 %v10089_v28  ;;  %v10216_v38 = vcombine.low %v186_v24, %v190_v25 }
  0x12   :  { %v70_v31 = vld [vmem:[%s16444_s1 + $0x120] sm:$0xff]  ;;  %3213 = vmatpush1.bf16.msra.mxu1 %v10088_v37 }
  0x13   :  { %v194_v35 = vld [vmem:[%s16444_s1 + $0x500] sm:$0xff]  ;;  %v10097_v39 = vcombine.high %v66_v30, %v70_v31  ;;  %3253 = vmatprep.subr.bf16.mxu0 %v10217_v29  ;;  %v10096_v47 = vcombine.low %v66_v30, %v70_v31 }
  0x14   :  { %v198_v36 = vld [vmem:[%s16444_s1 + $0x520] sm:$0xff]  ;;  %3254 = vmatpush1.bf16.msra.mxu0 %v10216_v38 }
  0x15   :  { %v10225_v40 = vcombine.high %v194_v35, %v198_v36  ;;  %v74_v41 = vld [vmem:[%s16444_s1 + $0x140] sm:$0xff]  ;;  %3214 = vmatprep.subr.bf16.mxu1 %v10097_v39  ;;  %v10224_v48 = vcombine.low %v194_v35, %v198_v36 }
  0x16   :  { %v78_v42 = vld [vmem:[%s16444_s1 + $0x160] sm:$0xff]  ;;  %3215 = vmatpush1.bf16.msra.mxu1 %v10096_v47 }
  0x17   :  { %v202_v45 = vld [vmem:[%s16444_s1 + $0x540] sm:$0xff]  ;;  %v10105_v49 = vcombine.high %v74_v41, %v78_v42  ;;  %3255 = vmatprep.subr.bf16.mxu0 %v10225_v40  ;;  %v10104_v56 = vcombine.low %v74_v41, %v78_v42 }
  0x18   :  { %v206_v46 = vld [vmem:[%s16444_s1 + $0x560] sm:$0xff]  ;;  %3256 = vmatpush1.bf16.msra.mxu0 %v10224_v48 }
  0x19   :  { %v10233_v50 = vcombine.high %v202_v45, %v206_v46  ;;  %v82_v51 = vld [vmem:[%s16444_s1 + $0x180] sm:$0xff]  ;;  %3216 = vmatprep.subr.bf16.mxu1 %v10105_v49  ;;  %v10232_v57 = vcombine.low %v202_v45, %v206_v46 }
  0x1a   :  { %v86_v52 = vld [vmem:[%s16444_s1 + $0x1a0] sm:$0xff]  ;;  %3217 = vmatpush1.bf16.msra.mxu1 %v10104_v56 }
  0x1b   :  { %v210_v54 = vld [vmem:[%s16444_s1 + $0x580] sm:$0xff]  ;;  %v10113_v58 = vcombine.high %v82_v51, %v86_v52  ;;  %3257 = vmatprep.subr.bf16.mxu0 %v10233_v50  ;;  %v10112_v2 = vcombine.low %v82_v51, %v86_v52 }
  0x1c   :  { %v214_v55 = vld [vmem:[%s16444_s1 + $0x5a0] sm:$0xff]  ;;  %3258 = vmatpush1.bf16.msra.mxu0 %v10232_v57 }
  0x1d   :  { %v33_v59 = vld [vmem:[%s16443_s0] sm:$0xff]  ;;  %v10241_v60 = vcombine.high %v210_v54, %v214_v55  ;;  %3218 = vmatprep.subr.bf16.mxu1 %v10113_v58  ;;  %v10240_v4 = vcombine.low %v210_v54, %v214_v55 }
  0x1e   :  { %v90_v61 = vld [vmem:[%s16444_s1 + $0x1c0] sm:$0xff]  ;;  %v12214_v63 = vrot.slane %v33_v59, %v12196_v53  ;;  %3219 = vmatpush1.bf16.msra.mxu1 %v10112_v2  ;;  %v589_v19 = vcombine.high %v33_v59, %v33_v59 }
  0x1f   :  { %v94_v62 = vld [vmem:[%s16444_s1 + $0x1e0] sm:$0xff]  ;;  %3259 = vmatprep.subr.bf16.mxu0 %v10241_v60 }
  0x20   :  { %v218_v0 = vld [vmem:[%s16444_s1 + $0x5c0] sm:$0xff]  ;;  %v604_v3 = vcombine.high %v12214_v63, %v12214_v63  ;;  %v10121_v5 = vcombine.high %v90_v61, %v94_v62  ;;  %v10120_v12 = vcombine.low %v90_v61, %v94_v62  ;;  %3260 = vmatpush1.bf16.msra.mxu0 %v10240_v4  ;;  %v12264_v28 = vrot.slane %v589_v19, %v12196_v53 }
  0x21   :  { %v222_v1 = vld [vmem:[%s16444_s1 + $0x5e0] sm:$0xff] }
  0x22   :  { %v10249_v6 = vcombine.high %v218_v0, %v222_v1  ;;  %v98_v7 = vld [vmem:[%s16444_s1 + $0x200] sm:$0xff]  ;;  %v12231_v9 = vrot.slane %v604_v3, %v12196_v53  ;;  %3220 = vmatprep.subr.bf16.mxu1 %v10121_v5  ;;  %v10248_v14 = vcombine.low %v218_v0, %v222_v1  ;;  %v12274_v32 = vrot.slane %v12264_v28, %v12196_v53 }
  0x23   :  { %v102_v8 = vld [vmem:[%s16444_s1 + $0x220] sm:$0xff]  ;;  %3221 = vmatpush1.bf16.msra.mxu1 %v10120_v12 }
  0x24   :  { %v226_v10 = vld [vmem:[%s16444_s1 + $0x600] sm:$0xff]  ;;  %3238 = vmatprep.mubr.bf16.mxu1 %v12231_v9  ;;  %v12242_v13 = vcombine.high %v12231_v9, %v12231_v9  ;;  %v10129_v15 = vcombine.high %v98_v7, %v102_v8  ;;  %3261 = vmatprep.subr.bf16.mxu0 %v10249_v6  ;;  %v10128_v22 = vcombine.low %v98_v7, %v102_v8 }
  0x25   :  { %v230_v11 = vld [vmem:[%s16444_s1 + $0x620] sm:$0xff]  ;;  %3262 = vmatpush1.bf16.msra.mxu0 %v10248_v14 }
  0x26   :  { %v10257_v16 = vcombine.high %v226_v10, %v230_v11  ;;  %v106_v17 = vld [vmem:[%s16444_s1 + $0x240] sm:$0xff]  ;;  %3279 = vmatprep.mubr.bf16.mxu0 %v12242_v13  ;;  %3222 = vmatprep.subr.bf16.mxu1 %v10129_v15  ;;  %v10256_v23 = vcombine.low %v226_v10, %v230_v11 }
  0x27   :  { %v110_v18 = vld [vmem:[%s16444_s1 + $0x260] sm:$0xff]  ;;  %3223 = vmatpush1.bf16.msra.mxu1 %v10128_v22  ;;  %v12350_v22 = vrot.slane %v12214_v63, %v12196_v53 }
  0x28   :  { %v234_v20 = vld [vmem:[%s16444_s1 + $0x640] sm:$0xff]  ;;  %v10137_v24 = vcombine.high %v106_v17, %v110_v18  ;;  %3263 = vmatprep.subr.bf16.mxu0 %v10257_v16  ;;  %v10136_v31 = vcombine.low %v106_v17, %v110_v18  ;;  %v35_v17 = vld [vmem:[%s16444_s1 + $0x8] sm:$0xff] }
  0x29   :  { %v238_v21 = vld [vmem:[%s16444_s1 + $0x660] sm:$0xff]  ;;  %3264 = vmatpush1.bf16.msra.mxu0 %v10256_v23  ;;  %v39_v18 = vld [vmem:[%s16444_s1 + $0x28] sm:$0xff] }
  0x2a   :  { %v10265_v25 = vcombine.high %v234_v20, %v238_v21  ;;  %v114_v26 = vld [vmem:[%s16444_s1 + $0x280] sm:$0xff]  ;;  %3224 = vmatprep.subr.bf16.mxu1 %v10137_v24  ;;  %v10264_v33 = vcombine.low %v234_v20, %v238_v21  ;;  %v10067_v24 = vcombine.high %v35_v17, %v39_v18 }
  0x2b   :  { %v118_v27 = vld [vmem:[%s16444_s1 + $0x2a0] sm:$0xff]  ;;  %3225 = vmatpush1.bf16.msra.mxu1 %v10136_v31  ;;  %v10066_v31 = vcombine.low %v35_v17, %v39_v18  ;;  %v91_v18 = vld [vmem:[%s16444_s1 + $0x1c8] sm:$0xff] }
  0x2c   :  { %v242_v29 = vld [vmem:[%s16444_s1 + $0x680] sm:$0xff]  ;;  %v10145_v34 = vcombine.high %v114_v26, %v118_v27  ;;  %3265 = vmatprep.subr.bf16.mxu0 %v10265_v25  ;;  %v10144_v40 = vcombine.low %v114_v26, %v118_v27  ;;  %v43_v26 = vld [vmem:[%s16444_s1 + $0x48] sm:$0xff] }
  0x2d   :  { %v246_v30 = vld [vmem:[%s16444_s1 + $0x6a0] sm:$0xff]  ;;  %3266 = vmatpush1.bf16.msra.mxu0 %v10264_v33  ;;  %v47_v27 = vld [vmem:[%s16444_s1 + $0x68] sm:$0xff]  ;;  %v12368_v33 = vcombine.high %v12350_v22, %v12350_v22 }
  0x2e   :  { %v10273_v35 = vcombine.high %v242_v29, %v246_v30  ;;  %v122_v36 = vld [vmem:[%s16444_s1 + $0x2c0] sm:$0xff]  ;;  %3226 = vmatprep.subr.bf16.mxu1 %v10145_v34  ;;  %v10272_v41 = vcombine.low %v242_v29, %v246_v30  ;;  %v605_v29 = vcombine.high %v12264_v28, %v12264_v28 }
  0x2f   :  { %v126_v37 = vld [vmem:[%s16444_s1 + $0x2e0] sm:$0xff]  ;;  %3227 = vmatpush1.bf16.msra.mxu1 %v10144_v40 }
  0x30   :  { %v250_v38 = vld [vmem:[%s16444_s1 + $0x6c0] sm:$0xff]  ;;  %v10153_v42 = vcombine.high %v122_v36, %v126_v37  ;;  %3267 = vmatprep.subr.bf16.mxu0 %v10273_v35  ;;  %v10152_v49 = vcombine.low %v122_v36, %v126_v37  ;;  %v10075_v35 = vcombine.high %v43_v26, %v47_v27  ;;  %v51_v37 = vld [vmem:[%s16444_s1 + $0x88] sm:$0xff]  ;;  %v12383_v40 = vrot.slane %v605_v29, %v12196_v53 }
  0x31   :  { %v254_v39 = vld [vmem:[%s16444_s1 + $0x6e0] sm:$0xff]  ;;  %3268 = vmatpush1.bf16.msra.mxu0 %v10272_v41  ;;  %v10074_v41 = vcombine.low %v43_v26, %v47_v27  ;;  %v59_v53 = vld [vmem:[%s16444_s1 + $0xc8] sm:$0xff] }
  0x32   :  { %v10281_v44 = vcombine.high %v250_v38, %v254_v39  ;;  %v130_v45 = vld [vmem:[%s16444_s1 + $0x300] sm:$0xff]  ;;  %3228 = vmatprep.subr.bf16.mxu1 %v10153_v42  ;;  %v10280_v50 = vcombine.low %v250_v38, %v254_v39  ;;  %v55_v39 = vld [vmem:[%s16444_s1 + $0xa8] sm:$0xff] }
  0x33   :  { %v134_v46 = vld [vmem:[%s16444_s1 + $0x320] sm:$0xff]  ;;  %3229 = vmatpush1.bf16.msra.mxu1 %v10152_v49  ;;  %v10082_v49 = vcombine.low %v51_v37, %v55_v39  ;;  %v99_v27 = vld [vmem:[%s16444_s1 + $0x208] sm:$0xff] }
  0x34   :  { %v258_v47 = vld [vmem:[%s16444_s1 + $0x700] sm:$0xff]  ;;  %v10161_v51 = vcombine.high %v130_v45, %v134_v46  ;;  %3269 = vmatprep.subr.bf16.mxu0 %v10281_v44  ;;  %v10160_v58 = vcombine.low %v130_v45, %v134_v46  ;;  %v10083_v44 = vcombine.high %v51_v37, %v55_v39 }
  0x35   :  { %v262_v48 = vld [vmem:[%s16444_s1 + $0x720] sm:$0xff]  ;;  %3270 = vmatpush1.bf16.msra.mxu0 %v10280_v50 }
  0x36   :  { %v10289_v52 = vcombine.high %v258_v47, %v262_v48  ;;  %v138_v54 = vld [vmem:[%s16444_s1 + $0x340] sm:$0xff]  ;;  %3230 = vmatprep.subr.bf16.mxu1 %v10161_v51  ;;  %v10288_v59 = vcombine.low %v258_v47, %v262_v48  ;;  %v63_v48 = vld [vmem:[%s16444_s1 + $0xe8] sm:$0xff] }
  0x37   :  { %v142_v55 = vld [vmem:[%s16444_s1 + $0x360] sm:$0xff]  ;;  %3231 = vmatpush1.bf16.msra.mxu1 %v10160_v58  ;;  %v10091_v51 = vcombine.high %v59_v53, %v63_v48  ;;  %v10090_v58 = vcombine.low %v59_v53, %v63_v48 }
  0x38   :  { %v266_v56 = vld [vmem:[%s16444_s1 + $0x740] sm:$0xff]  ;;  %v10169_v60 = vcombine.high %v138_v54, %v142_v55  ;;  %3271 = vmatprep.subr.bf16.mxu0 %v10289_v52  ;;  %v10168_v3 = vcombine.low %v138_v54, %v142_v55  ;;  %v67_v55 = vld [vmem:[%s16444_s1 + $0x108] sm:$0xff] }
  0x39   :  { %v270_v57 = vld [vmem:[%s16444_s1 + $0x760] sm:$0xff]  ;;  %3272 = vmatpush1.bf16.msra.mxu0 %v10288_v59 }
  0x3a   :  { %v10297_v61 = vcombine.high %v266_v56, %v270_v57  ;;  %v146_v62 = vld [vmem:[%s16444_s1 + $0x380] sm:$0xff]  ;;  %3232 = vmatprep.subr.bf16.mxu1 %v10169_v60  ;;  %v10296_v4 = vcombine.low %v266_v56, %v270_v57  ;;  %v71_v57 = vld [vmem:[%s16444_s1 + $0x128] sm:$0xff] }
  0x3b   :  { %v150_v0 = vld [vmem:[%s16444_s1 + $0x3a0] sm:$0xff]  ;;  %3233 = vmatpush1.bf16.msra.mxu1 %v10168_v3  ;;  %v10099_v60 = vcombine.high %v67_v55, %v71_v57  ;;  %v10098_v3 = vcombine.low %v67_v55, %v71_v57 }
  0x3c   :  { %v274_v1 = vld [vmem:[%s16444_s1 + $0x780] sm:$0xff]  ;;  %v10177_v5 = vcombine.high %v146_v62, %v150_v0  ;;  %3273 = vmatprep.subr.bf16.mxu0 %v10297_v61  ;;  %v10176_v12 = vcombine.low %v146_v62, %v150_v0  ;;  %v75_v0 = vld [vmem:[%s16444_s1 + $0x148] sm:$0xff] }
  0x3d   :  { %v278_v2 = vld [vmem:[%s16444_s1 + $0x7a0] sm:$0xff]  ;;  %3274 = vmatpush1.bf16.msra.mxu0 %v10296_v4 }
  0x3e   :  { %v10305_v6 = vcombine.high %v274_v1, %v278_v2  ;;  %v154_v7 = vld [vmem:[%s16444_s1 + $0x3c0] sm:$0xff]  ;;  %3234 = vmatprep.subr.bf16.mxu1 %v10177_v5  ;;  %v10304_v14 = vcombine.low %v274_v1, %v278_v2  ;;  %v79_v2 = vld [vmem:[%s16444_s1 + $0x168] sm:$0xff] }
  0x3f   :  { %v158_v8 = vld [vmem:[%s16444_s1 + $0x3e0] sm:$0xff]  ;;  %3235 = vmatpush1.bf16.msra.mxu1 %v10176_v12  ;;  %v10107_v5 = vcombine.high %v75_v0, %v79_v2  ;;  %v10106_v12 = vcombine.low %v75_v0, %v79_v2 }
  0x40   :  { %v282_v10 = vld [vmem:[%s16444_s1 + $0x7c0] sm:$0xff]  ;;  %v10185_v15 = vcombine.high %v154_v7, %v158_v8  ;;  %3275 = vmatprep.subr.bf16.mxu0 %v10305_v6  ;;  %v10184_v21 = vcombine.low %v154_v7, %v158_v8  ;;  %v83_v8 = vld [vmem:[%s16444_s1 + $0x188] sm:$0xff] }
  0x41   :  { %v286_v11 = vld [vmem:[%s16444_s1 + $0x7e0] sm:$0xff]  ;;  %3276 = vmatpush1.bf16.msra.mxu0 %v10304_v14 }
  0x42   :  { %v10313_v16 = vcombine.high %v282_v10, %v286_v11  ;;  %v290_v19 = vld [vmem:[%s16444_s1 + $0x800] sm:$0xff]  ;;  %3236 = vmatprep.subr.bf16.mxu1 %v10185_v15  ;;  %v10312_v23 = vcombine.low %v282_v10, %v286_v11  ;;  %v87_v11 = vld [vmem:[%s16444_s1 + $0x1a8] sm:$0xff] }
  0x43   :  { %v294_v20 = vld [vmem:[%s16444_s1 + $0x820] sm:$0xff]  ;;  %3237 = vmatpush1.bf16.msra.mxu1 %v10184_v21  ;;  %v10115_v15 = vcombine.high %v83_v8, %v87_v11  ;;  %v10114_v21 = vcombine.low %v83_v8, %v87_v11 }
  0x44   :  { %3277 = vmatprep.subr.bf16.mxu0 %v10313_v16  ;;  %v10321_v25 = vcombine.high %v290_v19, %v294_v20  ;;  %v298_v63 = vld [vmem:[%s16444_s1 + $0x840] sm:$0xff]  ;;  %v10320_v34 = vcombine.low %v290_v19, %v294_v20  ;;  %3370 = vmatprep.subr.bf16.mxu1 %v10067_v24  ;;  %v95_v20 = vld [vmem:[%s16444_s1 + $0x1e8] sm:$0xff] }
  0x45   :  { %v302_v30 = vld [vmem:[%s16444_s1 + $0x860] sm:$0xff]  ;;  %3278 = vmatpush1.bf16.msra.mxu0 %v10312_v23  ;;  %v10123_v24 = vcombine.high %v91_v18, %v95_v20 }
  0x46   :  { %v306_v28 = vld [vmem:[%s16444_s1 + $0x880] sm:$0xff]  ;;  %3288 = vmatprep.subr.bf16.mxu0 %v10321_v25  ;;  %v10329_v38 = vcombine.high %v298_v63, %v302_v30  ;;  %3239 = vmatmul.mubr.bf16.vlgmr.msra.gmra.mrb[0].mxu1 %v12350_v22  ;;  %v10328_v42 = vcombine.low %v298_v63, %v302_v30  ;;  %v103_v63 = vld [vmem:[%s16444_s1 + $0x228] sm:$0xff]  ;;  %v10122_v30 = vcombine.low %v91_v18, %v95_v20 }
  0x47   :  { %v310_v36 = vld [vmem:[%s16444_s1 + $0x8a0] sm:$0xff]  ;;  %3371 = vmatpush1.bf16.msra.mxu1 %v10066_v31  ;;  %3402 = vmatprep.mubr.bf16.mxu1 %v12231_v9  ;;  %v10130_v39 = vcombine.low %v99_v27, %v103_v63 }
  0x48   :  { %3280 = vmatmul.mubr.bf16.vlgmr.msra.gmra.mrb[0].mxu0 %v12368_v33  ;;  %3372 = vmatprep.subr.bf16.mxu1 %v10075_v35  ;;  %v314_v45 = vld [vmem:[%s16444_s1 + $0x8c0] sm:$0xff]  ;;  %v10337_v47 = vcombine.high %v306_v28, %v310_v36  ;;  %v10336_v50 = vcombine.low %v306_v28, %v310_v36  ;;  %v107_v36 = vld [vmem:[%s16444_s1 + $0x248] sm:$0xff] }
  0x49   :  { %3289 = vmatpush1.bf16.msra.mxu0 %v10320_v34  ;;  %v318_v46 = vld [vmem:[%s16444_s1 + $0x8e0] sm:$0xff]  ;;  %3320 = vmatprep.mubr.bf16.mxu0 %v12383_v40  ;;  %v10131_v34 = vcombine.high %v99_v27, %v103_v63 }
  0x4a   :  { %3290 = vmatprep.subr.bf16.mxu0 %v10329_v38  ;;  %v322_v52 = vld [vmem:[%s16444_s1 + $0x900] sm:$0xff]  ;;  %v10345_v56 = vcombine.high %v314_v45, %v318_v46  ;;  %v10344_v59 = vcombine.low %v314_v45, %v318_v46  ;;  %v111_v38 = vld [vmem:[%s16444_s1 + $0x268] sm:$0xff] }
  0x4b   :  { %3373 = vmatpush1.bf16.msra.mxu1 %v10074_v41  ;;  %v326_v54 = vld [vmem:[%s16444_s1 + $0x920] sm:$0xff]  ;;  %v115_v46 = vld [vmem:[%s16444_s1 + $0x288] sm:$0xff]  ;;  %v10138_v48 = vcombine.low %v107_v36, %v111_v38 }
  0x4c   :  { %3374 = vmatprep.subr.bf16.mxu1 %v10083_v44  ;;  %v330_v61 = vld [vmem:[%s16444_s1 + $0x940] sm:$0xff]  ;;  %v10353_v1 = vcombine.high %v322_v52, %v326_v54  ;;  %v10352_v4 = vcombine.low %v322_v52, %v326_v54  ;;  %v123_v54 = vld [vmem:[%s16444_s1 + $0x2c8] sm:$0xff] }
  0x4d   :  { %3291 = vmatpush1.bf16.msra.mxu0 %v10328_v42  ;;  %v334_v62 = vld [vmem:[%s16444_s1 + $0x960] sm:$0xff]  ;;  %v10139_v42 = vcombine.high %v107_v36, %v111_v38 }
  0x4e   :  { %3292 = vmatprep.subr.bf16.mxu0 %v10337_v47  ;;  %v338_v6 = vld [vmem:[%s16444_s1 + $0x980] sm:$0xff]  ;;  %v10361_v10 = vcombine.high %v330_v61, %v334_v62  ;;  %v10360_v14 = vcombine.low %v330_v61, %v334_v62  ;;  %v119_v47 = vld [vmem:[%s16444_s1 + $0x2a8] sm:$0xff] }
  0x4f   :  { %3375 = vmatpush1.bf16.msra.mxu1 %v10082_v49  ;;  %v342_v7 = vld [vmem:[%s16444_s1 + $0x9a0] sm:$0xff]  ;;  %v10146_v57 = vcombine.low %v115_v46, %v119_v47  ;;  %v131_v62 = vld [vmem:[%s16444_s1 + $0x308] sm:$0xff] }
  0x50   :  { %3376 = vmatprep.subr.bf16.mxu1 %v10091_v51  ;;  %v346_v16 = vld [vmem:[%s16444_s1 + $0x9c0] sm:$0xff]  ;;  %v10369_v19 = vcombine.high %v338_v6, %v342_v7  ;;  %v10368_v23 = vcombine.low %v338_v6, %v342_v7  ;;  %v139_v7 = vld [vmem:[%s16444_s1 + $0x348] sm:$0xff] }
  0x51   :  { %3293 = vmatpush1.bf16.msra.mxu0 %v10336_v50  ;;  %v350_v17 = vld [vmem:[%s16444_s1 + $0x9e0] sm:$0xff]  ;;  %v10147_v50 = vcombine.high %v115_v46, %v119_v47 }
  0x52   :  { %3294 = vmatprep.subr.bf16.mxu0 %v10345_v56  ;;  %v354_v25 = vld [vmem:[%s16444_s1 + $0xa00] sm:$0xff]  ;;  %v10377_v29 = vcombine.high %v346_v16, %v350_v17  ;;  %v10376_v31 = vcombine.low %v346_v16, %v350_v17  ;;  %v127_v56 = vld [vmem:[%s16444_s1 + $0x2e8] sm:$0xff] }
  0x53   :  { %3377 = vmatpush1.bf16.msra.mxu1 %v10090_v58  ;;  %v358_v26 = vld [vmem:[%s16444_s1 + $0xa20] sm:$0xff]  ;;  %v10154_v2 = vcombine.low %v123_v54, %v127_v56  ;;  %v147_v17 = vld [vmem:[%s16444_s1 + $0x388] sm:$0xff] }
  0x54   :  { %3378 = vmatprep.subr.bf16.mxu1 %v10099_v60  ;;  %v362_v35 = vld [vmem:[%s16444_s1 + $0xa40] sm:$0xff]  ;;  %v10385_v37 = vcombine.high %v354_v25, %v358_v26  ;;  %v10384_v41 = vcombine.low %v354_v25, %v358_v26  ;;  %v155_v26 = vld [vmem:[%s16444_s1 + $0x3c8] sm:$0xff] }
  0x55   :  { %3295 = vmatpush1.bf16.msra.mxu0 %v10344_v59  ;;  %v366_v28 = vld [vmem:[%s16444_s1 + $0xa60] sm:$0xff]  ;;  %v10155_v59 = vcombine.high %v123_v54, %v127_v56  ;;  %v12583_v56 = vcombine.high %v12383_v40, %v12383_v40 }
  0x56   :  { %3296 = vmatprep.subr.bf16.mxu0 %v10353_v1  ;;  %v370_v44 = vld [vmem:[%s16444_s1 + $0xa80] sm:$0xff]  ;;  %v10393_v53 = vcombine.high %v362_v35, %v366_v28  ;;  %v10392_v49 = vcombine.low %v362_v35, %v366_v28  ;;  %v135_v1 = vld [vmem:[%s16444_s1 + $0x328] sm:$0xff] }
  0x57   :  { %3379 = vmatpush1.bf16.msra.mxu1 %v10098_v3  ;;  %v374_v45 = vld [vmem:[%s16444_s1 + $0xaa0] sm:$0xff]  ;;  %v10162_v11 = vcombine.low %v131_v62, %v135_v1  ;;  %v163_v28 = vld [vmem:[%s16444_s1 + $0x408] sm:$0xff] }
  0x58   :  { %3380 = vmatprep.subr.bf16.mxu1 %v10107_v5  ;;  %v378_v51 = vld [vmem:[%s16444_s1 + $0xac0] sm:$0xff]  ;;  %v10401_v55 = vcombine.high %v370_v44, %v374_v45  ;;  %v10400_v58 = vcombine.low %v370_v44, %v374_v45  ;;  %v171_v45 = vld [vmem:[%s16444_s1 + $0x448] sm:$0xff] }
  0x59   :  { %3297 = vmatpush1.bf16.msra.mxu0 %v10352_v4  ;;  %v382_v52 = vld [vmem:[%s16444_s1 + $0xae0] sm:$0xff]  ;;  %v10163_v4 = vcombine.high %v131_v62, %v135_v1  ;;  %v187_v62 = vld [vmem:[%s16444_s1 + $0x4c8] sm:$0xff] }
  0x5a   :  { %3298 = vmatprep.subr.bf16.mxu0 %v10361_v10  ;;  %v386_v60 = vld [vmem:[%s16444_s1 + $0xb00] sm:$0xff]  ;;  %v10409_v0 = vcombine.high %v378_v51, %v382_v52  ;;  %v10408_v3 = vcombine.low %v378_v51, %v382_v52  ;;  %v143_v10 = vld [vmem:[%s16444_s1 + $0x368] sm:$0xff] }
  0x5b   :  { %3381 = vmatpush1.bf16.msra.mxu1 %v10106_v12  ;;  %v390_v61 = vld [vmem:[%s16444_s1 + $0xb20] sm:$0xff]  ;;  %v10170_v20 = vcombine.low %v139_v7, %v143_v10  ;;  %v179_v52 = vld [vmem:[%s16444_s1 + $0x488] sm:$0xff] }
  0x5c   :  { %3382 = vmatprep.subr.bf16.mxu1 %v10115_v15  ;;  %v394_v5 = vld [vmem:[%s16444_s1 + $0xb40] sm:$0xff]  ;;  %v10417_v8 = vcombine.high %v386_v60, %v390_v61  ;;  %v10416_v12 = vcombine.low %v386_v60, %v390_v61  ;;  %v191_v1 = vld [vmem:[%s16444_s1 + $0x4e8] sm:$0xff] }
  0x5d   :  { %3299 = vmatpush1.bf16.msra.mxu0 %v10360_v14  ;;  %v398_v6 = vld [vmem:[%s16444_s1 + $0xb60] sm:$0xff]  ;;  %v10171_v14 = vcombine.high %v139_v7, %v143_v10  ;;  %v195_v7 = vld [vmem:[%s16444_s1 + $0x508] sm:$0xff] }
  0x5e   :  { %3300 = vmatprep.subr.bf16.mxu0 %v10369_v19  ;;  %v402_v15 = vld [vmem:[%s16444_s1 + $0xb80] sm:$0xff]  ;;  %v10425_v18 = vcombine.high %v394_v5, %v398_v6  ;;  %v151_v19 = vld [vmem:[%s16444_s1 + $0x3a8] sm:$0xff] }
  0x5f   :  { %3383 = vmatpush1.bf16.msra.mxu1 %v10114_v21  ;;  %v406_v16 = vld [vmem:[%s16444_s1 + $0xba0] sm:$0xff]  ;;  %v10424_v21 = vcombine.low %v394_v5, %v398_v6  ;;  %v10178_v63 = vcombine.low %v147_v17, %v151_v19  ;;  %v199_v10 = vld [vmem:[%s16444_s1 + $0x528] sm:$0xff] }
  0x60   :  { %3384 = vmatprep.subr.bf16.mxu1 %v10123_v24  ;;  %v410_v24 = vld [vmem:[%s16444_s1 + $0xbc0] sm:$0xff]  ;;  %v10433_v27 = vcombine.high %v402_v15, %v406_v16 }
  0x61   :  { %3301 = vmatpush1.bf16.msra.mxu0 %v10368_v23  ;;  %v10179_v23 = vcombine.high %v147_v17, %v151_v19  ;;  %v414_v25 = vld [vmem:[%s16444_s1 + $0xbe0] sm:$0xff]  ;;  %v203_v17 = vld [vmem:[%s16444_s1 + $0x548] sm:$0xff] }
  0x62   :  { %3302 = vmatprep.subr.bf16.mxu0 %v10377_v29  ;;  %v159_v29 = vld [vmem:[%s16444_s1 + $0x3e8] sm:$0xff]  ;;  %v422_v35 = vld [vmem:[%s16444_s1 + $0xc20] sm:$0xff]  ;;  %v10441_v36 = vcombine.high %v410_v24, %v414_v25 }
  0x63   :  { %3385 = vmatpush1.bf16.msra.mxu1 %v10122_v30  ;;  %v10432_v30 = vcombine.low %v402_v15, %v406_v16  ;;  %v10186_v38 = vcombine.low %v155_v26, %v159_v29  ;;  %v430_v44 = vld [vmem:[%s16444_s1 + $0xc60] sm:$0xff]  ;;  %v207_v19 = vld [vmem:[%s16444_s1 + $0x568] sm:$0xff] }
  0x64   :  { %3386 = vmatprep.subr.bf16.mxu1 %v10131_v34  ;;  %v418_v34 = vld [vmem:[%s16444_s1 + $0xc00] sm:$0xff] }
  0x65   :  { %3303 = vmatpush1.bf16.msra.mxu0 %v10376_v31  ;;  %v10187_v31 = vcombine.high %v155_v26, %v159_v29  ;;  %v10449_v46 = vcombine.high %v418_v34, %v422_v35  ;;  %v438_v51 = vld [vmem:[%s16444_s1 + $0xca0] sm:$0xff]  ;;  %v211_v26 = vld [vmem:[%s16444_s1 + $0x588] sm:$0xff] }
  0x66   :  { %3304 = vmatprep.subr.bf16.mxu0 %v10385_v37  ;;  %v167_v37 = vld [vmem:[%s16444_s1 + $0x428] sm:$0xff]  ;;  %v442_v60 = vld [vmem:[%s16444_s1 + $0xcc0] sm:$0xff] }
  0x67   :  { %3387 = vmatpush1.bf16.msra.mxu1 %v10130_v39  ;;  %v10440_v39 = vcombine.low %v410_v24, %v414_v25  ;;  %v10194_v47 = vcombine.low %v163_v28, %v167_v37  ;;  %v446_v61 = vld [vmem:[%s16444_s1 + $0xce0] sm:$0xff]  ;;  %v215_v29 = vld [vmem:[%s16444_s1 + $0x5a8] sm:$0xff] }
  0x68   :  { %3388 = vmatprep.subr.bf16.mxu1 %v10139_v42  ;;  %v426_v42 = vld [vmem:[%s16444_s1 + $0xc40] sm:$0xff] }
  0x69   :  { %3305 = vmatpush1.bf16.msra.mxu0 %v10384_v41  ;;  %v10195_v41 = vcombine.high %v163_v28, %v167_v37  ;;  %v10457_v54 = vcombine.high %v426_v42, %v430_v44  ;;  %v450_v5 = vld [vmem:[%s16444_s1 + $0xd00] sm:$0xff]  ;;  %v223_v37 = vld [vmem:[%s16444_s1 + $0x5e8] sm:$0xff] }
  0x6a   :  { %3306 = vmatprep.subr.bf16.mxu0 %v10393_v53  ;;  %v175_v53 = vld [vmem:[%s16444_s1 + $0x468] sm:$0xff]  ;;  %v454_v6 = vld [vmem:[%s16444_s1 + $0xd20] sm:$0xff] }
  0x6b   :  { %3389 = vmatpush1.bf16.msra.mxu1 %v10138_v48  ;;  %v10448_v48 = vcombine.low %v418_v34, %v422_v35  ;;  %v458_v15 = vld [vmem:[%s16444_s1 + $0xd40] sm:$0xff] }
  0x6c   :  { %3390 = vmatprep.subr.bf16.mxu1 %v10147_v50  ;;  %v434_v50 = vld [vmem:[%s16444_s1 + $0xc80] sm:$0xff] }
  0x6d   :  { %3307 = vmatpush1.bf16.msra.mxu0 %v10392_v49  ;;  %v10203_v49 = vcombine.high %v171_v45, %v175_v53  ;;  %v462_v16 = vld [vmem:[%s16444_s1 + $0xd60] sm:$0xff] }
  0x6e   :  { %3308 = vmatprep.subr.bf16.mxu0 %v10401_v55  ;;  %v183_v55 = vld [vmem:[%s16444_s1 + $0x4a8] sm:$0xff]  ;;  %v466_v24 = vld [vmem:[%s16444_s1 + $0xd80] sm:$0xff] }
  0x6f   :  { %3391 = vmatpush1.bf16.msra.mxu1 %v10146_v57  ;;  %v10202_v57 = vcombine.low %v171_v45, %v175_v53  ;;  %v470_v25 = vld [vmem:[%s16444_s1 + $0xda0] sm:$0xff]  ;;  %v227_v45 = vld [vmem:[%s16444_s1 + $0x608] sm:$0xff] }
  0x70   :  { %3392 = vmatprep.subr.bf16.mxu1 %v10155_v59  ;;  %v10211_v59 = vcombine.high %v179_v52, %v183_v55  ;;  %v474_v34 = vld [vmem:[%s16444_s1 + $0xdc0] sm:$0xff]  ;;  %v10497_v28 = vcombine.high %v466_v24, %v470_v25  ;;  %v231_v53 = vld [vmem:[%s16444_s1 + $0x628] sm:$0xff] }
  0x71   :  { %3309 = vmatpush1.bf16.msra.mxu0 %v10400_v58  ;;  %v10456_v58 = vcombine.low %v426_v42, %v430_v44  ;;  %v478_v35 = vld [vmem:[%s16444_s1 + $0xde0] sm:$0xff] }
  0x72   :  { %3310 = vmatprep.subr.bf16.mxu0 %v10409_v0  ;;  %v10465_v0 = vcombine.high %v434_v50, %v438_v51  ;;  %v482_v42 = vld [vmem:[%s16444_s1 + $0xe00] sm:$0xff] }
  0x73   :  { %3393 = vmatpush1.bf16.msra.mxu1 %v10154_v2  ;;  %v10210_v2 = vcombine.low %v179_v52, %v183_v55  ;;  %v486_v44 = vld [vmem:[%s16444_s1 + $0xe20] sm:$0xff]  ;;  %v235_v52 = vld [vmem:[%s16444_s1 + $0x648] sm:$0xff] }
  0x74   :  { %3394 = vmatprep.subr.bf16.mxu1 %v10163_v4  ;;  %v10219_v4 = vcombine.high %v187_v62, %v191_v1  ;;  %v239_v55 = vld [vmem:[%s16444_s1 + $0x668] sm:$0xff] }
  0x75   :  { %3311 = vmatpush1.bf16.msra.mxu0 %v10408_v3  ;;  %v10464_v3 = vcombine.low %v434_v50, %v438_v51  ;;  %v490_v50 = vld [vmem:[%s16444_s1 + $0xe40] sm:$0xff] }
  0x76   :  { %3312 = vmatprep.subr.bf16.mxu0 %v10417_v8  ;;  %v10473_v8 = vcombine.high %v442_v60, %v446_v61  ;;  %v494_v51 = vld [vmem:[%s16444_s1 + $0xe60] sm:$0xff] }
  0x77   :  { %3395 = vmatpush1.bf16.msra.mxu1 %v10162_v11  ;;  %v10218_v11 = vcombine.low %v187_v62, %v191_v1  ;;  %v243_v62 = vld [vmem:[%s16444_s1 + $0x688] sm:$0xff] }
  0x78   :  { %3396 = vmatprep.subr.bf16.mxu1 %v10171_v14  ;;  %v10227_v14 = vcombine.high %v195_v7, %v199_v10  ;;  %v247_v1 = vld [vmem:[%s16444_s1 + $0x6a8] sm:$0xff] }
  0x79   :  { %3313 = vmatpush1.bf16.msra.mxu0 %v10416_v12  ;;  %v10472_v12 = vcombine.low %v442_v60, %v446_v61  ;;  %v498_v60 = vld [vmem:[%s16444_s1 + $0xe80] sm:$0xff] }
  0x7a   :  { %3314 = vmatprep.subr.bf16.mxu0 %v10425_v18  ;;  %v10481_v18 = vcombine.high %v450_v5, %v454_v6  ;;  %v502_v61 = vld [vmem:[%s16444_s1 + $0xea0] sm:$0xff] }
  0x7b   :  { %3397 = vmatpush1.bf16.msra.mxu1 %v10170_v20  ;;  %v10226_v20 = vcombine.low %v195_v7, %v199_v10  ;;  %v251_v7 = vld [vmem:[%s16444_s1 + $0x6c8] sm:$0xff] }
  0x7c   :  { %3398 = vmatprep.subr.bf16.mxu1 %v10179_v23  ;;  %v10235_v23 = vcombine.high %v203_v17, %v207_v19  ;;  %v255_v10 = vld [vmem:[%s16444_s1 + $0x6e8] sm:$0xff] }
  0x7d   :  { %3315 = vmatpush1.bf16.msra.mxu0 %v10424_v21  ;;  %v10480_v21 = vcombine.low %v450_v5, %v454_v6  ;;  %v506_v5 = vld [vmem:[%s16444_s1 + $0xec0] sm:$0xff] }
  0x7e   :  { %3316 = vmatprep.subr.bf16.mxu0 %v10433_v27  ;;  %v10489_v27 = vcombine.high %v458_v15, %v462_v16  ;;  %v510_v6 = vld [vmem:[%s16444_s1 + $0xee0] sm:$0xff] }
  0x7f   :  { %3399 = vmatpush1.bf16.msra.mxu1 %v10178_v63  ;;  %v10234_v63 = vcombine.low %v203_v17, %v207_v19  ;;  %v259_v17 = vld [vmem:[%s16444_s1 + $0x708] sm:$0xff] }
  0x80   :  { %3400 = vmatprep.subr.bf16.mxu1 %v10187_v31  ;;  %v10243_v31 = vcombine.high %v211_v26, %v215_v29  ;;  %v263_v19 = vld [vmem:[%s16444_s1 + $0x728] sm:$0xff] }
  0x81   :  { %3317 = vmatpush1.bf16.msra.mxu0 %v10432_v30  ;;  %v10488_v30 = vcombine.low %v458_v15, %v462_v16  ;;  %v514_v15 = vld [vmem:[%s16444_s1 + $0xf00] sm:$0xff] }
  0x82   :  { %3318 = vmatprep.subr.bf16.mxu0 %v10441_v36  ;;  %v219_v36 = vld [vmem:[%s16444_s1 + $0x5c8] sm:$0xff]  ;;  %v518_v16 = vld [vmem:[%s16444_s1 + $0xf20] sm:$0xff] }
  0x83   :  { %3401 = vmatpush1.bf16.msra.mxu1 %v10186_v38  ;;  %v10242_v38 = vcombine.low %v211_v26, %v215_v29  ;;  %v267_v26 = vld [vmem:[%s16444_s1 + $0x748] sm:$0xff] }
  0x84   :  { %3411 = vmatprep.subr.bf16.mxu1 %v10195_v41  ;;  %v10251_v41 = vcombine.high %v219_v36, %v223_v37  ;;  %v271_v29 = vld [vmem:[%s16444_s1 + $0x768] sm:$0xff] }
  0x85   :  { %3319 = vmatpush1.bf16.msra.mxu0 %v10440_v39  ;;  %v10496_v39 = vcombine.low %v466_v24, %v470_v25  ;;  %v522_v24 = vld [vmem:[%s16444_s1 + $0xf40] sm:$0xff] }
  0x86   :  { %3329 = vmatprep.subr.bf16.mxu0 %v10449_v46  ;;  %3403 = vmatmul.mubr.bf16.vlgmr.msra.gmra.mrb[4].mxu1 %v12350_v22  ;;  %v10505_v46 = vcombine.high %v474_v34, %v478_v35  ;;  %v526_v25 = vld [vmem:[%s16444_s1 + $0xf60] sm:$0xff] }
  0x87   :  { %3412 = vmatpush1.bf16.msra.mxu1 %v10194_v47  ;;  %3443 = vmatprep.mubr.bf16.mxu1 %v12242_v13  ;;  %v10250_v47 = vcombine.low %v219_v36, %v223_v37  ;;  %v10553_v36 = vcombine.high %v522_v24, %v526_v25  ;;  %v279_v37 = vld [vmem:[%s16444_s1 + $0x7a8] sm:$0xff] }
  0x88   :  { %3321 = vmatmul.mubr.bf16.vlgmr.msra.gmra.mrb[0].mxu0 %v12274_v32  ;;  %3413 = vmatprep.subr.bf16.mxu1 %v10203_v49  ;;  %v10259_v49 = vcombine.high %v227_v45, %v231_v53 }
  0x89   :  { %3330 = vmatpush1.bf16.msra.mxu0 %v10448_v48  ;;  %3361 = vmatprep.mubr.bf16.mxu0 %v12583_v56  ;;  %v10504_v48 = vcombine.low %v474_v34, %v478_v35  ;;  %v530_v34 = vld [vmem:[%s16444_s1 + $0xf80] sm:$0xff] }
  0x8a   :  { %3331 = vmatprep.subr.bf16.mxu0 %v10457_v54  ;;  %v10513_v54 = vcombine.high %v482_v42, %v486_v44  ;;  %v534_v35 = vld [vmem:[%s16444_s1 + $0xfa0] sm:$0xff] }
  0x8b   :  { %3414 = vmatpush1.bf16.msra.mxu1 %v10202_v57  ;;  %v10258_v57 = vcombine.low %v227_v45, %v231_v53  ;;  %v283_v45 = vld [vmem:[%s16444_s1 + $0x7c8] sm:$0xff] }
  0x8c   :  { %3415 = vmatprep.subr.bf16.mxu1 %v10211_v59  ;;  %v10267_v59 = vcombine.high %v235_v52, %v239_v55  ;;  %v287_v53 = vld [vmem:[%s16444_s1 + $0x7e8] sm:$0xff] }
  0x8d   :  { %3332 = vmatpush1.bf16.msra.mxu0 %v10456_v58  ;;  %v10512_v58 = vcombine.low %v482_v42, %v486_v44  ;;  %v538_v42 = vld [vmem:[%s16444_s1 + $0xfc0] sm:$0xff] }
  0x8e   :  { %3333 = vmatprep.subr.bf16.mxu0 %v10465_v0  ;;  %v10521_v0 = vcombine.high %v490_v50, %v494_v51  ;;  %v542_v44 = vld [vmem:[%s16444_s1 + $0xfe0] sm:$0xff] }
  0x8f   :  { %3416 = vmatpush1.bf16.msra.mxu1 %v10210_v2  ;;  %v10266_v2 = vcombine.low %v235_v52, %v239_v55  ;;  %v36_v52 = vld [vmem:[%s16444_s1 + $0x10] sm:$0xff] }
  0x90   :  { %3417 = vmatprep.subr.bf16.mxu1 %v10219_v4  ;;  %v10275_v4 = vcombine.high %v243_v62, %v247_v1  ;;  %v40_v55 = vld [vmem:[%s16444_s1 + $0x30] sm:$0xff] }
  0x91   :  { %3334 = vmatpush1.bf16.msra.mxu0 %v10464_v3  ;;  %v10520_v3 = vcombine.low %v490_v50, %v494_v51  ;;  %v291_v50 = vld [vmem:[%s16444_s1 + $0x808] sm:$0xff] }
  0x92   :  { %3335 = vmatprep.subr.bf16.mxu0 %v10473_v8  ;;  %v10529_v8 = vcombine.high %v498_v60, %v502_v61  ;;  %v295_v51 = vld [vmem:[%s16444_s1 + $0x828] sm:$0xff] }
  0x93   :  { %3418 = vmatpush1.bf16.msra.mxu1 %v10218_v11  ;;  %v10274_v11 = vcombine.low %v243_v62, %v247_v1  ;;  %v44_v62 = vld [vmem:[%s16444_s1 + $0x50] sm:$0xff] }
  0x94   :  { %3419 = vmatprep.subr.bf16.mxu1 %v10227_v14  ;;  %v10283_v14 = vcombine.high %v251_v7, %v255_v10  ;;  %v48_v1 = vld [vmem:[%s16444_s1 + $0x70] sm:$0xff] }
  0x95   :  { %3336 = vmatpush1.bf16.msra.mxu0 %v10472_v12  ;;  %v10528_v12 = vcombine.low %v498_v60, %v502_v61  ;;  %v299_v60 = vld [vmem:[%s16444_s1 + $0x848] sm:$0xff] }
  0x96   :  { %3337 = vmatprep.subr.bf16.mxu0 %v10481_v18  ;;  %v10537_v18 = vcombine.high %v506_v5, %v510_v6  ;;  %v303_v61 = vld [vmem:[%s16444_s1 + $0x868] sm:$0xff] }
  0x97   :  { %3420 = vmatpush1.bf16.msra.mxu1 %v10226_v20  ;;  %v10282_v20 = vcombine.low %v251_v7, %v255_v10  ;;  %v311_v7 = vld [vmem:[%s16444_s1 + $0x8a8] sm:$0xff]  ;;  %v10077_v10 = vcombine.high %v44_v62, %v48_v1 }
  0x98   :  { %3421 = vmatprep.subr.bf16.mxu1 %v10235_v23  ;;  %v10291_v23 = vcombine.high %v259_v17, %v263_v19 }
  0x99   :  { %3338 = vmatpush1.bf16.msra.mxu0 %v10480_v21  ;;  %v10536_v21 = vcombine.low %v506_v5, %v510_v6  ;;  %v10331_v5 = vcombine.high %v299_v60, %v303_v61  ;;  %v307_v6 = vld [vmem:[%s16444_s1 + $0x888] sm:$0xff] }
  0x9a   :  { %3339 = vmatprep.subr.bf16.mxu0 %v10489_v27  ;;  %v10545_v27 = vcombine.high %v514_v15, %v518_v16 }
  0x9b   :  { %3422 = vmatpush1.bf16.msra.mxu1 %v10234_v63  ;;  %v10290_v63 = vcombine.low %v259_v17, %v263_v19  ;;  %v319_v17 = vld [vmem:[%s16444_s1 + $0x8e8] sm:$0xff] }
  0x9c   :  { %3423 = vmatprep.subr.bf16.mxu1 %v10243_v31  ;;  %v10299_v31 = vcombine.high %v267_v26, %v271_v29 }
  0x9d   :  { %3340 = vmatpush1.bf16.msra.mxu0 %v10488_v30  ;;  %v10544_v30 = vcombine.low %v514_v15, %v518_v16  ;;  %v10339_v15 = vcombine.high %v307_v6, %v311_v7  ;;  %v315_v16 = vld [vmem:[%s16444_s1 + $0x8c8] sm:$0xff] }
  0x9e   :  { %3341 = vmatprep.subr.bf16.mxu0 %v10497_v28  ;;  %v275_v28 = vld [vmem:[%s16444_s1 + $0x788] sm:$0xff] }
  0x9f   :  { %3424 = vmatpush1.bf16.msra.mxu1 %v10242_v38  ;;  %v10298_v38 = vcombine.low %v267_v26, %v271_v29  ;;  %v327_v26 = vld [vmem:[%s16444_s1 + $0x928] sm:$0xff] }
  0xa0   :  { %3425 = vmatprep.subr.bf16.mxu1 %v10251_v41  ;;  %v10307_v41 = vcombine.high %v275_v28, %v279_v37 }
  0xa1   :  { %3342 = vmatpush1.bf16.msra.mxu0 %v10496_v39  ;;  %v10552_v39 = vcombine.low %v522_v24, %v526_v25  ;;  %v10347_v24 = vcombine.high %v315_v16, %v319_v17  ;;  %v323_v25 = vld [vmem:[%s16444_s1 + $0x908] sm:$0xff] }
  0xa2   :  { %3343 = vmatprep.subr.bf16.mxu0 %v10505_v46  ;;  %v10561_v46 = vcombine.high %v530_v34, %v534_v35 }
  0xa3   :  { %3426 = vmatpush1.bf16.msra.mxu1 %v10250_v47  ;;  %v10306_v47 = vcombine.low %v275_v28, %v279_v37  ;;  %v335_v28 = vld [vmem:[%s16444_s1 + $0x968] sm:$0xff] }
  0xa4   :  { %3427 = vmatprep.subr.bf16.mxu1 %v10259_v49  ;;  %v10315_v49 = vcombine.high %v283_v45, %v287_v53 }
  0xa5   :  { %3344 = vmatpush1.bf16.msra.mxu0 %v10504_v48  ;;  %v10560_v48 = vcombine.low %v530_v34, %v534_v35  ;;  %v10355_v34 = vcombine.high %v323_v25, %v327_v26  ;;  %v331_v35 = vld [vmem:[%s16444_s1 + $0x948] sm:$0xff] }
  0xa6   :  { %3345 = vmatprep.subr.bf16.mxu0 %v10513_v54  ;;  %v10569_v54 = vcombine.high %v538_v42, %v542_v44 }
  0xa7   :  { %3428 = vmatpush1.bf16.msra.mxu1 %v10258_v57  ;;  %v10314_v57 = vcombine.low %v283_v45, %v287_v53  ;;  %v343_v45 = vld [vmem:[%s16444_s1 + $0x9a8] sm:$0xff] }
  0xa8   :  { %3429 = vmatprep.subr.bf16.mxu1 %v10267_v59  ;;  %v10323_v59 = vcombine.high %v291_v50, %v295_v51 }
  0xa9   :  { %3346 = vmatpush1.bf16.msra.mxu0 %v10512_v58  ;;  %v10568_v58 = vcombine.low %v538_v42, %v542_v44  ;;  %v10363_v42 = vcombine.high %v331_v35, %v335_v28  ;;  %v339_v44 = vld [vmem:[%s16444_s1 + $0x988] sm:$0xff] }
  0xaa   :  { %3347 = vmatprep.subr.bf16.mxu0 %v10521_v0  ;;  %v10069_v0 = vcombine.high %v36_v52, %v40_v55 }
  0xab   :  { %3430 = vmatpush1.bf16.msra.mxu1 %v10266_v2  ;;  %v12771_v2 = vcombine.high %v12274_v32, %v12274_v32 }
  0xac   :  { %3431 = vmatprep.subr.bf16.mxu1 %v10275_v4  ;;  %v10068_v4 = vcombine.low %v36_v52, %v40_v55  ;;  %v351_v52 = vld [vmem:[%s16444_s1 + $0x9e8] sm:$0xff] }
  0xad   :  { %3348 = vmatpush1.bf16.msra.mxu0 %v10520_v3  ;;  %v10322_v3 = vcombine.low %v291_v50, %v295_v51  ;;  %v10371_v50 = vcombine.high %v339_v44, %v343_v45  ;;  %v347_v51 = vld [vmem:[%s16444_s1 + $0x9c8] sm:$0xff] }
  0xae   :  { %3349 = vmatprep.subr.bf16.mxu0 %v10529_v8  ;;  %v52_v8 = vld [vmem:[%s16444_s1 + $0x90] sm:$0xff] }
  0xaf   :  { %3432 = vmatpush1.bf16.msra.mxu1 %v10274_v11  ;;  %v56_v11 = vld [vmem:[%s16444_s1 + $0xb0] sm:$0xff] }
  0xb0   :  { %3433 = vmatprep.subr.bf16.mxu1 %v10283_v14  ;;  %v10076_v14 = vcombine.low %v44_v62, %v48_v1  ;;  %v10085_v19 = vcombine.high %v52_v8, %v56_v11  ;;  %v359_v62 = vld [vmem:[%s16444_s1 + $0xa28] sm:$0xff] }
  0xb1   :  { %3350 = vmatpush1.bf16.msra.mxu0 %v10528_v12  ;;  %v10330_v12 = vcombine.low %v299_v60, %v303_v61  ;;  %v10379_v60 = vcombine.high %v347_v51, %v351_v52  ;;  %v355_v61 = vld [vmem:[%s16444_s1 + $0xa08] sm:$0xff] }
  0xb2   :  { %3351 = vmatprep.subr.bf16.mxu0 %v10537_v18  ;;  %v60_v18 = vld [vmem:[%s16444_s1 + $0xd0] sm:$0xff] }
  0xb3   :  { %3434 = vmatpush1.bf16.msra.mxu1 %v10282_v20  ;;  %v64_v20 = vld [vmem:[%s16444_s1 + $0xf0] sm:$0xff] }
  0xb4   :  { %3435 = vmatprep.subr.bf16.mxu1 %v10291_v23  ;;  %v10084_v23 = vcombine.low %v52_v8, %v56_v11  ;;  %v10093_v29 = vcombine.high %v60_v18, %v64_v20  ;;  %v367_v8 = vld [vmem:[%s16444_s1 + $0xa68] sm:$0xff] }
  0xb5   :  { %3352 = vmatpush1.bf16.msra.mxu0 %v10536_v21  ;;  %v10338_v21 = vcombine.low %v307_v6, %v311_v7  ;;  %v10387_v6 = vcombine.high %v355_v61, %v359_v62  ;;  %v363_v7 = vld [vmem:[%s16444_s1 + $0xa48] sm:$0xff] }
  0xb6   :  { %3353 = vmatprep.subr.bf16.mxu0 %v10545_v27  ;;  %v68_v27 = vld [vmem:[%s16444_s1 + $0x110] sm:$0xff] }
  0xb7   :  { %3436 = vmatpush1.bf16.msra.mxu1 %v10290_v63  ;;  %v72_v63 = vld [vmem:[%s16444_s1 + $0x130] sm:$0xff] }
  0xb8   :  { %3437 = vmatprep.subr.bf16.mxu1 %v10299_v31  ;;  %v10092_v31 = vcombine.low %v60_v18, %v64_v20  ;;  %v10101_v37 = vcombine.high %v68_v27, %v72_v63 }
  0xb9   :  { %3354 = vmatpush1.bf16.msra.mxu0 %v10544_v30  ;;  %v10346_v30 = vcombine.low %v315_v16, %v319_v17 }
  0xba   :  { %3355 = vmatprep.subr.bf16.mxu0 %v10553_v36  ;;  %v76_v36 = vld [vmem:[%s16444_s1 + $0x150] sm:$0xff] }
  0xbb   :  { %3438 = vmatpush1.bf16.msra.mxu1 %v10298_v38  ;;  %v80_v38 = vld [vmem:[%s16444_s1 + $0x170] sm:$0xff] }
  0xbc   :  { %3439 = vmatprep.subr.bf16.mxu1 %v10307_v41  ;;  %v10100_v41 = vcombine.low %v68_v27, %v72_v63  ;;  %v10109_v53 = vcombine.high %v76_v36, %v80_v38 }
  0xbd   :  { %3356 = vmatpush1.bf16.msra.mxu0 %v10552_v39  ;;  %v10354_v39 = vcombine.low %v323_v25, %v327_v26 }
  0xbe   :  { %3357 = vmatprep.subr.bf16.mxu0 %v10561_v46  ;;  %v84_v46 = vld [vmem:[%s16444_s1 + $0x190] sm:$0xff] }
  0xbf   :  { %3440 = vmatpush1.bf16.msra.mxu1 %v10306_v47  ;;  %v88_v47 = vld [vmem:[%s16444_s1 + $0x1b0] sm:$0xff] }
  0xc0   :  { %3441 = vmatprep.subr.bf16.mxu1 %v10315_v49  ;;  %v10108_v49 = vcombine.low %v76_v36, %v80_v38  ;;  %v10117_v55 = vcombine.high %v84_v46, %v88_v47 }
  0xc1   :  { %3358 = vmatpush1.bf16.msra.mxu0 %v10560_v48  ;;  %v10362_v48 = vcombine.low %v331_v35, %v335_v28 }
  0xc2   :  { %3359 = vmatprep.subr.bf16.mxu0 %v10569_v54  ;;  %v92_v54 = vld [vmem:[%s16444_s1 + $0x1d0] sm:$0xff] }
  0xc3   :  { %3442 = vmatpush1.bf16.msra.mxu1 %v10314_v57  ;;  %v96_v57 = vld [vmem:[%s16444_s1 + $0x1f0] sm:$0xff] }
  0xc4   :  { %3452 = vmatprep.subr.bf16.mxu1 %v10323_v59  ;;  %v10116_v59 = vcombine.low %v84_v46, %v88_v47  ;;  %v10125_v1 = vcombine.high %v92_v54, %v96_v57 }
  0xc5   :  { %3360 = vmatpush1.bf16.msra.mxu0 %v10568_v58  ;;  %v10370_v58 = vcombine.low %v339_v44, %v343_v45 }
  0xc6   :  { %3534 = vmatprep.subr.bf16.mxu0 %v10069_v0  ;;  %3444 = vmatmul.mubr.bf16.vlgmr.msra.gmra.mrb[4].mxu1 %v12368_v33  ;;  %v100_v0 = vld [vmem:[%s16444_s1 + $0x210] sm:$0xff] }
  0xc7   :  { %3453 = vmatpush1.bf16.msra.mxu1 %v10322_v3  ;;  %3484 = vmatprep.mubr.bf16.mxu1 %v12383_v40  ;;  %v104_v3 = vld [vmem:[%s16444_s1 + $0x230] sm:$0xff] }
  0xc8   :  { %3362 = vmatmul.mubr.bf16.vlgmr.msra.gmra.mrb[0].mxu0 %v12771_v2  ;;  %3454 = vmatprep.subr.bf16.mxu1 %v10331_v5  ;;  %v10124_v5 = vcombine.low %v92_v54, %v96_v57  ;;  %v10133_v11 = vcombine.high %v100_v0, %v104_v3 }
  0xc9   :  { %3535 = vmatpush1.bf16.msra.mxu0 %v10068_v4  ;;  %3566 = vmatprep.mubr.bf16.mxu0 %v12231_v9  ;;  %v10378_v4 = vcombine.low %v347_v51, %v351_v52 }
  0xca   :  { %3536 = vmatprep.subr.bf16.mxu0 %v10077_v10  ;;  %v108_v10 = vld [vmem:[%s16444_s1 + $0x250] sm:$0xff] }
  0xcb   :  { %3455 = vmatpush1.bf16.msra.mxu1 %v10330_v12  ;;  %v112_v12 = vld [vmem:[%s16444_s1 + $0x270] sm:$0xff] }
  0xcc   :  { %3456 = vmatprep.subr.bf16.mxu1 %v10339_v15 }
  0xcd   :  { %3537 = vmatpush1.bf16.msra.mxu0 %v10076_v14  ;;  %v10386_v14 = vcombine.low %v355_v61, %v359_v62 }
  0xce   :  { %3538 = vmatprep.subr.bf16.mxu0 %v10085_v19 }
  0xcf   :  { %3457 = vmatpush1.bf16.msra.mxu1 %v10338_v21 }
  0xd0   :  { %3458 = vmatprep.subr.bf16.mxu1 %v10347_v24 }
  0xd1   :  { %3539 = vmatpush1.bf16.msra.mxu0 %v10084_v23 }
  0xd2   :  { %3540 = vmatprep.subr.bf16.mxu0 %v10093_v29 }
  0xd3   :  { %3459 = vmatpush1.bf16.msra.mxu1 %v10346_v30 }
  0xd4   :  { %3460 = vmatprep.subr.bf16.mxu1 %v10355_v34 }
  0xd5   :  { %3541 = vmatpush1.bf16.msra.mxu0 %v10092_v31 }
  0xd6   :  { %3542 = vmatprep.subr.bf16.mxu0 %v10101_v37 }
  0xd7   :  { %3461 = vmatpush1.bf16.msra.mxu1 %v10354_v39 }
  0xd8   :  { %3462 = vmatprep.subr.bf16.mxu1 %v10363_v42 }
  0xd9   :  { %3543 = vmatpush1.bf16.msra.mxu0 %v10100_v41 }
  0xda   :  { %3544 = vmatprep.subr.bf16.mxu0 %v10109_v53 }
  0xdb   :  { %3463 = vmatpush1.bf16.msra.mxu1 %v10362_v48 }
  0xdc   :  { %3464 = vmatprep.subr.bf16.mxu1 %v10371_v50 }
  0xdd   :  { %3545 = vmatpush1.bf16.msra.mxu0 %v10108_v49 }
  0xde   :  { %3546 = vmatprep.subr.bf16.mxu0 %v10117_v55 }
  0xdf   :  { %3465 = vmatpush1.bf16.msra.mxu1 %v10370_v58 }
  0xe0   :  { %3466 = vmatprep.subr.bf16.mxu1 %v10379_v60 }
  0xe1   :  { %3547 = vmatpush1.bf16.msra.mxu0 %v10116_v59 }
  0xe2   :  { %3548 = vmatprep.subr.bf16.mxu0 %v10125_v1 }
  0xe3   :  { %3467 = vmatpush1.bf16.msra.mxu1 %v10378_v4 }
  0xe4   :  { %14 = vsyncpa [#allocation3], 0  ;;  %3468 = vmatprep.subr.bf16.mxu1 %v10387_v6  ;;  %v10132_v15 = vcombine.low %v100_v0, %v104_v3  ;;  %v10395_v16 = vcombine.high %v363_v7, %v367_v8  ;;  %v10141_v17 = vcombine.high %v108_v10, %v112_v12  ;;  %v371_v18 = vld [vmem:[%s16444_s1 + $0xa88] sm:$0xff]  ;;  %v116_v20 = vld [vmem:[%s16444_s1 + $0x290] sm:$0xff]  ;;  %v10394_v23 = vcombine.low %v363_v7, %v367_v8 }
  0xe5   :  { %3549 = vmatpush1.bf16.msra.mxu0 %v10124_v5  ;;  %v375_v19 = vld [vmem:[%s16444_s1 + $0xaa8] sm:$0xff]  ;;  %v120_v21 = vld [vmem:[%s16444_s1 + $0x2b0] sm:$0xff]  ;;  %v10140_v24 = vcombine.low %v108_v10, %v112_v12 }
  0xe6   :  { %3550 = vmatprep.subr.bf16.mxu0 %v10133_v11  ;;  %v10403_v25 = vcombine.high %v371_v18, %v375_v19  ;;  %v10149_v26 = vcombine.high %v116_v20, %v120_v21  ;;  %v379_v27 = vld [vmem:[%s16444_s1 + $0xac8] sm:$0xff]  ;;  %v124_v63 = vld [vmem:[%s16444_s1 + $0x2d0] sm:$0xff]  ;;  %v10402_v31 = vcombine.low %v371_v18, %v375_v19  ;;  %v10148_v34 = vcombine.low %v116_v20, %v120_v21 }
  0xe7   :  { %3469 = vmatpush1.bf16.msra.mxu1 %v10386_v14  ;;  %v383_v29 = vld [vmem:[%s16444_s1 + $0xae8] sm:$0xff]  ;;  %v128_v30 = vld [vmem:[%s16444_s1 + $0x2f0] sm:$0xff] }
  0xe8   :  { %3470 = vmatprep.subr.bf16.mxu1 %v10395_v16  ;;  %v10411_v35 = vcombine.high %v379_v27, %v383_v29  ;;  %v10157_v28 = vcombine.high %v124_v63, %v128_v30  ;;  %v387_v36 = vld [vmem:[%s16444_s1 + $0xb08] sm:$0xff]  ;;  %v132_v38 = vld [vmem:[%s16444_s1 + $0x310] sm:$0xff]  ;;  %v10410_v41 = vcombine.low %v379_v27, %v383_v29  ;;  %v10156_v42 = vcombine.low %v124_v63, %v128_v30 }
  0xe9   :  { %3551 = vmatpush1.bf16.msra.mxu0 %v10132_v15  ;;  %v391_v37 = vld [vmem:[%s16444_s1 + $0xb28] sm:$0xff]  ;;  %v136_v39 = vld [vmem:[%s16444_s1 + $0x330] sm:$0xff] }
  0xea   :  { %3552 = vmatprep.subr.bf16.mxu0 %v10141_v17  ;;  %v10419_v44 = vcombine.high %v387_v36, %v391_v37  ;;  %v10165_v45 = vcombine.high %v132_v38, %v136_v39  ;;  %v395_v46 = vld [vmem:[%s16444_s1 + $0xb48] sm:$0xff]  ;;  %v140_v47 = vld [vmem:[%s16444_s1 + $0x350] sm:$0xff]  ;;  %v10418_v49 = vcombine.low %v387_v36, %v391_v37  ;;  %v10164_v50 = vcombine.low %v132_v38, %v136_v39 }
  0xeb   :  { %3471 = vmatpush1.bf16.msra.mxu1 %v10394_v23  ;;  %v399_v53 = vld [vmem:[%s16444_s1 + $0xb68] sm:$0xff]  ;;  %v144_v48 = vld [vmem:[%s16444_s1 + $0x370] sm:$0xff] }
  0xec   :  { %3472 = vmatprep.subr.bf16.mxu1 %v10403_v25  ;;  %v10427_v51 = vcombine.high %v395_v46, %v399_v53  ;;  %v10173_v52 = vcombine.high %v140_v47, %v144_v48  ;;  %v403_v54 = vld [vmem:[%s16444_s1 + $0xb88] sm:$0xff]  ;;  %v148_v57 = vld [vmem:[%s16444_s1 + $0x390] sm:$0xff]  ;;  %v10426_v59 = vcombine.low %v395_v46, %v399_v53  ;;  %v10172_v60 = vcombine.low %v140_v47, %v144_v48 }
  0xed   :  { %3553 = vmatpush1.bf16.msra.mxu0 %v10140_v24  ;;  %v407_v55 = vld [vmem:[%s16444_s1 + $0xba8] sm:$0xff]  ;;  %v152_v58 = vld [vmem:[%s16444_s1 + $0x3b0] sm:$0xff] }
  0xee   :  { %3554 = vmatprep.subr.bf16.mxu0 %v10149_v26  ;;  %v10435_v61 = vcombine.high %v403_v54, %v407_v55  ;;  %v10181_v62 = vcombine.high %v148_v57, %v152_v58  ;;  %v411_v0 = vld [vmem:[%s16444_s1 + $0xbc8] sm:$0xff]  ;;  %v156_v3 = vld [vmem:[%s16444_s1 + $0x3d0] sm:$0xff]  ;;  %v10434_v5 = vcombine.low %v403_v54, %v407_v55  ;;  %v10180_v6 = vcombine.low %v148_v57, %v152_v58 }
  0xef   :  { %3473 = vmatpush1.bf16.msra.mxu1 %v10402_v31  ;;  %v415_v1 = vld [vmem:[%s16444_s1 + $0xbe8] sm:$0xff]  ;;  %v160_v4 = vld [vmem:[%s16444_s1 + $0x3f0] sm:$0xff] }
  0xf0   :  { %3474 = vmatprep.subr.bf16.mxu1 %v10411_v35  ;;  %v10443_v7 = vcombine.high %v411_v0, %v415_v1  ;;  %v10189_v8 = vcombine.high %v156_v3, %v160_v4  ;;  %v419_v10 = vld [vmem:[%s16444_s1 + $0xc08] sm:$0xff]  ;;  %v164_v12 = vld [vmem:[%s16444_s1 + $0x410] sm:$0xff]  ;;  %v10442_v15 = vcombine.low %v411_v0, %v415_v1  ;;  %v10188_v16 = vcombine.low %v156_v3, %v160_v4 }
  0xf1   :  { %3555 = vmatpush1.bf16.msra.mxu0 %v10148_v34  ;;  %v423_v11 = vld [vmem:[%s16444_s1 + $0xc28] sm:$0xff]  ;;  %v168_v14 = vld [vmem:[%s16444_s1 + $0x430] sm:$0xff] }
  0xf2   :  { %3556 = vmatprep.subr.bf16.mxu0 %v10157_v28  ;;  %v10451_v17 = vcombine.high %v419_v10, %v423_v11  ;;  %v10197_v18 = vcombine.high %v164_v12, %v168_v14  ;;  %v427_v19 = vld [vmem:[%s16444_s1 + $0xc48] sm:$0xff]  ;;  %v172_v21 = vld [vmem:[%s16444_s1 + $0x450] sm:$0xff]  ;;  %v10450_v24 = vcombine.low %v419_v10, %v423_v11  ;;  %v10196_v25 = vcombine.low %v164_v12, %v168_v14 }
  0xf3   :  { %3475 = vmatpush1.bf16.msra.mxu1 %v10410_v41  ;;  %v431_v20 = vld [vmem:[%s16444_s1 + $0xc68] sm:$0xff]  ;;  %v176_v23 = vld [vmem:[%s16444_s1 + $0x470] sm:$0xff] }
  0xf4   :  { %3476 = vmatprep.subr.bf16.mxu1 %v10419_v44  ;;  %v10459_v26 = vcombine.high %v427_v19, %v431_v20  ;;  %v10205_v27 = vcombine.high %v172_v21, %v176_v23  ;;  %v435_v29 = vld [vmem:[%s16444_s1 + $0xc88] sm:$0xff]  ;;  %v180_v30 = vld [vmem:[%s16444_s1 + $0x490] sm:$0xff]  ;;  %v10458_v34 = vcombine.low %v427_v19, %v431_v20  ;;  %v10204_v35 = vcombine.low %v172_v21, %v176_v23 }
  0xf5   :  { %3557 = vmatpush1.bf16.msra.mxu0 %v10156_v42  ;;  %v439_v63 = vld [vmem:[%s16444_s1 + $0xca8] sm:$0xff]  ;;  %v184_v31 = vld [vmem:[%s16444_s1 + $0x4b0] sm:$0xff] }
  0xf6   :  { %3558 = vmatprep.subr.bf16.mxu0 %v10165_v45  ;;  %v10467_v28 = vcombine.high %v435_v29, %v439_v63  ;;  %v10213_v36 = vcombine.high %v180_v30, %v184_v31  ;;  %v443_v37 = vld [vmem:[%s16444_s1 + $0xcc8] sm:$0xff]  ;;  %v188_v39 = vld [vmem:[%s16444_s1 + $0x4d0] sm:$0xff]  ;;  %v10466_v42 = vcombine.low %v435_v29, %v439_v63  ;;  %v10212_v44 = vcombine.low %v180_v30, %v184_v31 }
  0xf7   :  { %3477 = vmatpush1.bf16.msra.mxu1 %v10418_v49  ;;  %v447_v38 = vld [vmem:[%s16444_s1 + $0xce8] sm:$0xff]  ;;  %v192_v41 = vld [vmem:[%s16444_s1 + $0x4f0] sm:$0xff] }
  0xf8   :  { %3478 = vmatprep.subr.bf16.mxu1 %v10427_v51  ;;  %v10475_v45 = vcombine.high %v443_v37, %v447_v38  ;;  %v10221_v46 = vcombine.high %v188_v39, %v192_v41  ;;  %v451_v53 = vld [vmem:[%s16444_s1 + $0xd08] sm:$0xff]  ;;  %v196_v48 = vld [vmem:[%s16444_s1 + $0x510] sm:$0xff]  ;;  %v10220_v51 = vcombine.low %v188_v39, %v192_v41 }
  0xf9   :  { %3559 = vmatpush1.bf16.msra.mxu0 %v10164_v50  ;;  %v455_v47 = vld [vmem:[%s16444_s1 + $0xd28] sm:$0xff]  ;;  %v200_v49 = vld [vmem:[%s16444_s1 + $0x530] sm:$0xff]  ;;  %v10474_v50 = vcombine.low %v443_v37, %v447_v38 }
  0xfa   :  { %3560 = vmatprep.subr.bf16.mxu0 %v10173_v52  ;;  %v10483_v52 = vcombine.high %v451_v53, %v455_v47  ;;  %v10229_v54 = vcombine.high %v196_v48, %v200_v49  ;;  %v459_v55 = vld [vmem:[%s16444_s1 + $0xd48] sm:$0xff]  ;;  %v204_v58 = vld [vmem:[%s16444_s1 + $0x550] sm:$0xff] }
  0xfb   :  { %3479 = vmatpush1.bf16.msra.mxu1 %v10426_v59  ;;  %v463_v57 = vld [vmem:[%s16444_s1 + $0xd68] sm:$0xff]  ;;  %v208_v59 = vld [vmem:[%s16444_s1 + $0x570] sm:$0xff] }
  0xfc   :  { %3480 = vmatprep.subr.bf16.mxu1 %v10435_v61  ;;  %v10228_v61 = vcombine.low %v196_v48, %v200_v49  ;;  %v10237_v0 = vcombine.high %v204_v58, %v208_v59  ;;  %v467_v1 = vld [vmem:[%s16444_s1 + $0xd88] sm:$0xff]  ;;  %v212_v4 = vld [vmem:[%s16444_s1 + $0x590] sm:$0xff] }
  0xfd   :  { %3561 = vmatpush1.bf16.msra.mxu0 %v10172_v60  ;;  %v10482_v60 = vcombine.low %v451_v53, %v455_v47  ;;  %v471_v3 = vld [vmem:[%s16444_s1 + $0xda8] sm:$0xff]  ;;  %v232_v29 = vld [vmem:[%s16444_s1 + $0x630] sm:$0xff] }
  0xfe   :  { %3562 = vmatprep.subr.bf16.mxu0 %v10181_v62  ;;  %v10491_v62 = vcombine.high %v459_v55, %v463_v57  ;;  %v475_v12 = vld [vmem:[%s16444_s1 + $0xdc8] sm:$0xff]  ;;  %v10498_v19 = vcombine.low %v467_v1, %v471_v3  ;;  %v240_v37 = vld [vmem:[%s16444_s1 + $0x670] sm:$0xff] }
  0xff   :  { %3481 = vmatpush1.bf16.msra.mxu1 %v10434_v5  ;;  %v216_v5 = vld [vmem:[%s16444_s1 + $0x5b0] sm:$0xff]  ;;  %v479_v14 = vld [vmem:[%s16444_s1 + $0xde8] sm:$0xff] }
 0x100   :  { %3482 = vmatprep.subr.bf16.mxu1 %v10443_v7  ;;  %v10236_v7 = vcombine.low %v204_v58, %v208_v59  ;;  %v10245_v11 = vcombine.high %v212_v4, %v216_v5  ;;  %v10244_v21 = vcombine.low %v212_v4, %v216_v5  ;;  %v10507_v23 = vcombine.high %v475_v12, %v479_v14  ;;  %v248_v53 = vld [vmem:[%s16444_s1 + $0x6b0] sm:$0xff] }
 0x101   :  { %3563 = vmatpush1.bf16.msra.mxu0 %v10180_v6  ;;  %v10490_v6 = vcombine.low %v459_v55, %v463_v57  ;;  %v10506_v63 = vcombine.low %v475_v12, %v479_v14  ;;  %v256_v55 = vld [vmem:[%s16444_s1 + $0x6f0] sm:$0xff] }
 0x102   :  { %3564 = vmatprep.subr.bf16.mxu0 %v10189_v8  ;;  %v10499_v8 = vcombine.high %v467_v1, %v471_v3  ;;  %v264_v1 = vld [vmem:[%s16444_s1 + $0x730] sm:$0xff] }
 0x103   :  { %3483 = vmatpush1.bf16.msra.mxu1 %v10442_v15  ;;  %v272_v12 = vld [vmem:[%s16444_s1 + $0x770] sm:$0xff] }
 0x104   :  { %3493 = vmatprep.subr.bf16.mxu1 %v10451_v17  ;;  %v224_v17 = vld [vmem:[%s16444_s1 + $0x5f0] sm:$0xff] }
 0x105   :  { %3565 = vmatpush1.bf16.msra.mxu0 %v10188_v16  ;;  %v220_v16 = vld [vmem:[%s16444_s1 + $0x5d0] sm:$0xff] }
 0x106   :  { %3575 = vmatprep.subr.bf16.mxu0 %v10197_v18  ;;  %3485 = vmatmul.mubr.bf16.vlgmr.msra.gmra.mrb[4].mxu1 %v12274_v32  ;;  %v10252_v30 = vcombine.low %v220_v16, %v224_v17 }
 0x107   :  { %3494 = vmatpush1.bf16.msra.mxu1 %v10450_v24  ;;  %3525 = vmatprep.mubr.bf16.mxu1 %v12583_v56  ;;  %v10253_v24 = vcombine.high %v220_v16, %v224_v17 }
 0x108   :  { %3567 = vmatmul.mubr.bf16.vlgmr.msra.gmra.mrb[4].mxu0 %v12350_v22  ;;  %3495 = vmatprep.subr.bf16.mxu1 %v10459_v26  ;;  %v487_v26 = vld [vmem:[%s16444_s1 + $0xe28] sm:$0xff] }
 0x109   :  { %3576 = vmatpush1.bf16.msra.mxu0 %v10196_v25  ;;  %3607 = vmatprep.mubr.bf16.mxu0 %v12242_v13  ;;  %v483_v25 = vld [vmem:[%s16444_s1 + $0xe08] sm:$0xff] }
 0x10a   :  { %3577 = vmatprep.subr.bf16.mxu0 %v10205_v27  ;;  %v228_v27 = vld [vmem:[%s16444_s1 + $0x610] sm:$0xff]  ;;  %v10515_v31 = vcombine.high %v483_v25, %v487_v26  ;;  %v10514_v38 = vcombine.low %v483_v25, %v487_v26 }
 0x10b   :  { %3496 = vmatpush1.bf16.msra.mxu1 %v10458_v34  ;;  %v10261_v34 = vcombine.high %v228_v27, %v232_v29  ;;  %v10260_v39 = vcombine.low %v228_v27, %v232_v29  ;;  %v539_v29 = vld [vmem:[%s16444_s1 + $0xfc8] sm:$0xff] }
 0x10c   :  { %3497 = vmatprep.subr.bf16.mxu1 %v10467_v28  ;;  %v495_v28 = vld [vmem:[%s16444_s1 + $0xe68] sm:$0xff] }
 0x10d   :  { %3578 = vmatpush1.bf16.msra.mxu0 %v10204_v35  ;;  %v491_v35 = vld [vmem:[%s16444_s1 + $0xe48] sm:$0xff] }
 0x10e   :  { %3579 = vmatprep.subr.bf16.mxu0 %v10213_v36  ;;  %v236_v36 = vld [vmem:[%s16444_s1 + $0x650] sm:$0xff]  ;;  %v10523_v41 = vcombine.high %v491_v35, %v495_v28  ;;  %v10522_v47 = vcombine.low %v491_v35, %v495_v28 }
 0x10f   :  { %3498 = vmatpush1.bf16.msra.mxu1 %v10466_v42  ;;  %v10269_v42 = vcombine.high %v236_v36, %v240_v37  ;;  %v10268_v48 = vcombine.low %v236_v36, %v240_v37  ;;  %v37_v37 = vld [vmem:[%s16444_s1 + $0x18] sm:$0xff] }
 0x110   :  { %3499 = vmatprep.subr.bf16.mxu1 %v10475_v45  ;;  %v503_v45 = vld [vmem:[%s16444_s1 + $0xea8] sm:$0xff] }
 0x111   :  { %3580 = vmatpush1.bf16.msra.mxu0 %v10212_v44  ;;  %v499_v44 = vld [vmem:[%s16444_s1 + $0xe88] sm:$0xff] }
 0x112   :  { %3581 = vmatprep.subr.bf16.mxu0 %v10221_v46  ;;  %v244_v46 = vld [vmem:[%s16444_s1 + $0x690] sm:$0xff]  ;;  %v10531_v49 = vcombine.high %v499_v44, %v503_v45  ;;  %v10530_v57 = vcombine.low %v499_v44, %v503_v45 }
 0x113   :  { %3500 = vmatpush1.bf16.msra.mxu1 %v10474_v50  ;;  %v10277_v50 = vcombine.high %v244_v46, %v248_v53  ;;  %v10276_v58 = vcombine.low %v244_v46, %v248_v53  ;;  %v45_v53 = vld [vmem:[%s16444_s1 + $0x58] sm:$0xff] }
 0x114   :  { %3501 = vmatprep.subr.bf16.mxu1 %v10483_v52  ;;  %v511_v52 = vld [vmem:[%s16444_s1 + $0xee8] sm:$0xff] }
 0x115   :  { %3582 = vmatpush1.bf16.msra.mxu0 %v10220_v51  ;;  %v507_v51 = vld [vmem:[%s16444_s1 + $0xec8] sm:$0xff] }
 0x116   :  { %3583 = vmatprep.subr.bf16.mxu0 %v10229_v54  ;;  %v252_v54 = vld [vmem:[%s16444_s1 + $0x6d0] sm:$0xff]  ;;  %v10539_v59 = vcombine.high %v507_v51, %v511_v52  ;;  %v10538_v3 = vcombine.low %v507_v51, %v511_v52 }
 0x117   :  { %3502 = vmatpush1.bf16.msra.mxu1 %v10482_v60  ;;  %v10285_v60 = vcombine.high %v252_v54, %v256_v55  ;;  %v10284_v4 = vcombine.low %v252_v54, %v256_v55  ;;  %v53_v55 = vld [vmem:[%s16444_s1 + $0x98] sm:$0xff] }
 0x118   :  { %3503 = vmatprep.subr.bf16.mxu1 %v10491_v62  ;;  %v519_v62 = vld [vmem:[%s16444_s1 + $0xf28] sm:$0xff] }
 0x119   :  { %3584 = vmatpush1.bf16.msra.mxu0 %v10228_v61  ;;  %v13033_v10 = vpop.f32.mrb[0].mxu1  ;;  %v515_v61 = vld [vmem:[%s16444_s1 + $0xf08] sm:$0xff] }
 0x11a   :  { %3585 = vmatprep.subr.bf16.mxu0 %v10237_v0  ;;  %v13041_v15 = vpop.f32.mrb[1].mxu1  ;;  %v260_v0 = vld [vmem:[%s16444_s1 + $0x710] sm:$0xff]  ;;  %v10547_v5 = vcombine.high %v515_v61, %v519_v62  ;;  %v10546_v14 = vcombine.low %v515_v61, %v519_v62 }
 0x11b   :  { %v3244_v18 = vpop.f32.mrb[2].mxu1  ;;  %3504 = vmatpush1.bf16.msra.mxu1 %v10490_v6  ;;  %v10293_v6 = vcombine.high %v260_v0, %v264_v1  ;;  %v10292_v16 = vcombine.low %v260_v0, %v264_v1  ;;  %v61_v1 = vld [vmem:[%s16444_s1 + $0xd8] sm:$0xff] }
 0x11c   :  { %v3245_v20 = vpop.f32.mrb[3].mxu1  ;;  %3505 = vmatprep.subr.bf16.mxu1 %v10499_v8  ;;  %v527_v8 = vld [vmem:[%s16444_s1 + $0xf68] sm:$0xff] }
 0x11d   :  { %3586 = vmatpush1.bf16.msra.mxu0 %v10236_v7  ;;  %v523_v7 = vld [vmem:[%s16444_s1 + $0xf48] sm:$0xff] }
 0x11e   :  { %3587 = vmatprep.subr.bf16.mxu0 %v10245_v11  ;;  %v268_v11 = vld [vmem:[%s16444_s1 + $0x750] sm:$0xff]  ;;  %v10555_v17 = vcombine.high %v523_v7, %v527_v8  ;;  %v535_v20 = vld [vmem:[%s16444_s1 + $0xfa8] sm:$0xff] }
 0x11f   :  { %3506 = vmatpush1.bf16.msra.mxu1 %v10498_v19  ;;  %v10301_v18 = vcombine.high %v268_v11, %v272_v12  ;;  %v531_v19 = vld [vmem:[%s16444_s1 + $0xf88] sm:$0xff]  ;;  %v10300_v25 = vcombine.low %v268_v11, %v272_v12  ;;  %v69_v12 = vld [vmem:[%s16444_s1 + $0x118] sm:$0xff] }
 0x120   :  { %3507 = vmatprep.subr.bf16.mxu1 %v10507_v23  ;;  %v280_v23 = vld [vmem:[%s16444_s1 + $0x7b0] sm:$0xff]  ;;  %v10563_v26 = vcombine.high %v531_v19, %v535_v20 }
 0x121   :  { %3588 = vmatpush1.bf16.msra.mxu0 %v10244_v21  ;;  %v276_v21 = vld [vmem:[%s16444_s1 + $0x790] sm:$0xff] }
 0x122   :  { %3589 = vmatprep.subr.bf16.mxu0 %v10253_v24  ;;  %v10554_v24 = vcombine.low %v523_v7, %v527_v8  ;;  %v10309_v27 = vcombine.high %v276_v21, %v280_v23  ;;  %v10308_v35 = vcombine.low %v276_v21, %v280_v23  ;;  %v77_v21 = vld [vmem:[%s16444_s1 + $0x158] sm:$0xff] }
 0x123   :  { %3508 = vmatpush1.bf16.msra.mxu1 %v10506_v63  ;;  %v543_v63 = vld [vmem:[%s16444_s1 + $0xfe8] sm:$0xff]  ;;  %v81_v23 = vld [vmem:[%s16444_s1 + $0x178] sm:$0xff] }
 0x124   :  { %3509 = vmatprep.subr.bf16.mxu1 %v10515_v31  ;;  %v288_v31 = vld [vmem:[%s16444_s1 + $0x7f0] sm:$0xff]  ;;  %v10571_v28 = vcombine.high %v539_v29, %v543_v63 }
 0x125   :  { %3590 = vmatpush1.bf16.msra.mxu0 %v10252_v30  ;;  %v284_v30 = vld [vmem:[%s16444_s1 + $0x7d0] sm:$0xff] }
 0x126   :  { %3591 = vmatprep.subr.bf16.mxu0 %v10261_v34  ;;  %v10562_v34 = vcombine.low %v531_v19, %v535_v20  ;;  %v10317_v36 = vcombine.high %v284_v30, %v288_v31  ;;  %v10316_v44 = vcombine.low %v284_v30, %v288_v31  ;;  %v85_v30 = vld [vmem:[%s16444_s1 + $0x198] sm:$0xff] }
 0x127   :  { %3510 = vmatpush1.bf16.msra.mxu1 %v10514_v38  ;;  %v41_v38 = vld [vmem:[%s16444_s1 + $0x38] sm:$0xff] }
 0x128   :  { %3511 = vmatprep.subr.bf16.mxu1 %v10523_v41  ;;  %v296_v41 = vld [vmem:[%s16444_s1 + $0x830] sm:$0xff]  ;;  %v10071_v45 = vcombine.high %v37_v37, %v41_v38  ;;  %v89_v31 = vld [vmem:[%s16444_s1 + $0x1b8] sm:$0xff] }
 0x129   :  { %3592 = vmatpush1.bf16.msra.mxu0 %v10260_v39  ;;  %v292_v39 = vld [vmem:[%s16444_s1 + $0x810] sm:$0xff] }
 0x12a   :  { %3593 = vmatprep.subr.bf16.mxu0 %v10269_v42  ;;  %v10570_v42 = vcombine.low %v539_v29, %v543_v63  ;;  %v10325_v46 = vcombine.high %v292_v39, %v296_v41  ;;  %v10324_v51 = vcombine.low %v292_v39, %v296_v41  ;;  %v10111_v29 = vcombine.high %v77_v21, %v81_v23  ;;  %v93_v39 = vld [vmem:[%s16444_s1 + $0x1d8] sm:$0xff] }
 0x12b   :  { %3512 = vmatpush1.bf16.msra.mxu1 %v10522_v47  ;;  %v49_v47 = vld [vmem:[%s16444_s1 + $0x78] sm:$0xff] }
 0x12c   :  { %3513 = vmatprep.subr.bf16.mxu1 %v10531_v49  ;;  %v304_v49 = vld [vmem:[%s16444_s1 + $0x870] sm:$0xff]  ;;  %v10079_v52 = vcombine.high %v45_v53, %v49_v47  ;;  %v97_v41 = vld [vmem:[%s16444_s1 + $0x1f8] sm:$0xff] }
 0x12d   :  { %3594 = vmatpush1.bf16.msra.mxu0 %v10268_v48  ;;  %v300_v48 = vld [vmem:[%s16444_s1 + $0x850] sm:$0xff] }
 0x12e   :  { %3595 = vmatprep.subr.bf16.mxu0 %v10277_v50  ;;  %v10070_v50 = vcombine.low %v37_v37, %v41_v38  ;;  %v10333_v54 = vcombine.high %v300_v48, %v304_v49  ;;  %v10332_v61 = vcombine.low %v300_v48, %v304_v49  ;;  %v10119_v37 = vcombine.high %v85_v30, %v89_v31  ;;  %v101_v48 = vld [vmem:[%s16444_s1 + $0x218] sm:$0xff] }
 0x12f   :  { %3514 = vmatpush1.bf16.msra.mxu1 %v10530_v57  ;;  %v57_v57 = vld [vmem:[%s16444_s1 + $0xb8] sm:$0xff] }
 0x130   :  { %3515 = vmatprep.subr.bf16.mxu1 %v10539_v59  ;;  %v312_v59 = vld [vmem:[%s16444_s1 + $0x8b0] sm:$0xff]  ;;  %v10087_v62 = vcombine.high %v53_v55, %v57_v57  ;;  %v105_v49 = vld [vmem:[%s16444_s1 + $0x238] sm:$0xff] }
 0x131   :  { %3596 = vmatpush1.bf16.msra.mxu0 %v10276_v58  ;;  %v308_v58 = vld [vmem:[%s16444_s1 + $0x890] sm:$0xff] }
 0x132   :  { %3597 = vmatprep.subr.bf16.mxu0 %v10285_v60  ;;  %v10078_v60 = vcombine.low %v45_v53, %v49_v47  ;;  %v10341_v0 = vcombine.high %v308_v58, %v312_v59  ;;  %v10340_v7 = vcombine.low %v308_v58, %v312_v59  ;;  %v10127_v53 = vcombine.high %v93_v39, %v97_v41  ;;  %v109_v58 = vld [vmem:[%s16444_s1 + $0x258] sm:$0xff] }
 0x133   :  { %3516 = vmatpush1.bf16.msra.mxu1 %v10538_v3  ;;  %v65_v3 = vld [vmem:[%s16444_s1 + $0xf8] sm:$0xff] }
 0x134   :  { %3517 = vmatprep.subr.bf16.mxu1 %v10547_v5  ;;  %v320_v5 = vld [vmem:[%s16444_s1 + $0x8f0] sm:$0xff]  ;;  %v10095_v8 = vcombine.high %v61_v1, %v65_v3  ;;  %v113_v59 = vld [vmem:[%s16444_s1 + $0x278] sm:$0xff] }
 0x135   :  { %3598 = vmatpush1.bf16.msra.mxu0 %v10284_v4  ;;  %v316_v4 = vld [vmem:[%s16444_s1 + $0x8d0] sm:$0xff] }
 0x136   :  { %3599 = vmatprep.subr.bf16.mxu0 %v10293_v6  ;;  %v10086_v6 = vcombine.low %v53_v55, %v57_v57  ;;  %v10349_v11 = vcombine.high %v316_v4, %v320_v5  ;;  %v10135_v55 = vcombine.high %v101_v48, %v105_v49 }
 0x137   :  { %3518 = vmatpush1.bf16.msra.mxu1 %v10546_v14  ;;  %v73_v14 = vld [vmem:[%s16444_s1 + $0x138] sm:$0xff] }
 0x138   :  { %3519 = vmatprep.subr.bf16.mxu1 %v10555_v17  ;;  %v10094_v17 = vcombine.low %v61_v1, %v65_v3  ;;  %v10103_v19 = vcombine.high %v69_v12, %v73_v14  ;;  %v10143_v1 = vcombine.high %v109_v58, %v113_v59 }
 0x139   :  { %3600 = vmatpush1.bf16.msra.mxu0 %v10292_v16  ;;  %v328_v16 = vld [vmem:[%s16444_s1 + $0x930] sm:$0xff] }
 0x13a   :  { %3601 = vmatprep.subr.bf16.mxu0 %v10301_v18  ;;  %v10348_v18 = vcombine.low %v316_v4, %v320_v5  ;;  %v117_v4 = vld [vmem:[%s16444_s1 + $0x298] sm:$0xff] }
 0x13b   :  { %3520 = vmatpush1.bf16.msra.mxu1 %v10554_v24  ;;  %v332_v24 = vld [vmem:[%s16444_s1 + $0x950] sm:$0xff]  ;;  %v121_v5 = vld [vmem:[%s16444_s1 + $0x2b8] sm:$0xff] }
 0x13c   :  { %3521 = vmatprep.subr.bf16.mxu1 %v10563_v26  ;;  %v10102_v26 = vcombine.low %v69_v12, %v73_v14  ;;  %v10151_v12 = vcombine.high %v117_v4, %v121_v5 }
 0x13d   :  { %3602 = vmatpush1.bf16.msra.mxu0 %v10300_v25  ;;  %v336_v25 = vld [vmem:[%s16444_s1 + $0x970] sm:$0xff] }
 0x13e   :  { %3603 = vmatprep.subr.bf16.mxu0 %v10309_v27  ;;  %v10365_v63 = vcombine.high %v332_v24, %v336_v25 }
 0x13f   :  { %3522 = vmatpush1.bf16.msra.mxu1 %v10562_v34  ;;  %v340_v34 = vld [vmem:[%s16444_s1 + $0x990] sm:$0xff] }
 0x140   :  { %3523 = vmatprep.subr.bf16.mxu1 %v10571_v28  ;;  %v10110_v28 = vcombine.low %v77_v21, %v81_v23 }
 0x141   :  { %3604 = vmatpush1.bf16.msra.mxu0 %v10308_v35  ;;  %v344_v35 = vld [vmem:[%s16444_s1 + $0x9b0] sm:$0xff] }
 0x142   :  { %3605 = vmatprep.subr.bf16.mxu0 %v10317_v36  ;;  %v10364_v36 = vcombine.low %v332_v24, %v336_v25  ;;  %v10373_v38 = vcombine.high %v340_v34, %v344_v35  ;;  %v133_v24 = vld [vmem:[%s16444_s1 + $0x318] sm:$0xff] }
 0x143   :  { %3524 = vmatpush1.bf16.msra.mxu1 %v10570_v42  ;;  %v348_v42 = vld [vmem:[%s16444_s1 + $0x9d0] sm:$0xff]  ;;  %v137_v25 = vld [vmem:[%s16444_s1 + $0x338] sm:$0xff] }
 0x144   :  { %3698 = vmatprep.subr.bf16.mxu1 %v10071_v45  ;;  %v10118_v45 = vcombine.low %v85_v30, %v89_v31  ;;  %v10167_v30 = vcombine.high %v133_v24, %v137_v25 }
 0x145   :  { %3606 = vmatpush1.bf16.msra.mxu0 %v10316_v44  ;;  %v352_v44 = vld [vmem:[%s16444_s1 + $0x9f0] sm:$0xff] }
 0x146   :  { %3616 = vmatprep.subr.bf16.mxu0 %v10325_v46  ;;  %3526 = vmatmul.mubr.bf16.vlgmr.msra.gmra.mrb[4].mxu1 %v12771_v2  ;;  %v10372_v46 = vcombine.low %v340_v34, %v344_v35  ;;  %v10381_v47 = vcombine.high %v348_v42, %v352_v44  ;;  %v141_v34 = vld [vmem:[%s16444_s1 + $0x358] sm:$0xff] }
 0x147   :  { %3699 = vmatpush1.bf16.msra.mxu1 %v10070_v50  ;;  %3730 = vmatprep.mubr.bf16.mxu1 %v12231_v9  ;;  %v324_v9 = vld [vmem:[%s16444_s1 + $0x910] sm:$0xff]  ;;  %v145_v35 = vld [vmem:[%s16444_s1 + $0x378] sm:$0xff] }
 0x148   :  { %3608 = vmatmul.mubr.bf16.vlgmr.msra.gmra.mrb[4].mxu0 %v12368_v33  ;;  %3700 = vmatprep.subr.bf16.mxu1 %v10079_v52  ;;  %v10357_v20 = vcombine.high %v324_v9, %v328_v16  ;;  %v10356_v27 = vcombine.low %v324_v9, %v328_v16  ;;  %v356_v50 = vld [vmem:[%s16444_s1 + $0xa10] sm:$0xff]  ;;  %v10126_v52 = vcombine.low %v93_v39, %v97_v41  ;;  %v125_v9 = vld [vmem:[%s16444_s1 + $0x2d8] sm:$0xff] }
 0x149   :  { %3617 = vmatpush1.bf16.msra.mxu0 %v10324_v51  ;;  %3648 = vmatprep.mubr.bf16.mxu0 %v12383_v40  ;;  %v360_v51 = vld [vmem:[%s16444_s1 + $0xa30] sm:$0xff]  ;;  %v129_v16 = vld [vmem:[%s16444_s1 + $0x2f8] sm:$0xff]  ;;  %v10175_v39 = vcombine.high %v141_v34, %v145_v35 }
 0x14a   :  { %3618 = vmatprep.subr.bf16.mxu0 %v10333_v54  ;;  %v10380_v54 = vcombine.low %v348_v42, %v352_v44  ;;  %v10389_v57 = vcombine.high %v356_v50, %v360_v51  ;;  %v10159_v21 = vcombine.high %v125_v9, %v129_v16  ;;  %v149_v42 = vld [vmem:[%s16444_s1 + $0x398] sm:$0xff] }
 0x14b   :  { %3701 = vmatpush1.bf16.msra.mxu1 %v10078_v60  ;;  %v364_v60 = vld [vmem:[%s16444_s1 + $0xa50] sm:$0xff]  ;;  %v153_v44 = vld [vmem:[%s16444_s1 + $0x3b8] sm:$0xff] }
 0x14c   :  { %3702 = vmatprep.subr.bf16.mxu1 %v10087_v62  ;;  %v10134_v62 = vcombine.low %v101_v48, %v105_v49  ;;  %v10183_v48 = vcombine.high %v149_v42, %v153_v44 }
 0x14d   :  { %3619 = vmatpush1.bf16.msra.mxu0 %v10332_v61  ;;  %v368_v61 = vld [vmem:[%s16444_s1 + $0xa70] sm:$0xff] }
 0x14e   :  { %3620 = vmatprep.subr.bf16.mxu0 %v10341_v0  ;;  %v10388_v0 = vcombine.low %v356_v50, %v360_v51  ;;  %v10397_v3 = vcombine.high %v364_v60, %v368_v61  ;;  %v157_v50 = vld [vmem:[%s16444_s1 + $0x3d8] sm:$0xff] }
 0x14f   :  { %3703 = vmatpush1.bf16.msra.mxu1 %v10086_v6  ;;  %v372_v6 = vld [vmem:[%s16444_s1 + $0xa90] sm:$0xff]  ;;  %v161_v51 = vld [vmem:[%s16444_s1 + $0x3f8] sm:$0xff] }
 0x150   :  { %3704 = vmatprep.subr.bf16.mxu1 %v10095_v8  ;;  %v10142_v8 = vcombine.low %v109_v58, %v113_v59  ;;  %v10191_v58 = vcombine.high %v157_v50, %v161_v51 }
 0x151   :  { %3621 = vmatpush1.bf16.msra.mxu0 %v10340_v7  ;;  %v376_v7 = vld [vmem:[%s16444_s1 + $0xab0] sm:$0xff] }
 0x152   :  { %3622 = vmatprep.subr.bf16.mxu0 %v10349_v11  ;;  %v10396_v11 = vcombine.low %v364_v60, %v368_v61  ;;  %v10405_v14 = vcombine.high %v372_v6, %v376_v7  ;;  %v165_v60 = vld [vmem:[%s16444_s1 + $0x418] sm:$0xff] }
 0x153   :  { %3705 = vmatpush1.bf16.msra.mxu1 %v10094_v17  ;;  %v380_v17 = vld [vmem:[%s16444_s1 + $0xad0] sm:$0xff]  ;;  %v169_v61 = vld [vmem:[%s16444_s1 + $0x438] sm:$0xff] }
 0x154   :  { %3706 = vmatprep.subr.bf16.mxu1 %v10103_v19  ;;  %v10150_v19 = vcombine.low %v117_v4, %v121_v5  ;;  %v10199_v4 = vcombine.high %v165_v60, %v169_v61 }
 0x155   :  { %3623 = vmatpush1.bf16.msra.mxu0 %v10348_v18  ;;  %v384_v18 = vld [vmem:[%s16444_s1 + $0xaf0] sm:$0xff] }
 0x156   :  { %3624 = vmatprep.subr.bf16.mxu0 %v10357_v20  ;;  %v10404_v20 = vcombine.low %v372_v6, %v376_v7  ;;  %v10413_v23 = vcombine.high %v380_v17, %v384_v18  ;;  %v173_v6 = vld [vmem:[%s16444_s1 + $0x458] sm:$0xff] }
 0x157   :  { %3707 = vmatpush1.bf16.msra.mxu1 %v10102_v26  ;;  %v388_v26 = vld [vmem:[%s16444_s1 + $0xb10] sm:$0xff]  ;;  %v177_v7 = vld [vmem:[%s16444_s1 + $0x478] sm:$0xff] }
 0x158   :  { %3708 = vmatprep.subr.bf16.mxu1 %v10111_v29  ;;  %v10158_v29 = vcombine.low %v125_v9, %v129_v16  ;;  %v10207_v9 = vcombine.high %v173_v6, %v177_v7 }
 0x159   :  { %3625 = vmatpush1.bf16.msra.mxu0 %v10356_v27  ;;  %v392_v27 = vld [vmem:[%s16444_s1 + $0xb30] sm:$0xff] }
 0x15a   :  { %3626 = vmatprep.subr.bf16.mxu0 %v10365_v63  ;;  %v10412_v63 = vcombine.low %v380_v17, %v384_v18  ;;  %v10421_v31 = vcombine.high %v388_v26, %v392_v27  ;;  %v181_v17 = vld [vmem:[%s16444_s1 + $0x498] sm:$0xff] }
 0x15b   :  { %3709 = vmatpush1.bf16.msra.mxu1 %v10110_v28  ;;  %v396_v28 = vld [vmem:[%s16444_s1 + $0xb50] sm:$0xff]  ;;  %v185_v18 = vld [vmem:[%s16444_s1 + $0x4b8] sm:$0xff] }
 0x15c   :  { %3710 = vmatprep.subr.bf16.mxu1 %v10119_v37  ;;  %v10166_v37 = vcombine.low %v133_v24, %v137_v25  ;;  %v10215_v24 = vcombine.high %v181_v17, %v185_v18 }
 0x15d   :  { %3627 = vmatpush1.bf16.msra.mxu0 %v10364_v36  ;;  %v400_v36 = vld [vmem:[%s16444_s1 + $0xb70] sm:$0xff] }
 0x15e   :  { %3628 = vmatprep.subr.bf16.mxu0 %v10373_v38  ;;  %v10420_v38 = vcombine.low %v388_v26, %v392_v27  ;;  %v10429_v41 = vcombine.high %v396_v28, %v400_v36  ;;  %v193_v26 = vld [vmem:[%s16444_s1 + $0x4f8] sm:$0xff]  ;;  %v444_v27 = vld [vmem:[%s16444_s1 + $0xcd0] sm:$0xff] }
 0x15f   :  { %3711 = vmatpush1.bf16.msra.mxu1 %v10118_v45  ;;  %v404_v45 = vld [vmem:[%s16444_s1 + $0xb90] sm:$0xff] }
 0x160   :  { %3712 = vmatprep.subr.bf16.mxu1 %v10127_v53  ;;  %v10174_v53 = vcombine.low %v141_v34, %v145_v35  ;;  %v197_v35 = vld [vmem:[%s16444_s1 + $0x518] sm:$0xff] }
 0x161   :  { %3629 = vmatpush1.bf16.msra.mxu0 %v10372_v46  ;;  %v408_v46 = vld [vmem:[%s16444_s1 + $0xbb0] sm:$0xff] }
 0x162   :  { %3630 = vmatprep.subr.bf16.mxu0 %v10381_v47  ;;  %v10428_v47 = vcombine.low %v396_v28, %v400_v36  ;;  %v10437_v49 = vcombine.high %v404_v45, %v408_v46  ;;  %v201_v28 = vld [vmem:[%s16444_s1 + $0x538] sm:$0xff]  ;;  %v456_v36 = vld [vmem:[%s16444_s1 + $0xd30] sm:$0xff] }
 0x163   :  { %3713 = vmatpush1.bf16.msra.mxu1 %v10126_v52  ;;  %v412_v52 = vld [vmem:[%s16444_s1 + $0xbd0] sm:$0xff] }
 0x164   :  { %3714 = vmatprep.subr.bf16.mxu1 %v10135_v55  ;;  %v10182_v55 = vcombine.low %v149_v42, %v153_v44  ;;  %v205_v44 = vld [vmem:[%s16444_s1 + $0x558] sm:$0xff] }
 0x165   :  { %3631 = vmatpush1.bf16.msra.mxu0 %v10380_v54  ;;  %v416_v54 = vld [vmem:[%s16444_s1 + $0xbf0] sm:$0xff] }
 0x166   :  { %3632 = vmatprep.subr.bf16.mxu0 %v10389_v57  ;;  %v10436_v57 = vcombine.low %v404_v45, %v408_v46  ;;  %v10445_v59 = vcombine.high %v412_v52, %v416_v54  ;;  %v209_v45 = vld [vmem:[%s16444_s1 + $0x578] sm:$0xff]  ;;  %v13417_v46 = vld [vmem:[%s16445_s2] sm:$0xff] }
 0x167   :  { %3715 = vmatpush1.bf16.msra.mxu1 %v10134_v62  ;;  %v420_v62 = vld [vmem:[%s16444_s1 + $0xc10] sm:$0xff] }
 0x168   :  { %3716 = vmatprep.subr.bf16.mxu1 %v10143_v1  ;;  %v10190_v1 = vcombine.low %v157_v50, %v161_v51  ;;  %v10239_v51 = vcombine.high %v205_v44, %v209_v45 }
 0x169   :  { %3633 = vmatpush1.bf16.msra.mxu0 %v10388_v0  ;;  %v424_v0 = vld [vmem:[%s16444_s1 + $0xc30] sm:$0xff] }
 0x16a   :  { %3634 = vmatprep.subr.bf16.mxu0 %v10397_v3  ;;  %v10444_v3 = vcombine.low %v412_v52, %v416_v54  ;;  %v10453_v5 = vcombine.high %v420_v62, %v424_v0 }
 0x16b   :  { %3717 = vmatpush1.bf16.msra.mxu1 %v10142_v8  ;;  %v428_v8 = vld [vmem:[%s16444_s1 + $0xc50] sm:$0xff] }
 0x16c   :  { %3718 = vmatprep.subr.bf16.mxu1 %v10151_v12  ;;  %v10198_v12 = vcombine.low %v165_v60, %v169_v61  ;;  %v472_v60 = vld [vmem:[%s16444_s1 + $0xdb0] sm:$0xff]  ;;  %v10238_v61 = vcombine.low %v205_v44, %v209_v45 }
 0x16d   :  { %3635 = vmatpush1.bf16.msra.mxu0 %v10396_v11  ;;  %v432_v11 = vld [vmem:[%s16444_s1 + $0xc70] sm:$0xff] }
 0x16e   :  { %3636 = vmatprep.subr.bf16.mxu0 %v10405_v14  ;;  %v10452_v14 = vcombine.low %v420_v62, %v424_v0  ;;  %v10461_v16 = vcombine.high %v428_v8, %v432_v11 }
 0x16f   :  { %3719 = vmatpush1.bf16.msra.mxu1 %v10150_v19  ;;  %v436_v19 = vld [vmem:[%s16444_s1 + $0xc90] sm:$0xff] }
 0x170   :  { %3720 = vmatprep.subr.bf16.mxu1 %v10159_v21  ;;  %v10206_v21 = vcombine.low %v173_v6, %v177_v7 }
 0x171   :  { %3637 = vmatpush1.bf16.msra.mxu0 %v10404_v20  ;;  %v440_v20 = vld [vmem:[%s16444_s1 + $0xcb0] sm:$0xff] }
 0x172   :  { %3638 = vmatprep.subr.bf16.mxu0 %v10413_v23  ;;  %v10460_v23 = vcombine.low %v428_v8, %v432_v11  ;;  %v10469_v25 = vcombine.high %v436_v19, %v440_v20  ;;  %v476_v8 = vld [vmem:[%s16444_s1 + $0xdd0] sm:$0xff] }
 0x173   :  { %3721 = vmatpush1.bf16.msra.mxu1 %v10158_v29  ;;  %v448_v29 = vld [vmem:[%s16444_s1 + $0xcf0] sm:$0xff] }
 0x174   :  { %3722 = vmatprep.subr.bf16.mxu1 %v10167_v30  ;;  %v10468_v30 = vcombine.low %v436_v19, %v440_v20  ;;  %v10477_v34 = vcombine.high %v444_v27, %v448_v29  ;;  %v229_v20 = vld [vmem:[%s16444_s1 + $0x618] sm:$0xff] }
 0x175   :  { %3639 = vmatpush1.bf16.msra.mxu0 %v10412_v63  ;;  %v10214_v63 = vcombine.low %v181_v17, %v185_v18 }
 0x176   :  { %3640 = vmatprep.subr.bf16.mxu0 %v10421_v31 }
 0x177   :  { %3723 = vmatpush1.bf16.msra.mxu1 %v10166_v37 }
 0x178   :  { %3724 = vmatprep.subr.bf16.mxu1 %v10175_v39  ;;  %v10231_v39 = vcombine.high %v197_v35, %v201_v28 }
 0x179   :  { %3641 = vmatpush1.bf16.msra.mxu0 %v10420_v38  ;;  %v10476_v38 = vcombine.low %v444_v27, %v448_v29  ;;  %v237_v29 = vld [vmem:[%s16444_s1 + $0x658] sm:$0xff] }
 0x17a   :  { %3642 = vmatprep.subr.bf16.mxu0 %v10429_v41  ;;  %v13406_v41 = vsub.s32 0, %v12181_v43 }
 0x17b   :  { %3725 = vmatpush1.bf16.msra.mxu1 %v10174_v53  ;;  %v13420_v53 = vsub.s32 1, %v12181_v43 }
 0x17c   :  { %3726 = vmatprep.subr.bf16.mxu1 %v10183_v48  ;;  %v464_v48 = vld [vmem:[%s16444_s1 + $0xd70] sm:$0xff]  ;;  %v551_v52 = vrot.slane %v13417_v46, %v13406_v41 }
 0x17d   :  { %3643 = vmatpush1.bf16.msra.mxu0 %v10428_v47  ;;  %v460_v47 = vld [vmem:[%s16444_s1 + $0xd50] sm:$0xff] }
 0x17e   :  { %3644 = vmatprep.subr.bf16.mxu0 %v10437_v49  ;;  %v10230_v49 = vcombine.low %v197_v35, %v201_v28  ;;  %v10493_v54 = vcombine.high %v460_v47, %v464_v48  ;;  %v10492_v62 = vcombine.low %v460_v47, %v464_v48  ;;  %v253_v48 = vld [vmem:[%s16444_s1 + $0x6d8] sm:$0xff] }
 0x17f   :  { %3727 = vmatpush1.bf16.msra.mxu1 %v10182_v55  ;;  %v213_v55 = vld [vmem:[%s16444_s1 + $0x598] sm:$0xff] }
 0x180   :  { %3728 = vmatprep.subr.bf16.mxu1 %v10191_v58  ;;  %v555_v58 = vrot.slane %v13417_v46, %v13420_v53 }
 0x181   :  { %3645 = vmatpush1.bf16.msra.mxu0 %v10436_v57  ;;  %v217_v57 = vld [vmem:[%s16444_s1 + $0x5b8] sm:$0xff] }
 0x182   :  { %3646 = vmatprep.subr.bf16.mxu0 %v10445_v59  ;;  %v468_v59 = vld [vmem:[%s16444_s1 + $0xd90] sm:$0xff]  ;;  %v10247_v0 = vcombine.high %v213_v55, %v217_v57  ;;  %v3243_v6 = vadd.f32 %v13041_v15, %v555_v58  ;;  %v261_v58 = vld [vmem:[%s16444_s1 + $0x718] sm:$0xff] }
 0x183   :  { %3729 = vmatpush1.bf16.msra.mxu1 %v10190_v1  ;;  %v3241_v1 = vadd.f32 %v13033_v10, %v551_v52  ;;  %v480_v10 = vld [vmem:[%s16444_s1 + $0xdf0] sm:$0xff]  ;;  %v10500_v17 = vcombine.low %v468_v59, %v472_v60 }
 0x184   :  { %3739 = vmatprep.subr.bf16.mxu1 %v10199_v4  ;;  %v221_v4 = vld [vmem:[%s16444_s1 + $0x5d8] sm:$0xff]  ;;  %v10509_v19 = vcombine.high %v476_v8, %v480_v10 }
 0x185   :  { %3647 = vmatpush1.bf16.msra.mxu0 %v10444_v3  ;;  %v10501_v3 = vcombine.high %v468_v59, %v472_v60  ;;  %v265_v59 = vld [vmem:[%s16444_s1 + $0x738] sm:$0xff]  ;;  %v516_v60 = vld [vmem:[%s16444_s1 + $0xf10] sm:$0xff] }
 0x186   :  { %3657 = vmatprep.subr.bf16.mxu0 %v10453_v5  ;;  %3731 = vmatmul.mubr.bf16.vlgmr.msra.gmra.mrb[8].mxu1 %v12350_v22  ;;  %v189_v22 = vld [vmem:[%s16444_s1 + $0x4d8] sm:$0xff] }
 0x187   :  { %3740 = vmatpush1.bf16.msra.mxu1 %v10198_v12  ;;  %3771 = vmatprep.mubr.bf16.mxu1 %v12242_v13  ;;  %v10223_v31 = vcombine.high %v189_v22, %v193_v26  ;;  %v452_v13 = vld [vmem:[%s16444_s1 + $0xd10] sm:$0xff]  ;;  %v10222_v37 = vcombine.low %v189_v22, %v193_v26  ;;  %v225_v5 = vld [vmem:[%s16444_s1 + $0x5f8] sm:$0xff]  ;;  %v10508_v22 = vcombine.low %v476_v8, %v480_v10 }
 0x188   :  { %3649 = vmatmul.mubr.bf16.vlgmr.msra.gmra.mrb[4].mxu0 %v12274_v32  ;;  %3741 = vmatprep.subr.bf16.mxu1 %v10207_v9  ;;  %v10485_v42 = vcombine.high %v452_v13, %v456_v36  ;;  %v10484_v50 = vcombine.low %v452_v13, %v456_v36  ;;  %v10255_v15 = vcombine.high %v221_v4, %v225_v5  ;;  %v245_v36 = vld [vmem:[%s16444_s1 + $0x698] sm:$0xff] }
 0x189   :  { %3658 = vmatpush1.bf16.msra.mxu0 %v10452_v14  ;;  %3689 = vmatprep.mubr.bf16.mxu0 %v12583_v56  ;;  %v10246_v14 = vcombine.low %v213_v55, %v217_v57  ;;  %v10294_v8 = vcombine.low %v261_v58, %v265_v59 }
 0x18a   :  { %3659 = vmatprep.subr.bf16.mxu0 %v10461_v16 }
 0x18b   :  { %3742 = vmatpush1.bf16.msra.mxu1 %v10206_v21  ;;  %v233_v21 = vld [vmem:[%s16444_s1 + $0x638] sm:$0xff] }
 0x18c   :  { %3743 = vmatprep.subr.bf16.mxu1 %v10215_v24  ;;  %v488_v24 = vld [vmem:[%s16444_s1 + $0xe30] sm:$0xff]  ;;  %v10263_v26 = vcombine.high %v229_v20, %v233_v21 }
 0x18d   :  { %3660 = vmatpush1.bf16.msra.mxu0 %v10460_v23  ;;  %v484_v23 = vld [vmem:[%s16444_s1 + $0xe10] sm:$0xff] }
 0x18e   :  { %3661 = vmatprep.subr.bf16.mxu0 %v10469_v25  ;;  %v10254_v25 = vcombine.low %v221_v4, %v225_v5  ;;  %v10517_v27 = vcombine.high %v484_v23, %v488_v24  ;;  %v10516_v35 = vcombine.low %v484_v23, %v488_v24  ;;  %v269_v4 = vld [vmem:[%s16444_s1 + $0x758] sm:$0xff] }
 0x18f   :  { %3744 = vmatpush1.bf16.msra.mxu1 %v10214_v63  ;;  %v241_v63 = vld [vmem:[%s16444_s1 + $0x678] sm:$0xff] }
 0x190   :  { %3745 = vmatprep.subr.bf16.mxu1 %v10223_v31  ;;  %v496_v31 = vld [vmem:[%s16444_s1 + $0xe70] sm:$0xff]  ;;  %v10271_v28 = vcombine.high %v237_v29, %v241_v63  ;;  %v273_v5 = vld [vmem:[%s16444_s1 + $0x778] sm:$0xff] }
 0x191   :  { %3662 = vmatpush1.bf16.msra.mxu0 %v10468_v30  ;;  %v492_v30 = vld [vmem:[%s16444_s1 + $0xe50] sm:$0xff]  ;;  %v285_v24 = vld [vmem:[%s16444_s1 + $0x7d8] sm:$0xff] }
 0x192   :  { %3663 = vmatprep.subr.bf16.mxu0 %v10477_v34  ;;  %v10262_v34 = vcombine.low %v229_v20, %v233_v21  ;;  %v10525_v13 = vcombine.high %v492_v30, %v496_v31  ;;  %v10524_v44 = vcombine.low %v492_v30, %v496_v31  ;;  %v293_v31 = vld [vmem:[%s16444_s1 + $0x818] sm:$0xff] }
 0x193   :  { %3746 = vmatpush1.bf16.msra.mxu1 %v10222_v37  ;;  %v249_v37 = vld [vmem:[%s16444_s1 + $0x6b8] sm:$0xff] }
 0x194   :  { %3747 = vmatprep.subr.bf16.mxu1 %v10231_v39  ;;  %v504_v39 = vld [vmem:[%s16444_s1 + $0xeb0] sm:$0xff]  ;;  %v10279_v45 = vcombine.high %v245_v36, %v249_v37  ;;  %v10278_v52 = vcombine.low %v245_v36, %v249_v37 }
 0x195   :  { %3664 = vmatpush1.bf16.msra.mxu0 %v10476_v38  ;;  %v500_v38 = vld [vmem:[%s16444_s1 + $0xe90] sm:$0xff] }
 0x196   :  { %3665 = vmatprep.subr.bf16.mxu0 %v10485_v42  ;;  %v10270_v42 = vcombine.low %v237_v29, %v241_v63  ;;  %v10533_v47 = vcombine.high %v500_v38, %v504_v39 }
 0x197   :  { %3748 = vmatpush1.bf16.msra.mxu1 %v10230_v49  ;;  %v257_v49 = vld [vmem:[%s16444_s1 + $0x6f8] sm:$0xff] }
 0x198   :  { %3749 = vmatprep.subr.bf16.mxu1 %v10239_v51  ;;  %v512_v51 = vld [vmem:[%s16444_s1 + $0xef0] sm:$0xff]  ;;  %v10287_v55 = vcombine.high %v253_v48, %v257_v49 }
 0x199   :  { %3666 = vmatpush1.bf16.msra.mxu0 %v10484_v50  ;;  %v508_v50 = vld [vmem:[%s16444_s1 + $0xed0] sm:$0xff] }
 0x19a   :  { %3667 = vmatprep.subr.bf16.mxu0 %v10493_v54  ;;  %v10532_v54 = vcombine.low %v500_v38, %v504_v39  ;;  %v10541_v57 = vcombine.high %v508_v50, %v512_v51  ;;  %v301_v39 = vld [vmem:[%s16444_s1 + $0x858] sm:$0xff] }
 0x19b   :  { %v3363_v7 = vpop.f32.mrb[0].mxu0  ;;  %3750 = vmatpush1.bf16.msra.mxu1 %v10238_v61  ;;  %v520_v61 = vld [vmem:[%s16444_s1 + $0xf30] sm:$0xff] }
 0x19c   :  { %v13458_v11 = vadd.f32 %v3363_v7, %v3241_v1  ;;  %v3365_v12 = vpop.f32.mrb[1].mxu0  ;;  %3751 = vmatprep.subr.bf16.mxu1 %v10247_v0  ;;  %v10540_v0 = vcombine.low %v508_v50, %v512_v51  ;;  %v10295_v1 = vcombine.high %v261_v58, %v265_v59  ;;  %v528_v7 = vld [vmem:[%s16444_s1 + $0xf70] sm:$0xff]  ;;  %v10548_v10 = vcombine.low %v516_v60, %v520_v61  ;;  %v309_v51 = vld [vmem:[%s16444_s1 + $0x898] sm:$0xff] }
 0x19d   :  { %v13460_v9 = vadd.f32 %v3365_v12, %v3243_v6  ;;  %v3367_v16 = vpop.f32.mrb[2].mxu0  ;;  %3668 = vmatpush1.bf16.msra.mxu0 %v10492_v62  ;;  %v10286_v62 = vcombine.low %v253_v48, %v257_v49  ;;  %v524_v6 = vld [vmem:[%s16444_s1 + $0xf50] sm:$0xff]  ;;  %v10303_v12 = vcombine.high %v269_v4, %v273_v5 }
 0x19e   :  { %v3368_v18 = vpop.f32.mrb[3].mxu0  ;;  %3669 = vmatprep.subr.bf16.mxu0 %v10501_v3  ;;  %v10549_v3 = vcombine.high %v516_v60, %v520_v61  ;;  %v277_v16 = vld [vmem:[%s16444_s1 + $0x798] sm:$0xff]  ;;  %v10556_v20 = vcombine.low %v524_v6, %v528_v7 }
 0x19f   :  { %3752 = vmatpush1.bf16.msra.mxu1 %v10246_v14  ;;  %v10557_v14 = vcombine.high %v524_v6, %v528_v7  ;;  %v536_v18 = vld [vmem:[%s16444_s1 + $0xfb0] sm:$0xff]  ;;  %v317_v61 = vld [vmem:[%s16444_s1 + $0x8d8] sm:$0xff] }
 0x1a0   :  { %3753 = vmatprep.subr.bf16.mxu1 %v10255_v15  ;;  %v532_v15 = vld [vmem:[%s16444_s1 + $0xf90] sm:$0xff]  ;;  %v325_v7 = vld [vmem:[%s16444_s1 + $0x918] sm:$0xff] }
 0x1a1   :  { %3670 = vmatpush1.bf16.msra.mxu0 %v10500_v17  ;;  %v281_v17 = vld [vmem:[%s16444_s1 + $0x7b8] sm:$0xff]  ;;  %v10565_v23 = vcombine.high %v532_v15, %v536_v18  ;;  %v10564_v29 = vcombine.low %v532_v15, %v536_v18 }
 0x1a2   :  { %3671 = vmatprep.subr.bf16.mxu0 %v10509_v19  ;;  %v10302_v19 = vcombine.low %v269_v4, %v273_v5  ;;  %v10311_v21 = vcombine.high %v277_v16, %v281_v17  ;;  %v333_v15 = vld [vmem:[%s16444_s1 + $0x958] sm:$0xff] }
 0x1a3   :  { %3754 = vmatpush1.bf16.msra.mxu1 %v10254_v25  ;;  %v289_v25 = vld [vmem:[%s16444_s1 + $0x7f8] sm:$0xff] }
 0x1a4   :  { %3755 = vmatprep.subr.bf16.mxu1 %v10263_v26  ;;  %v544_v26 = vld [vmem:[%s16444_s1 + $0xff0] sm:$0xff]  ;;  %v10319_v63 = vcombine.high %v285_v24, %v289_v25  ;;  %v337_v18 = vld [vmem:[%s16444_s1 + $0x978] sm:$0xff] }
 0x1a5   :  { %3672 = vmatpush1.bf16.msra.mxu0 %v10508_v22  ;;  %v540_v22 = vld [vmem:[%s16444_s1 + $0xfd0] sm:$0xff] }
 0x1a6   :  { %3673 = vmatprep.subr.bf16.mxu0 %v10517_v27  ;;  %v10310_v27 = vcombine.low %v277_v16, %v281_v17  ;;  %v10573_v30 = vcombine.high %v540_v22, %v544_v26  ;;  %v10572_v36 = vcombine.low %v540_v22, %v544_v26  ;;  %v341_v22 = vld [vmem:[%s16444_s1 + $0x998] sm:$0xff] }
 0x1a7   :  { %3756 = vmatpush1.bf16.msra.mxu1 %v10262_v34  ;;  %v297_v34 = vld [vmem:[%s16444_s1 + $0x838] sm:$0xff] }
 0x1a8   :  { %3757 = vmatprep.subr.bf16.mxu1 %v10271_v28  ;;  %v3882_v28 = vld [vmem:[%s16446_s3 + $0x20] sm:$0xff]  ;;  %v10327_v37 = vcombine.high %v293_v31, %v297_v34  ;;  %v10326_v48 = vcombine.low %v293_v31, %v297_v34  ;;  %v345_v26 = vld [vmem:[%s16444_s1 + $0x9b8] sm:$0xff] }
 0x1a9   :  { %3674 = vmatpush1.bf16.msra.mxu0 %v10516_v35  ;;  %v3878_v35 = vld [vmem:[%s16446_s3] sm:$0xff]  ;;  %v10375_v31 = vcombine.high %v341_v22, %v345_v26 }
 0x1aa   :  { %3675 = vmatprep.subr.bf16.mxu0 %v10525_v13  ;;  %v10318_v13 = vcombine.low %v285_v24, %v289_v25  ;;  %v10577_v38 = vcombine.high %v3878_v35, %v3882_v28  ;;  %v10576_v49 = vcombine.low %v3878_v35, %v3882_v28  ;;  %v10367_v24 = vcombine.high %v333_v15, %v337_v18  ;;  %v349_v35 = vld [vmem:[%s16444_s1 + $0x9d8] sm:$0xff] }
 0x1ab   :  { %3758 = vmatpush1.bf16.msra.mxu1 %v10270_v42  ;;  %v3863_v42 = vmax.f32 %v13460_v9, 0.0  ;;  %v353_v28 = vld [vmem:[%s16444_s1 + $0x9f8] sm:$0xff] }
 0x1ac   :  { %3759 = vmatprep.subr.bf16.mxu1 %v10279_v45  ;;  %v3886_v45 = vld [vmem:[%s16446_s3 + $0x40] sm:$0xff] }
 0x1ad   :  { %3676 = vmatpush1.bf16.msra.mxu0 %v10524_v44  ;;  %v305_v44 = vld [vmem:[%s16444_s1 + $0x878] sm:$0xff] }
 0x1ae   :  { %3677 = vmatprep.subr.bf16.mxu0 %v10533_v47  ;;  %v3890_v47 = vld [vmem:[%s16446_s3 + $0x60] sm:$0xff]  ;;  %v10335_v50 = vcombine.high %v301_v39, %v305_v44  ;;  %v10334_v58 = vcombine.low %v301_v39, %v305_v44  ;;  %v10383_v39 = vcombine.high %v349_v35, %v353_v28  ;;  %v357_v44 = vld [vmem:[%s16444_s1 + $0xa18] sm:$0xff] }
 0x1af   :  { %3760 = vmatpush1.bf16.msra.mxu1 %v10278_v52  ;;  %v10585_v9 = vcombine.high %v3886_v45, %v3890_v47  ;;  %v313_v52 = vld [vmem:[%s16444_s1 + $0x8b8] sm:$0xff]  ;;  %v10584_v59 = vcombine.low %v3886_v45, %v3890_v47  ;;  %v3942_v47 = vld [vmem:[%s16446_s3 + $0x200] sm:$0xff] }
 0x1b0   :  { %3761 = vmatprep.subr.bf16.mxu1 %v10287_v55  ;;  %v3894_v55 = vld [vmem:[%s16446_s3 + $0x80] sm:$0xff]  ;;  %v10343_v60 = vcombine.high %v309_v51, %v313_v52  ;;  %v361_v45 = vld [vmem:[%s16444_s1 + $0xa38] sm:$0xff] }
 0x1b1   :  { %3678 = vmatpush1.bf16.msra.mxu0 %v10532_v54  ;;  %v13589_v54 = vpack.c.bf16 %v3863_v42, %v3863_v42 }
 0x1b2   :  { %3679 = vmatprep.subr.bf16.mxu0 %v10541_v57  ;;  %v3898_v57 = vld [vmem:[%s16446_s3 + $0xa0] sm:$0xff] }
 0x1b3   :  { %3762 = vmatpush1.bf16.msra.mxu1 %v10286_v62  ;;  %v321_v62 = vld [vmem:[%s16444_s1 + $0x8f8] sm:$0xff]  ;;  %v10592_v4 = vcombine.low %v3894_v55, %v3898_v57 }
 0x1b4   :  { %3763 = vmatprep.subr.bf16.mxu1 %v10295_v1  ;;  %v3906_v1 = vld [vmem:[%s16446_s3 + $0xe0] sm:$0xff]  ;;  %v10351_v5 = vcombine.high %v317_v61, %v321_v62 }
 0x1b5   :  { %3680 = vmatpush1.bf16.msra.mxu0 %v10540_v0  ;;  %v3902_v0 = vld [vmem:[%s16446_s3 + $0xc0] sm:$0xff] }
 0x1b6   :  { %3681 = vmatprep.subr.bf16.mxu0 %v10549_v3  ;;  %v10342_v3 = vcombine.low %v309_v51, %v313_v52  ;;  %v10601_v6 = vcombine.high %v3902_v0, %v3906_v1  ;;  %v365_v52 = vld [vmem:[%s16444_s1 + $0xa58] sm:$0xff] }
 0x1b7   :  { %3764 = vmatpush1.bf16.msra.mxu1 %v10294_v8  ;;  %v329_v8 = vld [vmem:[%s16444_s1 + $0x938] sm:$0xff] }
 0x1b8   :  { %3765 = vmatprep.subr.bf16.mxu1 %v10303_v12  ;;  %v10350_v12 = vcombine.low %v317_v61, %v321_v62  ;;  %v10359_v16 = vcombine.high %v325_v7, %v329_v8  ;;  %v373_v62 = vld [vmem:[%s16444_s1 + $0xa98] sm:$0xff] }
 0x1b9   :  { %3682 = vmatpush1.bf16.msra.mxu0 %v10548_v10  ;;  %v3914_v10 = vld [vmem:[%s16446_s3 + $0x120] sm:$0xff] }
 0x1ba   :  { %3683 = vmatprep.subr.bf16.mxu0 %v10557_v14  ;;  %v10600_v14 = vcombine.low %v3902_v0, %v3906_v1  ;;  %v377_v0 = vld [vmem:[%s16444_s1 + $0xab8] sm:$0xff]  ;;  %v3958_v1 = vld [vmem:[%s16446_s3 + $0x280] sm:$0xff] }
 0x1bb   :  { %3766 = vmatpush1.bf16.msra.mxu1 %v10302_v19  ;;  %v3918_v19 = vld [vmem:[%s16446_s3 + $0x140] sm:$0xff] }
 0x1bc   :  { %3767 = vmatprep.subr.bf16.mxu1 %v10311_v21  ;;  %v10358_v21 = vcombine.low %v325_v7, %v329_v8  ;;  %v381_v8 = vld [vmem:[%s16444_s1 + $0xad8] sm:$0xff] }
 0x1bd   :  { %3684 = vmatpush1.bf16.msra.mxu0 %v10556_v20  ;;  %v3922_v20 = vld [vmem:[%s16446_s3 + $0x160] sm:$0xff] }
 0x1be   :  { %3685 = vmatprep.subr.bf16.mxu0 %v10565_v23  ;;  %v10617_v25 = vcombine.high %v3918_v19, %v3922_v20 }
 0x1bf   :  { %3768 = vmatpush1.bf16.msra.mxu1 %v10310_v27  ;;  %v3926_v27 = vld [vmem:[%s16446_s3 + $0x180] sm:$0xff] }
 0x1c0   :  { %3769 = vmatprep.subr.bf16.mxu1 %v10319_v63  ;;  %v10366_v63 = vcombine.low %v333_v15, %v337_v18  ;;  %v389_v18 = vld [vmem:[%s16444_s1 + $0xb18] sm:$0xff] }
 0x1c1   :  { %3686 = vmatpush1.bf16.msra.mxu0 %v10564_v29  ;;  %v3930_v29 = vld [vmem:[%s16446_s3 + $0x1a0] sm:$0xff] }
 0x1c2   :  { %3687 = vmatprep.subr.bf16.mxu0 %v10573_v30  ;;  %v10616_v30 = vcombine.low %v3918_v19, %v3922_v20  ;;  %v10625_v34 = vcombine.high %v3926_v27, %v3930_v29  ;;  %v393_v19 = vld [vmem:[%s16444_s1 + $0xb38] sm:$0xff]  ;;  %v3974_v20 = vld [vmem:[%s16446_s3 + $0x300] sm:$0xff] }
 0x1c3   :  { %3770 = vmatpush1.bf16.msra.mxu1 %v10318_v13  ;;  %v3934_v13 = vld [vmem:[%s16446_s3 + $0x1c0] sm:$0xff] }
 0x1c4   :  { %3780 = vmatprep.subr.bf16.mxu1 %v10327_v37  ;;  %v10374_v37 = vcombine.low %v341_v22, %v345_v26  ;;  %v397_v26 = vld [vmem:[%s16444_s1 + $0xb58] sm:$0xff] }
 0x1c5   :  { %3688 = vmatpush1.bf16.msra.mxu0 %v10572_v36  ;;  %v3938_v36 = vld [vmem:[%s16446_s3 + $0x1e0] sm:$0xff] }
 0x1c6   :  { %6992 = vmatprep.subr.bf16.mxu0 %v10577_v38  ;;  %3772 = vmatmul.mubr.bf16.vlgmr.msra.gmra.mrb[8].mxu1 %v12368_v33  ;;  %v10593_v33 = vcombine.high %v3894_v55, %v3898_v57  ;;  %v10624_v38 = vcombine.low %v3926_v27, %v3930_v29  ;;  %v10633_v42 = vcombine.high %v3934_v13, %v3938_v36  ;;  %v369_v55 = vld [vmem:[%s16444_s1 + $0xa78] sm:$0xff]  ;;  %v3950_v57 = vld [vmem:[%s16446_s3 + $0x240] sm:$0xff] }
 0x1c7   :  { %3781 = vmatpush1.bf16.msra.mxu1 %v10326_v48  ;;  %3812 = vmatprep.mubr.bf16.mxu1 %v12383_v40  ;;  %v3910_v40 = vld [vmem:[%s16446_s3 + $0x100] sm:$0xff]  ;;  %v401_v27 = vld [vmem:[%s16444_s1 + $0xb78] sm:$0xff] }
 0x1c8   :  { %3690 = vmatmul.mubr.bf16.vlgmr.msra.gmra.mrb[4].mxu0 %v12771_v2  ;;  %3782 = vmatprep.subr.bf16.mxu1 %v10335_v50  ;;  %v10609_v17 = vcombine.high %v3910_v40, %v3914_v10  ;;  %v10608_v23 = vcombine.low %v3910_v40, %v3914_v10  ;;  %v3946_v48 = vld [vmem:[%s16446_s3 + $0x220] sm:$0xff]  ;;  %v10632_v50 = vcombine.low %v3934_v13, %v3938_v36  ;;  %v385_v40 = vld [vmem:[%s16444_s1 + $0xaf8] sm:$0xff] }
 0x1c9   :  { %6993 = vmatpush1.bf16.msra.mxu0 %v10576_v49  ;;  %7024 = vmatprep.mubr.bf16.mxu0 %v13589_v54  ;;  %v10382_v49 = vcombine.low %v349_v35, %v353_v28  ;;  %v10641_v51 = vcombine.high %v3942_v47, %v3946_v48  ;;  %v3966_v10 = vld [vmem:[%s16446_s3 + $0x2c0] sm:$0xff]  ;;  %v405_v28 = vld [vmem:[%s16444_s1 + $0xb98] sm:$0xff] }
 0x1ca   :  { %6994 = vmatprep.subr.bf16.mxu0 %v10585_v9  ;;  %v10391_v9 = vcombine.high %v357_v44, %v361_v45  ;;  %v3982_v29 = vld [vmem:[%s16446_s3 + $0x340] sm:$0xff]  ;;  %v409_v13 = vld [vmem:[%s16444_s1 + $0xbb8] sm:$0xff] }
 0x1cb   :  { %3783 = vmatpush1.bf16.msra.mxu1 %v10334_v58  ;;  %v3954_v58 = vld [vmem:[%s16446_s3 + $0x260] sm:$0xff] }
 0x1cc   :  { %3784 = vmatprep.subr.bf16.mxu1 %v10343_v60  ;;  %v10640_v60 = vcombine.low %v3942_v47, %v3946_v48  ;;  %v10649_v61 = vcombine.high %v3950_v57, %v3954_v58  ;;  %v3990_v36 = vld [vmem:[%s16446_s3 + $0x380] sm:$0xff]  ;;  %v417_v47 = vld [vmem:[%s16444_s1 + $0xbf8] sm:$0xff] }
 0x1cd   :  { %6995 = vmatpush1.bf16.msra.mxu0 %v10584_v59  ;;  %v10390_v59 = vcombine.low %v357_v44, %v361_v45  ;;  %v413_v45 = vld [vmem:[%s16444_s1 + $0xbd8] sm:$0xff]  ;;  %v3998_v48 = vld [vmem:[%s16446_s3 + $0x3c0] sm:$0xff] }
 0x1ce   :  { %6996 = vmatprep.subr.bf16.mxu0 %v10593_v33  ;;  %v10399_v33 = vcombine.high %v365_v52, %v369_v55 }
 0x1cf   :  { %3785 = vmatpush1.bf16.msra.mxu1 %v10342_v3  ;;  %v3962_v3 = vld [vmem:[%s16446_s3 + $0x2a0] sm:$0xff] }
 0x1d0   :  { %3786 = vmatprep.subr.bf16.mxu1 %v10351_v5  ;;  %v10648_v5 = vcombine.low %v3950_v57, %v3954_v58  ;;  %v10657_v7 = vcombine.high %v3958_v1, %v3962_v3  ;;  %v425_v57 = vld [vmem:[%s16444_s1 + $0xc38] sm:$0xff]  ;;  %v4006_v58 = vld [vmem:[%s16446_s3 + $0x400] sm:$0xff] }
 0x1d1   :  { %6997 = vmatpush1.bf16.msra.mxu0 %v10592_v4  ;;  %v10398_v4 = vcombine.low %v365_v52, %v369_v55  ;;  %v421_v55 = vld [vmem:[%s16444_s1 + $0xc18] sm:$0xff] }
 0x1d2   :  { %6998 = vmatprep.subr.bf16.mxu0 %v10601_v6  ;;  %v10407_v6 = vcombine.high %v373_v62, %v377_v0 }
 0x1d3   :  { %3787 = vmatpush1.bf16.msra.mxu1 %v10350_v12  ;;  %v3970_v12 = vld [vmem:[%s16446_s3 + $0x2e0] sm:$0xff] }
 0x1d4   :  { %3788 = vmatprep.subr.bf16.mxu1 %v10359_v16  ;;  %v10656_v16 = vcombine.low %v3958_v1, %v3962_v3  ;;  %v10665_v15 = vcombine.high %v3966_v10, %v3970_v12  ;;  %v429_v1 = vld [vmem:[%s16444_s1 + $0xc58] sm:$0xff] }
 0x1d5   :  { %6999 = vmatpush1.bf16.msra.mxu0 %v10600_v14  ;;  %v10406_v14 = vcombine.low %v373_v62, %v377_v0  ;;  %v3862_v62 = vmax.f32 %v13458_v11, 0.0  ;;  %v433_v3 = vld [vmem:[%s16444_s1 + $0xc78] sm:$0xff]  ;;  %v10454_v11 = vcombine.low %v421_v55, %v425_v57 }
 0x1d6   :  { %7000 = vmatprep.subr.bf16.mxu0 %v10609_v17  ;;  %v10415_v17 = vcombine.high %v381_v8, %v385_v40 }
 0x1d7   :  { %3789 = vmatpush1.bf16.msra.mxu1 %v10358_v21  ;;  %v3978_v21 = vld [vmem:[%s16446_s3 + $0x320] sm:$0xff] }
 0x1d8   :  { %3790 = vmatprep.subr.bf16.mxu1 %v10367_v24  ;;  %v10664_v24 = vcombine.low %v3966_v10, %v3970_v12  ;;  %v10673_v22 = vcombine.high %v3974_v20, %v3978_v21  ;;  %v437_v10 = vld [vmem:[%s16444_s1 + $0xc98] sm:$0xff] }
 0x1d9   :  { %7001 = vmatpush1.bf16.msra.mxu0 %v10608_v23  ;;  %v10414_v23 = vcombine.low %v381_v8, %v385_v40  ;;  %v13782_v8 = vpack.c.bf16 %v3862_v62, %v3862_v62  ;;  %v441_v12 = vld [vmem:[%s16444_s1 + $0xcb8] sm:$0xff] }
 0x1da   :  { %7002 = vmatprep.subr.bf16.mxu0 %v10617_v25  ;;  %v10423_v25 = vcombine.high %v389_v18, %v393_v19 }
 0x1db   :  { %3791 = vmatpush1.bf16.msra.mxu1 %v10366_v63  ;;  %v3986_v63 = vld [vmem:[%s16446_s3 + $0x360] sm:$0xff] }
 0x1dc   :  { %3792 = vmatprep.subr.bf16.mxu1 %v10375_v31  ;;  %v10672_v31 = vcombine.low %v3974_v20, %v3978_v21  ;;  %v10681_v35 = vcombine.high %v3982_v29, %v3986_v63  ;;  %v449_v20 = vld [vmem:[%s16444_s1 + $0xcf8] sm:$0xff]  ;;  %v4030_v21 = vld [vmem:[%s16446_s3 + $0x4c0] sm:$0xff] }
 0x1dd   :  { %7003 = vmatpush1.bf16.msra.mxu0 %v10616_v30  ;;  %v10422_v30 = vcombine.low %v389_v18, %v393_v19  ;;  %v10471_v18 = vcombine.high %v437_v10, %v441_v12 }
 0x1de   :  { %7004 = vmatprep.subr.bf16.mxu0 %v10625_v34  ;;  %v10431_v34 = vcombine.high %v397_v26, %v401_v27 }
 0x1df   :  { %3793 = vmatpush1.bf16.msra.mxu1 %v10374_v37  ;;  %v3994_v37 = vld [vmem:[%s16446_s3 + $0x3a0] sm:$0xff] }
 0x1e0   :  { %3794 = vmatprep.subr.bf16.mxu1 %v10383_v39  ;;  %v10680_v39 = vcombine.low %v3982_v29, %v3986_v63  ;;  %v10689_v44 = vcombine.high %v3990_v36, %v3994_v37  ;;  %v4038_v29 = vld [vmem:[%s16446_s3 + $0x500] sm:$0xff] }
 0x1e1   :  { %7005 = vmatpush1.bf16.msra.mxu0 %v10624_v38  ;;  %v10430_v38 = vcombine.low %v397_v26, %v401_v27  ;;  %v457_v27 = vld [vmem:[%s16444_s1 + $0xd38] sm:$0xff]  ;;  %v4042_v63 = vld [vmem:[%s16446_s3 + $0x520] sm:$0xff] }
 0x1e2   :  { %7006 = vmatprep.subr.bf16.mxu0 %v10633_v42  ;;  %v10439_v42 = vcombine.high %v405_v28, %v409_v13 }
 0x1e3   :  { %3795 = vmatpush1.bf16.msra.mxu1 %v10382_v49  ;;  %v4002_v49 = vld [vmem:[%s16446_s3 + $0x3e0] sm:$0xff] }
 0x1e4   :  { %3796 = vmatprep.subr.bf16.mxu1 %v10391_v9  ;;  %v10688_v9 = vcombine.low %v3990_v36, %v3994_v37  ;;  %v10697_v52 = vcombine.high %v3998_v48, %v4002_v49  ;;  %v4046_v36 = vld [vmem:[%s16446_s3 + $0x540] sm:$0xff] }
 0x1e5   :  { %7007 = vmatpush1.bf16.msra.mxu0 %v10632_v50  ;;  %v10438_v50 = vcombine.low %v405_v28, %v409_v13  ;;  %v461_v28 = vld [vmem:[%s16444_s1 + $0xd58] sm:$0xff]  ;;  %v4050_v37 = vld [vmem:[%s16446_s3 + $0x560] sm:$0xff] }
 0x1e6   :  { %7008 = vmatprep.subr.bf16.mxu0 %v10641_v51  ;;  %v10447_v51 = vcombine.high %v413_v45, %v417_v47  ;;  %v465_v13 = vld [vmem:[%s16444_s1 + $0xd78] sm:$0xff] }
 0x1e7   :  { %3797 = vmatpush1.bf16.msra.mxu1 %v10390_v59  ;;  %v4010_v59 = vld [vmem:[%s16446_s3 + $0x420] sm:$0xff] }
 0x1e8   :  { %3798 = vmatprep.subr.bf16.mxu1 %v10399_v33  ;;  %v10696_v33 = vcombine.low %v3998_v48, %v4002_v49  ;;  %v10705_v0 = vcombine.high %v4006_v58, %v4010_v59  ;;  %v473_v48 = vld [vmem:[%s16444_s1 + $0xdb8] sm:$0xff]  ;;  %v4054_v49 = vld [vmem:[%s16446_s3 + $0x580] sm:$0xff] }
 0x1e9   :  { %7009 = vmatpush1.bf16.msra.mxu0 %v10640_v60  ;;  %v10446_v60 = vcombine.low %v413_v45, %v417_v47  ;;  %v10745_v45 = vcombine.high %v4046_v36, %v4050_v37  ;;  %v469_v47 = vld [vmem:[%s16444_s1 + $0xd98] sm:$0xff] }
 0x1ea   :  { %7010 = vmatprep.subr.bf16.mxu0 %v10649_v61  ;;  %v10455_v61 = vcombine.high %v421_v55, %v425_v57  ;;  %v10503_v55 = vcombine.high %v469_v47, %v473_v48 }
 0x1eb   :  { %3799 = vmatpush1.bf16.msra.mxu1 %v10398_v4  ;;  %v4014_v4 = vld [vmem:[%s16446_s3 + $0x440] sm:$0xff] }
 0x1ec   :  { %3800 = vmatprep.subr.bf16.mxu1 %v10407_v6  ;;  %v10704_v6 = vcombine.low %v4006_v58, %v4010_v59  ;;  %v477_v59 = vld [vmem:[%s16444_s1 + $0xdd8] sm:$0xff] }
 0x1ed   :  { %7011 = vmatpush1.bf16.msra.mxu0 %v10648_v5  ;;  %v4018_v5 = vld [vmem:[%s16446_s3 + $0x460] sm:$0xff] }
 0x1ee   :  { %7012 = vmatprep.subr.bf16.mxu0 %v10657_v7  ;;  %v10463_v7 = vcombine.high %v429_v1, %v433_v3  ;;  %v10713_v40 = vcombine.high %v4014_v4, %v4018_v5 }
 0x1ef   :  { %3801 = vmatpush1.bf16.msra.mxu1 %v10406_v14  ;;  %v4022_v14 = vld [vmem:[%s16446_s3 + $0x480] sm:$0xff] }
 0x1f0   :  { %3802 = vmatprep.subr.bf16.mxu1 %v10415_v17  ;;  %v10462_v17 = vcombine.low %v429_v1, %v433_v3  ;;  %v10502_v1 = vcombine.low %v469_v47, %v473_v48  ;;  %v521_v47 = vld [vmem:[%s16444_s1 + $0xf38] sm:$0xff]  ;;  %v4102_v48 = vld [vmem:[%s16446_s3 + $0x700] sm:$0xff] }
 0x1f1   :  { %7013 = vmatpush1.bf16.msra.mxu0 %v10656_v16  ;;  %v4026_v16 = vld [vmem:[%s16446_s3 + $0x4a0] sm:$0xff] }
 0x1f2   :  { %7014 = vmatprep.subr.bf16.mxu0 %v10665_v15  ;;  %v10712_v15 = vcombine.low %v4014_v4, %v4018_v5  ;;  %v10721_v19 = vcombine.high %v4022_v14, %v4026_v16 }
 0x1f3   :  { %3803 = vmatpush1.bf16.msra.mxu1 %v10414_v23  ;;  %v4034_v23 = vld [vmem:[%s16446_s3 + $0x4e0] sm:$0xff] }
 0x1f4   :  { %3804 = vmatprep.subr.bf16.mxu1 %v10423_v25  ;;  %v10720_v25 = vcombine.low %v4022_v14, %v4026_v16  ;;  %v10729_v26 = vcombine.high %v4030_v21, %v4034_v23 }
 0x1f5   :  { %7015 = vmatpush1.bf16.msra.mxu0 %v10664_v24  ;;  %v10470_v24 = vcombine.low %v437_v10, %v441_v12  ;;  %v4070_v10 = vld [vmem:[%s16446_s3 + $0x600] sm:$0xff] }
 0x1f6   :  { %7016 = vmatprep.subr.bf16.mxu0 %v10673_v22  ;;  %v4074_v12 = vld [vmem:[%s16446_s3 + $0x620] sm:$0xff] }
 0x1f7   :  { %3805 = vmatpush1.bf16.msra.mxu1 %v10422_v30 }
 0x1f8   :  { %3806 = vmatprep.subr.bf16.mxu1 %v10431_v34 }
 0x1f9   :  { %7017 = vmatpush1.bf16.msra.mxu0 %v10672_v31  ;;  %v10728_v31 = vcombine.low %v4030_v21, %v4034_v23  ;;  %v4082_v21 = vld [vmem:[%s16446_s3 + $0x660] sm:$0xff] }
 0x1fa   :  { %7018 = vmatprep.subr.bf16.mxu0 %v10681_v35  ;;  %v10737_v35 = vcombine.high %v4038_v29, %v4042_v63 }
 0x1fb   :  { %3807 = vmatpush1.bf16.msra.mxu1 %v10430_v38 }
 0x1fc   :  { %3808 = vmatprep.subr.bf16.mxu1 %v10439_v42  ;;  %v10736_v42 = vcombine.low %v4038_v29, %v4042_v63  ;;  %v4090_v29 = vld [vmem:[%s16446_s3 + $0x6a0] sm:$0xff] }
 0x1fd   :  { %7019 = vmatpush1.bf16.msra.mxu0 %v10680_v39  ;;  %v13836_v39 = vsub.s32 3, %v12181_v43 }
 0x1fe   :  { %7020 = vmatprep.subr.bf16.mxu0 %v10689_v44  ;;  %v10495_v44 = vcombine.high %v461_v28, %v465_v13 }
 0x1ff   :  { %3809 = vmatpush1.bf16.msra.mxu1 %v10438_v50  ;;  %v4058_v50 = vld [vmem:[%s16446_s3 + $0x5a0] sm:$0xff] }
 0x200   :  { %3810 = vmatprep.subr.bf16.mxu1 %v10447_v51  ;;  %v10494_v51 = vcombine.low %v461_v28, %v465_v13  ;;  %v10753_v58 = vcombine.high %v4054_v49, %v4058_v50  ;;  %v10752_v4 = vcombine.low %v4054_v49, %v4058_v50  ;;  %v513_v28 = vld [vmem:[%s16444_s1 + $0xef8] sm:$0xff]  ;;  %v4094_v13 = vld [vmem:[%s16446_s3 + $0x6c0] sm:$0xff] }
 0x201   :  { %7021 = vmatpush1.bf16.msra.mxu0 %v10688_v9  ;;  %v563_v9 = vrot.slane %v13417_v46, %v13836_v39  ;;  %v4062_v46 = vld [vmem:[%s16446_s3 + $0x5c0] sm:$0xff] }
 0x202   :  { %7022 = vmatprep.subr.bf16.mxu0 %v10697_v52  ;;  %v10744_v52 = vcombine.low %v4046_v36, %v4050_v37  ;;  %v4098_v36 = vld [vmem:[%s16446_s3 + $0x6e0] sm:$0xff] }
 0x203   :  { %3811 = vmatpush1.bf16.msra.mxu1 %v10446_v60  ;;  %v481_v60 = vld [vmem:[%s16444_s1 + $0xdf8] sm:$0xff]  ;;  %v4106_v49 = vld [vmem:[%s16446_s3 + $0x720] sm:$0xff] }
 0x204   :  { %3821 = vmatprep.subr.bf16.mxu1 %v10455_v61  ;;  %v4066_v61 = vld [vmem:[%s16446_s3 + $0x5e0] sm:$0xff]  ;;  %v10511_v5 = vcombine.high %v477_v59, %v481_v60  ;;  %v10510_v16 = vcombine.low %v477_v59, %v481_v60 }
 0x205   :  { %7023 = vmatpush1.bf16.msra.mxu0 %v10696_v33  ;;  %v4110_v59 = vld [vmem:[%s16446_s3 + $0x740] sm:$0xff] }
 0x206   :  { %7033 = vmatprep.subr.bf16.mxu0 %v10705_v0  ;;  %3813 = vmatmul.mubr.bf16.vlgmr.msra.gmra.mrb[8].mxu1 %v12274_v32  ;;  %v445_v32 = vld [vmem:[%s16444_s1 + $0xcd8] sm:$0xff]  ;;  %v4114_v60 = vld [vmem:[%s16446_s3 + $0x760] sm:$0xff] }
 0x207   :  { %3822 = vmatpush1.bf16.msra.mxu1 %v10454_v11  ;;  %3853 = vmatprep.mubr.bf16.mxu1 %v12583_v56  ;;  %v10479_v22 = vcombine.high %v445_v32, %v449_v20  ;;  %v453_v56 = vld [vmem:[%s16444_s1 + $0xd18] sm:$0xff]  ;;  %v10478_v30 = vcombine.low %v445_v32, %v449_v20  ;;  %v4078_v20 = vld [vmem:[%s16446_s3 + $0x640] sm:$0xff] }
 0x208   :  { %7025 = vmatmul.mubr.bf16.vlgmr.msra.gmra.mrb[8].mxu0 %v13782_v8  ;;  %3823 = vmatprep.subr.bf16.mxu1 %v10463_v7  ;;  %v10487_v34 = vcombine.high %v453_v56, %v457_v27  ;;  %v10486_v38 = vcombine.low %v453_v56, %v457_v27  ;;  %v485_v7 = vld [vmem:[%s16444_s1 + $0xe18] sm:$0xff]  ;;  %v4086_v27 = vld [vmem:[%s16446_s3 + $0x680] sm:$0xff] }
 0x209   :  { %7034 = vmatpush1.bf16.msra.mxu0 %v10704_v6  ;;  %v10761_v6 = vcombine.high %v4062_v46, %v4066_v61  ;;  %v497_v32 = vld [vmem:[%s16444_s1 + $0xe78] sm:$0xff] }
 0x20a   :  { %7035 = vmatprep.subr.bf16.mxu0 %v10713_v40  ;;  %v489_v40 = vld [vmem:[%s16444_s1 + $0xe38] sm:$0xff] }
 0x20b   :  { %3824 = vmatpush1.bf16.msra.mxu1 %v10462_v17  ;;  %v10760_v17 = vcombine.low %v4062_v46, %v4066_v61  ;;  %v10518_v23 = vcombine.low %v485_v7, %v489_v40  ;;  %v505_v56 = vld [vmem:[%s16444_s1 + $0xeb8] sm:$0xff]  ;;  %v10800_v46 = vcombine.low %v4102_v48, %v4106_v49 }
 0x20c   :  { %3825 = vmatprep.subr.bf16.mxu1 %v10471_v18  ;;  %v10769_v18 = vcombine.high %v4070_v10, %v4074_v12 }
 0x20d   :  { %7036 = vmatpush1.bf16.msra.mxu0 %v10712_v15  ;;  %v10519_v15 = vcombine.high %v485_v7, %v489_v40  ;;  %v13959_v40 = vld [vmem:[%s16445_s2] sm:$0xff] }
 0x20e   :  { %7037 = vmatprep.subr.bf16.mxu0 %v10721_v19  ;;  %v493_v19 = vld [vmem:[%s16444_s1 + $0xe58] sm:$0xff] }
 0x20f   :  { %3826 = vmatpush1.bf16.msra.mxu1 %v10470_v24  ;;  %v10768_v24 = vcombine.low %v4070_v10, %v4074_v12  ;;  %v10526_v63 = vcombine.low %v493_v19, %v497_v32 }
 0x210   :  { %3827 = vmatprep.subr.bf16.mxu1 %v10479_v22  ;;  %v10777_v22 = vcombine.high %v4078_v20, %v4082_v21 }
 0x211   :  { %7038 = vmatpush1.bf16.msra.mxu0 %v10720_v25  ;;  %v10527_v25 = vcombine.high %v493_v19, %v497_v32 }
 0x212   :  { %7039 = vmatprep.subr.bf16.mxu0 %v10729_v26  ;;  %v501_v26 = vld [vmem:[%s16444_s1 + $0xe98] sm:$0xff] }
 0x213   :  { %3828 = vmatpush1.bf16.msra.mxu1 %v10478_v30  ;;  %v10776_v30 = vcombine.low %v4078_v20, %v4082_v21  ;;  %v10534_v37 = vcombine.low %v501_v26, %v505_v56 }
 0x214   :  { %3829 = vmatprep.subr.bf16.mxu1 %v10487_v34  ;;  %v10785_v34 = vcombine.high %v4086_v27, %v4090_v29 }
 0x215   :  { %7040 = vmatpush1.bf16.msra.mxu0 %v10728_v31  ;;  %v10535_v31 = vcombine.high %v501_v26, %v505_v56  ;;  %v4138_v26 = vld [vmem:[%s16446_s3 + $0x820] sm:$0xff] }
 0x216   :  { %7041 = vmatprep.subr.bf16.mxu0 %v10737_v35  ;;  %v509_v35 = vld [vmem:[%s16444_s1 + $0xed8] sm:$0xff] }
 0x217   :  { %3830 = vmatpush1.bf16.msra.mxu1 %v10486_v38  ;;  %v10784_v38 = vcombine.low %v4086_v27, %v4090_v29  ;;  %v10542_v50 = vcombine.low %v509_v35, %v513_v28 }
 0x218   :  { %3831 = vmatprep.subr.bf16.mxu1 %v10495_v44  ;;  %v10793_v44 = vcombine.high %v4094_v13, %v4098_v36 }
 0x219   :  { %7042 = vmatpush1.bf16.msra.mxu0 %v10736_v42  ;;  %v13852_v57 = vpop.f32.mrb[4].mxu1  ;;  %v10543_v42 = vcombine.high %v509_v35, %v513_v28  ;;  %v4142_v35 = vld [vmem:[%s16446_s3 + $0x840] sm:$0xff] }
 0x21a   :  { %7043 = vmatprep.subr.bf16.mxu0 %v10745_v45  ;;  %v3529_v33 = vpop.f32.mrb[5].mxu1  ;;  %v517_v45 = vld [vmem:[%s16444_s1 + $0xf18] sm:$0xff]  ;;  %v4146_v28 = vld [vmem:[%s16446_s3 + $0x860] sm:$0xff] }
 0x21b   :  { %v11414_v62 = vadd.f32 %v3529_v33, %v563_v9  ;;  %v3531_v0 = vpop.f32.mrb[6].mxu1  ;;  %3832 = vmatpush1.bf16.msra.mxu1 %v10494_v51  ;;  %v10792_v9 = vcombine.low %v4094_v13, %v4098_v36  ;;  %v10551_v51 = vcombine.high %v517_v45, %v521_v47  ;;  %v10550_v33 = vcombine.low %v517_v45, %v521_v47  ;;  %v4150_v47 = vld [vmem:[%s16446_s3 + $0x880] sm:$0xff] }
 0x21c   :  { %v3532_v3 = vpop.f32.mrb[7].mxu1  ;;  %3833 = vmatprep.subr.bf16.mxu1 %v10503_v55  ;;  %v525_v55 = vld [vmem:[%s16444_s1 + $0xf58] sm:$0xff]  ;;  %v10809_v0 = vcombine.high %v4110_v59, %v4114_v60 }
 0x21d   :  { %7044 = vmatpush1.bf16.msra.mxu0 %v10744_v52  ;;  %v3865_v11 = vmax.f32 %v11414_v62, 0.0  ;;  %v10801_v52 = vcombine.high %v4102_v48, %v4106_v49  ;;  %v13942_v62 = vsub.s32 2, %v12181_v43  ;;  %v537_v3 = vld [vmem:[%s16444_s1 + $0xfb8] sm:$0xff]  ;;  %v4154_v48 = vld [vmem:[%s16446_s3 + $0x8a0] sm:$0xff] }
 0x21e   :  { %7045 = vmatprep.subr.bf16.mxu0 %v10753_v58  ;;  %v529_v58 = vld [vmem:[%s16444_s1 + $0xf78] sm:$0xff] }
 0x21f   :  { %v13878_v14 = vpack.c.bf16 %v3865_v11, %v3865_v11  ;;  %3834 = vmatpush1.bf16.msra.mxu1 %v10502_v1  ;;  %v10559_v61 = vcombine.high %v525_v55, %v529_v58  ;;  %v533_v1 = vld [vmem:[%s16444_s1 + $0xf98] sm:$0xff]  ;;  %v10558_v11 = vcombine.low %v525_v55, %v529_v58  ;;  %v559_v10 = vrot.slane %v13959_v40, %v13942_v62  ;;  %v4158_v55 = vld [vmem:[%s16446_s3 + $0x8c0] sm:$0xff] }
 0x220   :  { %3835 = vmatprep.subr.bf16.mxu1 %v10511_v5  ;;  %v4122_v5 = vld [vmem:[%s16446_s3 + $0x7a0] sm:$0xff]  ;;  %v10567_v7 = vcombine.high %v533_v1, %v537_v3  ;;  %v10566_v19 = vcombine.low %v533_v1, %v537_v3 }
 0x221   :  { %7046 = vmatpush1.bf16.msra.mxu0 %v10752_v4  ;;  %7065 = vmatprep.mubr.bf16.mxu0 %v13878_v14  ;;  %v4118_v4 = vld [vmem:[%s16446_s3 + $0x780] sm:$0xff]  ;;  %v11413_v21 = vadd.f32 %v13852_v57, %v559_v10 }
 0x222   :  { %7047 = vmatprep.subr.bf16.mxu0 %v10761_v6  ;;  %v10808_v6 = vcombine.low %v4110_v59, %v4114_v60  ;;  %v10817_v12 = vcombine.high %v4118_v4, %v4122_v5  ;;  %v10816_v32 = vcombine.low %v4118_v4, %v4122_v5  ;;  %v4162_v58 = vld [vmem:[%s16446_s3 + $0x8e0] sm:$0xff]  ;;  %v3911_v60 = vld [vmem:[%s16446_s3 + $0x108] sm:$0xff] }
 0x223   :  { %3836 = vmatpush1.bf16.msra.mxu1 %v10510_v16  ;;  %v541_v16 = vld [vmem:[%s16444_s1 + $0xfd8] sm:$0xff]  ;;  %v3864_v29 = vmax.f32 %v11413_v21, 0.0  ;;  %v4166_v1 = vld [vmem:[%s16446_s3 + $0x900] sm:$0xff]  ;;  %v3919_v5 = vld [vmem:[%s16446_s3 + $0x148] sm:$0xff] }
 0x224   :  { %3837 = vmatprep.subr.bf16.mxu1 %v10519_v15  ;;  %v4126_v15 = vld [vmem:[%s16446_s3 + $0x7c0] sm:$0xff] }
 0x225   :  { %7048 = vmatpush1.bf16.msra.mxu0 %v10760_v17  ;;  %v545_v17 = vld [vmem:[%s16444_s1 + $0xff8] sm:$0xff]  ;;  %v14000_v36 = vpack.c.bf16 %v3864_v29, %v3864_v29  ;;  %v4170_v3 = vld [vmem:[%s16446_s3 + $0x920] sm:$0xff] }
 0x226   :  { %7049 = vmatprep.subr.bf16.mxu0 %v10769_v18  ;;  %v4130_v18 = vld [vmem:[%s16446_s3 + $0x7e0] sm:$0xff]  ;;  %v10575_v20 = vcombine.high %v541_v16, %v545_v17  ;;  %v10574_v57 = vcombine.low %v541_v16, %v545_v17 }
 0x227   :  { %3838 = vmatpush1.bf16.msra.mxu1 %v10518_v23  ;;  %v10825_v23 = vcombine.high %v4126_v15, %v4130_v18  ;;  %v10824_v56 = vcombine.low %v4126_v15, %v4130_v18  ;;  %v4178_v16 = vld [vmem:[%s16446_s3 + $0x960] sm:$0xff]  ;;  %v3927_v15 = vld [vmem:[%s16446_s3 + $0x188] sm:$0xff] }
 0x228   :  { %3839 = vmatprep.subr.bf16.mxu1 %v10527_v25  ;;  %v3883_v25 = vld [vmem:[%s16446_s3 + $0x28] sm:$0xff]  ;;  %v4182_v21 = vld [vmem:[%s16446_s3 + $0x980] sm:$0xff] }
 0x229   :  { %7050 = vmatpush1.bf16.msra.mxu0 %v10768_v24  ;;  %v3879_v24 = vld [vmem:[%s16446_s3 + $0x8] sm:$0xff]  ;;  %v4194_v29 = vld [vmem:[%s16446_s3 + $0x9e0] sm:$0xff] }
 0x22a   :  { %7051 = vmatprep.subr.bf16.mxu0 %v10777_v22  ;;  %v4134_v22 = vld [vmem:[%s16446_s3 + $0x800] sm:$0xff]  ;;  %v10579_v27 = vcombine.high %v3879_v24, %v3883_v25  ;;  %v3931_v18 = vld [vmem:[%s16446_s3 + $0x1a8] sm:$0xff] }
 0x22b   :  { %3840 = vmatpush1.bf16.msra.mxu1 %v10526_v63  ;;  %v3887_v63 = vld [vmem:[%s16446_s3 + $0x48] sm:$0xff] }
 0x22c   :  { %3841 = vmatprep.subr.bf16.mxu1 %v10535_v31  ;;  %v10833_v31 = vcombine.high %v4134_v22, %v4138_v26 }
 0x22d   :  { %7052 = vmatpush1.bf16.msra.mxu0 %v10776_v30  ;;  %v3891_v30 = vld [vmem:[%s16446_s3 + $0x68] sm:$0xff] }
 0x22e   :  { %7053 = vmatprep.subr.bf16.mxu0 %v10785_v34  ;;  %v10578_v34 = vcombine.low %v3879_v24, %v3883_v25  ;;  %v10587_v13 = vcombine.high %v3887_v63, %v3891_v30  ;;  %v10586_v45 = vcombine.low %v3887_v63, %v3891_v30  ;;  %v10627_v24 = vcombine.high %v3927_v15, %v3931_v18  ;;  %v3935_v25 = vld [vmem:[%s16446_s3 + $0x1c8] sm:$0xff] }
 0x22f   :  { %3842 = vmatpush1.bf16.msra.mxu1 %v10534_v37  ;;  %v3895_v37 = vld [vmem:[%s16446_s3 + $0x88] sm:$0xff] }
 0x230   :  { %3843 = vmatprep.subr.bf16.mxu1 %v10543_v42  ;;  %v10832_v42 = vcombine.low %v4134_v22, %v4138_v26  ;;  %v3939_v22 = vld [vmem:[%s16446_s3 + $0x1e8] sm:$0xff] }
 0x231   :  { %7054 = vmatpush1.bf16.msra.mxu0 %v10784_v38  ;;  %v3899_v38 = vld [vmem:[%s16446_s3 + $0xa8] sm:$0xff]  ;;  %v10635_v63 = vcombine.high %v3935_v25, %v3939_v22 }
 0x232   :  { %7055 = vmatprep.subr.bf16.mxu0 %v10793_v44  ;;  %v10841_v44 = vcombine.high %v4142_v35, %v4146_v28  ;;  %v10595_v49 = vcombine.high %v3895_v37, %v3899_v38  ;;  %v3943_v30 = vld [vmem:[%s16446_s3 + $0x208] sm:$0xff] }
 0x233   :  { %3844 = vmatpush1.bf16.msra.mxu1 %v10542_v50  ;;  %v3907_v50 = vld [vmem:[%s16446_s3 + $0xe8] sm:$0xff] }
 0x234   :  { %3845 = vmatprep.subr.bf16.mxu1 %v10551_v51  ;;  %v10849_v51 = vcombine.high %v4150_v47, %v4154_v48 }
 0x235   :  { %7056 = vmatpush1.bf16.msra.mxu0 %v10792_v9  ;;  %v10840_v9 = vcombine.low %v4142_v35, %v4146_v28  ;;  %v10634_v28 = vcombine.low %v3935_v25, %v3939_v22  ;;  %v4242_v25 = vld [vmem:[%s16446_s3 + $0xb60] sm:$0xff] }
 0x236   :  { %7057 = vmatprep.subr.bf16.mxu0 %v10801_v52  ;;  %v10594_v52 = vcombine.low %v3895_v37, %v3899_v38  ;;  %v4202_v37 = vld [vmem:[%s16446_s3 + $0xa20] sm:$0xff] }
 0x237   :  { %3846 = vmatpush1.bf16.msra.mxu1 %v10550_v33  ;;  %v3915_v33 = vld [vmem:[%s16446_s3 + $0x128] sm:$0xff] }
 0x238   :  { %3847 = vmatprep.subr.bf16.mxu1 %v10559_v61  ;;  %v10857_v61 = vcombine.high %v4158_v55, %v4162_v58  ;;  %v10611_v4 = vcombine.high %v3911_v60, %v3915_v33  ;;  %v10610_v10 = vcombine.low %v3911_v60, %v3915_v33  ;;  %v4218_v60 = vld [vmem:[%s16446_s3 + $0xaa0] sm:$0xff] }
 0x239   :  { %7058 = vmatpush1.bf16.msra.mxu0 %v10800_v46  ;;  %v10848_v46 = vcombine.low %v4150_v47, %v4154_v48 }
 0x23a   :  { %7059 = vmatprep.subr.bf16.mxu0 %v10809_v0 }
 0x23b   :  { %3848 = vmatpush1.bf16.msra.mxu1 %v10558_v11  ;;  %v3923_v11 = vld [vmem:[%s16446_s3 + $0x168] sm:$0xff] }
 0x23c   :  { %3849 = vmatprep.subr.bf16.mxu1 %v10567_v7  ;;  %v10865_v7 = vcombine.high %v4166_v1, %v4170_v3  ;;  %v10619_v17 = vcombine.high %v3919_v5, %v3923_v11 }
 0x23d   :  { %7060 = vmatpush1.bf16.msra.mxu0 %v10808_v6  ;;  %v10856_v6 = vcombine.low %v4158_v55, %v4162_v58 }
 0x23e   :  { %7061 = vmatprep.subr.bf16.mxu0 %v10817_v12  ;;  %v4174_v12 = vld [vmem:[%s16446_s3 + $0x940] sm:$0xff] }
 0x23f   :  { %3850 = vmatpush1.bf16.msra.mxu1 %v10566_v19  ;;  %v10864_v19 = vcombine.low %v4166_v1, %v4170_v3  ;;  %v10872_v26 = vcombine.low %v4174_v12, %v4178_v16 }
 0x240   :  { %3851 = vmatprep.subr.bf16.mxu1 %v10575_v20  ;;  %v10618_v20 = vcombine.low %v3919_v5, %v3923_v11  ;;  %v4226_v5 = vld [vmem:[%s16446_s3 + $0xae0] sm:$0xff] }
 0x241   :  { %7062 = vmatpush1.bf16.msra.mxu0 %v10816_v32  ;;  %v10873_v32 = vcombine.high %v4174_v12, %v4178_v16 }
 0x242   :  { %7063 = vmatprep.subr.bf16.mxu0 %v10825_v23  ;;  %v4186_v23 = vld [vmem:[%s16446_s3 + $0x9a0] sm:$0xff] }
 0x243   :  { %3852 = vmatpush1.bf16.msra.mxu1 %v10574_v57  ;;  %v10881_v57 = vcombine.high %v4182_v21, %v4186_v23 }
 0x244   :  { %7156 = vmatprep.subr.bf16.mxu1 %v10579_v27  ;;  %v4190_v27 = vld [vmem:[%s16446_s3 + $0x9c0] sm:$0xff] }
 0x245   :  { %7064 = vmatpush1.bf16.msra.mxu0 %v10824_v56  ;;  %v10626_v56 = vcombine.low %v3927_v15, %v3931_v18  ;;  %v10889_v35 = vcombine.high %v4190_v27, %v4194_v29  ;;  %v4234_v15 = vld [vmem:[%s16446_s3 + $0xb20] sm:$0xff] }
 0x246   :  { %7074 = vmatprep.subr.bf16.mxu0 %v10833_v31  ;;  %3854 = vmatmul.mubr.bf16.vlgmr.msra.gmra.mrb[8].mxu1 %v12771_v2  ;;  %v3903_v2 = vld [vmem:[%s16446_s3 + $0xc8] sm:$0xff] }
 0x247   :  { %7157 = vmatpush1.bf16.msra.mxu1 %v10578_v34  ;;  %7188 = vmatprep.mubr.bf16.mxu1 %v13589_v54  ;;  %v10603_v59 = vcombine.high %v3903_v2, %v3907_v50  ;;  %v10602_v0 = vcombine.low %v3903_v2, %v3907_v50  ;;  %v3947_v31 = vld [vmem:[%s16446_s3 + $0x228] sm:$0xff]  ;;  %v10880_v34 = vcombine.low %v4182_v21, %v4186_v23  ;;  %v4210_v2 = vld [vmem:[%s16446_s3 + $0xa60] sm:$0xff] }
 0x248   :  { %7066 = vmatmul.mubr.bf16.vlgmr.msra.gmra.mrb[8].mxu0 %v14000_v36  ;;  %7158 = vmatprep.subr.bf16.mxu1 %v10587_v13  ;;  %v4198_v13 = vld [vmem:[%s16446_s3 + $0xa00] sm:$0xff]  ;;  %v10643_v38 = vcombine.high %v3943_v30, %v3947_v31  ;;  %v10642_v48 = vcombine.low %v3943_v30, %v3947_v31 }
 0x249   :  { %7075 = vmatpush1.bf16.msra.mxu0 %v10832_v42  ;;  %v3951_v42 = vld [vmem:[%s16446_s3 + $0x248] sm:$0xff]  ;;  %v10897_v47 = vcombine.high %v4198_v13, %v4202_v37  ;;  %v4250_v30 = vld [vmem:[%s16446_s3 + $0xba0] sm:$0xff] }
 0x24a   :  { %7076 = vmatprep.subr.bf16.mxu0 %v10841_v44  ;;  %v3955_v44 = vld [vmem:[%s16446_s3 + $0x268] sm:$0xff] }
 0x24b   :  { %7159 = vmatpush1.bf16.msra.mxu1 %v10586_v45  ;;  %v10888_v45 = vcombine.low %v4190_v27, %v4194_v29  ;;  %v10651_v50 = vcombine.high %v3951_v42, %v3955_v44  ;;  %v10650_v58 = vcombine.low %v3951_v42, %v3955_v44  ;;  %v4258_v42 = vld [vmem:[%s16446_s3 + $0xbe0] sm:$0xff] }
 0x24c   :  { %7160 = vmatprep.subr.bf16.mxu1 %v10595_v49  ;;  %v4206_v49 = vld [vmem:[%s16446_s3 + $0xa40] sm:$0xff] }
 0x24d   :  { %7077 = vmatpush1.bf16.msra.mxu0 %v10840_v9  ;;  %v3959_v9 = vld [vmem:[%s16446_s3 + $0x288] sm:$0xff]  ;;  %v10905_v55 = vcombine.high %v4206_v49, %v4210_v2 }
 0x24e   :  { %7078 = vmatprep.subr.bf16.mxu0 %v10849_v51  ;;  %v3963_v51 = vld [vmem:[%s16446_s3 + $0x2a8] sm:$0xff] }
 0x24f   :  { %7161 = vmatpush1.bf16.msra.mxu1 %v10594_v52  ;;  %v10896_v52 = vcombine.low %v4198_v13, %v4202_v37  ;;  %v10659_v33 = vcombine.high %v3959_v9, %v3963_v51  ;;  %v10658_v3 = vcombine.low %v3959_v9, %v3963_v51  ;;  %v14187_v9 = vld [vmem:[%s16446_s3 + $0xc20] sm:$0xff] }
 0x250   :  { %7162 = vmatprep.subr.bf16.mxu1 %v10603_v59  ;;  %v4214_v59 = vld [vmem:[%s16446_s3 + $0xa80] sm:$0xff] }
 0x251   :  { %7079 = vmatpush1.bf16.msra.mxu0 %v10848_v46  ;;  %v3967_v46 = vld [vmem:[%s16446_s3 + $0x2c8] sm:$0xff]  ;;  %v10913_v1 = vcombine.high %v4214_v59, %v4218_v60 }
 0x252   :  { %7080 = vmatprep.subr.bf16.mxu0 %v10857_v61  ;;  %v3971_v61 = vld [vmem:[%s16446_s3 + $0x2e8] sm:$0xff] }
 0x253   :  { %7163 = vmatpush1.bf16.msra.mxu1 %v10602_v0  ;;  %v10904_v0 = vcombine.low %v4206_v49, %v4210_v2  ;;  %v10667_v11 = vcombine.high %v3967_v46, %v3971_v61  ;;  %v10666_v16 = vcombine.low %v3967_v46, %v3971_v61  ;;  %v4023_v46 = vld [vmem:[%s16446_s3 + $0x488] sm:$0xff] }
 0x254   :  { %7164 = vmatprep.subr.bf16.mxu1 %v10611_v4  ;;  %v4222_v4 = vld [vmem:[%s16446_s3 + $0xac0] sm:$0xff]  ;;  %v4027_v61 = vld [vmem:[%s16446_s3 + $0x4a8] sm:$0xff] }
 0x255   :  { %7081 = vmatpush1.bf16.msra.mxu0 %v10856_v6  ;;  %v3975_v6 = vld [vmem:[%s16446_s3 + $0x308] sm:$0xff]  ;;  %v10921_v12 = vcombine.high %v4222_v4, %v4226_v5 }
 0x256   :  { %7082 = vmatprep.subr.bf16.mxu0 %v10865_v7  ;;  %v3979_v7 = vld [vmem:[%s16446_s3 + $0x328] sm:$0xff] }
 0x257   :  { %7165 = vmatpush1.bf16.msra.mxu1 %v10610_v10  ;;  %v10912_v10 = vcombine.low %v4214_v59, %v4218_v60  ;;  %v10675_v18 = vcombine.high %v3975_v6, %v3979_v7  ;;  %v10674_v23 = vcombine.low %v3975_v6, %v3979_v7  ;;  %v4039_v6 = vld [vmem:[%s16446_s3 + $0x508] sm:$0xff] }
 0x258   :  { %7166 = vmatprep.subr.bf16.mxu1 %v10619_v17  ;;  %v4230_v17 = vld [vmem:[%s16446_s3 + $0xb00] sm:$0xff]  ;;  %v4043_v7 = vld [vmem:[%s16446_s3 + $0x528] sm:$0xff] }
 0x259   :  { %7083 = vmatpush1.bf16.msra.mxu0 %v10864_v19  ;;  %v3983_v19 = vld [vmem:[%s16446_s3 + $0x348] sm:$0xff]  ;;  %v10929_v21 = vcombine.high %v4230_v17, %v4234_v15 }
 0x25a   :  { %7084 = vmatprep.subr.bf16.mxu0 %v10873_v32  ;;  %v3987_v32 = vld [vmem:[%s16446_s3 + $0x368] sm:$0xff] }
 0x25b   :  { %7167 = vmatpush1.bf16.msra.mxu1 %v10618_v20  ;;  %v10920_v20 = vcombine.low %v4222_v4, %v4226_v5  ;;  %v10683_v22 = vcombine.high %v3983_v19, %v3987_v32  ;;  %v10682_v29 = vcombine.low %v3983_v19, %v3987_v32  ;;  %v4035_v4 = vld [vmem:[%s16446_s3 + $0x4e8] sm:$0xff]  ;;  %v10722_v5 = vcombine.low %v4023_v46, %v4027_v61 }
 0x25c   :  { %7168 = vmatprep.subr.bf16.mxu1 %v10627_v24  ;;  %v4238_v24 = vld [vmem:[%s16446_s3 + $0xb40] sm:$0xff]  ;;  %v570_v19 = vsub.s32 5, %v12181_v43 }
 0x25d   :  { %7085 = vmatpush1.bf16.msra.mxu0 %v10872_v26  ;;  %v3991_v26 = vld [vmem:[%s16446_s3 + $0x388] sm:$0xff]  ;;  %v10937_v27 = vcombine.high %v4238_v24, %v4242_v25 }
 0x25e   :  { %7086 = vmatprep.subr.bf16.mxu0 %v10881_v57  ;;  %v3995_v57 = vld [vmem:[%s16446_s3 + $0x3a8] sm:$0xff] }
 0x25f   :  { %7169 = vmatpush1.bf16.msra.mxu1 %v10626_v56  ;;  %v10928_v56 = vcombine.low %v4230_v17, %v4234_v15  ;;  %v10691_v31 = vcombine.high %v3991_v26, %v3995_v57  ;;  %v10690_v37 = vcombine.low %v3991_v26, %v3995_v57  ;;  %v4051_v17 = vld [vmem:[%s16446_s3 + $0x568] sm:$0xff]  ;;  %v10738_v15 = vcombine.low %v4039_v6, %v4043_v7 }
 0x260   :  { %7170 = vmatprep.subr.bf16.mxu1 %v10635_v63  ;;  %v4246_v63 = vld [vmem:[%s16446_s3 + $0xb80] sm:$0xff]  ;;  %v4063_v26 = vld [vmem:[%s16446_s3 + $0x5c8] sm:$0xff] }
 0x261   :  { %7087 = vmatpush1.bf16.msra.mxu0 %v10880_v34  ;;  %v3999_v34 = vld [vmem:[%s16446_s3 + $0x3c8] sm:$0xff]  ;;  %v10945_v13 = vcombine.high %v4246_v63, %v4250_v30 }
 0x262   :  { %7088 = vmatprep.subr.bf16.mxu0 %v10889_v35  ;;  %v4003_v35 = vld [vmem:[%s16446_s3 + $0x3e8] sm:$0xff] }
 0x263   :  { %7171 = vmatpush1.bf16.msra.mxu1 %v10634_v28  ;;  %v10936_v28 = vcombine.low %v4238_v24, %v4242_v25  ;;  %v10699_v44 = vcombine.high %v3999_v34, %v4003_v35  ;;  %v10698_v2 = vcombine.low %v3999_v34, %v4003_v35  ;;  %v571_v25 = vrot.slane %v13959_v40, %v570_v19  ;;  %v4067_v57 = vld [vmem:[%s16446_s3 + $0x5e8] sm:$0xff] }
 0x264   :  { %7172 = vmatprep.subr.bf16.mxu1 %v10643_v38  ;;  %v4254_v38 = vld [vmem:[%s16446_s3 + $0xbc0] sm:$0xff]  ;;  %v10763_v34 = vcombine.high %v4063_v26, %v4067_v57 }
 0x265   :  { %7089 = vmatpush1.bf16.msra.mxu0 %v10888_v45  ;;  %v4007_v45 = vld [vmem:[%s16446_s3 + $0x408] sm:$0xff]  ;;  %v10953_v49 = vcombine.high %v4254_v38, %v4258_v42 }
 0x266   :  { %7090 = vmatprep.subr.bf16.mxu0 %v10897_v47  ;;  %v4011_v47 = vld [vmem:[%s16446_s3 + $0x428] sm:$0xff] }
 0x267   :  { %7173 = vmatpush1.bf16.msra.mxu1 %v10642_v48  ;;  %v10944_v48 = vcombine.low %v4246_v63, %v4250_v30  ;;  %v10707_v51 = vcombine.high %v4007_v45, %v4011_v47  ;;  %v10706_v60 = vcombine.low %v4007_v45, %v4011_v47  ;;  %v14258_v45 = vld [vmem:[%s16446_s3 + $0x10] sm:$0xff] }
 0x268   :  { %7174 = vmatprep.subr.bf16.mxu1 %v10651_v50  ;;  %v14182_v50 = vld [vmem:[%s16446_s3 + $0xc00] sm:$0xff]  ;;  %v14263_v47 = vld [vmem:[%s16446_s3 + $0x30] sm:$0xff] }
 0x269   :  { %7091 = vmatpush1.bf16.msra.mxu0 %v10896_v52  ;;  %v4015_v52 = vld [vmem:[%s16446_s3 + $0x448] sm:$0xff]  ;;  %v10961_v59 = vcombine.high %v14182_v50, %v14187_v9 }
 0x26a   :  { %7092 = vmatprep.subr.bf16.mxu0 %v10905_v55  ;;  %v4019_v55 = vld [vmem:[%s16446_s3 + $0x468] sm:$0xff] }
 0x26b   :  { %7175 = vmatpush1.bf16.msra.mxu1 %v10650_v58  ;;  %v10952_v58 = vcombine.low %v4254_v38, %v4258_v42  ;;  %v4270_v38 = vld [vmem:[%s16446_s3 + $0xc40] sm:$0xff] }
 0x26c   :  { %7176 = vmatprep.subr.bf16.mxu1 %v10659_v33  ;;  %v10715_v33 = vcombine.high %v4015_v52, %v4019_v55  ;;  %v4274_v42 = vld [vmem:[%s16446_s3 + $0xc60] sm:$0xff] }
 0x26d   :  { %7093 = vmatpush1.bf16.msra.mxu0 %v10904_v0  ;;  %v10714_v0 = vcombine.low %v4015_v52, %v4019_v55  ;;  %v4079_v52 = vld [vmem:[%s16446_s3 + $0x648] sm:$0xff] }
 0x26e   :  { %7094 = vmatprep.subr.bf16.mxu0 %v10913_v1  ;;  %v10723_v1 = vcombine.high %v4023_v46, %v4027_v61  ;;  %v4083_v55 = vld [vmem:[%s16446_s3 + $0x668] sm:$0xff]  ;;  %v10968_v46 = vcombine.low %v4270_v38, %v4274_v42 }
 0x26f   :  { %7177 = vmatpush1.bf16.msra.mxu1 %v10658_v3  ;;  %v4031_v3 = vld [vmem:[%s16446_s3 + $0x4c8] sm:$0xff] }
 0x270   :  { %7178 = vmatprep.subr.bf16.mxu1 %v10667_v11  ;;  %v10731_v11 = vcombine.high %v4031_v3, %v4035_v4  ;;  %v4087_v61 = vld [vmem:[%s16446_s3 + $0x688] sm:$0xff] }
 0x271   :  { %7095 = vmatpush1.bf16.msra.mxu0 %v10912_v10  ;;  %v10730_v10 = vcombine.low %v4031_v3, %v4035_v4  ;;  %v4286_v3 = vld [vmem:[%s16446_s3 + $0xcc0] sm:$0xff] }
 0x272   :  { %7096 = vmatprep.subr.bf16.mxu0 %v10921_v12  ;;  %v10739_v12 = vcombine.high %v4039_v6, %v4043_v7  ;;  %v4290_v4 = vld [vmem:[%s16446_s3 + $0xce0] sm:$0xff]  ;;  %v4095_v7 = vld [vmem:[%s16446_s3 + $0x6c8] sm:$0xff] }
 0x273   :  { %7179 = vmatpush1.bf16.msra.mxu1 %v10666_v16  ;;  %v4047_v16 = vld [vmem:[%s16446_s3 + $0x548] sm:$0xff] }
 0x274   :  { %7180 = vmatprep.subr.bf16.mxu1 %v10675_v18  ;;  %v566_v18 = vsub.s32 4, %v12181_v43  ;;  %v10747_v32 = vcombine.high %v4047_v16, %v4051_v17  ;;  %v10746_v24 = vcombine.low %v4047_v16, %v4051_v17  ;;  %v4294_v16 = vld [vmem:[%s16446_s3 + $0xd00] sm:$0xff] }
 0x275   :  { %7097 = vmatpush1.bf16.msra.mxu0 %v10920_v20  ;;  %v4055_v20 = vld [vmem:[%s16446_s3 + $0x588] sm:$0xff]  ;;  %v4298_v17 = vld [vmem:[%s16446_s3 + $0xd20] sm:$0xff] }
 0x276   :  { %7098 = vmatprep.subr.bf16.mxu0 %v10929_v21  ;;  %v4059_v21 = vld [vmem:[%s16446_s3 + $0x5a8] sm:$0xff] }
 0x277   :  { %7181 = vmatpush1.bf16.msra.mxu1 %v10674_v23  ;;  %v567_v23 = vrot.slane %v13959_v40, %v566_v18  ;;  %v10754_v63 = vcombine.low %v4055_v20, %v4059_v21 }
 0x278   :  { %7182 = vmatprep.subr.bf16.mxu1 %v10683_v22  ;;  %v10755_v22 = vcombine.high %v4055_v20, %v4059_v21  ;;  %v10984_v20 = vcombine.low %v4286_v3, %v4290_v4  ;;  %v4103_v21 = vld [vmem:[%s16446_s3 + $0x708] sm:$0xff] }
 0x279   :  { %7099 = vmatpush1.bf16.msra.mxu0 %v10928_v56 }
 0x27a   :  { %7100 = vmatprep.subr.bf16.mxu0 %v10937_v27 }
 0x27b   :  { %7183 = vmatpush1.bf16.msra.mxu1 %v10682_v29 }
 0x27c   :  { %7184 = vmatprep.subr.bf16.mxu1 %v10691_v31 }
 0x27d   :  { %7101 = vmatpush1.bf16.msra.mxu0 %v10936_v28  ;;  %v4071_v28 = vld [vmem:[%s16446_s3 + $0x608] sm:$0xff] }
 0x27e   :  { %7102 = vmatprep.subr.bf16.mxu0 %v10945_v13  ;;  %v4075_v13 = vld [vmem:[%s16446_s3 + $0x628] sm:$0xff] }
 0x27f   :  { %7185 = vmatpush1.bf16.msra.mxu1 %v10690_v37 }
 0x280   :  { %7186 = vmatprep.subr.bf16.mxu1 %v10699_v44  ;;  %v10762_v44 = vcombine.low %v4063_v26, %v4067_v57 }
 0x281   :  { %7103 = vmatpush1.bf16.msra.mxu0 %v10944_v48 }
 0x282   :  { %7104 = vmatprep.subr.bf16.mxu0 %v10953_v49  ;;  %v10771_v49 = vcombine.high %v4071_v28, %v4075_v13 }
 0x283   :  { %7187 = vmatpush1.bf16.msra.mxu1 %v10698_v2  ;;  %v10960_v2 = vcombine.low %v14182_v50, %v14187_v9  ;;  %v4278_v50 = vld [vmem:[%s16446_s3 + $0xc80] sm:$0xff] }
 0x284   :  { %7197 = vmatprep.subr.bf16.mxu1 %v10707_v51  ;;  %v4282_v9 = vld [vmem:[%s16446_s3 + $0xca0] sm:$0xff] }
 0x285   :  { %7105 = vmatpush1.bf16.msra.mxu0 %v10952_v58  ;;  %v10969_v58 = vcombine.high %v4270_v38, %v4274_v42  ;;  %v10976_v6 = vcombine.low %v4278_v50, %v4282_v9  ;;  %v4318_v38 = vld [vmem:[%s16446_s3 + $0xdc0] sm:$0xff] }
 0x286   :  { %7189 = vmatmul.mubr.bf16.vlgmr.msra.gmra.mrb[12].mxu1 %v13782_v8  ;;  %7115 = vmatprep.subr.bf16.mxu0 %v10961_v59  ;;  %v10580_v59 = vcombine.low %v14258_v45, %v14263_v47  ;;  %v4322_v42 = vld [vmem:[%s16446_s3 + $0xde0] sm:$0xff] }
 0x287   :  { %7198 = vmatpush1.bf16.msra.mxu1 %v10706_v60  ;;  %7229 = vmatprep.mubr.bf16.mxu1 %v13878_v14  ;;  %v10770_v60 = vcombine.low %v4071_v28, %v4075_v13  ;;  %v4119_v28 = vld [vmem:[%s16446_s3 + $0x788] sm:$0xff] }
 0x288   :  { %7199 = vmatprep.subr.bf16.mxu1 %v10715_v33  ;;  %v10779_v33 = vcombine.high %v4079_v52, %v4083_v55  ;;  %v4123_v13 = vld [vmem:[%s16446_s3 + $0x7a8] sm:$0xff] }
 0x28b   :  { %7200 = vmatpush1.bf16.msra.mxu1 %v10714_v0  ;;  %v4091_v0 = vld [vmem:[%s16446_s3 + $0x6a8] sm:$0xff] }
 0x28c   :  { %7201 = vmatprep.subr.bf16.mxu1 %v10723_v1  ;;  %v10977_v1 = vcombine.high %v4278_v50, %v4282_v9  ;;  %v4326_v50 = vld [vmem:[%s16446_s3 + $0xe00] sm:$0xff] }
 0x28d   :  { %v4330_v9 = vld [vmem:[%s16446_s3 + $0xe20] sm:$0xff] }
 0x28f   :  { %7202 = vmatpush1.bf16.msra.mxu1 %v10722_v5  ;;  %v10778_v5 = vcombine.low %v4079_v52, %v4083_v55  ;;  %v4127_v52 = vld [vmem:[%s16446_s3 + $0x7c8] sm:$0xff] }
 0x290   :  { %7203 = vmatprep.subr.bf16.mxu1 %v10731_v11  ;;  %v10787_v11 = vcombine.high %v4087_v61, %v4091_v0  ;;  %v4131_v55 = vld [vmem:[%s16446_s3 + $0x7e8] sm:$0xff] }
 0x293   :  { %7204 = vmatpush1.bf16.msra.mxu1 %v10730_v10  ;;  %v4099_v10 = vld [vmem:[%s16446_s3 + $0x6e8] sm:$0xff] }
 0x294   :  { %7205 = vmatprep.subr.bf16.mxu1 %v10739_v12  ;;  %v10985_v12 = vcombine.high %v4286_v3, %v4290_v4  ;;  %v10794_v26 = vcombine.low %v4095_v7, %v4099_v10  ;;  %v4334_v3 = vld [vmem:[%s16446_s3 + $0xe40] sm:$0xff] }
 0x295   :  { %v4338_v4 = vld [vmem:[%s16446_s3 + $0xe60] sm:$0xff] }
 0x297   :  { %7206 = vmatpush1.bf16.msra.mxu1 %v10738_v15  ;;  %v10786_v15 = vcombine.low %v4087_v61, %v4091_v0  ;;  %v4135_v61 = vld [vmem:[%s16446_s3 + $0x808] sm:$0xff] }
 0x298   :  { %7207 = vmatprep.subr.bf16.mxu1 %v10747_v32  ;;  %v10795_v32 = vcombine.high %v4095_v7, %v4099_v10  ;;  %v4139_v0 = vld [vmem:[%s16446_s3 + $0x828] sm:$0xff] }
 0x299   :  { %v4143_v7 = vld [vmem:[%s16446_s3 + $0x848] sm:$0xff] }
 0x29a   :  { %v4147_v10 = vld [vmem:[%s16446_s3 + $0x868] sm:$0xff] }
 0x29b   :  { %v3691_v56 = vpop.f32.mrb[4].mxu0  ;;  %7208 = vmatpush1.bf16.msra.mxu1 %v10746_v24  ;;  %v10993_v24 = vcombine.high %v4294_v16, %v4298_v17 }
 0x29c   :  { %v11415_v27 = vadd.f32 %v3691_v56, %v567_v23  ;;  %v3693_v29 = vpop.f32.mrb[5].mxu0  ;;  %7209 = vmatprep.subr.bf16.mxu1 %v10755_v22  ;;  %v4107_v23 = vld [vmem:[%s16446_s3 + $0x728] sm:$0xff]  ;;  %v4306_v22 = vld [vmem:[%s16446_s3 + $0xd60] sm:$0xff]  ;;  %v10992_v56 = vcombine.low %v4294_v16, %v4298_v17 }
 0x29d   :  { %v11416_v30 = vadd.f32 %v3693_v29, %v571_v25  ;;  %v3695_v31 = vpop.f32.mrb[6].mxu0  ;;  %v4302_v25 = vld [vmem:[%s16446_s3 + $0xd40] sm:$0xff]  ;;  %v10803_v57 = vcombine.high %v4103_v21, %v4107_v23  ;;  %v4115_v29 = vld [vmem:[%s16446_s3 + $0x768] sm:$0xff] }
 0x29e   :  { %v3866_v40 = vmax.f32 %v11415_v27, 0.0  ;;  %v3696_v35 = vpop.f32.mrb[7].mxu0  ;;  %v4111_v27 = vld [vmem:[%s16446_s3 + $0x748] sm:$0xff]  ;;  %v4314_v31 = vld [vmem:[%s16446_s3 + $0xda0] sm:$0xff] }
 0x29f   :  { %v3867_v37 = vmax.f32 %v11416_v30, 0.0  ;;  %7210 = vmatpush1.bf16.msra.mxu1 %v10754_v63  ;;  %v11001_v63 = vcombine.high %v4302_v25, %v4306_v22  ;;  %v4310_v30 = vld [vmem:[%s16446_s3 + $0xd80] sm:$0xff]  ;;  %v11000_v35 = vcombine.low %v4302_v25, %v4306_v22 }
 0x2a0   :  { %7211 = vmatprep.subr.bf16.mxu1 %v10763_v34  ;;  %v14269_v51 = vpack.c.bf16 %v3866_v40, %v3866_v40  ;;  %v10802_v34 = vcombine.low %v4103_v21, %v4107_v23  ;;  %v10811_v40 = vcombine.high %v4111_v27, %v4115_v29  ;;  %v4342_v16 = vld [vmem:[%s16446_s3 + $0xe80] sm:$0xff]  ;;  %v4151_v21 = vld [vmem:[%s16446_s3 + $0x888] sm:$0xff] }
 0x2a1   :  { %v14265_v48 = vpack.c.bf16 %v3867_v37, %v3867_v37  ;;  %v11009_v37 = vcombine.high %v4310_v30, %v4314_v31  ;;  %v4346_v17 = vld [vmem:[%s16446_s3 + $0xea0] sm:$0xff]  ;;  %v4155_v23 = vld [vmem:[%s16446_s3 + $0x8a8] sm:$0xff] }
 0x2a2   :  { %v4350_v25 = vld [vmem:[%s16446_s3 + $0xec0] sm:$0xff] }
 0x2a3   :  { %7106 = vmatprep.mubr.bf16.mxu0 %v14265_v48  ;;  %7212 = vmatpush1.bf16.msra.mxu1 %v10762_v44  ;;  %v10810_v44 = vcombine.low %v4111_v27, %v4115_v29  ;;  %v4354_v22 = vld [vmem:[%s16446_s3 + $0xee0] sm:$0xff]  ;;  %v4159_v27 = vld [vmem:[%s16446_s3 + $0x8c8] sm:$0xff] }
 0x2a4   :  { %7107 = vmatmul.mubr.bf16.vlgmr.msra.gmra.mrb[8].mxu0 %v14269_v51  ;;  %7213 = vmatprep.subr.bf16.mxu1 %v10771_v49  ;;  %v10819_v49 = vcombine.high %v4119_v28, %v4123_v13  ;;  %v4163_v29 = vld [vmem:[%s16446_s3 + $0x8e8] sm:$0xff] }
 0x2a5   :  { %7116 = vmatpush1.bf16.msra.mxu0 %v10960_v2  ;;  %v11008_v2 = vcombine.low %v4310_v30, %v4314_v31  ;;  %v4358_v30 = vld [vmem:[%s16446_s3 + $0xf00] sm:$0xff] }
 0x2a6   :  { %7117 = vmatprep.subr.bf16.mxu0 %v10969_v58  ;;  %v11017_v58 = vcombine.high %v4318_v38, %v4322_v42  ;;  %v4362_v31 = vld [vmem:[%s16446_s3 + $0xf20] sm:$0xff] }
 0x2a7   :  { %7214 = vmatpush1.bf16.msra.mxu1 %v10770_v60  ;;  %v10818_v60 = vcombine.low %v4119_v28, %v4123_v13  ;;  %v4167_v28 = vld [vmem:[%s16446_s3 + $0x908] sm:$0xff] }
 0x2a8   :  { %7215 = vmatprep.subr.bf16.mxu1 %v10779_v33  ;;  %v10827_v33 = vcombine.high %v4127_v52, %v4131_v55  ;;  %v4171_v13 = vld [vmem:[%s16446_s3 + $0x928] sm:$0xff] }
 0x2a9   :  { %7118 = vmatpush1.bf16.msra.mxu0 %v10968_v46  ;;  %v11016_v46 = vcombine.low %v4318_v38, %v4322_v42  ;;  %v4366_v38 = vld [vmem:[%s16446_s3 + $0xf40] sm:$0xff] }
 0x2aa   :  { %7119 = vmatprep.subr.bf16.mxu0 %v10977_v1  ;;  %v11025_v1 = vcombine.high %v4326_v50, %v4330_v9  ;;  %v4370_v42 = vld [vmem:[%s16446_s3 + $0xf60] sm:$0xff] }
 0x2ab   :  { %7216 = vmatpush1.bf16.msra.mxu1 %v10778_v5  ;;  %v10826_v5 = vcombine.low %v4127_v52, %v4131_v55  ;;  %v4175_v52 = vld [vmem:[%s16446_s3 + $0x948] sm:$0xff] }
 0x2ac   :  { %7217 = vmatprep.subr.bf16.mxu1 %v10787_v11  ;;  %v10835_v11 = vcombine.high %v4135_v61, %v4139_v0  ;;  %v4179_v55 = vld [vmem:[%s16446_s3 + $0x968] sm:$0xff] }
 0x2ad   :  { %7120 = vmatpush1.bf16.msra.mxu0 %v10976_v6  ;;  %v11024_v6 = vcombine.low %v4326_v50, %v4330_v9  ;;  %v4374_v50 = vld [vmem:[%s16446_s3 + $0xf80] sm:$0xff] }
 0x2ae   :  { %7121 = vmatprep.subr.bf16.mxu0 %v10985_v12  ;;  %v11033_v12 = vcombine.high %v4334_v3, %v4338_v4  ;;  %v4378_v9 = vld [vmem:[%s16446_s3 + $0xfa0] sm:$0xff] }
 0x2af   :  { %7218 = vmatpush1.bf16.msra.mxu1 %v10786_v15  ;;  %v10834_v15 = vcombine.low %v4135_v61, %v4139_v0  ;;  %v4183_v61 = vld [vmem:[%s16446_s3 + $0x988] sm:$0xff] }
 0x2b0   :  { %7219 = vmatprep.subr.bf16.mxu1 %v10795_v32  ;;  %v10843_v32 = vcombine.high %v4143_v7, %v4147_v10  ;;  %v4187_v0 = vld [vmem:[%s16446_s3 + $0x9a8] sm:$0xff] }
 0x2b1   :  { %7122 = vmatpush1.bf16.msra.mxu0 %v10984_v20  ;;  %v11032_v20 = vcombine.low %v4334_v3, %v4338_v4  ;;  %v4382_v3 = vld [vmem:[%s16446_s3 + $0xfc0] sm:$0xff] }
 0x2b2   :  { %7123 = vmatprep.subr.bf16.mxu0 %v10993_v24  ;;  %v11041_v24 = vcombine.high %v4342_v16, %v4346_v17  ;;  %v4386_v4 = vld [vmem:[%s16446_s3 + $0xfe0] sm:$0xff] }
 0x2b3   :  { %7220 = vmatpush1.bf16.msra.mxu1 %v10794_v26  ;;  %v10842_v26 = vcombine.low %v4143_v7, %v4147_v10  ;;  %v4191_v7 = vld [vmem:[%s16446_s3 + $0x9c8] sm:$0xff] }
 0x2b4   :  { %7221 = vmatprep.subr.bf16.mxu1 %v10803_v57  ;;  %v10851_v57 = vcombine.high %v4151_v21, %v4155_v23  ;;  %v4195_v10 = vld [vmem:[%s16446_s3 + $0x9e8] sm:$0xff] }
 0x2b5   :  { %7124 = vmatpush1.bf16.msra.mxu0 %v10992_v56  ;;  %v11040_v56 = vcombine.low %v4342_v16, %v4346_v17  ;;  %v10882_v16 = vcombine.low %v4183_v61, %v4187_v0  ;;  %v10891_v17 = vcombine.high %v4191_v7, %v4195_v10 }
 0x2b6   :  { %7125 = vmatprep.subr.bf16.mxu0 %v11001_v63  ;;  %v11049_v63 = vcombine.high %v4350_v25, %v4354_v22 }
 0x2b7   :  { %7222 = vmatpush1.bf16.msra.mxu1 %v10802_v34  ;;  %v10850_v34 = vcombine.low %v4151_v21, %v4155_v23  ;;  %v10581_v21 = vcombine.high %v14258_v45, %v14263_v47  ;;  %v10890_v23 = vcombine.low %v4191_v7, %v4195_v10  ;;  %v4283_v7 = vld [vmem:[%s16446_s3 + $0xca8] sm:$0xff] }
 0x2b8   :  { %7223 = vmatprep.subr.bf16.mxu1 %v10811_v40  ;;  %v10859_v40 = vcombine.high %v4159_v27, %v4163_v29  ;;  %v4343_v45 = vld [vmem:[%s16446_s3 + $0xe88] sm:$0xff] }
 0x2b9   :  { %7126 = vmatpush1.bf16.msra.mxu0 %v11000_v35  ;;  %v11048_v35 = vcombine.low %v4350_v25, %v4354_v22  ;;  %v4207_v25 = vld [vmem:[%s16446_s3 + $0xa48] sm:$0xff] }
 0x2ba   :  { %7127 = vmatprep.subr.bf16.mxu0 %v11009_v37  ;;  %v11057_v37 = vcombine.high %v4358_v30, %v4362_v31  ;;  %v4211_v22 = vld [vmem:[%s16446_s3 + $0xa68] sm:$0xff] }
 0x2bb   :  { %7224 = vmatpush1.bf16.msra.mxu1 %v10810_v44  ;;  %v10858_v44 = vcombine.low %v4159_v27, %v4163_v29  ;;  %v4219_v27 = vld [vmem:[%s16446_s3 + $0xaa8] sm:$0xff]  ;;  %v10906_v29 = vcombine.low %v4207_v25, %v4211_v22 }
 0x2bc   :  { %7225 = vmatprep.subr.bf16.mxu1 %v10819_v49  ;;  %v10867_v49 = vcombine.high %v4167_v28, %v4171_v13  ;;  %v4347_v47 = vld [vmem:[%s16446_s3 + $0xea8] sm:$0xff] }
 0x2bd   :  { %7128 = vmatpush1.bf16.msra.mxu0 %v11008_v2  ;;  %v11056_v2 = vcombine.low %v4358_v30, %v4362_v31  ;;  %v4223_v30 = vld [vmem:[%s16446_s3 + $0xac8] sm:$0xff] }
 0x2be   :  { %7129 = vmatprep.subr.bf16.mxu0 %v11017_v58  ;;  %v11065_v58 = vcombine.high %v4366_v38, %v4370_v42  ;;  %v4227_v31 = vld [vmem:[%s16446_s3 + $0xae8] sm:$0xff] }
 0x2bf   :  { %7226 = vmatpush1.bf16.msra.mxu1 %v10818_v60  ;;  %v10866_v60 = vcombine.low %v4167_v28, %v4171_v13  ;;  %v4235_v28 = vld [vmem:[%s16446_s3 + $0xb28] sm:$0xff]  ;;  %v10922_v13 = vcombine.low %v4223_v30, %v4227_v31 }
 0x2c0   :  { %7227 = vmatprep.subr.bf16.mxu1 %v10827_v33  ;;  %v10875_v33 = vcombine.high %v4175_v52, %v4179_v55 }
 0x2c1   :  { %7130 = vmatpush1.bf16.msra.mxu0 %v11016_v46  ;;  %v11064_v46 = vcombine.low %v4366_v38, %v4370_v42  ;;  %v4239_v38 = vld [vmem:[%s16446_s3 + $0xb48] sm:$0xff] }
 0x2c2   :  { %7131 = vmatprep.subr.bf16.mxu0 %v11025_v1  ;;  %v11073_v1 = vcombine.high %v4374_v50, %v4378_v9  ;;  %v4243_v42 = vld [vmem:[%s16446_s3 + $0xb68] sm:$0xff] }
 0x2c3   :  { %7228 = vmatpush1.bf16.msra.mxu1 %v10826_v5  ;;  %v10874_v5 = vcombine.low %v4175_v52, %v4179_v55  ;;  %v4251_v52 = vld [vmem:[%s16446_s3 + $0xba8] sm:$0xff]  ;;  %v10938_v55 = vcombine.low %v4239_v38, %v4243_v42 }
 0x2c4   :  { %7238 = vmatprep.subr.bf16.mxu1 %v10835_v11  ;;  %v10883_v11 = vcombine.high %v4183_v61, %v4187_v0  ;;  %v4267_v61 = vld [vmem:[%s16446_s3 + $0xc28] sm:$0xff] }
 0x2c5   :  { %7132 = vmatpush1.bf16.msra.mxu0 %v11024_v6  ;;  %v11072_v6 = vcombine.low %v4374_v50, %v4378_v9  ;;  %v4255_v50 = vld [vmem:[%s16446_s3 + $0xbc8] sm:$0xff] }
 0x2c6   :  { %7133 = vmatprep.subr.bf16.mxu0 %v11033_v12  ;;  %7230 = vmatmul.mubr.bf16.vlgmr.msra.gmra.mrb[12].mxu1 %v14000_v36  ;;  %v11081_v12 = vcombine.high %v4382_v3, %v4386_v4  ;;  %v4259_v9 = vld [vmem:[%s16446_s3 + $0xbe8] sm:$0xff] }
 0x2c7   :  { %7239 = vmatpush1.bf16.msra.mxu1 %v10834_v15  ;;  %7270 = vmatprep.mubr.bf16.mxu1 %v14265_v48  ;;  %v11080_v15 = vcombine.low %v4382_v3, %v4386_v4  ;;  %v10954_v0 = vcombine.low %v4255_v50, %v4259_v9  ;;  %v4271_v3 = vld [vmem:[%s16446_s3 + $0xc48] sm:$0xff] }
 0x2c8   :  { %7240 = vmatprep.subr.bf16.mxu1 %v10843_v32  ;;  %v4199_v32 = vld [vmem:[%s16446_s3 + $0xa08] sm:$0xff] }
 0x2c9   :  { %7134 = vmatpush1.bf16.msra.mxu0 %v11032_v20  ;;  %v4203_v20 = vld [vmem:[%s16446_s3 + $0xa28] sm:$0xff] }
 0x2ca   :  { %7135 = vmatprep.subr.bf16.mxu0 %v11041_v24  ;;  %v10899_v24 = vcombine.high %v4199_v32, %v4203_v20  ;;  %v4275_v4 = vld [vmem:[%s16446_s3 + $0xc68] sm:$0xff] }
 0x2cb   :  { %7241 = vmatpush1.bf16.msra.mxu1 %v10842_v26  ;;  %v10898_v26 = vcombine.low %v4199_v32, %v4203_v20  ;;  %v10970_v10 = vcombine.low %v4271_v3, %v4275_v4  ;;  %v4295_v20 = vld [vmem:[%s16446_s3 + $0xd08] sm:$0xff] }
 0x2cc   :  { %7242 = vmatprep.subr.bf16.mxu1 %v10851_v57  ;;  %v10907_v57 = vcombine.high %v4207_v25, %v4211_v22  ;;  %v4303_v25 = vld [vmem:[%s16446_s3 + $0xd48] sm:$0xff] }
 0x2cd   :  { %7136 = vmatpush1.bf16.msra.mxu0 %v11040_v56  ;;  %v4215_v56 = vld [vmem:[%s16446_s3 + $0xa88] sm:$0xff] }
 0x2ce   :  { %7137 = vmatprep.subr.bf16.mxu0 %v11049_v63  ;;  %v10915_v63 = vcombine.high %v4215_v56, %v4219_v27  ;;  %v4307_v22 = vld [vmem:[%s16446_s3 + $0xd68] sm:$0xff] }
 0x2cf   :  { %7243 = vmatpush1.bf16.msra.mxu1 %v10850_v34  ;;  %v10914_v34 = vcombine.low %v4215_v56, %v4219_v27  ;;  %v578_v56 = vsub.s32 7, %v12181_v43  ;;  %v11003_v27 = vcombine.high %v4303_v25, %v4307_v22 }
 0x2d0   :  { %7244 = vmatprep.subr.bf16.mxu1 %v10859_v40  ;;  %v10923_v40 = vcombine.high %v4223_v30, %v4227_v31  ;;  %v12037_v30 = vld [vmem:[%s16445_s2] sm:$0xff] }
 0x2d1   :  { %7138 = vmatpush1.bf16.msra.mxu0 %v11048_v35  ;;  %v4231_v35 = vld [vmem:[%s16446_s3 + $0xb08] sm:$0xff] }
 0x2d2   :  { %7139 = vmatprep.subr.bf16.mxu0 %v11057_v37  ;;  %v10931_v37 = vcombine.high %v4231_v35, %v4235_v28 }
 0x2d3   :  { %7245 = vmatpush1.bf16.msra.mxu1 %v10858_v44  ;;  %v10930_v44 = vcombine.low %v4231_v35, %v4235_v28 }
 0x2d4   :  { %7246 = vmatprep.subr.bf16.mxu1 %v10867_v49  ;;  %v10939_v49 = vcombine.high %v4239_v38, %v4243_v42 }
 0x2d5   :  { %7140 = vmatpush1.bf16.msra.mxu0 %v11056_v2  ;;  %v4247_v2 = vld [vmem:[%s16446_s3 + $0xb88] sm:$0xff] }
 0x2d6   :  { %7141 = vmatprep.subr.bf16.mxu0 %v11065_v58  ;;  %v10947_v58 = vcombine.high %v4247_v2, %v4251_v52 }
 0x2d7   :  { %7247 = vmatpush1.bf16.msra.mxu1 %v10866_v60  ;;  %v10946_v60 = vcombine.low %v4247_v2, %v4251_v52 }
 0x2d8   :  { %7248 = vmatprep.subr.bf16.mxu1 %v10875_v33  ;;  %v10955_v33 = vcombine.high %v4255_v50, %v4259_v9  ;;  %v3888_v9 = vld [vmem:[%s16446_s3 + $0x50] sm:$0xff] }
 0x2d9   :  { %7142 = vmatpush1.bf16.msra.mxu0 %v11064_v46  ;;  %v4263_v46 = vld [vmem:[%s16446_s3 + $0xc08] sm:$0xff] }
 0x2da   :  { %7143 = vmatprep.subr.bf16.mxu0 %v11073_v1  ;;  %v10963_v1 = vcombine.high %v4263_v46, %v4267_v61 }
 0x2db   :  { %7249 = vmatpush1.bf16.msra.mxu1 %v10874_v5  ;;  %v10962_v5 = vcombine.low %v4263_v46, %v4267_v61  ;;  %v4331_v46 = vld [vmem:[%s16446_s3 + $0xe28] sm:$0xff] }
 0x2dc   :  { %7250 = vmatprep.subr.bf16.mxu1 %v10883_v11  ;;  %v10971_v11 = vcombine.high %v4271_v3, %v4275_v4  ;;  %v3896_v4 = vld [vmem:[%s16446_s3 + $0x90] sm:$0xff] }
 0x2dd   :  { %7144 = vmatpush1.bf16.msra.mxu0 %v11072_v6  ;;  %v4279_v6 = vld [vmem:[%s16446_s3 + $0xc88] sm:$0xff] }
 0x2de   :  { %7145 = vmatprep.subr.bf16.mxu0 %v11081_v12  ;;  %v10979_v12 = vcombine.high %v4279_v6, %v4283_v7 }
 0x2df   :  { %7251 = vmatpush1.bf16.msra.mxu1 %v10882_v16  ;;  %v4287_v16 = vld [vmem:[%s16446_s3 + $0xcc8] sm:$0xff] }
 0x2e0   :  { %7252 = vmatprep.subr.bf16.mxu1 %v10891_v17  ;;  %v4291_v17 = vld [vmem:[%s16446_s3 + $0xce8] sm:$0xff] }
 0x2e1   :  { %7146 = vmatpush1.bf16.msra.mxu0 %v11080_v15  ;;  %v10978_v15 = vcombine.low %v4279_v6, %v4283_v7  ;;  %v10987_v32 = vcombine.high %v4287_v16, %v4291_v17  ;;  %v4335_v6 = vld [vmem:[%s16446_s3 + $0xe48] sm:$0xff] }
 0x2e2   :  { %7320 = vmatprep.subr.bf16.mxu0 %v10581_v21  ;;  %v4299_v21 = vld [vmem:[%s16446_s3 + $0xd28] sm:$0xff] }
 0x2e3   :  { %7253 = vmatpush1.bf16.msra.mxu1 %v10890_v23  ;;  %v10986_v23 = vcombine.low %v4287_v16, %v4291_v17  ;;  %v4339_v7 = vld [vmem:[%s16446_s3 + $0xe68] sm:$0xff] }
 0x2e4   :  { %7254 = vmatprep.subr.bf16.mxu1 %v10899_v24  ;;  %v10995_v24 = vcombine.high %v4295_v20, %v4299_v21  ;;  %v11035_v17 = vcombine.high %v4335_v6, %v4339_v7 }
 0x2e7   :  { %7255 = vmatpush1.bf16.msra.mxu1 %v10898_v26  ;;  %v574_v26 = vsub.s32 6, %v12181_v43  ;;  %v11922_v43 = vld [vmem:[%s16448_s5 + $0x7c0] ss:$16 sps:$4 sm:$0xff]  }
 0x2e8   :  { %7256 = vmatprep.subr.bf16.mxu1 %v10907_v57  ;;  %v10994_v57 = vcombine.low %v4295_v20, %v4299_v21  ;;  %v11034_v20 = vcombine.low %v4335_v6, %v4339_v7  ;;  %v3948_v6 = vld [vmem:[%s16446_s3 + $0x230] sm:$0xff]  ;;  %v4383_v7 = vld [vmem:[%s16446_s3 + $0xfc8] sm:$0xff] }
 0x2e9   :  { %v575_v31 = vrot.slane %v12037_v30, %v574_v26 }
 0x2eb   :  { %7257 = vmatpush1.bf16.msra.mxu1 %v10906_v29  ;;  %v4311_v29 = vld [vmem:[%s16446_s3 + $0xd88] sm:$0xff] }
 0x2ec   :  { %7258 = vmatprep.subr.bf16.mxu1 %v10915_v63  ;;  %v4315_v63 = vld [vmem:[%s16446_s3 + $0xda8] sm:$0xff] }
 0x2ed   :  { %v11011_v35 = vcombine.high %v4311_v29, %v4315_v63  ;;  %v11010_v2 = vcombine.low %v4311_v29, %v4315_v63  ;;  %v11042_v29 = vcombine.low %v4343_v45, %v4347_v47 }
 0x2ef   :  { %7259 = vmatpush1.bf16.msra.mxu1 %v10914_v34  ;;  %v579_v34 = vrot.slane %v12037_v30, %v578_v56 }
 0x2f0   :  { %7260 = vmatprep.subr.bf16.mxu1 %v10923_v40  ;;  %v11002_v40 = vcombine.low %v4303_v25, %v4307_v22  ;;  %v3916_v25 = vld [vmem:[%s16446_s3 + $0x130] sm:$0xff]  ;;  %v4351_v22 = vld [vmem:[%s16446_s3 + $0xec8] sm:$0xff] }
 0x2f3   :  { %7261 = vmatpush1.bf16.msra.mxu1 %v10922_v13  ;;  %v4319_v13 = vld [vmem:[%s16446_s3 + $0xdc8] sm:$0xff] }
 0x2f4   :  { %7262 = vmatprep.subr.bf16.mxu1 %v10931_v37  ;;  %v4323_v37 = vld [vmem:[%s16446_s3 + $0xde8] sm:$0xff] }
 0x2f7   :  { %7263 = vmatpush1.bf16.msra.mxu1 %v10930_v44 }
 0x2f8   :  { %7264 = vmatprep.subr.bf16.mxu1 %v10939_v49 }
 0x2fb   :  { %7265 = vmatpush1.bf16.msra.mxu1 %v10938_v55 }
 0x2fc   :  { %7266 = vmatprep.subr.bf16.mxu1 %v10947_v58  ;;  %v11019_v58 = vcombine.high %v4319_v13, %v4323_v37 }
 0x2ff   :  { %7267 = vmatpush1.bf16.msra.mxu1 %v10946_v60  ;;  %v3892_v60 = vld [vmem:[%s16446_s3 + $0x70] sm:$0xff] }
 0x300   :  { %7268 = vmatprep.subr.bf16.mxu1 %v10955_v33  ;;  %v4327_v33 = vld [vmem:[%s16446_s3 + $0xe08] sm:$0xff]  ;;  %v10589_v3 = vcombine.high %v3888_v9, %v3892_v60 }
 0x303   :  { %7269 = vmatpush1.bf16.msra.mxu1 %v10954_v0  ;;  %v11018_v0 = vcombine.low %v4319_v13, %v4323_v37 }
 0x304   :  { %7279 = vmatprep.subr.bf16.mxu1 %v10963_v1 }
 0x306   :  { %7271 = vmatmul.mubr.bf16.vlgmr.msra.gmra.mrb[12].mxu1 %v14269_v51 }
 0x307   :  { %7280 = vmatpush1.bf16.msra.mxu1 %v10962_v5  ;;  %v11027_v5 = vcombine.high %v4327_v33, %v4331_v46 }
 0x308   :  { %7281 = vmatprep.subr.bf16.mxu1 %v10971_v11  ;;  %v3900_v11 = vld [vmem:[%s16446_s3 + $0xb0] sm:$0xff] }
 0x309   :  { %v10597_v16 = vcombine.high %v3896_v4, %v3900_v11 }
 0x30b   :  { %7282 = vmatpush1.bf16.msra.mxu1 %v10970_v10  ;;  %v10588_v10 = vcombine.low %v3888_v9, %v3892_v60  ;;  %v3936_v9 = vld [vmem:[%s16446_s3 + $0x1d0] sm:$0xff] }
 0x30c   :  { %7283 = vmatprep.subr.bf16.mxu1 %v10979_v12  ;;  %v11026_v12 = vcombine.low %v4327_v33, %v4331_v46  ;;  %v3940_v60 = vld [vmem:[%s16446_s3 + $0x1f0] sm:$0xff]  ;;  %v4375_v33 = vld [vmem:[%s16446_s3 + $0xf88] sm:$0xff] }
 0x30d   :  { %v4379_v46 = vld [vmem:[%s16446_s3 + $0xfa8] sm:$0xff] }
 0x30f   :  { %7284 = vmatpush1.bf16.msra.mxu1 %v10978_v15  ;;  %v3904_v15 = vld [vmem:[%s16446_s3 + $0xd0] sm:$0xff] }
 0x310   :  { %7285 = vmatprep.subr.bf16.mxu1 %v10987_v32  ;;  %v3908_v32 = vld [vmem:[%s16446_s3 + $0xf0] sm:$0xff] }
 0x311   :  { %v10605_v21 = vcombine.high %v3904_v15, %v3908_v32 }
 0x313   :  { %7286 = vmatpush1.bf16.msra.mxu1 %v10986_v23  ;;  %v11043_v23 = vcombine.high %v4343_v45, %v4347_v47  ;;  %v3956_v45 = vld [vmem:[%s16446_s3 + $0x270] sm:$0xff]  ;;  %v3881_v47 = vld [vmem:[%s16446_s3 + $0x18] sm:$0xff] }
 0x314   :  { %7287 = vmatprep.subr.bf16.mxu1 %v10995_v24  ;;  %v3912_v24 = vld [vmem:[%s16446_s3 + $0x110] sm:$0xff] }
 0x315   :  { %v10613_v63 = vcombine.high %v3912_v24, %v3916_v25 }
 0x317   :  { %7288 = vmatpush1.bf16.msra.mxu1 %v10994_v57  ;;  %v4355_v57 = vld [vmem:[%s16446_s3 + $0xee8] sm:$0xff] }
 0x318   :  { %7289 = vmatprep.subr.bf16.mxu1 %v11003_v27  ;;  %v10604_v27 = vcombine.low %v3904_v15, %v3908_v32  ;;  %v11051_v30 = vcombine.high %v4351_v22, %v4355_v57  ;;  %v11050_v13 = vcombine.low %v4351_v22, %v4355_v57  ;;  %v3952_v32 = vld [vmem:[%s16446_s3 + $0x250] sm:$0xff]  ;;  %v3889_v57 = vld [vmem:[%s16446_s3 + $0x58] sm:$0xff] }
 0x319   :  { %v3855_v28 = vpop.f32.mrb[8].mxu1  ;;  %v3964_v22 = vld [vmem:[%s16446_s3 + $0x2b0] sm:$0xff] }
 0x31a   :  { %v11417_v38 = vadd.f32 %v3855_v28, %v575_v31  ;;  %v3857_v42 = vpop.f32.mrb[9].mxu1  ;;  %v3920_v31 = vld [vmem:[%s16446_s3 + $0x150] sm:$0xff]  ;;  %v10612_v28 = vcombine.low %v3912_v24, %v3916_v25 }
 0x31b   :  { %v11418_v44 = vadd.f32 %v3857_v42, %v579_v34  ;;  %v3859_v49 = vpop.f32.mrb[10].mxu1  ;;  %7290 = vmatpush1.bf16.msra.mxu1 %v11002_v40  ;;  %v3924_v34 = vld [vmem:[%s16446_s3 + $0x170] sm:$0xff]  ;;  %v4359_v40 = vld [vmem:[%s16446_s3 + $0xf08] sm:$0xff] }
 0x31c   :  { %v3868_v52 = vmax.f32 %v11417_v38, 0.0  ;;  %v3860_v55 = vpop.f32.mrb[11].mxu1  ;;  %7291 = vmatprep.subr.bf16.mxu1 %v11011_v35  ;;  %v4363_v35 = vld [vmem:[%s16446_s3 + $0xf28] sm:$0xff]  ;;  %v10621_v37 = vcombine.high %v3920_v31, %v3924_v34  ;;  %v3928_v42 = vld [vmem:[%s16446_s3 + $0x190] sm:$0xff] }
 0x31d   :  { %v3869_v50 = vmax.f32 %v11418_v44, 0.0  ;;  %v11059_v38 = vcombine.high %v4359_v40, %v4363_v35  ;;  %v3932_v44 = vld [vmem:[%s16446_s3 + $0x1b0] sm:$0xff]  ;;  %v4367_v49 = vld [vmem:[%s16446_s3 + $0xf48] sm:$0xff]  ;;  %v11058_v55 = vcombine.low %v4359_v40, %v4363_v35  ;;  %v3897_v35 = vld [vmem:[%s16446_s3 + $0x98] sm:$0xff] }
 0x31e   :  { %v14573_v1 = vpack.c.bf16 %v3868_v52, %v3868_v52  ;;  %v10620_v52 = vcombine.low %v3920_v31, %v3924_v34  ;;  %v3960_v25 = vld [vmem:[%s16446_s3 + $0x290] sm:$0xff] }
 0x31f   :  { %v14571_v61 = vpack.c.bf16 %v3869_v50, %v3869_v50  ;;  %7292 = vmatpush1.bf16.msra.mxu1 %v11010_v2  ;;  %v4371_v2 = vld [vmem:[%s16446_s3 + $0xf68] sm:$0xff]  ;;  %v3968_v31 = vld [vmem:[%s16446_s3 + $0x2d0] sm:$0xff] }
 0x320   :  { %7293 = vmatprep.subr.bf16.mxu1 %v11019_v58  ;;  %v10629_v58 = vcombine.high %v3928_v42, %v3932_v44  ;;  %v11067_v50 = vcombine.high %v4367_v49, %v4371_v2  ;;  %v3972_v40 = vld [vmem:[%s16446_s3 + $0x2f0] sm:$0xff] }
 0x321   :  { %7147 = vmatprep.mubr.bf16.mxu0 %v14571_v61  ;;  %7311 = vmatprep.mubr.bf16.mxu1 %v14571_v61 }
 0x322   :  { %7148 = vmatmul.mubr.bf16.vlgmr.msra.gmra.mrb[8].mxu0 %v14573_v1 }
 0x323   :  { %7321 = vmatpush1.bf16.msra.mxu0 %v10580_v59  ;;  %7294 = vmatpush1.bf16.msra.mxu1 %v11018_v0  ;;  %v10596_v59 = vcombine.low %v3896_v4, %v3900_v11  ;;  %v10628_v0 = vcombine.low %v3928_v42, %v3932_v44  ;;  %v10637_v4 = vcombine.high %v3936_v9, %v3940_v60  ;;  %v3944_v11 = vld [vmem:[%s16446_s3 + $0x210] sm:$0xff] }
 0x324   :  { %7352 = vmatprep.mubr.bf16.mxu0 %v13589_v54  ;;  %7322 = vmatprep.subr.bf16.mxu0 %v10589_v3  ;;  %v11066_v3 = vcombine.low %v4367_v49, %v4371_v2  ;;  %v3976_v44 = vld [vmem:[%s16446_s3 + $0x310] sm:$0xff]  ;;  %v3905_v2 = vld [vmem:[%s16446_s3 + $0xd8] sm:$0xff] }
 0x325   :  { %7295 = vmatprep.subr.bf16.mxu1 %v11027_v5  ;;  %v11075_v5 = vcombine.high %v4375_v33, %v4379_v46  ;;  %v3980_v49 = vld [vmem:[%s16446_s3 + $0x330] sm:$0xff] }
 0x327   :  { %7323 = vmatpush1.bf16.msra.mxu0 %v10588_v10  ;;  %7296 = vmatpush1.bf16.msra.mxu1 %v11026_v12  ;;  %v4387_v10 = vld [vmem:[%s16446_s3 + $0xfe8] sm:$0xff]  ;;  %v10636_v12 = vcombine.low %v3936_v9, %v3940_v60  ;;  %v3984_v9 = vld [vmem:[%s16446_s3 + $0x350] sm:$0xff] }
 0x328   :  { %7324 = vmatprep.subr.bf16.mxu0 %v10597_v16  ;;  %7297 = vmatprep.subr.bf16.mxu1 %v11035_v17  ;;  %v11074_v16 = vcombine.low %v4375_v33, %v4379_v46  ;;  %v10645_v17 = vcombine.high %v3944_v11, %v3948_v6  ;;  %v11083_v15 = vcombine.high %v4383_v7, %v4387_v10  ;;  %v3988_v60 = vld [vmem:[%s16446_s3 + $0x370] sm:$0xff]  ;;  %v3913_v33 = vld [vmem:[%s16446_s3 + $0x118] sm:$0xff] }
 0x329   :  { %v3917_v46 = vld [vmem:[%s16446_s3 + $0x138] sm:$0xff] }
 0x32b   :  { %7325 = vmatpush1.bf16.msra.mxu0 %v10596_v59  ;;  %7298 = vmatpush1.bf16.msra.mxu1 %v11034_v20  ;;  %v3885_v59 = vld [vmem:[%s16446_s3 + $0x38] sm:$0xff]  ;;  %v10644_v20 = vcombine.low %v3944_v11, %v3948_v6  ;;  %v3992_v11 = vld [vmem:[%s16446_s3 + $0x390] sm:$0xff] }
 0x32c   :  { %7326 = vmatprep.subr.bf16.mxu0 %v10605_v21  ;;  %7299 = vmatprep.subr.bf16.mxu1 %v11043_v23  ;;  %v11082_v21 = vcombine.low %v4383_v7, %v4387_v10  ;;  %v10653_v23 = vcombine.high %v3952_v32, %v3956_v45  ;;  %v10583_v24 = vcombine.high %v3881_v47, %v3885_v59  ;;  %v3996_v6 = vld [vmem:[%s16446_s3 + $0x3b0] sm:$0xff]  ;;  %v3921_v7 = vld [vmem:[%s16446_s3 + $0x158] sm:$0xff] }
 0x32d   :  { %v3925_v10 = vld [vmem:[%s16446_s3 + $0x178] sm:$0xff] }
 0x32f   :  { %7327 = vmatpush1.bf16.msra.mxu0 %v10604_v27  ;;  %7300 = vmatpush1.bf16.msra.mxu1 %v11042_v29  ;;  %v3893_v27 = vld [vmem:[%s16446_s3 + $0x78] sm:$0xff]  ;;  %v10652_v29 = vcombine.low %v3952_v32, %v3956_v45  ;;  %v4000_v32 = vld [vmem:[%s16446_s3 + $0x3d0] sm:$0xff] }
 0x330   :  { %7328 = vmatprep.subr.bf16.mxu0 %v10613_v63  ;;  %7301 = vmatprep.subr.bf16.mxu1 %v11051_v30  ;;  %v10582_v63 = vcombine.low %v3881_v47, %v3885_v59  ;;  %v10661_v30 = vcombine.high %v3960_v25, %v3964_v22  ;;  %v10591_v34 = vcombine.high %v3889_v57, %v3893_v27  ;;  %v4004_v45 = vld [vmem:[%s16446_s3 + $0x3f0] sm:$0xff]  ;;  %v3929_v47 = vld [vmem:[%s16446_s3 + $0x198] sm:$0xff] }
 0x331   :  { %v3933_v59 = vld [vmem:[%s16446_s3 + $0x1b8] sm:$0xff] }
 0x333   :  { %7329 = vmatpush1.bf16.msra.mxu0 %v10612_v28  ;;  %7302 = vmatpush1.bf16.msra.mxu1 %v11050_v13  ;;  %v3901_v28 = vld [vmem:[%s16446_s3 + $0xb8] sm:$0xff]  ;;  %v10660_v13 = vcombine.low %v3960_v25, %v3964_v22  ;;  %v4008_v25 = vld [vmem:[%s16446_s3 + $0x410] sm:$0xff] }
 0x334   :  { %7330 = vmatprep.subr.bf16.mxu0 %v10621_v37  ;;  %7303 = vmatprep.subr.bf16.mxu1 %v11059_v38  ;;  %v10590_v37 = vcombine.low %v3889_v57, %v3893_v27  ;;  %v10669_v38 = vcombine.high %v3968_v31, %v3972_v40  ;;  %v10599_v42 = vcombine.high %v3897_v35, %v3901_v28  ;;  %v4012_v22 = vld [vmem:[%s16446_s3 + $0x430] sm:$0xff]  ;;  %v3937_v57 = vld [vmem:[%s16446_s3 + $0x1d8] sm:$0xff] }
 0x335   :  { %v3941_v27 = vld [vmem:[%s16446_s3 + $0x1f8] sm:$0xff] }
 0x337   :  { %7331 = vmatpush1.bf16.msra.mxu0 %v10620_v52  ;;  %7304 = vmatpush1.bf16.msra.mxu1 %v11058_v55  ;;  %v10668_v52 = vcombine.low %v3968_v31, %v3972_v40  ;;  %v10598_v55 = vcombine.low %v3897_v35, %v3901_v28  ;;  %v10639_v31 = vcombine.high %v3937_v57, %v3941_v27  ;;  %v4020_v40 = vld [vmem:[%s16446_s3 + $0x470] sm:$0xff]  ;;  %v3945_v35 = vld [vmem:[%s16446_s3 + $0x218] sm:$0xff] }
 0x338   :  { %7332 = vmatprep.subr.bf16.mxu0 %v10629_v58  ;;  %7305 = vmatprep.subr.bf16.mxu1 %v11067_v50  ;;  %v10677_v58 = vcombine.high %v3976_v44, %v3980_v49  ;;  %v3949_v28 = vld [vmem:[%s16446_s3 + $0x238] sm:$0xff] }
 0x33b   :  { %7333 = vmatpush1.bf16.msra.mxu0 %v10628_v0  ;;  %7306 = vmatpush1.bf16.msra.mxu1 %v11066_v3  ;;  %v10676_v0 = vcombine.low %v3976_v44, %v3980_v49  ;;  %v4024_v44 = vld [vmem:[%s16446_s3 + $0x490] sm:$0xff] }
 0x33c   :  { %7334 = vmatprep.subr.bf16.mxu0 %v10637_v4  ;;  %7307 = vmatprep.subr.bf16.mxu1 %v11075_v5  ;;  %v10685_v4 = vcombine.high %v3984_v9, %v3988_v60  ;;  %v10615_v5 = vcombine.high %v3913_v33, %v3917_v46  ;;  %v4028_v49 = vld [vmem:[%s16446_s3 + $0x4b0] sm:$0xff] }
 0x33f   :  { %7335 = vmatpush1.bf16.msra.mxu0 %v10636_v12  ;;  %7308 = vmatpush1.bf16.msra.mxu1 %v11074_v16  ;;  %v10684_v12 = vcombine.low %v3984_v9, %v3988_v60  ;;  %v10614_v16 = vcombine.low %v3913_v33, %v3917_v46  ;;  %v4032_v9 = vld [vmem:[%s16446_s3 + $0x4d0] sm:$0xff]  ;;  %v3961_v33 = vld [vmem:[%s16446_s3 + $0x298] sm:$0xff] }
 0x340   :  { %7336 = vmatprep.subr.bf16.mxu0 %v10645_v17  ;;  %7309 = vmatprep.subr.bf16.mxu1 %v11083_v15  ;;  %v10693_v17 = vcombine.high %v3992_v11, %v3996_v6  ;;  %v10623_v15 = vcombine.high %v3921_v7, %v3925_v10  ;;  %v4036_v60 = vld [vmem:[%s16446_s3 + $0x4f0] sm:$0xff]  ;;  %v3965_v46 = vld [vmem:[%s16446_s3 + $0x2b8] sm:$0xff] }
 0x343   :  { %7337 = vmatpush1.bf16.msra.mxu0 %v10644_v20  ;;  %7310 = vmatpush1.bf16.msra.mxu1 %v11082_v21  ;;  %v10692_v20 = vcombine.low %v3992_v11, %v3996_v6  ;;  %v10622_v21 = vcombine.low %v3921_v7, %v3925_v10  ;;  %v4040_v11 = vld [vmem:[%s16446_s3 + $0x510] sm:$0xff]  ;;  %v3969_v7 = vld [vmem:[%s16446_s3 + $0x2d8] sm:$0xff] }
 0x344   :  { %7338 = vmatprep.subr.bf16.mxu0 %v10653_v23  ;;  %7484 = vmatprep.subr.bf16.mxu1 %v10583_v24  ;;  %v10701_v23 = vcombine.high %v4000_v32, %v4004_v45  ;;  %v10631_v24 = vcombine.high %v3929_v47, %v3933_v59  ;;  %v4044_v6 = vld [vmem:[%s16446_s3 + $0x530] sm:$0xff]  ;;  %v3973_v10 = vld [vmem:[%s16446_s3 + $0x2f8] sm:$0xff] }
 0x346   :  { %7312 = vmatmul.mubr.bf16.vlgmr.msra.gmra.mrb[12].mxu1 %v14573_v1 }
 0x347   :  { %7339 = vmatpush1.bf16.msra.mxu0 %v10652_v29  ;;  %7485 = vmatpush1.bf16.msra.mxu1 %v10582_v63  ;;  %v10700_v29 = vcombine.low %v4000_v32, %v4004_v45  ;;  %v10630_v63 = vcombine.low %v3929_v47, %v3933_v59  ;;  %v4048_v32 = vld [vmem:[%s16446_s3 + $0x550] sm:$0xff]  ;;  %v3977_v47 = vld [vmem:[%s16446_s3 + $0x318] sm:$0xff] }
 0x348   :  { %7516 = vmatprep.mubr.bf16.mxu1 %v13589_v54  ;;  %7340 = vmatprep.subr.bf16.mxu0 %v10661_v30  ;;  %v3909_v54 = vld [vmem:[%s16446_s3 + $0xf8] sm:$0xff]  ;;  %v10709_v30 = vcombine.high %v4008_v25, %v4012_v22  ;;  %v4052_v45 = vld [vmem:[%s16446_s3 + $0x570] sm:$0xff] }
 0x349   :  { %7486 = vmatprep.subr.bf16.mxu1 %v10591_v34  ;;  %v10607_v50 = vcombine.high %v3905_v2, %v3909_v54  ;;  %v10606_v3 = vcombine.low %v3905_v2, %v3909_v54  ;;  %v4016_v34 = vld [vmem:[%s16446_s3 + $0x450] sm:$0xff]  ;;  %v3953_v2 = vld [vmem:[%s16446_s3 + $0x258] sm:$0xff] }
 0x34a   :  { %v3957_v54 = vld [vmem:[%s16446_s3 + $0x278] sm:$0xff] }
 0x34b   :  { %7341 = vmatpush1.bf16.msra.mxu0 %v10660_v13  ;;  %7487 = vmatpush1.bf16.msra.mxu1 %v10590_v37  ;;  %v10708_v13 = vcombine.low %v4008_v25, %v4012_v22  ;;  %v10638_v37 = vcombine.low %v3937_v57, %v3941_v27  ;;  %v3981_v59 = vld [vmem:[%s16446_s3 + $0x338] sm:$0xff]  ;;  %v4056_v25 = vld [vmem:[%s16446_s3 + $0x590] sm:$0xff] }
 0x34c   :  { %7342 = vmatprep.subr.bf16.mxu0 %v10669_v38  ;;  %7488 = vmatprep.subr.bf16.mxu1 %v10599_v42  ;;  %v10717_v38 = vcombine.high %v4016_v34, %v4020_v40  ;;  %v10647_v42 = vcombine.high %v3945_v35, %v3949_v28  ;;  %v4060_v22 = vld [vmem:[%s16446_s3 + $0x5b0] sm:$0xff]  ;;  %v3985_v57 = vld [vmem:[%s16446_s3 + $0x358] sm:$0xff] }
 0x34d   :  { %v3989_v27 = vld [vmem:[%s16446_s3 + $0x378] sm:$0xff] }
 0x34f   :  { %7343 = vmatpush1.bf16.msra.mxu0 %v10668_v52  ;;  %7489 = vmatpush1.bf16.msra.mxu1 %v10598_v55  ;;  %v10716_v52 = vcombine.low %v4016_v34, %v4020_v40  ;;  %v10646_v55 = vcombine.low %v3945_v35, %v3949_v28  ;;  %v4064_v34 = vld [vmem:[%s16446_s3 + $0x5d0] sm:$0xff]  ;;  %v3993_v35 = vld [vmem:[%s16446_s3 + $0x398] sm:$0xff] }
 0x350   :  { %7344 = vmatprep.subr.bf16.mxu0 %v10677_v58  ;;  %7490 = vmatprep.subr.bf16.mxu1 %v10607_v50  ;;  %v10725_v58 = vcombine.high %v4024_v44, %v4028_v49  ;;  %v10655_v50 = vcombine.high %v3953_v2, %v3957_v54  ;;  %v4068_v40 = vld [vmem:[%s16446_s3 + $0x5f0] sm:$0xff]  ;;  %v3997_v28 = vld [vmem:[%s16446_s3 + $0x3b8] sm:$0xff] }
 0x353   :  { %7345 = vmatpush1.bf16.msra.mxu0 %v10676_v0  ;;  %7491 = vmatpush1.bf16.msra.mxu1 %v10606_v3  ;;  %v10724_v0 = vcombine.low %v4024_v44, %v4028_v49  ;;  %v10654_v3 = vcombine.low %v3953_v2, %v3957_v54  ;;  %v4072_v44 = vld [vmem:[%s16446_s3 + $0x610] sm:$0xff]  ;;  %v4001_v2 = vld [vmem:[%s16446_s3 + $0x3d8] sm:$0xff] }
 0x354   :  { %7346 = vmatprep.subr.bf16.mxu0 %v10685_v4  ;;  %7492 = vmatprep.subr.bf16.mxu1 %v10615_v5  ;;  %v10733_v4 = vcombine.high %v4032_v9, %v4036_v60  ;;  %v10663_v5 = vcombine.high %v3961_v33, %v3965_v46  ;;  %v4076_v49 = vld [vmem:[%s16446_s3 + $0x630] sm:$0xff]  ;;  %v4005_v54 = vld [vmem:[%s16446_s3 + $0x3f8] sm:$0xff] }
 0x357   :  { %7347 = vmatpush1.bf16.msra.mxu0 %v10684_v12  ;;  %7493 = vmatpush1.bf16.msra.mxu1 %v10614_v16  ;;  %v10732_v12 = vcombine.low %v4032_v9, %v4036_v60  ;;  %v10662_v16 = vcombine.low %v3961_v33, %v3965_v46  ;;  %v4080_v9 = vld [vmem:[%s16446_s3 + $0x650] sm:$0xff]  ;;  %v4009_v33 = vld [vmem:[%s16446_s3 + $0x418] sm:$0xff] }
 0x358   :  { %7348 = vmatprep.subr.bf16.mxu0 %v10693_v17  ;;  %7494 = vmatprep.subr.bf16.mxu1 %v10623_v15  ;;  %v10741_v17 = vcombine.high %v4040_v11, %v4044_v6  ;;  %v10671_v15 = vcombine.high %v3969_v7, %v3973_v10  ;;  %v4084_v60 = vld [vmem:[%s16446_s3 + $0x670] sm:$0xff]  ;;  %v4013_v46 = vld [vmem:[%s16446_s3 + $0x438] sm:$0xff] }
 0x35b   :  { %7349 = vmatpush1.bf16.msra.mxu0 %v10692_v20  ;;  %7495 = vmatpush1.bf16.msra.mxu1 %v10622_v21  ;;  %v10740_v20 = vcombine.low %v4040_v11, %v4044_v6  ;;  %v10670_v21 = vcombine.low %v3969_v7, %v3973_v10  ;;  %v4088_v11 = vld [vmem:[%s16446_s3 + $0x690] sm:$0xff]  ;;  %v4017_v7 = vld [vmem:[%s16446_s3 + $0x458] sm:$0xff] }
 0x35c   :  { %7350 = vmatprep.subr.bf16.mxu0 %v10701_v23  ;;  %7496 = vmatprep.subr.bf16.mxu1 %v10631_v24  ;;  %v10749_v23 = vcombine.high %v4048_v32, %v4052_v45  ;;  %v10679_v24 = vcombine.high %v3977_v47, %v3981_v59  ;;  %v4092_v6 = vld [vmem:[%s16446_s3 + $0x6b0] sm:$0xff]  ;;  %v4021_v10 = vld [vmem:[%s16446_s3 + $0x478] sm:$0xff] }
 0x35f   :  { %7351 = vmatpush1.bf16.msra.mxu0 %v10700_v29  ;;  %7497 = vmatpush1.bf16.msra.mxu1 %v10630_v63  ;;  %v10748_v29 = vcombine.low %v4048_v32, %v4052_v45  ;;  %v10678_v63 = vcombine.low %v3977_v47, %v3981_v59  ;;  %v4096_v32 = vld [vmem:[%s16446_s3 + $0x6d0] sm:$0xff]  ;;  %v4025_v47 = vld [vmem:[%s16446_s3 + $0x498] sm:$0xff] }
 0x360   :  { %7361 = vmatprep.subr.bf16.mxu0 %v10709_v30  ;;  %7498 = vmatprep.subr.bf16.mxu1 %v10639_v31  ;;  %v10757_v30 = vcombine.high %v4056_v25, %v4060_v22  ;;  %v10687_v31 = vcombine.high %v3985_v57, %v3989_v27  ;;  %v4100_v45 = vld [vmem:[%s16446_s3 + $0x6f0] sm:$0xff]  ;;  %v4029_v59 = vld [vmem:[%s16446_s3 + $0x4b8] sm:$0xff] }
 0x362   :  { %7353 = vmatmul.mubr.bf16.vlgmr.msra.gmra.mrb[12].mxu0 %v13782_v8 }
 0x363   :  { %7362 = vmatpush1.bf16.msra.mxu0 %v10708_v13  ;;  %7393 = vmatprep.mubr.bf16.mxu0 %v13878_v14  ;;  %v10756_v13 = vcombine.low %v4056_v25, %v4060_v22  ;;  %v4104_v25 = vld [vmem:[%s16446_s3 + $0x710] sm:$0xff] }
 0x364   :  { %7499 = vmatpush1.bf16.msra.mxu1 %v10638_v37  ;;  %7363 = vmatprep.subr.bf16.mxu0 %v10717_v38  ;;  %v10686_v37 = vcombine.low %v3985_v57, %v3989_v27  ;;  %v10765_v38 = vcombine.high %v4064_v34, %v4068_v40  ;;  %v4108_v22 = vld [vmem:[%s16446_s3 + $0x730] sm:$0xff]  ;;  %v10796_v57 = vcombine.low %v4096_v32, %v4100_v45 }
 0x365   :  { %7500 = vmatprep.subr.bf16.mxu1 %v10647_v42  ;;  %v10695_v42 = vcombine.high %v3993_v35, %v3997_v28  ;;  %v10726_v27 = vcombine.low %v4025_v47, %v4029_v59 }
 0x367   :  { %7364 = vmatpush1.bf16.msra.mxu0 %v10716_v52  ;;  %v10764_v52 = vcombine.low %v4064_v34, %v4068_v40  ;;  %v4041_v34 = vld [vmem:[%s16446_s3 + $0x518] sm:$0xff] }
 0x368   :  { %7501 = vmatpush1.bf16.msra.mxu1 %v10646_v55  ;;  %7365 = vmatprep.subr.bf16.mxu0 %v10725_v58  ;;  %v10694_v55 = vcombine.low %v3993_v35, %v3997_v28  ;;  %v10773_v58 = vcombine.high %v4072_v44, %v4076_v49  ;;  %v4045_v40 = vld [vmem:[%s16446_s3 + $0x538] sm:$0xff]  ;;  %v10804_v35 = vcombine.low %v4104_v25, %v4108_v22 }
 0x369   :  { %7502 = vmatprep.subr.bf16.mxu1 %v10655_v50  ;;  %v10703_v50 = vcombine.high %v4001_v2, %v4005_v54 }
 0x36b   :  { %7366 = vmatpush1.bf16.msra.mxu0 %v10724_v0  ;;  %v10772_v0 = vcombine.low %v4072_v44, %v4076_v49  ;;  %v4049_v44 = vld [vmem:[%s16446_s3 + $0x558] sm:$0xff] }
 0x36c   :  { %7503 = vmatpush1.bf16.msra.mxu1 %v10654_v3  ;;  %7367 = vmatprep.subr.bf16.mxu0 %v10733_v4  ;;  %v10702_v3 = vcombine.low %v4001_v2, %v4005_v54  ;;  %v10781_v4 = vcombine.high %v4080_v9, %v4084_v60  ;;  %v4053_v49 = vld [vmem:[%s16446_s3 + $0x578] sm:$0xff]  ;;  %v10742_v54 = vcombine.low %v4041_v34, %v4045_v40 }
 0x36d   :  { %7504 = vmatprep.subr.bf16.mxu1 %v10663_v5  ;;  %v10711_v5 = vcombine.high %v4009_v33, %v4013_v46 }
 0x36f   :  { %7368 = vmatpush1.bf16.msra.mxu0 %v10732_v12  ;;  %v10780_v12 = vcombine.low %v4080_v9, %v4084_v60  ;;  %v4057_v9 = vld [vmem:[%s16446_s3 + $0x598] sm:$0xff] }
 0x370   :  { %7505 = vmatpush1.bf16.msra.mxu1 %v10662_v16  ;;  %7369 = vmatprep.subr.bf16.mxu0 %v10741_v17  ;;  %v10710_v16 = vcombine.low %v4009_v33, %v4013_v46  ;;  %v10789_v17 = vcombine.high %v4088_v11, %v4092_v6  ;;  %v4061_v60 = vld [vmem:[%s16446_s3 + $0x5b8] sm:$0xff]  ;;  %v10750_v46 = vcombine.low %v4049_v44, %v4053_v49 }
 0x371   :  { %7506 = vmatprep.subr.bf16.mxu1 %v10671_v15  ;;  %v10719_v15 = vcombine.high %v4017_v7, %v4021_v10 }
 0x373   :  { %7370 = vmatpush1.bf16.msra.mxu0 %v10740_v20  ;;  %v10788_v20 = vcombine.low %v4088_v11, %v4092_v6  ;;  %v4065_v11 = vld [vmem:[%s16446_s3 + $0x5d8] sm:$0xff] }
 0x374   :  { %7507 = vmatpush1.bf16.msra.mxu1 %v10670_v21  ;;  %7371 = vmatprep.subr.bf16.mxu0 %v10749_v23  ;;  %v10718_v21 = vcombine.low %v4017_v7, %v4021_v10  ;;  %v10797_v23 = vcombine.high %v4096_v32, %v4100_v45  ;;  %v4069_v6 = vld [vmem:[%s16446_s3 + $0x5f8] sm:$0xff]  ;;  %v10758_v10 = vcombine.low %v4057_v9, %v4061_v60 }
 0x375   :  { %7508 = vmatprep.subr.bf16.mxu1 %v10679_v24  ;;  %v10727_v24 = vcombine.high %v4025_v47, %v4029_v59  ;;  %v4073_v32 = vld [vmem:[%s16446_s3 + $0x618] sm:$0xff]  ;;  %v10766_v59 = vcombine.low %v4065_v11, %v4069_v6 }
 0x376   :  { %v4077_v45 = vld [vmem:[%s16446_s3 + $0x638] sm:$0xff] }
 0x377   :  { %7372 = vmatpush1.bf16.msra.mxu0 %v10748_v29  ;;  %v10805_v29 = vcombine.high %v4104_v25, %v4108_v22  ;;  %v4081_v25 = vld [vmem:[%s16446_s3 + $0x658] sm:$0xff] }
 0x378   :  { %7509 = vmatpush1.bf16.msra.mxu1 %v10678_v63  ;;  %7373 = vmatprep.subr.bf16.mxu0 %v10757_v30  ;;  %v4112_v30 = vld [vmem:[%s16446_s3 + $0x750] sm:$0xff]  ;;  %v4085_v22 = vld [vmem:[%s16446_s3 + $0x678] sm:$0xff] }
 0x379   :  { %7510 = vmatprep.subr.bf16.mxu1 %v10687_v31  ;;  %v4116_v31 = vld [vmem:[%s16446_s3 + $0x770] sm:$0xff] }
 0x37a   :  { %v10812_v2 = vcombine.low %v4112_v30, %v4116_v31 }
 0x37b   :  { %7374 = vmatpush1.bf16.msra.mxu0 %v10756_v13  ;;  %v10813_v13 = vcombine.high %v4112_v30, %v4116_v31  ;;  %v4089_v30 = vld [vmem:[%s16446_s3 + $0x698] sm:$0xff] }
 0x37c   :  { %7511 = vmatpush1.bf16.msra.mxu1 %v10686_v37  ;;  %7375 = vmatprep.subr.bf16.mxu0 %v10765_v38  ;;  %v10743_v37 = vcombine.high %v4041_v34, %v4045_v40  ;;  %v4120_v38 = vld [vmem:[%s16446_s3 + $0x790] sm:$0xff]  ;;  %v4093_v31 = vld [vmem:[%s16446_s3 + $0x6b8] sm:$0xff]  ;;  %v10782_v40 = vcombine.low %v4081_v25, %v4085_v22 }
 0x37d   :  { %7512 = vmatprep.subr.bf16.mxu1 %v10695_v42  ;;  %v4124_v42 = vld [vmem:[%s16446_s3 + $0x7b0] sm:$0xff] }
 0x37e   :  { %v10820_v33 = vcombine.low %v4120_v38, %v4124_v42 }
 0x37f   :  { %7376 = vmatpush1.bf16.msra.mxu0 %v10764_v52  ;;  %v10821_v52 = vcombine.high %v4120_v38, %v4124_v42  ;;  %v4097_v38 = vld [vmem:[%s16446_s3 + $0x6d8] sm:$0xff] }
 0x380   :  { %7513 = vmatpush1.bf16.msra.mxu1 %v10694_v55  ;;  %7377 = vmatprep.subr.bf16.mxu0 %v10773_v58  ;;  %v10751_v55 = vcombine.high %v4049_v44, %v4053_v49  ;;  %v4128_v58 = vld [vmem:[%s16446_s3 + $0x7d0] sm:$0xff]  ;;  %v4101_v42 = vld [vmem:[%s16446_s3 + $0x6f8] sm:$0xff]  ;;  %v10790_v49 = vcombine.low %v4089_v30, %v4093_v31 }
 0x381   :  { %7514 = vmatprep.subr.bf16.mxu1 %v10703_v50  ;;  %v4132_v50 = vld [vmem:[%s16446_s3 + $0x7f0] sm:$0xff] }
 0x382   :  { %v10828_v7 = vcombine.low %v4128_v58, %v4132_v50 }
 0x383   :  { %7378 = vmatpush1.bf16.msra.mxu0 %v10772_v0  ;;  %v10829_v0 = vcombine.high %v4128_v58, %v4132_v50  ;;  %v4105_v58 = vld [vmem:[%s16446_s3 + $0x718] sm:$0xff] }
 0x384   :  { %7515 = vmatpush1.bf16.msra.mxu1 %v10702_v3  ;;  %7379 = vmatprep.subr.bf16.mxu0 %v10781_v4  ;;  %v10759_v3 = vcombine.high %v4057_v9, %v4061_v60  ;;  %v4136_v4 = vld [vmem:[%s16446_s3 + $0x810] sm:$0xff]  ;;  %v4109_v50 = vld [vmem:[%s16446_s3 + $0x738] sm:$0xff]  ;;  %v10798_v60 = vcombine.low %v4097_v38, %v4101_v42 }
 0x385   :  { %7525 = vmatprep.subr.bf16.mxu1 %v10711_v5  ;;  %v4140_v5 = vld [vmem:[%s16446_s3 + $0x830] sm:$0xff] }
 0x386   :  { %v10836_v47 = vcombine.low %v4136_v4, %v4140_v5 }
 0x387   :  { %7380 = vmatpush1.bf16.msra.mxu0 %v10780_v12  ;;  %7517 = vmatmul.mubr.bf16.vlgmr.msra.gmra.mrb[16].mxu1 %v13782_v8  ;;  %v4033_v8 = vld [vmem:[%s16446_s3 + $0x4d8] sm:$0xff]  ;;  %v10837_v12 = vcombine.high %v4136_v4, %v4140_v5 }
 0x388   :  { %7526 = vmatpush1.bf16.msra.mxu1 %v10710_v16  ;;  %7557 = vmatprep.mubr.bf16.mxu1 %v13878_v14  ;;  %v4037_v14 = vld [vmem:[%s16446_s3 + $0x4f8] sm:$0xff]  ;;  %v10767_v16 = vcombine.high %v4065_v11, %v4069_v6  ;;  %v10806_v6 = vcombine.low %v4105_v58, %v4109_v50 }
 0x389   :  { %7381 = vmatprep.subr.bf16.mxu0 %v10789_v17  ;;  %7527 = vmatprep.subr.bf16.mxu1 %v10719_v15  ;;  %v10735_v63 = vcombine.high %v4033_v8, %v4037_v14  ;;  %v10734_v28 = vcombine.low %v4033_v8, %v4037_v14  ;;  %v4144_v17 = vld [vmem:[%s16446_s3 + $0x850] sm:$0xff]  ;;  %v10774_v14 = vcombine.low %v4073_v32, %v4077_v45  ;;  %v4113_v4 = vld [vmem:[%s16446_s3 + $0x758] sm:$0xff] }
 0x38a   :  { %v4148_v15 = vld [vmem:[%s16446_s3 + $0x870] sm:$0xff]  ;;  %v4117_v5 = vld [vmem:[%s16446_s3 + $0x778] sm:$0xff] }
 0x38b   :  { %7382 = vmatpush1.bf16.msra.mxu0 %v10788_v20  ;;  %v10845_v20 = vcombine.high %v4144_v17, %v4148_v15  ;;  %v10844_v8 = vcombine.low %v4144_v17, %v4148_v15  ;;  %v4121_v17 = vld [vmem:[%s16446_s3 + $0x798] sm:$0xff] }
 0x38c   :  { %7528 = vmatpush1.bf16.msra.mxu1 %v10718_v21  ;;  %7383 = vmatprep.subr.bf16.mxu0 %v10797_v23  ;;  %v10775_v21 = vcombine.high %v4073_v32, %v4077_v45  ;;  %v4152_v23 = vld [vmem:[%s16446_s3 + $0x890] sm:$0xff]  ;;  %v4125_v15 = vld [vmem:[%s16446_s3 + $0x7b8] sm:$0xff]  ;;  %v10814_v45 = vcombine.low %v4113_v4, %v4117_v5 }
 0x38d   :  { %7529 = vmatprep.subr.bf16.mxu1 %v10727_v24  ;;  %v4156_v24 = vld [vmem:[%s16446_s3 + $0x8b0] sm:$0xff] }
 0x38e   :  { %v10852_v34 = vcombine.low %v4152_v23, %v4156_v24 }
 0x38f   :  { %7384 = vmatpush1.bf16.msra.mxu0 %v10796_v57  ;;  %v10853_v57 = vcombine.high %v4152_v23, %v4156_v24  ;;  %v4129_v23 = vld [vmem:[%s16446_s3 + $0x7d8] sm:$0xff] }
 0x390   :  { %7530 = vmatpush1.bf16.msra.mxu1 %v10726_v27  ;;  %7385 = vmatprep.subr.bf16.mxu0 %v10805_v29  ;;  %v10783_v27 = vcombine.high %v4081_v25, %v4085_v22  ;;  %v4160_v29 = vld [vmem:[%s16446_s3 + $0x8d0] sm:$0xff]  ;;  %v4133_v24 = vld [vmem:[%s16446_s3 + $0x7f8] sm:$0xff]  ;;  %v10822_v22 = vcombine.low %v4121_v17, %v4125_v15 }
 0x391   :  { %7531 = vmatprep.subr.bf16.mxu1 %v10735_v63  ;;  %v4164_v63 = vld [vmem:[%s16446_s3 + $0x8f0] sm:$0xff] }
 0x392   :  { %v10860_v44 = vcombine.low %v4160_v29, %v4164_v63 }
 0x393   :  { %7386 = vmatpush1.bf16.msra.mxu0 %v10804_v35  ;;  %v10861_v35 = vcombine.high %v4160_v29, %v4164_v63  ;;  %v4137_v29 = vld [vmem:[%s16446_s3 + $0x818] sm:$0xff] }
 0x394   :  { %7532 = vmatpush1.bf16.msra.mxu1 %v10734_v28  ;;  %7387 = vmatprep.subr.bf16.mxu0 %v10813_v13  ;;  %v10791_v28 = vcombine.high %v4089_v30, %v4093_v31  ;;  %v4168_v13 = vld [vmem:[%s16446_s3 + $0x910] sm:$0xff]  ;;  %v4141_v63 = vld [vmem:[%s16446_s3 + $0x838] sm:$0xff]  ;;  %v10830_v31 = vcombine.low %v4129_v23, %v4133_v24 }
 0x395   :  { %7533 = vmatprep.subr.bf16.mxu1 %v10743_v37  ;;  %v4172_v37 = vld [vmem:[%s16446_s3 + $0x930] sm:$0xff] }
 0x396   :  { %v10868_v9 = vcombine.low %v4168_v13, %v4172_v37 }
 0x397   :  { %7388 = vmatpush1.bf16.msra.mxu0 %v10812_v2  ;;  %v10869_v2 = vcombine.high %v4168_v13, %v4172_v37  ;;  %v4145_v13 = vld [vmem:[%s16446_s3 + $0x858] sm:$0xff] }
 0x398   :  { %7534 = vmatpush1.bf16.msra.mxu1 %v10742_v54  ;;  %7389 = vmatprep.subr.bf16.mxu0 %v10821_v52  ;;  %v10799_v54 = vcombine.high %v4097_v38, %v4101_v42  ;;  %v4176_v52 = vld [vmem:[%s16446_s3 + $0x950] sm:$0xff]  ;;  %v4149_v37 = vld [vmem:[%s16446_s3 + $0x878] sm:$0xff]  ;;  %v10838_v42 = vcombine.low %v4137_v29, %v4141_v63 }
 0x399   :  { %7535 = vmatprep.subr.bf16.mxu1 %v10751_v55  ;;  %v4180_v55 = vld [vmem:[%s16446_s3 + $0x970] sm:$0xff] }
 0x39a   :  { %v10876_v11 = vcombine.low %v4176_v52, %v4180_v55 }
 0x39b   :  { %7390 = vmatpush1.bf16.msra.mxu0 %v10820_v33  ;;  %v10877_v33 = vcombine.high %v4176_v52, %v4180_v55  ;;  %v4153_v52 = vld [vmem:[%s16446_s3 + $0x898] sm:$0xff] }
 0x39c   :  { %7536 = vmatpush1.bf16.msra.mxu1 %v10750_v46  ;;  %7391 = vmatprep.subr.bf16.mxu0 %v10829_v0  ;;  %v10807_v46 = vcombine.high %v4105_v58, %v4109_v50  ;;  %v4184_v0 = vld [vmem:[%s16446_s3 + $0x990] sm:$0xff]  ;;  %v4157_v55 = vld [vmem:[%s16446_s3 + $0x8b8] sm:$0xff]  ;;  %v10846_v50 = vcombine.low %v4145_v13, %v4149_v37 }
 0x39d   :  { %7537 = vmatprep.subr.bf16.mxu1 %v10759_v3  ;;  %v4188_v3 = vld [vmem:[%s16446_s3 + $0x9b0] sm:$0xff] }
 0x39e   :  { %v10884_v32 = vcombine.low %v4184_v0, %v4188_v3 }
 0x39f   :  { %7392 = vmatpush1.bf16.msra.mxu0 %v10828_v7  ;;  %v10885_v7 = vcombine.high %v4184_v0, %v4188_v3  ;;  %v10854_v3 = vcombine.low %v4153_v52, %v4157_v55 }
 0x3a0   :  { %7538 = vmatpush1.bf16.msra.mxu1 %v10758_v10  ;;  %7402 = vmatprep.subr.bf16.mxu0 %v10837_v12  ;;  %v10815_v10 = vcombine.high %v4113_v4, %v4117_v5  ;;  %v4192_v12 = vld [vmem:[%s16446_s3 + $0x9d0] sm:$0xff] }
 0x3a1   :  { %7539 = vmatprep.subr.bf16.mxu1 %v10767_v16  ;;  %v4196_v16 = vld [vmem:[%s16446_s3 + $0x9f0] sm:$0xff] }
 0x3a2   :  { %7394 = vmatmul.mubr.bf16.vlgmr.msra.gmra.mrb[12].mxu0 %v14000_v36  ;;  %v10892_v25 = vcombine.low %v4192_v12, %v4196_v16 }
 0x3a3   :  { %7403 = vmatpush1.bf16.msra.mxu0 %v10836_v47  ;;  %7434 = vmatprep.mubr.bf16.mxu0 %v14265_v48  ;;  %v10893_v47 = vcombine.high %v4192_v12, %v4196_v16 }
 0x3a4   :  { %7540 = vmatpush1.bf16.msra.mxu1 %v10766_v59  ;;  %7404 = vmatprep.subr.bf16.mxu0 %v10845_v20  ;;  %v10823_v59 = vcombine.high %v4121_v17, %v4125_v15  ;;  %v4200_v20 = vld [vmem:[%s16446_s3 + $0xa10] sm:$0xff] }
 0x3a5   :  { %7541 = vmatprep.subr.bf16.mxu1 %v10775_v21  ;;  %v4204_v21 = vld [vmem:[%s16446_s3 + $0xa30] sm:$0xff] }
 0x3a6   :  { %v10900_v30 = vcombine.low %v4200_v20, %v4204_v21 }
 0x3a7   :  { %7405 = vmatpush1.bf16.msra.mxu0 %v10844_v8  ;;  %v10901_v8 = vcombine.high %v4200_v20, %v4204_v21 }
 0x3a8   :  { %7542 = vmatpush1.bf16.msra.mxu1 %v10774_v14  ;;  %7406 = vmatprep.subr.bf16.mxu0 %v10853_v57  ;;  %v10831_v14 = vcombine.high %v4129_v23, %v4133_v24  ;;  %v4208_v57 = vld [vmem:[%s16446_s3 + $0xa50] sm:$0xff] }
 0x3a9   :  { %7543 = vmatprep.subr.bf16.mxu1 %v10783_v27  ;;  %v4212_v27 = vld [vmem:[%s16446_s3 + $0xa70] sm:$0xff] }
 0x3aa   :  { %v10908_v38 = vcombine.low %v4208_v57, %v4212_v27 }
 0x3ab   :  { %7407 = vmatpush1.bf16.msra.mxu0 %v10852_v34  ;;  %v10909_v34 = vcombine.high %v4208_v57, %v4212_v27 }
 0x3ac   :  { %7544 = vmatpush1.bf16.msra.mxu1 %v10782_v40  ;;  %7408 = vmatprep.subr.bf16.mxu0 %v10861_v35  ;;  %v10839_v40 = vcombine.high %v4137_v29, %v4141_v63  ;;  %v4216_v35 = vld [vmem:[%s16446_s3 + $0xa90] sm:$0xff] }
 0x3ad   :  { %7545 = vmatprep.subr.bf16.mxu1 %v10791_v28  ;;  %v4220_v28 = vld [vmem:[%s16446_s3 + $0xab0] sm:$0xff] }
 0x3ae   :  { %v10916_v58 = vcombine.low %v4216_v35, %v4220_v28 }
 0x3af   :  { %7409 = vmatpush1.bf16.msra.mxu0 %v10860_v44  ;;  %v10917_v44 = vcombine.high %v4216_v35, %v4220_v28 }
 0x3b0   :  { %7546 = vmatpush1.bf16.msra.mxu1 %v10790_v49  ;;  %7410 = vmatprep.subr.bf16.mxu0 %v10869_v2  ;;  %v10847_v49 = vcombine.high %v4145_v13, %v4149_v37  ;;  %v4224_v2 = vld [vmem:[%s16446_s3 + $0xad0] sm:$0xff] }
 0x3b1   :  { %7547 = vmatprep.subr.bf16.mxu1 %v10799_v54  ;;  %v4228_v54 = vld [vmem:[%s16446_s3 + $0xaf0] sm:$0xff] }
 0x3b2   :  { %v10924_v0 = vcombine.low %v4224_v2, %v4228_v54 }
 0x3b3   :  { %7411 = vmatpush1.bf16.msra.mxu0 %v10868_v9  ;;  %v10925_v9 = vcombine.high %v4224_v2, %v4228_v54 }
 0x3b4   :  { %7548 = vmatpush1.bf16.msra.mxu1 %v10798_v60  ;;  %7412 = vmatprep.subr.bf16.mxu0 %v10877_v33  ;;  %v10855_v60 = vcombine.high %v4153_v52, %v4157_v55  ;;  %v4232_v33 = vld [vmem:[%s16446_s3 + $0xb10] sm:$0xff] }
 0x3b5   :  { %7549 = vmatprep.subr.bf16.mxu1 %v10807_v46  ;;  %v4236_v46 = vld [vmem:[%s16446_s3 + $0xb30] sm:$0xff] }
 0x3b6   :  { %v10933_v4 = vcombine.high %v4232_v33, %v4236_v46  ;;  %v10932_v12 = vcombine.low %v4232_v33, %v4236_v46 }
 0x3b7   :  { %7413 = vmatpush1.bf16.msra.mxu0 %v10876_v11  ;;  %v4240_v11 = vld [vmem:[%s16446_s3 + $0xb50] sm:$0xff] }
 0x3b8   :  { %7550 = vmatpush1.bf16.msra.mxu1 %v10806_v6  ;;  %7414 = vmatprep.subr.bf16.mxu0 %v10885_v7  ;;  %v4244_v6 = vld [vmem:[%s16446_s3 + $0xb70] sm:$0xff]  ;;  %v4169_v7 = vld [vmem:[%s16446_s3 + $0x918] sm:$0xff] }
 0x3b9   :  { %7551 = vmatprep.subr.bf16.mxu1 %v10815_v10  ;;  %v4173_v10 = vld [vmem:[%s16446_s3 + $0x938] sm:$0xff]  ;;  %v10941_v17 = vcombine.high %v4240_v11, %v4244_v6  ;;  %v10940_v20 = vcombine.low %v4240_v11, %v4244_v6 }
 0x3ba   :  { %v10871_v15 = vcombine.high %v4169_v7, %v4173_v10  ;;  %v10870_v21 = vcombine.low %v4169_v7, %v4173_v10 }
 0x3bb   :  { %7415 = vmatpush1.bf16.msra.mxu0 %v10884_v32  ;;  %v4248_v32 = vld [vmem:[%s16446_s3 + $0xb90] sm:$0xff] }
 0x3bc   :  { %7552 = vmatpush1.bf16.msra.mxu1 %v10814_v45  ;;  %7416 = vmatprep.subr.bf16.mxu0 %v10893_v47  ;;  %v4252_v45 = vld [vmem:[%s16446_s3 + $0xbb0] sm:$0xff]  ;;  %v4177_v47 = vld [vmem:[%s16446_s3 + $0x958] sm:$0xff] }
 0x3bd   :  { %7553 = vmatprep.subr.bf16.mxu1 %v10823_v59  ;;  %v4181_v59 = vld [vmem:[%s16446_s3 + $0x978] sm:$0xff]  ;;  %v10949_v23 = vcombine.high %v4248_v32, %v4252_v45  ;;  %v10948_v57 = vcombine.low %v4248_v32, %v4252_v45 }
 0x3be   :  { %v10879_v24 = vcombine.high %v4177_v47, %v4181_v59  ;;  %v10878_v27 = vcombine.low %v4177_v47, %v4181_v59 }
 0x3bf   :  { %7417 = vmatpush1.bf16.msra.mxu0 %v10892_v25  ;;  %v4256_v25 = vld [vmem:[%s16446_s3 + $0xbd0] sm:$0xff] }
 0x3c0   :  { %7554 = vmatpush1.bf16.msra.mxu1 %v10822_v22  ;;  %7418 = vmatprep.subr.bf16.mxu0 %v10901_v8  ;;  %v4260_v22 = vld [vmem:[%s16446_s3 + $0xbf0] sm:$0xff]  ;;  %v4185_v8 = vld [vmem:[%s16446_s3 + $0x998] sm:$0xff] }
 0x3c1   :  { %7555 = vmatprep.subr.bf16.mxu1 %v10831_v14  ;;  %v4189_v14 = vld [vmem:[%s16446_s3 + $0x9b8] sm:$0xff]  ;;  %v10957_v29 = vcombine.high %v4256_v25, %v4260_v22  ;;  %v10956_v35 = vcombine.low %v4256_v25, %v4260_v22 }
 0x3c2   :  { %v10887_v63 = vcombine.high %v4185_v8, %v4189_v14  ;;  %v10886_v28 = vcombine.low %v4185_v8, %v4189_v14 }
 0x3c3   :  { %7419 = vmatpush1.bf16.msra.mxu0 %v10900_v30  ;;  %v4264_v30 = vld [vmem:[%s16446_s3 + $0xc10] sm:$0xff] }
 0x3c4   :  { %7556 = vmatpush1.bf16.msra.mxu1 %v10830_v31  ;;  %7420 = vmatprep.subr.bf16.mxu0 %v10909_v34  ;;  %v4268_v31 = vld [vmem:[%s16446_s3 + $0xc30] sm:$0xff]  ;;  %v4193_v34 = vld [vmem:[%s16446_s3 + $0x9d8] sm:$0xff] }
 0x3c5   :  { %7566 = vmatprep.subr.bf16.mxu1 %v10839_v40  ;;  %v4197_v40 = vld [vmem:[%s16446_s3 + $0x9f8] sm:$0xff]  ;;  %v10965_v13 = vcombine.high %v4264_v30, %v4268_v31  ;;  %v10964_v2 = vcombine.low %v4264_v30, %v4268_v31 }
 0x3c6   :  { %v10895_v37 = vcombine.high %v4193_v34, %v4197_v40  ;;  %v10894_v54 = vcombine.low %v4193_v34, %v4197_v40 }
 0x3c7   :  { %7421 = vmatpush1.bf16.msra.mxu0 %v10908_v38  ;;  %7558 = vmatmul.mubr.bf16.vlgmr.msra.gmra.mrb[16].mxu1 %v14000_v36  ;;  %v4161_v36 = vld [vmem:[%s16446_s3 + $0x8d8] sm:$0xff]  ;;  %v4272_v38 = vld [vmem:[%s16446_s3 + $0xc50] sm:$0xff] }
 0x3c8   :  { %7567 = vmatpush1.bf16.msra.mxu1 %v10838_v42  ;;  %7598 = vmatprep.mubr.bf16.mxu1 %v14265_v48  ;;  %v4165_v48 = vld [vmem:[%s16446_s3 + $0x8f8] sm:$0xff]  ;;  %v4276_v42 = vld [vmem:[%s16446_s3 + $0xc70] sm:$0xff] }
 0x3c9   :  { %7422 = vmatprep.subr.bf16.mxu0 %v10917_v44  ;;  %7568 = vmatprep.subr.bf16.mxu1 %v10847_v49  ;;  %v10863_v5 = vcombine.high %v4161_v36, %v4165_v48  ;;  %v10862_v16 = vcombine.low %v4161_v36, %v4165_v48  ;;  %v4201_v44 = vld [vmem:[%s16446_s3 + $0xa18] sm:$0xff]  ;;  %v10973_v52 = vcombine.high %v4272_v38, %v4276_v42 }
 0x3ca   :  { %v4205_v49 = vld [vmem:[%s16446_s3 + $0xa38] sm:$0xff]  ;;  %v10972_v33 = vcombine.low %v4272_v38, %v4276_v42 }
 0x3cb   :  { %7423 = vmatpush1.bf16.msra.mxu0 %v10916_v58  ;;  %v10903_v55 = vcombine.high %v4201_v44, %v4205_v49  ;;  %v4280_v58 = vld [vmem:[%s16446_s3 + $0xc90] sm:$0xff]  ;;  %v10902_v46 = vcombine.low %v4201_v44, %v4205_v49  ;;  %v4249_v38 = vld [vmem:[%s16446_s3 + $0xb98] sm:$0xff] }
 0x3cc   :  { %7569 = vmatpush1.bf16.msra.mxu1 %v10846_v50  ;;  %7424 = vmatprep.subr.bf16.mxu0 %v10925_v9  ;;  %v4284_v50 = vld [vmem:[%s16446_s3 + $0xcb0] sm:$0xff]  ;;  %v4209_v9 = vld [vmem:[%s16446_s3 + $0xa58] sm:$0xff] }
 0x3cd   :  { %7570 = vmatprep.subr.bf16.mxu1 %v10855_v60  ;;  %v4213_v60 = vld [vmem:[%s16446_s3 + $0xa78] sm:$0xff]  ;;  %v10981_v36 = vcombine.high %v4280_v58, %v4284_v50  ;;  %v10980_v11 = vcombine.low %v4280_v58, %v4284_v50  ;;  %v4328_v58 = vld [vmem:[%s16446_s3 + $0xe10] sm:$0xff] }
 0x3ce   :  { %v10911_v48 = vcombine.high %v4209_v9, %v4213_v60  ;;  %v10910_v6 = vcombine.low %v4209_v9, %v4213_v60  ;;  %v4253_v42 = vld [vmem:[%s16446_s3 + $0xbb8] sm:$0xff]  ;;  %v4332_v50 = vld [vmem:[%s16446_s3 + $0xe30] sm:$0xff] }
 0x3cf   :  { %7425 = vmatpush1.bf16.msra.mxu0 %v10924_v0  ;;  %v4288_v0 = vld [vmem:[%s16446_s3 + $0xcd0] sm:$0xff]  ;;  %v4257_v9 = vld [vmem:[%s16446_s3 + $0xbd8] sm:$0xff] }
 0x3d0   :  { %7571 = vmatpush1.bf16.msra.mxu1 %v10854_v3  ;;  %7426 = vmatprep.subr.bf16.mxu0 %v10933_v4  ;;  %v4292_v3 = vld [vmem:[%s16446_s3 + $0xcf0] sm:$0xff]  ;;  %v4217_v4 = vld [vmem:[%s16446_s3 + $0xa98] sm:$0xff] }
 0x3d1   :  { %7572 = vmatprep.subr.bf16.mxu1 %v10863_v5  ;;  %v4221_v5 = vld [vmem:[%s16446_s3 + $0xab8] sm:$0xff]  ;;  %v10989_v7 = vcombine.high %v4288_v0, %v4292_v3  ;;  %v10988_v32 = vcombine.low %v4288_v0, %v4292_v3  ;;  %v4336_v0 = vld [vmem:[%s16446_s3 + $0xe50] sm:$0xff] }
 0x3d2   :  { %v10919_v10 = vcombine.high %v4217_v4, %v4221_v5  ;;  %v10918_v45 = vcombine.low %v4217_v4, %v4221_v5  ;;  %v4261_v60 = vld [vmem:[%s16446_s3 + $0xbf8] sm:$0xff]  ;;  %v4340_v3 = vld [vmem:[%s16446_s3 + $0xe70] sm:$0xff] }
 0x3d3   :  { %7427 = vmatpush1.bf16.msra.mxu0 %v10932_v12  ;;  %v4296_v12 = vld [vmem:[%s16446_s3 + $0xd10] sm:$0xff]  ;;  %v4265_v4 = vld [vmem:[%s16446_s3 + $0xc18] sm:$0xff] }
 0x3d4   :  { %7573 = vmatpush1.bf16.msra.mxu1 %v10862_v16  ;;  %7428 = vmatprep.subr.bf16.mxu0 %v10941_v17  ;;  %v4300_v16 = vld [vmem:[%s16446_s3 + $0xd30] sm:$0xff]  ;;  %v4225_v17 = vld [vmem:[%s16446_s3 + $0xad8] sm:$0xff] }
 0x3d5   :  { %7574 = vmatprep.subr.bf16.mxu1 %v10871_v15  ;;  %v4229_v15 = vld [vmem:[%s16446_s3 + $0xaf8] sm:$0xff]  ;;  %v10997_v47 = vcombine.high %v4296_v12, %v4300_v16  ;;  %v10996_v25 = vcombine.low %v4296_v12, %v4300_v16  ;;  %v4344_v12 = vld [vmem:[%s16446_s3 + $0xe90] sm:$0xff] }
 0x3d6   :  { %v10927_v59 = vcombine.high %v4225_v17, %v4229_v15  ;;  %v10926_v22 = vcombine.low %v4225_v17, %v4229_v15  ;;  %v4269_v5 = vld [vmem:[%s16446_s3 + $0xc38] sm:$0xff]  ;;  %v4348_v16 = vld [vmem:[%s16446_s3 + $0xeb0] sm:$0xff] }
 0x3d7   :  { %7429 = vmatpush1.bf16.msra.mxu0 %v10940_v20  ;;  %v4304_v20 = vld [vmem:[%s16446_s3 + $0xd50] sm:$0xff]  ;;  %v4273_v17 = vld [vmem:[%s16446_s3 + $0xc58] sm:$0xff] }
 0x3d8   :  { %7575 = vmatpush1.bf16.msra.mxu1 %v10870_v21  ;;  %7430 = vmatprep.subr.bf16.mxu0 %v10949_v23  ;;  %v4308_v21 = vld [vmem:[%s16446_s3 + $0xd70] sm:$0xff]  ;;  %v4233_v23 = vld [vmem:[%s16446_s3 + $0xb18] sm:$0xff] }
 0x3d9   :  { %7576 = vmatprep.subr.bf16.mxu1 %v10879_v24  ;;  %v4237_v24 = vld [vmem:[%s16446_s3 + $0xb38] sm:$0xff]  ;;  %v11005_v8 = vcombine.high %v4304_v20, %v4308_v21  ;;  %v11004_v30 = vcombine.low %v4304_v20, %v4308_v21  ;;  %v4352_v20 = vld [vmem:[%s16446_s3 + $0xed0] sm:$0xff] }
 0x3da   :  { %v10935_v14 = vcombine.high %v4233_v23, %v4237_v24  ;;  %v10934_v31 = vcombine.low %v4233_v23, %v4237_v24  ;;  %v4277_v15 = vld [vmem:[%s16446_s3 + $0xc78] sm:$0xff]  ;;  %v4356_v21 = vld [vmem:[%s16446_s3 + $0xef0] sm:$0xff] }
 0x3db   :  { %7431 = vmatpush1.bf16.msra.mxu0 %v10948_v57  ;;  %v4312_v57 = vld [vmem:[%s16446_s3 + $0xd90] sm:$0xff]  ;;  %v4281_v23 = vld [vmem:[%s16446_s3 + $0xc98] sm:$0xff] }
 0x3dc   :  { %7577 = vmatpush1.bf16.msra.mxu1 %v10878_v27  ;;  %7432 = vmatprep.subr.bf16.mxu0 %v10957_v29  ;;  %v4316_v27 = vld [vmem:[%s16446_s3 + $0xdb0] sm:$0xff]  ;;  %v4241_v29 = vld [vmem:[%s16446_s3 + $0xb58] sm:$0xff] }
 0x3dd   :  { %7578 = vmatprep.subr.bf16.mxu1 %v10887_v63  ;;  %v4245_v63 = vld [vmem:[%s16446_s3 + $0xb78] sm:$0xff]  ;;  %v11013_v34 = vcombine.high %v4312_v57, %v4316_v27  ;;  %v11012_v49 = vcombine.low %v4312_v57, %v4316_v27  ;;  %v4360_v57 = vld [vmem:[%s16446_s3 + $0xf10] sm:$0xff] }
 0x3de   :  { %v4285_v24 = vld [vmem:[%s16446_s3 + $0xcb8] sm:$0xff]  ;;  %v4364_v27 = vld [vmem:[%s16446_s3 + $0xf30] sm:$0xff] }
 0x3df   :  { %7433 = vmatpush1.bf16.msra.mxu0 %v10956_v35  ;;  %v10943_v35 = vcombine.high %v4241_v29, %v4245_v63 }
 0x3e0   :  { %7579 = vmatpush1.bf16.msra.mxu1 %v10886_v28  ;;  %7443 = vmatprep.subr.bf16.mxu0 %v10965_v13  ;;  %v4320_v28 = vld [vmem:[%s16446_s3 + $0xdd0] sm:$0xff] }
 0x3e1   :  { %7580 = vmatprep.subr.bf16.mxu1 %v10895_v37  ;;  %v4324_v13 = vld [vmem:[%s16446_s3 + $0xdf0] sm:$0xff] }
 0x3e2   :  { %7435 = vmatmul.mubr.bf16.vlgmr.msra.gmra.mrb[12].mxu0 %v14269_v51 }
 0x3e3   :  { %7444 = vmatpush1.bf16.msra.mxu0 %v10964_v2  ;;  %7475 = vmatprep.mubr.bf16.mxu0 %v14571_v61 }
 0x3e4   :  { %7581 = vmatpush1.bf16.msra.mxu1 %v10894_v54  ;;  %7445 = vmatprep.subr.bf16.mxu0 %v10973_v52  ;;  %v10942_v54 = vcombine.low %v4241_v29, %v4245_v63  ;;  %v11021_v52 = vcombine.high %v4320_v28, %v4324_v13  ;;  %v11052_v29 = vcombine.low %v4352_v20, %v4356_v21 }
 0x3e5   :  { %7582 = vmatprep.subr.bf16.mxu1 %v10903_v55  ;;  %v10951_v55 = vcombine.high %v4249_v38, %v4253_v42  ;;  %v10982_v63 = vcombine.low %v4281_v23, %v4285_v24 }
 0x3e7   :  { %7446 = vmatpush1.bf16.msra.mxu0 %v10972_v33  ;;  %v11020_v33 = vcombine.low %v4320_v28, %v4324_v13  ;;  %v4297_v28 = vld [vmem:[%s16446_s3 + $0xd18] sm:$0xff] }
 0x3e8   :  { %7583 = vmatpush1.bf16.msra.mxu1 %v10902_v46  ;;  %7447 = vmatprep.subr.bf16.mxu0 %v10981_v36  ;;  %v10950_v46 = vcombine.low %v4249_v38, %v4253_v42  ;;  %v11029_v36 = vcombine.high %v4328_v58, %v4332_v50  ;;  %v4301_v13 = vld [vmem:[%s16446_s3 + $0xd38] sm:$0xff]  ;;  %v11060_v38 = vcombine.low %v4360_v57, %v4364_v27 }
 0x3e9   :  { %7584 = vmatprep.subr.bf16.mxu1 %v10911_v48  ;;  %v10959_v48 = vcombine.high %v4257_v9, %v4261_v60 }
 0x3eb   :  { %7448 = vmatpush1.bf16.msra.mxu0 %v10980_v11  ;;  %v11028_v11 = vcombine.low %v4328_v58, %v4332_v50  ;;  %v4309_v58 = vld [vmem:[%s16446_s3 + $0xd78] sm:$0xff] }
 0x3ec   :  { %7585 = vmatpush1.bf16.msra.mxu1 %v10910_v6  ;;  %7449 = vmatprep.subr.bf16.mxu0 %v10989_v7  ;;  %v10958_v6 = vcombine.low %v4257_v9, %v4261_v60  ;;  %v11037_v7 = vcombine.high %v4336_v0, %v4340_v3  ;;  %v10998_v9 = vcombine.low %v4297_v28, %v4301_v13 }
 0x3ed   :  { %7586 = vmatprep.subr.bf16.mxu1 %v10919_v10  ;;  %v10967_v10 = vcombine.high %v4265_v4, %v4269_v5 }
 0x3ef   :  { %7450 = vmatpush1.bf16.msra.mxu0 %v10988_v32  ;;  %v11036_v32 = vcombine.low %v4336_v0, %v4340_v3  ;;  %v4313_v0 = vld [vmem:[%s16446_s3 + $0xd98] sm:$0xff] }
 0x3f0   :  { %7587 = vmatpush1.bf16.msra.mxu1 %v10918_v45  ;;  %7451 = vmatprep.subr.bf16.mxu0 %v10997_v47  ;;  %v10966_v45 = vcombine.low %v4265_v4, %v4269_v5  ;;  %v11045_v47 = vcombine.high %v4344_v12, %v4348_v16  ;;  %v4317_v3 = vld [vmem:[%s16446_s3 + $0xdb8] sm:$0xff] }
 0x3f1   :  { %7588 = vmatprep.subr.bf16.mxu1 %v10927_v59  ;;  %v10975_v59 = vcombine.high %v4273_v17, %v4277_v15 }
 0x3f3   :  { %7452 = vmatpush1.bf16.msra.mxu0 %v10996_v25  ;;  %v11044_v25 = vcombine.low %v4344_v12, %v4348_v16  ;;  %v4321_v16 = vld [vmem:[%s16446_s3 + $0xdd8] sm:$0xff] }
 0x3f4   :  { %7589 = vmatpush1.bf16.msra.mxu1 %v10926_v22  ;;  %7453 = vmatprep.subr.bf16.mxu0 %v11005_v8  ;;  %v10974_v22 = vcombine.low %v4273_v17, %v4277_v15  ;;  %v11053_v8 = vcombine.high %v4352_v20, %v4356_v21  ;;  %v4325_v17 = vld [vmem:[%s16446_s3 + $0xdf8] sm:$0xff] }
 0x3f5   :  { %v15230_v40 = vpop.f32.mrb[8].mxu0  ;;  %7590 = vmatprep.subr.bf16.mxu1 %v10935_v14  ;;  %v10983_v14 = vcombine.high %v4281_v23, %v4285_v24  ;;  %v11023_v20 = vcombine.high %v4321_v16, %v4325_v17  ;;  %v4329_v21 = vld [vmem:[%s16446_s3 + $0xe18] sm:$0xff]  ;;  %v11556_v24 = vld [vmem:[%s16448_s5] ss:$16 sps:$4 sm:$0xff]  }
 0x3f6   :  { %v15238_v37 = vpop.f32.mrb[9].mxu0  ;;  %v4333_v23 = vld [vmem:[%s16446_s3 + $0xe38] sm:$0xff] }
 0x3f7   :  { %7454 = vmatpush1.bf16.msra.mxu0 %v11004_v30  ;;  %v7153_v44 = vpop.f32.mrb[10].mxu0  ;;  %v11061_v30 = vcombine.high %v4360_v57, %v4364_v27  ;;  %v4337_v57 = vld [vmem:[%s16446_s3 + $0xe58] sm:$0xff] }
 0x3f8   :  { %7591 = vmatpush1.bf16.msra.mxu1 %v10934_v31  ;;  %v7154_v2 = vpop.f32.mrb[11].mxu0  ;;  %7455 = vmatprep.subr.bf16.mxu0 %v11013_v34  ;;  %v4368_v34 = vld [vmem:[%s16446_s3 + $0xf50] sm:$0xff]  ;;  %v4341_v27 = vld [vmem:[%s16446_s3 + $0xe78] sm:$0xff] }
 0x3f9   :  { %7592 = vmatprep.subr.bf16.mxu1 %v10943_v35  ;;  %v4372_v35 = vld [vmem:[%s16446_s3 + $0xf70] sm:$0xff] }
 0x3fa   :  { %v11069_v44 = vcombine.high %v4368_v34, %v4372_v35  ;;  %v4376_v2 = vld [vmem:[%s16446_s3 + $0xf90] sm:$0xff]  ;;  %v11068_v50 = vcombine.low %v4368_v34, %v4372_v35  ;;  %v11038_v35 = vcombine.low %v4337_v57, %v4341_v27 }
 0x3fb   :  { %7456 = vmatpush1.bf16.msra.mxu0 %v11012_v49  ;;  %v10999_v49 = vcombine.high %v4297_v28, %v4301_v13  ;;  %v11562_v34 = vld [vmem:[%s16448_s5 + $0x40] ss:$16 sps:$4 sm:$0xff]   ;;  %v11567_v28 = vld [vmem:[%s16448_s5 + $0x64] ss:$16 sps:$4 sm:$0xff]  }
 0x3fc   :  { %7593 = vmatpush1.bf16.msra.mxu1 %v10942_v54  ;;  %7457 = vmatprep.subr.bf16.mxu0 %v11021_v52  ;;  %v4380_v54 = vld [vmem:[%s16446_s3 + $0xfb0] sm:$0xff]  ;;  %v15329_v52 = vld [vmem:[%s16447_s4] sm:$0xff] }
 0x3fd   :  { %7594 = vmatprep.subr.bf16.mxu1 %v10951_v55  ;;  %v4305_v55 = vld [vmem:[%s16446_s3 + $0xd58] sm:$0xff]  ;;  %v11077_v60 = vcombine.high %v4376_v2, %v4380_v54  ;;  %v11076_v4 = vcombine.low %v4376_v2, %v4380_v54  ;;  %v11570_v2 = vld [vmem:[%s16448_s5 + $0x84] ss:$16 sps:$4 sm:$0xff]  }
 0x3fe   :  { %v11006_v5 = vcombine.low %v4305_v55, %v4309_v58 }
 0x3ff   :  { %7458 = vmatpush1.bf16.msra.mxu0 %v11020_v33  ;;  %v4399_v33 = vrot.slane %v15329_v52, %v13420_v53 }
 0x400   :  { %7595 = vmatpush1.bf16.msra.mxu1 %v10950_v46  ;;  %7459 = vmatprep.subr.bf16.mxu0 %v11029_v36  ;;  %v11007_v46 = vcombine.high %v4305_v55, %v4309_v58  ;;  %v4384_v36 = vld [vmem:[%s16446_s3 + $0xfd0] sm:$0xff]  ;;  %v4361_v55 = vld [vmem:[%s16446_s3 + $0xf18] sm:$0xff] }
 0x401   :  { %7596 = vmatprep.subr.bf16.mxu1 %v10959_v48  ;;  %v4388_v48 = vld [vmem:[%s16446_s3 + $0xff0] sm:$0xff]  ;;  %v4365_v58 = vld [vmem:[%s16446_s3 + $0xf38] sm:$0xff] }
 0x403   :  { %7460 = vmatpush1.bf16.msra.mxu0 %v11028_v11  ;;  %v11085_v11 = vcombine.high %v4384_v36, %v4388_v48 }
 0x404   :  { %7597 = vmatpush1.bf16.msra.mxu1 %v10958_v6  ;;  %7461 = vmatprep.subr.bf16.mxu0 %v11037_v7  ;;  %v11420_v6 = vadd.f32 %v15238_v37, %v4399_v33  ;;  %v11014_v37 = vcombine.low %v4313_v0, %v4317_v3  ;;  %v11063_v33 = vcombine.high %v4361_v55, %v4365_v58 }
 0x405   :  { %7607 = vmatprep.subr.bf16.mxu1 %v10967_v10  ;;  %v11015_v10 = vcombine.high %v4313_v0, %v4317_v3  ;;  %v11062_v0 = vcombine.low %v4361_v55, %v4365_v58  ;;  %v11576_v3 = vld [vmem:[%s16448_s5 + $0xc4] ss:$16 sps:$4 sm:$0xff]   ;;  %v11616_v58 = vld [vmem:[%s16448_s5 + $0xa8] ss:$16 sps:$4 sm:$0xff]  }
 0x407   :  { %7462 = vmatpush1.bf16.msra.mxu0 %v11036_v32  ;;  %7599 = vmatmul.mubr.bf16.vlgmr.msra.gmra.mrb[16].mxu1 %v14269_v51  ;;  %v4289_v51 = vld [vmem:[%s16446_s3 + $0xcd8] sm:$0xff]  ;;  %v11084_v32 = vcombine.low %v4384_v36, %v4388_v48  ;;  %v11571_v48 = vld [vmem:[%s16448_s5 + $0xa0] ss:$16 sps:$4 sm:$0xff]  }
 0x408   :  { %7608 = vmatpush1.bf16.msra.mxu1 %v10966_v45  ;;  %7639 = vmatprep.mubr.bf16.mxu1 %v14571_v61  ;;  %v4293_v61 = vld [vmem:[%s16446_s3 + $0xcf8] sm:$0xff] }
 0x409   :  { %7463 = vmatprep.subr.bf16.mxu0 %v11045_v47  ;;  %7609 = vmatprep.subr.bf16.mxu1 %v10975_v59  ;;  %v10991_v31 = vcombine.high %v4289_v51, %v4293_v61  ;;  %v10990_v42 = vcombine.low %v4289_v51, %v4293_v61  ;;  %v11558_v47 = vld [vmem:[%s16448_s5 + $0x4] ss:$16 sps:$4 sm:$0xff]   ;;  %v7649_v59 = vmax.f32 %v11420_v6, 0.0  ;;  %v11559_v51 = vld [vmem:[%s16448_s5 + $0x20] ss:$16 sps:$4 sm:$0xff]   ;;  %v11030_v61 = vcombine.low %v4329_v21, %v4333_v23  ;;  %v4373_v36 = vld [vmem:[%s16446_s3 + $0xf78] sm:$0xff] }
 0x40a   :  { %v11574_v6 = vld [vmem:[%s16448_s5 + $0xc0] ss:$16 sps:$4 sm:$0xff]  }
 0x40b   :  { %7464 = vmatpush1.bf16.msra.mxu0 %v11044_v25  ;;  %v11022_v25 = vcombine.low %v4321_v16, %v4325_v17  ;;  %v11579_v16 = vld [vmem:[%s16448_s5 + $0xe4] ss:$16 sps:$4 sm:$0xff]  }
 0x40c   :  { %7610 = vmatpush1.bf16.msra.mxu1 %v10974_v22  ;;  %7465 = vmatprep.subr.bf16.mxu0 %v11053_v8  ;;  %v11561_v22 = vld [vmem:[%s16448_s5 + $0x24] ss:$16 sps:$4 sm:$0xff]   ;;  %v15377_v8 = vpack.c.bf16 %v7649_v59, %v7649_v59 }
 0x40d   :  { %7611 = vmatprep.subr.bf16.mxu1 %v10983_v14  ;;  %v11031_v14 = vcombine.high %v4329_v21, %v4333_v23  ;;  %v11585_v23 = vld [vmem:[%s16448_s5 + $0x124] ss:$16 sps:$4 sm:$0xff]  }
 0x40f   :  { %7466 = vmatpush1.bf16.msra.mxu0 %v11052_v29  ;;  %v11564_v29 = vld [vmem:[%s16448_s5 + $0x44] ss:$16 sps:$4 sm:$0xff]  }
 0x410   :  { %7612 = vmatpush1.bf16.msra.mxu1 %v10982_v63  ;;  %7467 = vmatprep.subr.bf16.mxu0 %v11061_v30  ;;  %v11039_v63 = vcombine.high %v4337_v57, %v4341_v27  ;;  %v4345_v30 = vld [vmem:[%s16446_s3 + $0xe98] sm:$0xff]  ;;  %v11589_v27 = vld [vmem:[%s16448_s5 + $0x140] ss:$16 sps:$4 sm:$0xff]  }
 0x411   :  { %7613 = vmatprep.subr.bf16.mxu1 %v10991_v31  ;;  %v4349_v31 = vld [vmem:[%s16446_s3 + $0xeb8] sm:$0xff] }
 0x412   :  { %v11047_v13 = vcombine.high %v4345_v30, %v4349_v31  ;;  %v11594_v57 = vld [vmem:[%s16448_s5 + $0x2c] ss:$16 sps:$4 sm:$0xff]  }
 0x413   :  { %7468 = vmatpush1.bf16.msra.mxu0 %v11060_v38  ;;  %v4353_v38 = vld [vmem:[%s16446_s3 + $0xed8] sm:$0xff] }
 0x414   :  { %7614 = vmatpush1.bf16.msra.mxu1 %v10990_v42  ;;  %7469 = vmatprep.subr.bf16.mxu0 %v11069_v44  ;;  %v4357_v42 = vld [vmem:[%s16446_s3 + $0xef8] sm:$0xff]  ;;  %v11565_v44 = vld [vmem:[%s16448_s5 + $0x60] ss:$16 sps:$4 sm:$0xff]  }
 0x415   :  { %7615 = vmatprep.subr.bf16.mxu1 %v10999_v49  ;;  %v11046_v49 = vcombine.low %v4345_v30, %v4349_v31  ;;  %v11055_v54 = vcombine.high %v4353_v38, %v4357_v42  ;;  %v11606_v30 = vld [vmem:[%s16448_s5 + $0x6c] ss:$16 sps:$4 sm:$0xff]   ;;  %v11601_v31 = vld [vmem:[%s16448_s5 + $0x180] ss:$16 sps:$4 sm:$0xff]  }
 0x417   :  { %7470 = vmatpush1.bf16.msra.mxu0 %v11068_v50  ;;  %v11568_v50 = vld [vmem:[%s16448_s5 + $0x80] ss:$16 sps:$4 sm:$0xff]  }
 0x418   :  { %7616 = vmatpush1.bf16.msra.mxu1 %v10998_v9  ;;  %7471 = vmatprep.subr.bf16.mxu0 %v11077_v60  ;;  %v11054_v9 = vcombine.low %v4353_v38, %v4357_v42  ;;  %v11573_v60 = vld [vmem:[%s16448_s5 + $0xa4] ss:$16 sps:$4 sm:$0xff]   ;;  %v4395_v38 = vrot.slane %v15329_v52, %v13406_v41  ;;  %v11610_v42 = vld [vmem:[%s16448_s5 + $0x88] ss:$16 sps:$4 sm:$0xff]  }
 0x419   :  { %v15352_v7 = vpop.f32.mrb[12].mxu1  ;;  %7617 = vmatprep.subr.bf16.mxu1 %v11007_v46  ;;  %v4369_v46 = vld [vmem:[%s16446_s3 + $0xf58] sm:$0xff] }
 0x41a   :  { %v15354_v12 = vpop.f32.mrb[13].mxu1  ;;  %v11419_v55 = vadd.f32 %v15230_v40, %v4395_v38  ;;  %v11619_v40 = vld [vmem:[%s16448_s5 + $0x1e0] ss:$16 sps:$4 sm:$0xff]   ;;  %v11681_v38 = vld [vmem:[%s16448_s5 + $0x324] ss:$16 sps:$4 sm:$0xff]  }
 0x41b   :  { %7472 = vmatpush1.bf16.msra.mxu0 %v11076_v4  ;;  %v7317_v15 = vpop.f32.mrb[14].mxu1  ;;  %v11071_v4 = vcombine.high %v4369_v46, %v4373_v36 }
 0x41c   :  { %7618 = vmatpush1.bf16.msra.mxu1 %v11006_v5  ;;  %v7318_v45 = vpop.f32.mrb[15].mxu1  ;;  %7473 = vmatprep.subr.bf16.mxu0 %v11085_v11  ;;  %v4377_v5 = vld [vmem:[%s16446_s3 + $0xf98] sm:$0xff] }
 0x41d   :  { %7619 = vmatprep.subr.bf16.mxu1 %v11015_v10  ;;  %v4381_v11 = vld [vmem:[%s16446_s3 + $0xfb8] sm:$0xff]  ;;  %v11070_v10 = vcombine.low %v4369_v46, %v4373_v36  ;;  %v11577_v45 = vld [vmem:[%s16448_s5 + $0xe0] ss:$16 sps:$4 sm:$0xff]  }
 0x41e   :  { %v11079_v17 = vcombine.high %v4377_v5, %v4381_v11  ;;  %v4385_v15 = vld [vmem:[%s16446_s3 + $0xfd8] sm:$0xff] }
 0x41f   :  { %7474 = vmatpush1.bf16.msra.mxu0 %v11084_v32  ;;  %v4389_v32 = vld [vmem:[%s16446_s3 + $0xff8] sm:$0xff] }
 0x420   :  { %7620 = vmatpush1.bf16.msra.mxu1 %v11014_v37  ;;  %9222 = vmatprep.subr.bf16.mxu0 %v11558_v47  ;;  %v11078_v37 = vcombine.low %v4377_v5, %v4381_v11  ;;  %v11582_v47 = vld [vmem:[%s16448_s5 + $0x104] ss:$16 sps:$4 sm:$0xff]   ;;  %v11087_v59 = vcombine.high %v4385_v15, %v4389_v32  ;;  %v11086_v21 = vcombine.low %v4385_v15, %v4389_v32  ;;  %v11622_v46 = vld [vmem:[%s16448_s5 + $0xc8] ss:$16 sps:$4 sm:$0xff]   ;;  %v11642_v15 = vld [vmem:[%s16448_s5 + $0x12c] ss:$16 sps:$4 sm:$0xff]  }
 0x421   :  { %7621 = vmatprep.subr.bf16.mxu1 %v11023_v20  ;;  %v11580_v20 = vld [vmem:[%s16448_s5 + $0x100] ss:$16 sps:$4 sm:$0xff]   ;;  %v11633_v5 = vld [vmem:[%s16448_s5 + $0x224] ss:$16 sps:$4 sm:$0xff]  }
 0x422   :  { %7476 = vmatmul.mubr.bf16.vlgmr.msra.gmra.mrb[12].mxu0 %v14573_v1  ;;  %v11637_v32 = vld [vmem:[%s16448_s5 + $0x240] ss:$16 sps:$4 sm:$0xff]  }
 0x423   :  { %9223 = vmatpush1.bf16.msra.mxu0 %v11556_v24  ;;  %9254 = vmatprep.mubr.bf16.mxu0 %v15377_v8  ;;  %v11588_v24 = vld [vmem:[%s16448_s5 + $0xc] ss:$16 sps:$4 sm:$0xff]  }
 0x424   :  { %7622 = vmatpush1.bf16.msra.mxu1 %v11022_v25  ;;  %9224 = vmatprep.subr.bf16.mxu0 %v11561_v22  ;;  %v11583_v25 = vld [vmem:[%s16448_s5 + $0x120] ss:$16 sps:$4 sm:$0xff]   ;;  %v11586_v22 = vld [vmem:[%s16448_s5 + $0x8] ss:$16 sps:$4 sm:$0xff]  }
 0x425   :  { %7623 = vmatprep.subr.bf16.mxu1 %v11031_v14  ;;  %v11591_v14 = vld [vmem:[%s16448_s5 + $0x144] ss:$16 sps:$4 sm:$0xff]  }
 0x427   :  { %9225 = vmatpush1.bf16.msra.mxu0 %v11559_v51  ;;  %v11592_v51 = vld [vmem:[%s16448_s5 + $0x28] ss:$16 sps:$4 sm:$0xff]  }
 0x428   :  { %7624 = vmatpush1.bf16.msra.mxu1 %v11030_v61  ;;  %9226 = vmatprep.subr.bf16.mxu0 %v11564_v29  ;;  %v11597_v61 = vld [vmem:[%s16448_s5 + $0x164] ss:$16 sps:$4 sm:$0xff]   ;;  %v11595_v29 = vld [vmem:[%s16448_s5 + $0x160] ss:$16 sps:$4 sm:$0xff]  }
 0x429   :  { %7625 = vmatprep.subr.bf16.mxu1 %v11039_v63  ;;  %v11603_v63 = vld [vmem:[%s16448_s5 + $0x184] ss:$16 sps:$4 sm:$0xff]  }
 0x42b   :  { %9227 = vmatpush1.bf16.msra.mxu0 %v11562_v34  ;;  %v11604_v34 = vld [vmem:[%s16448_s5 + $0x68] ss:$16 sps:$4 sm:$0xff]  }
 0x42c   :  { %7626 = vmatpush1.bf16.msra.mxu1 %v11038_v35  ;;  %9228 = vmatprep.subr.bf16.mxu0 %v11567_v28  ;;  %v11609_v35 = vld [vmem:[%s16448_s5 + $0x1a4] ss:$16 sps:$4 sm:$0xff]   ;;  %v11612_v28 = vld [vmem:[%s16448_s5 + $0x8c] ss:$16 sps:$4 sm:$0xff]  }
 0x42d   :  { %7627 = vmatprep.subr.bf16.mxu1 %v11047_v13  ;;  %v11607_v13 = vld [vmem:[%s16448_s5 + $0x1a0] ss:$16 sps:$4 sm:$0xff]  }
 0x42f   :  { %9229 = vmatpush1.bf16.msra.mxu0 %v11565_v44  ;;  %v11615_v44 = vld [vmem:[%s16448_s5 + $0x1c4] ss:$16 sps:$4 sm:$0xff]  }
 0x430   :  { %7628 = vmatpush1.bf16.msra.mxu1 %v11046_v49  ;;  %9230 = vmatprep.subr.bf16.mxu0 %v11570_v2  ;;  %v4407_v49 = vrot.slane %v15329_v52, %v13836_v39  ;;  %v11618_v2 = vld [vmem:[%s16448_s5 + $0xac] ss:$16 sps:$4 sm:$0xff]  }
 0x431   :  { %7629 = vmatprep.subr.bf16.mxu1 %v11055_v54  ;;  %v11613_v54 = vld [vmem:[%s16448_s5 + $0x1c0] ss:$16 sps:$4 sm:$0xff]  }
 0x433   :  { %9231 = vmatpush1.bf16.msra.mxu0 %v11568_v50  ;;  %v11621_v50 = vld [vmem:[%s16448_s5 + $0x1e4] ss:$16 sps:$4 sm:$0xff]  }
 0x434   :  { %7630 = vmatpush1.bf16.msra.mxu1 %v11054_v9  ;;  %9232 = vmatprep.subr.bf16.mxu0 %v11573_v60  ;;  %v11422_v9 = vadd.f32 %v15354_v12, %v4407_v49  ;;  %v11624_v60 = vld [vmem:[%s16448_s5 + $0xcc] ss:$16 sps:$4 sm:$0xff]   ;;  %v11627_v12 = vld [vmem:[%s16448_s5 + $0x204] ss:$16 sps:$4 sm:$0xff]   ;;  %v11682_v49 = vld [vmem:[%s16448_s5 + $0x208] ss:$16 sps:$4 sm:$0xff]  }
 0x435   :  { %7631 = vmatprep.subr.bf16.mxu1 %v11063_v33  ;;  %v7648_v33 = vmax.f32 %v11419_v55, 0.0  ;;  %v11685_v55 = vld [vmem:[%s16448_s5 + $0x340] ss:$16 sps:$4 sm:$0xff]  }
 0x436   :  { %v7651_v36 = vmax.f32 %v11422_v9, 0.0  ;;  %v11696_v9 = vld [vmem:[%s16448_s5 + $0x24c] ss:$16 sps:$4 sm:$0xff]  }
 0x437   :  { %9233 = vmatpush1.bf16.msra.mxu0 %v11571_v48  ;;  %v11630_v48 = vld [vmem:[%s16448_s5 + $0xec] ss:$16 sps:$4 sm:$0xff]  }
 0x438   :  { %7632 = vmatpush1.bf16.msra.mxu1 %v11062_v0  ;;  %9234 = vmatprep.subr.bf16.mxu0 %v11576_v3  ;;  %v11625_v0 = vld [vmem:[%s16448_s5 + $0x200] ss:$16 sps:$4 sm:$0xff]   ;;  %v15569_v3 = vpack.c.bf16 %v7648_v33, %v7648_v33  ;;  %v15577_v11 = vpack.c.bf16 %v7651_v36, %v7651_v36  ;;  %v11699_v33 = vld [vmem:[%s16448_s5 + $0x384] ss:$16 sps:$4 sm:$0xff]   ;;  %v11700_v36 = vld [vmem:[%s16448_s5 + $0x268] ss:$16 sps:$4 sm:$0xff]  }
 0x439   :  { %7633 = vmatprep.subr.bf16.mxu1 %v11071_v4  ;;  %v11628_v4 = vld [vmem:[%s16448_s5 + $0xe8] ss:$16 sps:$4 sm:$0xff]  }
 0x43b   :  { %9235 = vmatpush1.bf16.msra.mxu0 %v11574_v6  ;;  %v11636_v6 = vld [vmem:[%s16448_s5 + $0x10c] ss:$16 sps:$4 sm:$0xff]  }
 0x43c   :  { %7634 = vmatpush1.bf16.msra.mxu1 %v11070_v10  ;;  %9236 = vmatprep.subr.bf16.mxu0 %v11579_v16  ;;  %v11631_v10 = vld [vmem:[%s16448_s5 + $0x220] ss:$16 sps:$4 sm:$0xff]   ;;  %v11634_v16 = vld [vmem:[%s16448_s5 + $0x108] ss:$16 sps:$4 sm:$0xff]  }
 0x43d   :  { %7635 = vmatprep.subr.bf16.mxu1 %v11079_v17  ;;  %v11639_v17 = vld [vmem:[%s16448_s5 + $0x244] ss:$16 sps:$4 sm:$0xff]  }
 0x43f   :  { %9237 = vmatpush1.bf16.msra.mxu0 %v11577_v45  ;;  %v11640_v45 = vld [vmem:[%s16448_s5 + $0x128] ss:$16 sps:$4 sm:$0xff]  }
 0x440   :  { %7636 = vmatpush1.bf16.msra.mxu1 %v11078_v37  ;;  %9238 = vmatprep.subr.bf16.mxu0 %v11582_v47  ;;  %v11645_v37 = vld [vmem:[%s16448_s5 + $0x264] ss:$16 sps:$4 sm:$0xff]   ;;  %v11648_v47 = vld [vmem:[%s16448_s5 + $0x14c] ss:$16 sps:$4 sm:$0xff]  }
 0x441   :  { %7637 = vmatprep.subr.bf16.mxu1 %v11087_v59  ;;  %v11643_v59 = vld [vmem:[%s16448_s5 + $0x260] ss:$16 sps:$4 sm:$0xff]  }
 0x443   :  { %9239 = vmatpush1.bf16.msra.mxu0 %v11580_v20  ;;  %v11646_v20 = vld [vmem:[%s16448_s5 + $0x148] ss:$16 sps:$4 sm:$0xff]  }
 0x444   :  { %7638 = vmatpush1.bf16.msra.mxu1 %v11086_v21  ;;  %9240 = vmatprep.subr.bf16.mxu0 %v11585_v23  ;;  %v11651_v21 = vld [vmem:[%s16448_s5 + $0x284] ss:$16 sps:$4 sm:$0xff]   ;;  %v11654_v23 = vld [vmem:[%s16448_s5 + $0x16c] ss:$16 sps:$4 sm:$0xff]  }
 0x445   :  { %9386 = vmatprep.subr.bf16.mxu1 %v11588_v24  ;;  %v11649_v24 = vld [vmem:[%s16448_s5 + $0x280] ss:$16 sps:$4 sm:$0xff]  }
 0x447   :  { %7640 = vmatmul.mubr.bf16.vlgmr.msra.gmra.mrb[16].mxu1 %v14573_v1  ;;  %9241 = vmatpush1.bf16.msra.mxu0 %v11583_v25  ;;  %v11600_v1 = vld [vmem:[%s16448_s5 + $0x4c] ss:$16 sps:$4 sm:$0xff]   ;;  %v11652_v25 = vld [vmem:[%s16448_s5 + $0x168] ss:$16 sps:$4 sm:$0xff]  }
 0x448   :  { %9387 = vmatpush1.bf16.msra.mxu1 %v11586_v22  ;;  %9418 = vmatprep.mubr.bf16.mxu1 %v15377_v8  ;;  %v11598_v8 = vld [vmem:[%s16448_s5 + $0x48] ss:$16 sps:$4 sm:$0xff]   ;;  %v11657_v22 = vld [vmem:[%s16448_s5 + $0x2a4] ss:$16 sps:$4 sm:$0xff]  }
 0x449   :  { %9242 = vmatprep.subr.bf16.mxu0 %v11591_v14  ;;  %9388 = vmatprep.subr.bf16.mxu1 %v11594_v57  ;;  %v11660_v14 = vld [vmem:[%s16448_s5 + $0x18c] ss:$16 sps:$4 sm:$0xff]   ;;  %v11655_v57 = vld [vmem:[%s16448_s5 + $0x2a0] ss:$16 sps:$4 sm:$0xff]  }
 0x44b   :  { %9243 = vmatpush1.bf16.msra.mxu0 %v11589_v27  ;;  %v11658_v27 = vld [vmem:[%s16448_s5 + $0x188] ss:$16 sps:$4 sm:$0xff]  }
 0x44c   :  { %9389 = vmatpush1.bf16.msra.mxu1 %v11592_v51  ;;  %9244 = vmatprep.subr.bf16.mxu0 %v11597_v61  ;;  %v11663_v51 = vld [vmem:[%s16448_s5 + $0x2c4] ss:$16 sps:$4 sm:$0xff]   ;;  %v11666_v61 = vld [vmem:[%s16448_s5 + $0x1ac] ss:$16 sps:$4 sm:$0xff]  }
 0x44d   :  { %9390 = vmatprep.subr.bf16.mxu1 %v11600_v1  ;;  %v11661_v1 = vld [vmem:[%s16448_s5 + $0x2c0] ss:$16 sps:$4 sm:$0xff]  }
 0x44f   :  { %9245 = vmatpush1.bf16.msra.mxu0 %v11595_v29  ;;  %v11664_v29 = vld [vmem:[%s16448_s5 + $0x1a8] ss:$16 sps:$4 sm:$0xff]  }
 0x450   :  { %9391 = vmatpush1.bf16.msra.mxu1 %v11598_v8  ;;  %9246 = vmatprep.subr.bf16.mxu0 %v11603_v63  ;;  %v11669_v8 = vld [vmem:[%s16448_s5 + $0x2e4] ss:$16 sps:$4 sm:$0xff]   ;;  %v11672_v63 = vld [vmem:[%s16448_s5 + $0x1cc] ss:$16 sps:$4 sm:$0xff]  }
 0x451   :  { %9392 = vmatprep.subr.bf16.mxu1 %v11606_v30  ;;  %v11667_v30 = vld [vmem:[%s16448_s5 + $0x2e0] ss:$16 sps:$4 sm:$0xff]  }
 0x453   :  { %9247 = vmatpush1.bf16.msra.mxu0 %v11601_v31  ;;  %v11670_v31 = vld [vmem:[%s16448_s5 + $0x1c8] ss:$16 sps:$4 sm:$0xff]  }
 0x454   :  { %9393 = vmatpush1.bf16.msra.mxu1 %v11604_v34  ;;  %9248 = vmatprep.subr.bf16.mxu0 %v11609_v35  ;;  %v11675_v34 = vld [vmem:[%s16448_s5 + $0x304] ss:$16 sps:$4 sm:$0xff]   ;;  %v11678_v35 = vld [vmem:[%s16448_s5 + $0x1ec] ss:$16 sps:$4 sm:$0xff]  }
 0x455   :  { %9394 = vmatprep.subr.bf16.mxu1 %v11612_v28  ;;  %v11673_v28 = vld [vmem:[%s16448_s5 + $0x300] ss:$16 sps:$4 sm:$0xff]  }
 0x457   :  { %9249 = vmatpush1.bf16.msra.mxu0 %v11607_v13  ;;  %v11676_v13 = vld [vmem:[%s16448_s5 + $0x1e8] ss:$16 sps:$4 sm:$0xff]  }
 0x458   :  { %9395 = vmatpush1.bf16.msra.mxu1 %v11610_v42  ;;  %9250 = vmatprep.subr.bf16.mxu0 %v11615_v44  ;;  %v11684_v42 = vld [vmem:[%s16448_s5 + $0x20c] ss:$16 sps:$4 sm:$0xff]   ;;  %v11679_v44 = vld [vmem:[%s16448_s5 + $0x320] ss:$16 sps:$4 sm:$0xff]  }
 0x459   :  { %9396 = vmatprep.subr.bf16.mxu1 %v11618_v2  ;;  %v11687_v2 = vld [vmem:[%s16448_s5 + $0x344] ss:$16 sps:$4 sm:$0xff]  }
 0x45b   :  { %9251 = vmatpush1.bf16.msra.mxu0 %v11613_v54  ;;  %v11690_v54 = vld [vmem:[%s16448_s5 + $0x22c] ss:$16 sps:$4 sm:$0xff]  }
 0x45c   :  { %9397 = vmatpush1.bf16.msra.mxu1 %v11616_v58  ;;  %9252 = vmatprep.subr.bf16.mxu0 %v11621_v50  ;;  %v11688_v58 = vld [vmem:[%s16448_s5 + $0x228] ss:$16 sps:$4 sm:$0xff]   ;;  %v11693_v50 = vld [vmem:[%s16448_s5 + $0x364] ss:$16 sps:$4 sm:$0xff]  }
 0x45d   :  { %9398 = vmatprep.subr.bf16.mxu1 %v11624_v60  ;;  %v11691_v60 = vld [vmem:[%s16448_s5 + $0x360] ss:$16 sps:$4 sm:$0xff]  }
 0x45f   :  { %9253 = vmatpush1.bf16.msra.mxu0 %v11619_v40  ;;  %v11694_v40 = vld [vmem:[%s16448_s5 + $0x248] ss:$16 sps:$4 sm:$0xff]  }
 0x460   :  { %9399 = vmatpush1.bf16.msra.mxu1 %v11622_v46  ;;  %9263 = vmatprep.subr.bf16.mxu0 %v11627_v12  ;;  %v11702_v46 = vld [vmem:[%s16448_s5 + $0x26c] ss:$16 sps:$4 sm:$0xff]   ;;  %v11697_v12 = vld [vmem:[%s16448_s5 + $0x380] ss:$16 sps:$4 sm:$0xff]  }
 0x461   :  { %9400 = vmatprep.subr.bf16.mxu1 %v11630_v48  ;;  %v11705_v48 = vld [vmem:[%s16448_s5 + $0x3a4] ss:$16 sps:$4 sm:$0xff]  }
 0x462   :  { %9255 = vmatmul.mubr.bf16.vlgmr.msra.gmra.mrb[16].mxu0 %v15569_v3 }
 0x463   :  { %9264 = vmatpush1.bf16.msra.mxu0 %v11625_v0  ;;  %9295 = vmatprep.mubr.bf16.mxu0 %v15577_v11  ;;  %v11708_v0 = vld [vmem:[%s16448_s5 + $0x28c] ss:$16 sps:$4 sm:$0xff]  }
 0x464   :  { %9401 = vmatpush1.bf16.msra.mxu1 %v11628_v4  ;;  %9265 = vmatprep.subr.bf16.mxu0 %v11633_v5  ;;  %v4403_v4 = vrot.slane %v15329_v52, %v13942_v62  ;;  %v11706_v5 = vld [vmem:[%s16448_s5 + $0x288] ss:$16 sps:$4 sm:$0xff]  }
 0x465   :  { %9402 = vmatprep.subr.bf16.mxu1 %v11636_v6  ;;  %v11714_v6 = vld [vmem:[%s16448_s5 + $0x2ac] ss:$16 sps:$4 sm:$0xff]  }
 0x467   :  { %9266 = vmatpush1.bf16.msra.mxu0 %v11631_v10  ;;  %v11709_v10 = vld [vmem:[%s16448_s5 + $0x3c0] ss:$16 sps:$4 sm:$0xff]  }
 0x468   :  { %9403 = vmatpush1.bf16.msra.mxu1 %v11634_v16  ;;  %9267 = vmatprep.subr.bf16.mxu0 %v11639_v17  ;;  %v11421_v16 = vadd.f32 %v15352_v7, %v4403_v4  ;;  %v11712_v17 = vld [vmem:[%s16448_s5 + $0x2a8] ss:$16 sps:$4 sm:$0xff]   ;;  %v11715_v7 = vld [vmem:[%s16448_s5 + $0x3e0] ss:$16 sps:$4 sm:$0xff]   ;;  %v11765_v4 = vld [vmem:[%s16448_s5 + $0x42c] ss:$16 sps:$4 sm:$0xff]  }
 0x469   :  { %9404 = vmatprep.subr.bf16.mxu1 %v11642_v15  ;;  %v11717_v15 = vld [vmem:[%s16448_s5 + $0x3e4] ss:$16 sps:$4 sm:$0xff]  }
 0x46b   :  { %9268 = vmatpush1.bf16.msra.mxu0 %v11637_v32  ;;  %v11720_v32 = vld [vmem:[%s16448_s5 + $0x2cc] ss:$16 sps:$4 sm:$0xff]  }
 0x46c   :  { %9405 = vmatpush1.bf16.msra.mxu1 %v11640_v45  ;;  %9269 = vmatprep.subr.bf16.mxu0 %v11645_v37  ;;  %v7650_v45 = vmax.f32 %v11421_v16, 0.0  ;;  %v11718_v37 = vld [vmem:[%s16448_s5 + $0x2c8] ss:$16 sps:$4 sm:$0xff]   ;;  %v11808_v16 = vld [vmem:[%s16448_s5 + $0x560] ss:$16 sps:$4 sm:$0xff]  }
 0x46d   :  { %9406 = vmatprep.subr.bf16.mxu1 %v11648_v47  ;;  %v11744_v47 = vld [vmem:[%s16448_s5 + $0x404] ss:$16 sps:$4 sm:$0xff]  }
 0x46f   :  { %9270 = vmatpush1.bf16.msra.mxu0 %v11643_v59  ;;  %v11723_v59 = vld [vmem:[%s16448_s5 + $0x2ec] ss:$16 sps:$4 sm:$0xff]  }
 0x470   :  { %9407 = vmatpush1.bf16.msra.mxu1 %v11646_v20  ;;  %9271 = vmatprep.subr.bf16.mxu0 %v11651_v21  ;;  %v11742_v20 = vld [vmem:[%s16448_s5 + $0x400] ss:$16 sps:$4 sm:$0xff]   ;;  %v15772_v21 = vpack.c.bf16 %v7650_v45, %v7650_v45  ;;  %v11775_v45 = vld [vmem:[%s16448_s5 + $0x468] ss:$16 sps:$4 sm:$0xff]  }
 0x471   :  { %9408 = vmatprep.subr.bf16.mxu1 %v11654_v23  ;;  %v11721_v23 = vld [vmem:[%s16448_s5 + $0x2e8] ss:$16 sps:$4 sm:$0xff]  }
 0x473   :  { %9272 = vmatpush1.bf16.msra.mxu0 %v11649_v24  ;;  %v11750_v24 = vld [vmem:[%s16448_s5 + $0x424] ss:$16 sps:$4 sm:$0xff]  }
 0x474   :  { %9409 = vmatpush1.bf16.msra.mxu1 %v11652_v25  ;;  %9273 = vmatprep.subr.bf16.mxu0 %v11657_v22  ;;  %v11726_v25 = vld [vmem:[%s16448_s5 + $0x30c] ss:$16 sps:$4 sm:$0xff]   ;;  %v11748_v22 = vld [vmem:[%s16448_s5 + $0x420] ss:$16 sps:$4 sm:$0xff]  }
 0x475   :  { %9410 = vmatprep.subr.bf16.mxu1 %v11660_v14  ;;  %v11724_v14 = vld [vmem:[%s16448_s5 + $0x308] ss:$16 sps:$4 sm:$0xff]  }
 0x477   :  { %9274 = vmatpush1.bf16.msra.mxu0 %v11655_v57  ;;  %v11756_v57 = vld [vmem:[%s16448_s5 + $0x444] ss:$16 sps:$4 sm:$0xff]  }
 0x478   :  { %9411 = vmatpush1.bf16.msra.mxu1 %v11658_v27  ;;  %9275 = vmatprep.subr.bf16.mxu0 %v11663_v51  ;;  %v11729_v27 = vld [vmem:[%s16448_s5 + $0x32c] ss:$16 sps:$4 sm:$0xff]   ;;  %v11754_v51 = vld [vmem:[%s16448_s5 + $0x440] ss:$16 sps:$4 sm:$0xff]  }
 0x479   :  { %9412 = vmatprep.subr.bf16.mxu1 %v11666_v61  ;;  %v11727_v61 = vld [vmem:[%s16448_s5 + $0x328] ss:$16 sps:$4 sm:$0xff]  }
 0x47b   :  { %9276 = vmatpush1.bf16.msra.mxu0 %v11661_v1  ;;  %v11762_v1 = vld [vmem:[%s16448_s5 + $0x464] ss:$16 sps:$4 sm:$0xff]  }
 0x47c   :  { %9413 = vmatpush1.bf16.msra.mxu1 %v11664_v29  ;;  %9277 = vmatprep.subr.bf16.mxu0 %v11669_v8  ;;  %v11732_v29 = vld [vmem:[%s16448_s5 + $0x34c] ss:$16 sps:$4 sm:$0xff]   ;;  %v11760_v8 = vld [vmem:[%s16448_s5 + $0x460] ss:$16 sps:$4 sm:$0xff]  }
 0x47d   :  { %9414 = vmatprep.subr.bf16.mxu1 %v11672_v63  ;;  %v11730_v63 = vld [vmem:[%s16448_s5 + $0x348] ss:$16 sps:$4 sm:$0xff]  }
 0x47f   :  { %9278 = vmatpush1.bf16.msra.mxu0 %v11667_v30  ;;  %v11768_v30 = vld [vmem:[%s16448_s5 + $0x484] ss:$16 sps:$4 sm:$0xff]  }
 0x480   :  { %9415 = vmatpush1.bf16.msra.mxu1 %v11670_v31  ;;  %9279 = vmatprep.subr.bf16.mxu0 %v11675_v34  ;;  %v11735_v31 = vld [vmem:[%s16448_s5 + $0x36c] ss:$16 sps:$4 sm:$0xff]   ;;  %v11766_v34 = vld [vmem:[%s16448_s5 + $0x480] ss:$16 sps:$4 sm:$0xff]  }
 0x481   :  { %9416 = vmatprep.subr.bf16.mxu1 %v11678_v35  ;;  %v11733_v35 = vld [vmem:[%s16448_s5 + $0x368] ss:$16 sps:$4 sm:$0xff]  }
 0x483   :  { %9280 = vmatpush1.bf16.msra.mxu0 %v11673_v28  ;;  %v11774_v28 = vld [vmem:[%s16448_s5 + $0x4a4] ss:$16 sps:$4 sm:$0xff]  }
 0x484   :  { %9417 = vmatpush1.bf16.msra.mxu1 %v11676_v13  ;;  %9281 = vmatprep.subr.bf16.mxu0 %v11681_v38  ;;  %v11738_v13 = vld [vmem:[%s16448_s5 + $0x38c] ss:$16 sps:$4 sm:$0xff]   ;;  %v11772_v38 = vld [vmem:[%s16448_s5 + $0x4a0] ss:$16 sps:$4 sm:$0xff]  }
 0x485   :  { %9427 = vmatprep.subr.bf16.mxu1 %v11684_v42  ;;  %v11736_v42 = vld [vmem:[%s16448_s5 + $0x388] ss:$16 sps:$4 sm:$0xff]  }
 0x487   :  { %9282 = vmatpush1.bf16.msra.mxu0 %v11679_v44  ;;  %9419 = vmatmul.mubr.bf16.vlgmr.msra.gmra.mrb[20].mxu1 %v15569_v3  ;;  %v11703_v3 = vld [vmem:[%s16448_s5 + $0x3a0] ss:$16 sps:$4 sm:$0xff]   ;;  %v11780_v44 = vld [vmem:[%s16448_s5 + $0x4c4] ss:$16 sps:$4 sm:$0xff]  }
 0x488   :  { %9428 = vmatpush1.bf16.msra.mxu1 %v11682_v49  ;;  %9459 = vmatprep.mubr.bf16.mxu1 %v15577_v11  ;;  %v11711_v11 = vld [vmem:[%s16448_s5 + $0x3c4] ss:$16 sps:$4 sm:$0xff]   ;;  %v11741_v49 = vld [vmem:[%s16448_s5 + $0x3ac] ss:$16 sps:$4 sm:$0xff]  }
 0x489   :  { %9283 = vmatprep.subr.bf16.mxu0 %v11687_v2  ;;  %9429 = vmatprep.subr.bf16.mxu1 %v11690_v54  ;;  %v11778_v2 = vld [vmem:[%s16448_s5 + $0x4c0] ss:$16 sps:$4 sm:$0xff]   ;;  %v11739_v54 = vld [vmem:[%s16448_s5 + $0x3a8] ss:$16 sps:$4 sm:$0xff]  }
 0x48b   :  { %9284 = vmatpush1.bf16.msra.mxu0 %v11685_v55  ;;  %v11786_v55 = vld [vmem:[%s16448_s5 + $0x4e4] ss:$16 sps:$4 sm:$0xff]  }
 0x48c   :  { %9430 = vmatpush1.bf16.msra.mxu1 %v11688_v58  ;;  %9285 = vmatprep.subr.bf16.mxu0 %v11693_v50  ;;  %v11747_v58 = vld [vmem:[%s16448_s5 + $0x3cc] ss:$16 sps:$4 sm:$0xff]   ;;  %v11784_v50 = vld [vmem:[%s16448_s5 + $0x4e0] ss:$16 sps:$4 sm:$0xff]  }
 0x48d   :  { %9431 = vmatprep.subr.bf16.mxu1 %v11696_v9  ;;  %v11745_v9 = vld [vmem:[%s16448_s5 + $0x3c8] ss:$16 sps:$4 sm:$0xff]  }
 0x48f   :  { %9286 = vmatpush1.bf16.msra.mxu0 %v11691_v60  ;;  %v11792_v60 = vld [vmem:[%s16448_s5 + $0x504] ss:$16 sps:$4 sm:$0xff]  }
 0x490   :  { %9432 = vmatpush1.bf16.msra.mxu1 %v11694_v40  ;;  %9287 = vmatprep.subr.bf16.mxu0 %v11699_v33  ;;  %v11753_v40 = vld [vmem:[%s16448_s5 + $0x3ec] ss:$16 sps:$4 sm:$0xff]   ;;  %v11790_v33 = vld [vmem:[%s16448_s5 + $0x500] ss:$16 sps:$4 sm:$0xff]  }
 0x491   :  { %9433 = vmatprep.subr.bf16.mxu1 %v11702_v46  ;;  %v11751_v46 = vld [vmem:[%s16448_s5 + $0x3e8] ss:$16 sps:$4 sm:$0xff]  }
 0x493   :  { %9288 = vmatpush1.bf16.msra.mxu0 %v11697_v12  ;;  %v11798_v12 = vld [vmem:[%s16448_s5 + $0x524] ss:$16 sps:$4 sm:$0xff]  }
 0x494   :  { %9434 = vmatpush1.bf16.msra.mxu1 %v11700_v36  ;;  %9289 = vmatprep.subr.bf16.mxu0 %v11705_v48  ;;  %v11759_v36 = vld [vmem:[%s16448_s5 + $0x40c] ss:$16 sps:$4 sm:$0xff]   ;;  %v11796_v48 = vld [vmem:[%s16448_s5 + $0x520] ss:$16 sps:$4 sm:$0xff]  }
 0x495   :  { %9435 = vmatprep.subr.bf16.mxu1 %v11708_v0  ;;  %v11757_v0 = vld [vmem:[%s16448_s5 + $0x408] ss:$16 sps:$4 sm:$0xff]  }
 0x497   :  { %9290 = vmatpush1.bf16.msra.mxu0 %v11703_v3  ;;  %v11804_v3 = vld [vmem:[%s16448_s5 + $0x544] ss:$16 sps:$4 sm:$0xff]  }
 0x498   :  { %9436 = vmatpush1.bf16.msra.mxu1 %v11706_v5  ;;  %9291 = vmatprep.subr.bf16.mxu0 %v11711_v11  ;;  %v11802_v5 = vld [vmem:[%s16448_s5 + $0x540] ss:$16 sps:$4 sm:$0xff]   ;;  %v11763_v11 = vld [vmem:[%s16448_s5 + $0x428] ss:$16 sps:$4 sm:$0xff]  }
 0x499   :  { %9437 = vmatprep.subr.bf16.mxu1 %v11714_v6  ;;  %v11810_v6 = vld [vmem:[%s16448_s5 + $0x564] ss:$16 sps:$4 sm:$0xff]  }
 0x49b   :  { %9292 = vmatpush1.bf16.msra.mxu0 %v11709_v10  ;;  %v11771_v10 = vld [vmem:[%s16448_s5 + $0x44c] ss:$16 sps:$4 sm:$0xff]  }
 0x49c   :  { %9438 = vmatpush1.bf16.msra.mxu1 %v11712_v17  ;;  %9293 = vmatprep.subr.bf16.mxu0 %v11717_v15  ;;  %v11769_v17 = vld [vmem:[%s16448_s5 + $0x448] ss:$16 sps:$4 sm:$0xff]   ;;  %v11816_v15 = vld [vmem:[%s16448_s5 + $0x584] ss:$16 sps:$4 sm:$0xff]  }
 0x49d   :  { %9439 = vmatprep.subr.bf16.mxu1 %v11720_v32  ;;  %v11777_v32 = vld [vmem:[%s16448_s5 + $0x46c] ss:$16 sps:$4 sm:$0xff]  }
 0x49f   :  { %9294 = vmatpush1.bf16.msra.mxu0 %v11715_v7  ;;  %v11814_v7 = vld [vmem:[%s16448_s5 + $0x580] ss:$16 sps:$4 sm:$0xff]  }
 0x4a0   :  { %9440 = vmatpush1.bf16.msra.mxu1 %v11718_v37  ;;  %9304 = vmatprep.subr.bf16.mxu0 %v11744_v47  ;;  %v11822_v37 = vld [vmem:[%s16448_s5 + $0x5a4] ss:$16 sps:$4 sm:$0xff]   ;;  %v11783_v47 = vld [vmem:[%s16448_s5 + $0x48c] ss:$16 sps:$4 sm:$0xff]  }
 0x4a1   :  { %9441 = vmatprep.subr.bf16.mxu1 %v11723_v59  ;;  %v11820_v59 = vld [vmem:[%s16448_s5 + $0x5a0] ss:$16 sps:$4 sm:$0xff]  }
 0x4a2   :  { %9296 = vmatmul.mubr.bf16.vlgmr.msra.gmra.mrb[16].mxu0 %v15772_v21 }
 0x4a3   :  { %9305 = vmatpush1.bf16.msra.mxu0 %v11742_v20  ;;  %v11781_v20 = vld [vmem:[%s16448_s5 + $0x488] ss:$16 sps:$4 sm:$0xff]  }
 0x4a4   :  { %9442 = vmatpush1.bf16.msra.mxu1 %v11721_v23  ;;  %9306 = vmatprep.subr.bf16.mxu0 %v11750_v24  ;;  %v11789_v23 = vld [vmem:[%s16448_s5 + $0x4ac] ss:$16 sps:$4 sm:$0xff]   ;;  %v11826_v24 = vld [vmem:[%s16448_s5 + $0x5c0] ss:$16 sps:$4 sm:$0xff]  }
 0x4a5   :  { %9443 = vmatprep.subr.bf16.mxu1 %v11726_v25  ;;  %v11787_v25 = vld [vmem:[%s16448_s5 + $0x4a8] ss:$16 sps:$4 sm:$0xff]  }
 0x4a7   :  { %9307 = vmatpush1.bf16.msra.mxu0 %v11748_v22  ;;  %v11834_v22 = vld [vmem:[%s16448_s5 + $0x5e4] ss:$16 sps:$4 sm:$0xff]  }
 0x4a8   :  { %9444 = vmatpush1.bf16.msra.mxu1 %v11724_v14  ;;  %9308 = vmatprep.subr.bf16.mxu0 %v11756_v57  ;;  %v11795_v14 = vld [vmem:[%s16448_s5 + $0x4cc] ss:$16 sps:$4 sm:$0xff]   ;;  %v11832_v57 = vld [vmem:[%s16448_s5 + $0x5e0] ss:$16 sps:$4 sm:$0xff]  }
 0x4a9   :  { %9445 = vmatprep.subr.bf16.mxu1 %v11729_v27  ;;  %v11793_v27 = vld [vmem:[%s16448_s5 + $0x4c8] ss:$16 sps:$4 sm:$0xff]  }
 0x4ab   :  { %9309 = vmatpush1.bf16.msra.mxu0 %v11754_v51  ;;  %v11840_v51 = vld [vmem:[%s16448_s5 + $0x604] ss:$16 sps:$4 sm:$0xff]  }
 0x4ac   :  { %9446 = vmatpush1.bf16.msra.mxu1 %v11727_v61  ;;  %9310 = vmatprep.subr.bf16.mxu0 %v11762_v1  ;;  %v11801_v61 = vld [vmem:[%s16448_s5 + $0x4ec] ss:$16 sps:$4 sm:$0xff]   ;;  %v11799_v1 = vld [vmem:[%s16448_s5 + $0x4e8] ss:$16 sps:$4 sm:$0xff]  }
 0x4ad   :  { %9447 = vmatprep.subr.bf16.mxu1 %v11732_v29  ;;  %v11807_v29 = vld [vmem:[%s16448_s5 + $0x50c] ss:$16 sps:$4 sm:$0xff]  }
 0x4af   :  { %9311 = vmatpush1.bf16.msra.mxu0 %v11760_v8  ;;  %v11805_v8 = vld [vmem:[%s16448_s5 + $0x508] ss:$16 sps:$4 sm:$0xff]  }
 0x4b0   :  { %9448 = vmatpush1.bf16.msra.mxu1 %v11730_v63  ;;  %9312 = vmatprep.subr.bf16.mxu0 %v11768_v30  ;;  %v11813_v63 = vld [vmem:[%s16448_s5 + $0x52c] ss:$16 sps:$4 sm:$0xff]   ;;  %v11811_v30 = vld [vmem:[%s16448_s5 + $0x528] ss:$16 sps:$4 sm:$0xff]  }
 0x4b1   :  { %9449 = vmatprep.subr.bf16.mxu1 %v11735_v31  ;;  %v11819_v31 = vld [vmem:[%s16448_s5 + $0x54c] ss:$16 sps:$4 sm:$0xff]  }
 0x4b3   :  { %9313 = vmatpush1.bf16.msra.mxu0 %v11766_v34  ;;  %v11817_v34 = vld [vmem:[%s16448_s5 + $0x548] ss:$16 sps:$4 sm:$0xff]  }
 0x4b4   :  { %9450 = vmatpush1.bf16.msra.mxu1 %v11733_v35  ;;  %9314 = vmatprep.subr.bf16.mxu0 %v11774_v28  ;;  %v11825_v35 = vld [vmem:[%s16448_s5 + $0x56c] ss:$16 sps:$4 sm:$0xff]   ;;  %v11823_v28 = vld [vmem:[%s16448_s5 + $0x568] ss:$16 sps:$4 sm:$0xff]  }
 0x4b5   :  { %9451 = vmatprep.subr.bf16.mxu1 %v11738_v13  ;;  %v11831_v13 = vld [vmem:[%s16448_s5 + $0x58c] ss:$16 sps:$4 sm:$0xff]  }
 0x4b7   :  { %9315 = vmatpush1.bf16.msra.mxu0 %v11772_v38  ;;  %v4411_v38 = vrot.slane %v15329_v52, %v566_v18 }
 0x4b8   :  { %9452 = vmatpush1.bf16.msra.mxu1 %v11736_v42  ;;  %9316 = vmatprep.subr.bf16.mxu0 %v11780_v44  ;;  %v4415_v42 = vrot.slane %v15329_v52, %v570_v19  ;;  %v11829_v44 = vld [vmem:[%s16448_s5 + $0x588] ss:$16 sps:$4 sm:$0xff]  }
 0x4b9   :  { %9453 = vmatprep.subr.bf16.mxu1 %v11741_v49  ;;  %v11835_v19 = vld [vmem:[%s16448_s5 + $0x5a8] ss:$16 sps:$4 sm:$0xff]  }
 0x4bb   :  { %9317 = vmatpush1.bf16.msra.mxu0 %v11778_v2  ;;  %v11837_v2 = vld [vmem:[%s16448_s5 + $0x5ac] ss:$16 sps:$4 sm:$0xff]  }
 0x4bc   :  { %9454 = vmatpush1.bf16.msra.mxu1 %v11739_v54  ;;  %9318 = vmatprep.subr.bf16.mxu0 %v11786_v55 }
 0x4bd   :  { %9455 = vmatprep.subr.bf16.mxu1 %v11747_v58 }
 0x4bf   :  { %9319 = vmatpush1.bf16.msra.mxu0 %v11784_v50 }
 0x4c0   :  { %9456 = vmatpush1.bf16.msra.mxu1 %v11745_v9  ;;  %9320 = vmatprep.subr.bf16.mxu0 %v11792_v60  ;;  %v11843_v60 = vld [vmem:[%s16448_s5 + $0x5cc] ss:$16 sps:$4 sm:$0xff]  }
 0x4c1   :  { %9457 = vmatprep.subr.bf16.mxu1 %v11753_v40 }
 0x4c3   :  { %9321 = vmatpush1.bf16.msra.mxu0 %v11790_v33  ;;  %v11838_v33 = vld [vmem:[%s16448_s5 + $0x600] ss:$16 sps:$4 sm:$0xff]  }
 0x4c4   :  { %9458 = vmatpush1.bf16.msra.mxu1 %v11751_v46  ;;  %9322 = vmatprep.subr.bf16.mxu0 %v11798_v12  ;;  %v11841_v12 = vld [vmem:[%s16448_s5 + $0x5c8] ss:$16 sps:$4 sm:$0xff]  }
 0x4c5   :  { %9468 = vmatprep.subr.bf16.mxu1 %v11759_v36  ;;  %v11846_v36 = vld [vmem:[%s16448_s5 + $0x624] ss:$16 sps:$4 sm:$0xff]  }
 0x4c7   :  { %9460 = vmatmul.mubr.bf16.vlgmr.msra.gmra.mrb[20].mxu1 %v15772_v21  ;;  %9323 = vmatpush1.bf16.msra.mxu0 %v11796_v48  ;;  %v11828_v21 = vld [vmem:[%s16448_s5 + $0x5c4] ss:$16 sps:$4 sm:$0xff]   ;;  %v11849_v48 = vld [vmem:[%s16448_s5 + $0x5ec] ss:$16 sps:$4 sm:$0xff]  }
 0x4c8   :  { %9469 = vmatpush1.bf16.msra.mxu1 %v11757_v0  ;;  %9324 = vmatprep.subr.bf16.mxu0 %v11804_v3  ;;  %v11844_v0 = vld [vmem:[%s16448_s5 + $0x620] ss:$16 sps:$4 sm:$0xff]   ;;  %v11847_v3 = vld [vmem:[%s16448_s5 + $0x5e8] ss:$16 sps:$4 sm:$0xff]  }
 0x4c9   :  { %9470 = vmatprep.subr.bf16.mxu1 %v11765_v4  ;;  %v11852_v4 = vld [vmem:[%s16448_s5 + $0x644] ss:$16 sps:$4 sm:$0xff]  }
 0x4cb   :  { %9325 = vmatpush1.bf16.msra.mxu0 %v11802_v5  ;;  %v11855_v5 = vld [vmem:[%s16448_s5 + $0x60c] ss:$16 sps:$4 sm:$0xff]  }
 0x4cc   :  { %9471 = vmatpush1.bf16.msra.mxu1 %v11763_v11  ;;  %9326 = vmatprep.subr.bf16.mxu0 %v11810_v6  ;;  %v11850_v11 = vld [vmem:[%s16448_s5 + $0x640] ss:$16 sps:$4 sm:$0xff]   ;;  %v11853_v6 = vld [vmem:[%s16448_s5 + $0x608] ss:$16 sps:$4 sm:$0xff]  }
 0x4cd   :  { %9472 = vmatprep.subr.bf16.mxu1 %v11771_v10  ;;  %v11858_v10 = vld [vmem:[%s16448_s5 + $0x664] ss:$16 sps:$4 sm:$0xff]  }
 0x4cf   :  { %9327 = vmatpush1.bf16.msra.mxu0 %v11808_v16  ;;  %v11861_v16 = vld [vmem:[%s16448_s5 + $0x62c] ss:$16 sps:$4 sm:$0xff]  }
 0x4d0   :  { %9473 = vmatpush1.bf16.msra.mxu1 %v11769_v17  ;;  %9328 = vmatprep.subr.bf16.mxu0 %v11816_v15  ;;  %v11856_v17 = vld [vmem:[%s16448_s5 + $0x660] ss:$16 sps:$4 sm:$0xff]   ;;  %v11859_v15 = vld [vmem:[%s16448_s5 + $0x628] ss:$16 sps:$4 sm:$0xff]  }
 0x4d1   :  { %9474 = vmatprep.subr.bf16.mxu1 %v11777_v32  ;;  %v11864_v32 = vld [vmem:[%s16448_s5 + $0x684] ss:$16 sps:$4 sm:$0xff]  }
 0x4d3   :  { %9329 = vmatpush1.bf16.msra.mxu0 %v11814_v7  ;;  %v11867_v7 = vld [vmem:[%s16448_s5 + $0x64c] ss:$16 sps:$4 sm:$0xff]  }
 0x4d4   :  { %9475 = vmatpush1.bf16.msra.mxu1 %v11775_v45  ;;  %9330 = vmatprep.subr.bf16.mxu0 %v11822_v37  ;;  %v11862_v45 = vld [vmem:[%s16448_s5 + $0x680] ss:$16 sps:$4 sm:$0xff]   ;;  %v11865_v37 = vld [vmem:[%s16448_s5 + $0x648] ss:$16 sps:$4 sm:$0xff]  }
 0x4d5   :  { %9476 = vmatprep.subr.bf16.mxu1 %v11783_v47  ;;  %v11870_v47 = vld [vmem:[%s16448_s5 + $0x6a4] ss:$16 sps:$4 sm:$0xff]  }
 0x4d7   :  { %9331 = vmatpush1.bf16.msra.mxu0 %v11820_v59  ;;  %v11873_v59 = vld [vmem:[%s16448_s5 + $0x66c] ss:$16 sps:$4 sm:$0xff]  }
 0x4d8   :  { %9477 = vmatpush1.bf16.msra.mxu1 %v11781_v20  ;;  %9332 = vmatprep.subr.bf16.mxu0 %v11828_v21  ;;  %v11868_v20 = vld [vmem:[%s16448_s5 + $0x6a0] ss:$16 sps:$4 sm:$0xff]   ;;  %v11871_v21 = vld [vmem:[%s16448_s5 + $0x668] ss:$16 sps:$4 sm:$0xff]  }
 0x4d9   :  { %9478 = vmatprep.subr.bf16.mxu1 %v11789_v23  ;;  %v11876_v23 = vld [vmem:[%s16448_s5 + $0x6c4] ss:$16 sps:$4 sm:$0xff]  }
 0x4db   :  { %9333 = vmatpush1.bf16.msra.mxu0 %v11826_v24  ;;  %v11879_v24 = vld [vmem:[%s16448_s5 + $0x68c] ss:$16 sps:$4 sm:$0xff]  }
 0x4dc   :  { %9479 = vmatpush1.bf16.msra.mxu1 %v11787_v25  ;;  %9334 = vmatprep.subr.bf16.mxu0 %v11834_v22  ;;  %v11874_v25 = vld [vmem:[%s16448_s5 + $0x6c0] ss:$16 sps:$4 sm:$0xff]   ;;  %v11877_v22 = vld [vmem:[%s16448_s5 + $0x688] ss:$16 sps:$4 sm:$0xff]  }
 0x4dd   :  { %9480 = vmatprep.subr.bf16.mxu1 %v11795_v14  ;;  %v11882_v14 = vld [vmem:[%s16448_s5 + $0x6e4] ss:$16 sps:$4 sm:$0xff]  }
 0x4df   :  { %9335 = vmatpush1.bf16.msra.mxu0 %v11832_v57  ;;  %v11885_v57 = vld [vmem:[%s16448_s5 + $0x6ac] ss:$16 sps:$4 sm:$0xff]  }
 0x4e0   :  { %9481 = vmatpush1.bf16.msra.mxu1 %v11793_v27  ;;  %9345 = vmatprep.subr.bf16.mxu0 %v11840_v51  ;;  %v11880_v27 = vld [vmem:[%s16448_s5 + $0x6e0] ss:$16 sps:$4 sm:$0xff]  }
 0x4e1   :  { %9482 = vmatprep.subr.bf16.mxu1 %v11801_v61  ;;  %v12038_v51 = vld [vmem:[%s16447_s4] sm:$0xff] }
 0x4e2   :  { %v4423_v61 = vrot.slane %v12038_v51, %v578_v56  ;;  %v11886_v56 = vld [vmem:[%s16448_s5 + $0x700] ss:$16 sps:$4 sm:$0xff]  }
 0x4e4   :  { %9483 = vmatpush1.bf16.msra.mxu1 %v11799_v1  ;;  %v11883_v1 = vld [vmem:[%s16448_s5 + $0x6a8] ss:$16 sps:$4 sm:$0xff]  }
 0x4e5   :  { %9484 = vmatprep.subr.bf16.mxu1 %v11807_v29  ;;  %v11888_v29 = vld [vmem:[%s16448_s5 + $0x704] ss:$16 sps:$4 sm:$0xff]  }
 0x4e8   :  { %9485 = vmatpush1.bf16.msra.mxu1 %v11805_v8  ;;  %v11891_v8 = vld [vmem:[%s16448_s5 + $0x6cc] ss:$16 sps:$4 sm:$0xff]  }
 0x4e9   :  { %9486 = vmatprep.subr.bf16.mxu1 %v11813_v63 }
 0x4ec   :  { %9487 = vmatpush1.bf16.msra.mxu1 %v11811_v30 }
 0x4ed   :  { %9488 = vmatprep.subr.bf16.mxu1 %v11819_v31 }
 0x4f0   :  { %9489 = vmatpush1.bf16.msra.mxu1 %v11817_v34 }
 0x4f1   :  { %9490 = vmatprep.subr.bf16.mxu1 %v11825_v35  ;;  %v11889_v35 = vld [vmem:[%s16448_s5 + $0x6c8] ss:$16 sps:$4 sm:$0xff]  }
 0x4f4   :  { %9491 = vmatpush1.bf16.msra.mxu1 %v11823_v28  ;;  %v11894_v28 = vld [vmem:[%s16448_s5 + $0x724] ss:$16 sps:$4 sm:$0xff]  }
 0x4f5   :  { %v7477_v49 = vpop.f32.mrb[12].mxu0  ;;  %9492 = vmatprep.subr.bf16.mxu1 %v11831_v13 }
 0x4f6   :  { %v11423_v54 = vadd.f32 %v7477_v49, %v4411_v38  ;;  %v7479_v55 = vpop.f32.mrb[13].mxu0  ;;  %v11897_v38 = vld [vmem:[%s16448_s5 + $0x6ec] ss:$16 sps:$4 sm:$0xff]  }
 0x4f7   :  { %v11424_v58 = vadd.f32 %v7479_v55, %v4415_v42  ;;  %v7481_v50 = vpop.f32.mrb[14].mxu0  ;;  %v11903_v55 = vld [vmem:[%s16448_s5 + $0x70c] ss:$16 sps:$4 sm:$0xff]  }
 0x4f8   :  { %v7652_v18 = vmax.f32 %v11423_v54, 0.0  ;;  %v7482_v9 = vpop.f32.mrb[15].mxu0  ;;  %9493 = vmatpush1.bf16.msra.mxu1 %v11829_v44  ;;  %v11892_v44 = vld [vmem:[%s16448_s5 + $0x720] ss:$16 sps:$4 sm:$0xff]   ;;  %v11900_v54 = vld [vmem:[%s16448_s5 + $0x744] ss:$16 sps:$4 sm:$0xff]  }
 0x4f9   :  { %v7653_v52 = vmax.f32 %v11424_v58, 0.0  ;;  %9494 = vmatprep.subr.bf16.mxu1 %v11837_v2  ;;  %v11895_v2 = vld [vmem:[%s16448_s5 + $0x6e8] ss:$16 sps:$4 sm:$0xff]   ;;  %v11898_v58 = vld [vmem:[%s16448_s5 + $0x740] ss:$16 sps:$4 sm:$0xff]  }
 0x4fa   :  { %v7660_v46 = vpack.c.bf16 %v7652_v18, %v7652_v18  ;;  %v11901_v50 = vld [vmem:[%s16448_s5 + $0x708] ss:$16 sps:$4 sm:$0xff]   ;;  %v11906_v18 = vld [vmem:[%s16448_s5 + $0x764] ss:$16 sps:$4 sm:$0xff]   ;;  %v11909_v9 = vld [vmem:[%s16448_s5 + $0x72c] ss:$16 sps:$4 sm:$0xff]  }
 0x4fb   :  { %v7661_v40 = vpack.c.bf16 %v7653_v52, %v7653_v52  ;;  %v11907_v52 = vld [vmem:[%s16448_s5 + $0x728] ss:$16 sps:$4 sm:$0xff]  }
 0x4fc   :  { %9495 = vmatpush1.bf16.msra.mxu1 %v11835_v19  ;;  %v11904_v19 = vld [vmem:[%s16448_s5 + $0x760] ss:$16 sps:$4 sm:$0xff]  }
 0x4fd   :  { %9336 = vmatprep.mubr.bf16.mxu0 %v7661_v40  ;;  %9500 = vmatprep.mubr.bf16.mxu1 %v7661_v40  ;;  %v11915_v40 = vld [vmem:[%s16448_s5 + $0x74c] ss:$16 sps:$4 sm:$0xff]  }
 0x4fe   :  { %9337 = vmatmul.mubr.bf16.vlgmr.msra.gmra.mrb[16].mxu0 %v7660_v46  ;;  %9496 = vmatprep.subr.bf16.mxu1 %v11843_v60  ;;  %v11912_v60 = vld [vmem:[%s16448_s5 + $0x784] ss:$16 sps:$4 sm:$0xff]  }
 0x4ff   :  { %9346 = vmatpush1.bf16.msra.mxu0 %v11838_v33  ;;  %v11910_v33 = vld [vmem:[%s16448_s5 + $0x780] ss:$16 sps:$4 sm:$0xff]  }
 0x500   :  { %9497 = vmatpush1.bf16.msra.mxu1 %v11841_v12  ;;  %9347 = vmatprep.subr.bf16.mxu0 %v11846_v36  ;;  %v11918_v12 = vld [vmem:[%s16448_s5 + $0x7a4] ss:$16 sps:$4 sm:$0xff]   ;;  %v11921_v36 = vld [vmem:[%s16448_s5 + $0x76c] ss:$16 sps:$4 sm:$0xff]  }
 0x501   :  { %9498 = vmatprep.subr.bf16.mxu1 %v11849_v48  ;;  %v11916_v48 = vld [vmem:[%s16448_s5 + $0x7a0] ss:$16 sps:$4 sm:$0xff]  }
 0x503   :  { %9348 = vmatpush1.bf16.msra.mxu0 %v11844_v0  ;;  %v4419_v0 = vrot.slane %v12038_v51, %v574_v26  ;;  %v11957_v51 = vld [vmem:[%s16450_s7 + $0x54] ss:$8 sps:$4 sm:$0xff]  }
 0x504   :  { %9499 = vmatpush1.bf16.msra.mxu1 %v11847_v3  ;;  %9349 = vmatprep.subr.bf16.mxu0 %v11852_v4  ;;  %v11919_v3 = vld [vmem:[%s16448_s5 + $0x768] ss:$16 sps:$4 sm:$0xff]   ;;  %v11924_v4 = vld [vmem:[%s16448_s5 + $0x7c4] ss:$16 sps:$4 sm:$0xff]  }
 0x505   :  { %9509 = vmatprep.subr.bf16.mxu1 %v11855_v5  ;;  %v11927_v5 = vld [vmem:[%s16448_s5 + $0x78c] ss:$16 sps:$4 sm:$0xff]  }
 0x507   :  { %9350 = vmatpush1.bf16.msra.mxu0 %v11850_v11  ;;  %9501 = vmatmul.mubr.bf16.vlgmr.msra.gmra.mrb[20].mxu1 %v7660_v46  ;;  %v11913_v46 = vld [vmem:[%s16448_s5 + $0x748] ss:$16 sps:$4 sm:$0xff]  }
 0x508   :  { %9510 = vmatpush1.bf16.msra.mxu1 %v11853_v6  ;;  %9351 = vmatprep.subr.bf16.mxu0 %v11858_v10  ;;  %v11925_v11 = vld [vmem:[%s16448_s5 + $0x788] ss:$16 sps:$4 sm:$0xff]   ;;  %v11930_v6 = vld [vmem:[%s16448_s5 + $0x7e4] ss:$16 sps:$4 sm:$0xff]   ;;  %v11933_v10 = vld [vmem:[%s16448_s5 + $0x7ac] ss:$16 sps:$4 sm:$0xff]  }
 0x509   :  { %9511 = vmatprep.subr.bf16.mxu1 %v11861_v16  ;;  %v11928_v16 = vld [vmem:[%s16448_s5 + $0x7e0] ss:$16 sps:$4 sm:$0xff]  }
 0x50b   :  { %9352 = vmatpush1.bf16.msra.mxu0 %v11856_v17 }
 0x50c   :  { %9512 = vmatpush1.bf16.msra.mxu1 %v11859_v15  ;;  %9353 = vmatprep.subr.bf16.mxu0 %v11864_v32  ;;  %v11931_v15 = vld [vmem:[%s16448_s5 + $0x7a8] ss:$16 sps:$4 sm:$0xff]   ;;  %v11942_v32 = vld [vmem:[%s16450_s7 + $0x4] ss:$8 sps:$4 sm:$0xff]  }
 0x50d   :  { %9513 = vmatprep.subr.bf16.mxu1 %v11867_v7  ;;  %v11936_v7 = vld [vmem:[%s16448_s5 + $0x7cc] ss:$16 sps:$4 sm:$0xff]  }
 0x50f   :  { %9354 = vmatpush1.bf16.msra.mxu0 %v11862_v45  ;;  %v11940_v45 = vld [vmem:[%s16450_s7] ss:$8 sps:$4 sm:$0xff]  }
 0x510   :  { %9514 = vmatpush1.bf16.msra.mxu1 %v11865_v37  ;;  %9355 = vmatprep.subr.bf16.mxu0 %v11870_v47  ;;  %v11934_v47 = vld [vmem:[%s16448_s5 + $0x7c8] ss:$16 sps:$4 sm:$0xff]  }
 0x511   :  { %9515 = vmatprep.subr.bf16.mxu1 %v11873_v59  ;;  %v11945_v59 = vld [vmem:[%s16450_s7 + $0x14] ss:$8 sps:$4 sm:$0xff]  }
 0x513   :  { %9356 = vmatpush1.bf16.msra.mxu0 %v11868_v20  ;;  %v11939_v20 = vld [vmem:[%s16448_s5 + $0x7ec] ss:$16 sps:$4 sm:$0xff]  }
 0x514   :  { %9516 = vmatpush1.bf16.msra.mxu1 %v11871_v21  ;;  %9357 = vmatprep.subr.bf16.mxu0 %v11876_v23  ;;  %v11943_v21 = vld [vmem:[%s16450_s7 + $0x10] ss:$8 sps:$4 sm:$0xff]  }
 0x515   :  { %9517 = vmatprep.subr.bf16.mxu1 %v11879_v24  ;;  %v11937_v23 = vld [vmem:[%s16448_s5 + $0x7e8] ss:$16 sps:$4 sm:$0xff]   ;;  %v11948_v24 = vld [vmem:[%s16450_s7 + $0x24] ss:$8 sps:$4 sm:$0xff]  }
 0x517   :  { %9358 = vmatpush1.bf16.msra.mxu0 %v11874_v25  ;;  %v11946_v25 = vld [vmem:[%s16450_s7 + $0x20] ss:$8 sps:$4 sm:$0xff]  }
 0x518   :  { %9518 = vmatpush1.bf16.msra.mxu1 %v11877_v22  ;;  %9359 = vmatprep.subr.bf16.mxu0 %v11882_v14  ;;  %v11951_v22 = vld [vmem:[%s16450_s7 + $0x34] ss:$8 sps:$4 sm:$0xff]   ;;  %v11949_v14 = vld [vmem:[%s16450_s7 + $0x30] ss:$8 sps:$4 sm:$0xff]  }
 0x519   :  { %9519 = vmatprep.subr.bf16.mxu1 %v11885_v57  ;;  %v11954_v57 = vld [vmem:[%s16450_s7 + $0x44] ss:$8 sps:$4 sm:$0xff]  }
 0x51a   :  { %v7641_v63 = vpop.f32.mrb[16].mxu1 }
 0x51b   :  { %9360 = vmatpush1.bf16.msra.mxu0 %v11880_v27  ;;  %v7643_v30 = vpop.f32.mrb[17].mxu1  ;;  %v11425_v26 = vadd.f32 %v7641_v63, %v4419_v0  ;;  %v11952_v27 = vld [vmem:[%s16450_s7 + $0x40] ss:$8 sps:$4 sm:$0xff]   ;;  %v11961_v63 = vld [vmem:[%s16450_s7 + $0x70] ss:$8 sps:$4 sm:$0xff]  }
 0x51c   :  { %v11426_v31 = vadd.f32 %v7643_v30, %v4423_v61  ;;  %v7645_v34 = vpop.f32.mrb[18].mxu1  ;;  %9520 = vmatpush1.bf16.msra.mxu1 %v11883_v1  ;;  %9361 = vmatprep.subr.bf16.mxu0 %v11888_v29  ;;  %v11955_v61 = vld [vmem:[%s16450_s7 + $0x50] ss:$8 sps:$4 sm:$0xff]   ;;  %v11960_v1 = vld [vmem:[%s16450_s7 + $0x64] ss:$8 sps:$4 sm:$0xff]  }
 0x51d   :  { %v7646_v13 = vpop.f32.mrb[19].mxu1  ;;  %9521 = vmatprep.subr.bf16.mxu1 %v11891_v8  ;;  %v7654_v17 = vmax.f32 %v11425_v26, 0.0  ;;  %v11958_v29 = vld [vmem:[%s16450_s7 + $0x60] ss:$8 sps:$4 sm:$0xff]   ;;  %v11963_v8 = vld [vmem:[%s16450_s7 + $0x74] ss:$8 sps:$4 sm:$0xff]  }
 0x51e   :  { %v7655_v42 = vmax.f32 %v11426_v31, 0.0  ;;  %v11966_v30 = vld [vmem:[%s16450_s7 + $0x84] ss:$8 sps:$4 sm:$0xff]   ;;  %v11969_v31 = vld [vmem:[%s16450_s7 + $0x94] ss:$8 sps:$4 sm:$0xff]  }
 0x51f   :  { %9362 = vmatpush1.bf16.msra.mxu0 %v11886_v56  ;;  %v7662_v37 = vpack.c.bf16 %v7654_v17, %v7654_v17  ;;  %v11964_v56 = vld [vmem:[%s16450_s7 + $0x80] ss:$8 sps:$4 sm:$0xff]   ;;  %v11967_v34 = vld [vmem:[%s16450_s7 + $0x90] ss:$8 sps:$4 sm:$0xff]   ;;  %v11975_v13 = vld [vmem:[%s16450_s7 + $0xb4] ss:$8 sps:$4 sm:$0xff]  }
 0x520   :  { %v7663_v49 = vpack.c.bf16 %v7655_v42, %v7655_v42  ;;  %9522 = vmatpush1.bf16.msra.mxu1 %v11889_v35  ;;  %9363 = vmatprep.subr.bf16.mxu0 %v11894_v28  ;;  %v11972_v35 = vld [vmem:[%s16450_s7 + $0xa4] ss:$8 sps:$4 sm:$0xff]   ;;  %v11970_v28 = vld [vmem:[%s16450_s7 + $0xa0] ss:$8 sps:$4 sm:$0xff]   ;;  %v11993_v26 = vld [vmem:[%s16450_s7 + $0x114] ss:$8 sps:$4 sm:$0xff]  }
 0x521   :  { %9523 = vmatprep.subr.bf16.mxu1 %v11897_v38  ;;  %v11973_v38 = vld [vmem:[%s16450_s7 + $0xb0] ss:$8 sps:$4 sm:$0xff]   ;;  %v11978_v42 = vld [vmem:[%s16450_s7 + $0xc4] ss:$8 sps:$4 sm:$0xff]  }
 0x522   :  { %9377 = vmatprep.mubr.bf16.mxu0 %v7663_v49  ;;  %9541 = vmatprep.mubr.bf16.mxu1 %v7663_v49  ;;  %v11981_v49 = vld [vmem:[%s16450_s7 + $0xd4] ss:$8 sps:$4 sm:$0xff]  }
 0x523   :  { %9364 = vmatpush1.bf16.msra.mxu0 %v11892_v44  ;;  %v11976_v44 = vld [vmem:[%s16450_s7 + $0xc0] ss:$8 sps:$4 sm:$0xff]  }
 0x524   :  { %9524 = vmatpush1.bf16.msra.mxu1 %v11895_v2  ;;  %9365 = vmatprep.subr.bf16.mxu0 %v11900_v54  ;;  %v11979_v2 = vld [vmem:[%s16450_s7 + $0xd0] ss:$8 sps:$4 sm:$0xff]   ;;  %v11984_v54 = vld [vmem:[%s16450_s7 + $0xe4] ss:$8 sps:$4 sm:$0xff]  }
 0x525   :  { %9525 = vmatprep.subr.bf16.mxu1 %v11903_v55  ;;  %v11982_v55 = vld [vmem:[%s16450_s7 + $0xe0] ss:$8 sps:$4 sm:$0xff]  }
 0x527   :  { %9366 = vmatpush1.bf16.msra.mxu0 %v11898_v58  ;;  %v11987_v58 = vld [vmem:[%s16450_s7 + $0xf4] ss:$8 sps:$4 sm:$0xff]  }
 0x528   :  { %9526 = vmatpush1.bf16.msra.mxu1 %v11901_v50  ;;  %9367 = vmatprep.subr.bf16.mxu0 %v11906_v18  ;;  %v11985_v50 = vld [vmem:[%s16450_s7 + $0xf0] ss:$8 sps:$4 sm:$0xff]   ;;  %v11990_v18 = vld [vmem:[%s16450_s7 + $0x104] ss:$8 sps:$4 sm:$0xff]  }
 0x529   :  { %9527 = vmatprep.subr.bf16.mxu1 %v11909_v9  ;;  %v16320_v9 = vld [vmem:[%s16449_s6] sm:$0xf] }
 0x52b   :  { %9368 = vmatpush1.bf16.msra.mxu0 %v11904_v19  ;;  %v7925_v19 = vrot.slane %v16320_v9, %v13406_v41 }
 0x52c   :  { %9528 = vmatpush1.bf16.msra.mxu1 %v11907_v52  ;;  %9369 = vmatprep.subr.bf16.mxu0 %v11912_v60  ;;  %v7929_v52 = vrot.slane %v16320_v9, %v13420_v53 }
 0x52d   :  { %9529 = vmatprep.subr.bf16.mxu1 %v11915_v40 }
 0x52f   :  { %9370 = vmatpush1.bf16.msra.mxu0 %v11910_v33 }
 0x530   :  { %9530 = vmatpush1.bf16.msra.mxu1 %v11913_v46  ;;  %9371 = vmatprep.subr.bf16.mxu0 %v11918_v12 }
 0x531   :  { %9531 = vmatprep.subr.bf16.mxu1 %v11921_v36 }
 0x533   :  { %9372 = vmatpush1.bf16.msra.mxu0 %v11916_v48 }
 0x534   :  { %9532 = vmatpush1.bf16.msra.mxu1 %v11919_v3  ;;  %9373 = vmatprep.subr.bf16.mxu0 %v11924_v4  ;;  %v11988_v4 = vld [vmem:[%s16450_s7 + $0x100] ss:$8 sps:$4 sm:$0xff]  }
 0x535   :  { %9533 = vmatprep.subr.bf16.mxu1 %v11927_v5 }
 0x537   :  { %9374 = vmatpush1.bf16.msra.mxu0 %v11922_v43  ;;  %v7937_v43 = vrot.slane %v16320_v9, %v13836_v39  ;;  %v11996_v39 = vld [vmem:[%s16450_s7 + $0x124] ss:$8 sps:$4 sm:$0xff]  }
 0x538   :  { %9534 = vmatpush1.bf16.msra.mxu1 %v11925_v11  ;;  %9375 = vmatprep.subr.bf16.mxu0 %v11930_v6 }
 0x539   :  { %9535 = vmatprep.subr.bf16.mxu1 %v11933_v10  ;;  %v11991_v10 = vld [vmem:[%s16450_s7 + $0x110] ss:$8 sps:$4 sm:$0xff]  }
 0x53b   :  { %9376 = vmatpush1.bf16.msra.mxu0 %v11928_v16 }
 0x53c   :  { %9536 = vmatpush1.bf16.msra.mxu1 %v11931_v15  ;;  %9954 = vmatprep.subr.bf16.mxu0 %v11942_v32 }
 0x53d   :  { %9537 = vmatprep.subr.bf16.mxu1 %v11936_v7  ;;  %v11994_v7 = vld [vmem:[%s16450_s7 + $0x120] ss:$8 sps:$4 sm:$0xff]  }
 0x53e   :  { %9378 = vmatmul.mubr.bf16.vlgmr.msra.gmra.mrb[16].mxu0 %v7662_v37 }
 0x53f   :  { %9955 = vmatpush1.bf16.msra.mxu0 %v11940_v45 }
 0x540   :  { %9538 = vmatpush1.bf16.msra.mxu1 %v11934_v47  ;;  %9956 = vmatprep.subr.bf16.mxu0 %v11945_v59  ;;  %v11997_v47 = vld [vmem:[%s16450_s7 + $0x130] ss:$8 sps:$4 sm:$0xff]   ;;  %v12002_v59 = vld [vmem:[%s16450_s7 + $0x144] ss:$8 sps:$4 sm:$0xff]  }
 0x541   :  { %9539 = vmatprep.subr.bf16.mxu1 %v11939_v20  ;;  %v12000_v20 = vld [vmem:[%s16450_s7 + $0x140] ss:$8 sps:$4 sm:$0xff]  }
 0x543   :  { %9957 = vmatpush1.bf16.msra.mxu0 %v11943_v21  ;;  %v12005_v21 = vld [vmem:[%s16450_s7 + $0x154] ss:$8 sps:$4 sm:$0xff]  }
 0x544   :  { %9540 = vmatpush1.bf16.msra.mxu1 %v11937_v23  ;;  %9958 = vmatprep.subr.bf16.mxu0 %v11948_v24  ;;  %v12003_v23 = vld [vmem:[%s16450_s7 + $0x150] ss:$8 sps:$4 sm:$0xff]   ;;  %v12008_v24 = vld [vmem:[%s16450_s7 + $0x164] ss:$8 sps:$4 sm:$0xff]  }
 0x547   :  { %9542 = vmatmul.mubr.bf16.vlgmr.msra.gmra.mrb[20].mxu1 %v7662_v37  ;;  %9959 = vmatpush1.bf16.msra.mxu0 %v11946_v25  ;;  %v11999_v37 = vld [vmem:[%s16450_s7 + $0x134] ss:$8 sps:$4 sm:$0xff]   ;;  %v12006_v25 = vld [vmem:[%s16450_s7 + $0x160] ss:$8 sps:$4 sm:$0xff]  }
 0x548   :  { %9960 = vmatprep.subr.bf16.mxu0 %v11951_v22  ;;  %v12011_v22 = vld [vmem:[%s16450_s7 + $0x174] ss:$8 sps:$4 sm:$0xff]  }
 0x54b   :  { %9961 = vmatpush1.bf16.msra.mxu0 %v11949_v14  ;;  %v12009_v14 = vld [vmem:[%s16450_s7 + $0x170] ss:$8 sps:$4 sm:$0xff]  }
 0x54c   :  { %9962 = vmatprep.subr.bf16.mxu0 %v11954_v57  ;;  %v12014_v57 = vld [vmem:[%s16450_s7 + $0x184] ss:$8 sps:$4 sm:$0xff]  }
 0x54f   :  { %9963 = vmatpush1.bf16.msra.mxu0 %v11952_v27  ;;  %v12012_v27 = vld [vmem:[%s16450_s7 + $0x180] ss:$8 sps:$4 sm:$0xff]  }
 0x550   :  { %9964 = vmatprep.subr.bf16.mxu0 %v11957_v51  ;;  %v12017_v51 = vld [vmem:[%s16450_s7 + $0x194] ss:$8 sps:$4 sm:$0xff]  }
 0x553   :  { %9965 = vmatpush1.bf16.msra.mxu0 %v11955_v61  ;;  %v12015_v61 = vld [vmem:[%s16450_s7 + $0x190] ss:$8 sps:$4 sm:$0xff]  }
 0x554   :  { %9966 = vmatprep.subr.bf16.mxu0 %v11960_v1  ;;  %v12020_v1 = vld [vmem:[%s16450_s7 + $0x1a4] ss:$8 sps:$4 sm:$0xff]  }
 0x557   :  { %9967 = vmatpush1.bf16.msra.mxu0 %v11958_v29  ;;  %v12018_v29 = vld [vmem:[%s16450_s7 + $0x1a0] ss:$8 sps:$4 sm:$0xff]  }
 0x558   :  { %9968 = vmatprep.subr.bf16.mxu0 %v11963_v8  ;;  %v12023_v8 = vld [vmem:[%s16450_s7 + $0x1b4] ss:$8 sps:$4 sm:$0xff]  }
 0x55b   :  { %9969 = vmatpush1.bf16.msra.mxu0 %v11961_v63  ;;  %v12021_v63 = vld [vmem:[%s16450_s7 + $0x1b0] ss:$8 sps:$4 sm:$0xff]  }
 0x55c   :  { %9970 = vmatprep.subr.bf16.mxu0 %v11966_v30  ;;  %v12026_v30 = vld [vmem:[%s16450_s7 + $0x1c4] ss:$8 sps:$4 sm:$0xff]  }
 0x55f   :  { %9971 = vmatpush1.bf16.msra.mxu0 %v11964_v56  ;;  %v12024_v56 = vld [vmem:[%s16450_s7 + $0x1c0] ss:$8 sps:$4 sm:$0xff]  }
 0x560   :  { %9972 = vmatprep.subr.bf16.mxu0 %v11969_v31  ;;  %v12029_v31 = vld [vmem:[%s16450_s7 + $0x1d4] ss:$8 sps:$4 sm:$0xff]  }
 0x563   :  { %9973 = vmatpush1.bf16.msra.mxu0 %v11967_v34  ;;  %v12027_v34 = vld [vmem:[%s16450_s7 + $0x1d0] ss:$8 sps:$4 sm:$0xff]  }
 0x564   :  { %9974 = vmatprep.subr.bf16.mxu0 %v11972_v35  ;;  %v7933_v35 = vrot.slane %v16320_v9, %v13942_v62  ;;  %v12033_v62 = vld [vmem:[%s16450_s7 + $0x1f0] ss:$8 sps:$4 sm:$0xff]  }
 0x567   :  { %9975 = vmatpush1.bf16.msra.mxu0 %v11970_v28  ;;  %v12032_v28 = vld [vmem:[%s16450_s7 + $0x1e4] ss:$8 sps:$4 sm:$0xff]  }
 0x568   :  { %9976 = vmatprep.subr.bf16.mxu0 %v11975_v13  ;;  %v12030_v13 = vld [vmem:[%s16450_s7 + $0x1e0] ss:$8 sps:$4 sm:$0xff]  }
 0x56b   :  { %9977 = vmatpush1.bf16.msra.mxu0 %v11973_v38 }
 0x56c   :  { %9978 = vmatprep.subr.bf16.mxu0 %v11978_v42  ;;  %v12035_v42 = vld [vmem:[%s16450_s7 + $0x1f4] ss:$8 sps:$4 sm:$0xff]   ;;  %s12064_s7 = smov [#allocation2]  }
 0x56d   :  { %s10056_s0 = sshll.u32 %s12064_s7, 4  ;;  %s10057_s0 = int_to_ptr.vmem [resolvable:$true] %s10056_s0 }
 0x56e   :  { %s12039_s12 = scalar_lea.vmem %s10057_s0, 64  ;;  %p12044_p1 = scmp.lt.s32.totalorder %s10057_s0, %s10057_s0 }
 0x56f   :  { %9979 = vmatpush1.bf16.msra.mxu0 %v11976_v44  ;;  %p12040_p0 = scmp.ne.s32.totalorder %s10057_s0, %s12039_s12  ;;  %p12045_p2 = scmp.lt.s32.totalorder %s12039_s12, %s12039_s12 }
 0x570   :  { %9980 = vmatprep.subr.bf16.mxu0 %v11981_v49 }
 0x571   :  { %p12046_p3 = por %p12045_p2, %p12044_p1 }
 0x573   :  { %9981 = vmatpush1.bf16.msra.mxu0 %v11979_v2  ;;  %v9622_v2 = vld [vmem:[%s16451_s8] sm:$0x3]  ;;  %p12047_p4 = pnand %p12046_p3, %p12040_p0 }
 0x574   :  { %9982 = vmatprep.subr.bf16.mxu0 %v11984_v54  ;;  %v9627_v54 = vrot.slane %v9622_v2, %v13406_v41 }
 0x577   :  { %9983 = vmatpush1.bf16.msra.mxu0 %v11982_v55  ;;  %v9631_v55 = vrot.slane %v9622_v2, %v13420_v53 }
 0x578   :  { %9984 = vmatprep.subr.bf16.mxu0 %v11987_v58 }
 0x57b   :  { %9985 = vmatpush1.bf16.msra.mxu0 %v11985_v50 }
 0x57c   :  { %9995 = vmatprep.subr.bf16.mxu0 %v11990_v18 }
 0x611   :  { %v9379_v60 = vpop.f32.mrb[16].mxu0 }
 0x612   :  { %v11427_v40 = vadd.f32 %v9379_v60, %v7925_v19  ;;  %v9381_v33 = vpop.f32.mrb[17].mxu0 }
 0x613   :  { %v11428_v46 = vadd.f32 %v9381_v33, %v7929_v52  ;;  %v9383_v12 = vpop.f32.mrb[18].mxu0 }
 0x614   :  { %v9550_v36 = vmax.f32 %v11427_v40, 0.0  ;;  %v9384_v48 = vpop.f32.mrb[19].mxu0 }
 0x615   :  { %v9551_v0 = vmax.f32 %v11428_v46, 0.0 }
 0x616   :  { %v9554_v5 = vpack.c.bf16 %v9550_v36, %v9550_v36 }
 0x617   :  { %v9555_v3 = vpack.c.bf16 %v9551_v0, %v9551_v0 }
 0x619   :  { %9986 = vmatprep.mubr.bf16.mxu0 %v9555_v3 }
 0x61a   :  { %9987 = vmatmul.mubr.bf16.vlgmr.msra.gmra.mrb[20].mxu0 %v9554_v5  ;;  %v16334_v11 = vpop.f32.mrb[20].mxu1 }
 0x61b   :  { %9996 = vmatpush1.bf16.msra.mxu0 %v11988_v4  ;;  %v9545_v6 = vpop.f32.mrb[21].mxu1  ;;  %v11429_v38 = vadd.f32 %v16334_v11, %v7933_v35 }
 0x61c   :  { %v11430_v16 = vadd.f32 %v9545_v6, %v7937_v43  ;;  %v9547_v17 = vpop.f32.mrb[22].mxu1  ;;  %9997 = vmatprep.subr.bf16.mxu0 %v11993_v26 }
 0x61d   :  { %v9548_v15 = vpop.f32.mrb[23].mxu1  ;;  %v9552_v44 = vmax.f32 %v11429_v38, 0.0 }
 0x61e   :  { %v9553_v32 = vmax.f32 %v11430_v16, 0.0 }
 0x61f   :  { %9998 = vmatpush1.bf16.msra.mxu0 %v11991_v10  ;;  %v9556_v49 = vpack.c.bf16 %v9552_v44, %v9552_v44 }
 0x620   :  { %v9557_v45 = vpack.c.bf16 %v9553_v32, %v9553_v32  ;;  %9999 = vmatprep.subr.bf16.mxu0 %v11996_v39 }
 0x622   :  { %10027 = vmatprep.mubr.bf16.mxu0 %v9557_v45 }
 0x623   :  { %10000 = vmatpush1.bf16.msra.mxu0 %v11994_v7 }
 0x624   :  { %10001 = vmatprep.subr.bf16.mxu0 %v11999_v37 }
 0x627   :  { %10002 = vmatpush1.bf16.msra.mxu0 %v11997_v47 }
 0x628   :  { %10003 = vmatprep.subr.bf16.mxu0 %v12002_v59 }
 0x62b   :  { %10004 = vmatpush1.bf16.msra.mxu0 %v12000_v20 }
 0x62c   :  { %10005 = vmatprep.subr.bf16.mxu0 %v12005_v21 }
 0x62f   :  { %10006 = vmatpush1.bf16.msra.mxu0 %v12003_v23 }
 0x630   :  { %10007 = vmatprep.subr.bf16.mxu0 %v12008_v24 }
 0x633   :  { %10008 = vmatpush1.bf16.msra.mxu0 %v12006_v25 }
 0x634   :  { %10009 = vmatprep.subr.bf16.mxu0 %v12011_v22 }
 0x637   :  { %10010 = vmatpush1.bf16.msra.mxu0 %v12009_v14 }
 0x638   :  { %10011 = vmatprep.subr.bf16.mxu0 %v12014_v57 }
 0x63b   :  { %10012 = vmatpush1.bf16.msra.mxu0 %v12012_v27 }
 0x63c   :  { %10013 = vmatprep.subr.bf16.mxu0 %v12017_v51 }
 0x63f   :  { %10014 = vmatpush1.bf16.msra.mxu0 %v12015_v61 }
 0x640   :  { %10015 = vmatprep.subr.bf16.mxu0 %v12020_v1 }
 0x643   :  { %10016 = vmatpush1.bf16.msra.mxu0 %v12018_v29 }
 0x644   :  { %10017 = vmatprep.subr.bf16.mxu0 %v12023_v8 }
 0x647   :  { %10018 = vmatpush1.bf16.msra.mxu0 %v12021_v63 }
 0x648   :  { %10019 = vmatprep.subr.bf16.mxu0 %v12026_v30 }
 0x64b   :  { %10020 = vmatpush1.bf16.msra.mxu0 %v12024_v56 }
 0x64c   :  { %10021 = vmatprep.subr.bf16.mxu0 %v12029_v31 }
 0x64f   :  { %10022 = vmatpush1.bf16.msra.mxu0 %v12027_v34 }
 0x650   :  { %10023 = vmatprep.subr.bf16.mxu0 %v12032_v28 }
 0x653   :  { %10024 = vmatpush1.bf16.msra.mxu0 %v12030_v13 }
 0x654   :  { %10025 = vmatprep.subr.bf16.mxu0 %v12035_v42 }
 0x657   :  { %10026 = vmatpush1.bf16.msra.mxu0 %v12033_v62 }
 0x65a   :  { %10028 = vmatmul.mubr.bf16.vlgmr.msra.gmra.mrb[20].mxu0 %v9556_v49 }
 0x72d   :  { %v10029_v58 = vpop.f32.mrb[20].mxu0 }
 0x72e   :  { %v11431_v50 = vadd.f32 %v10029_v58, %v9627_v54  ;;  %v10031_v18 = vpop.f32.mrb[21].mxu0 }
 0x72f   :  { %v11432_v9 = vadd.f32 %v10031_v18, %v9631_v55  ;;  %v10033_v19 = vpop.f32.mrb[22].mxu0 }
 0x730   :  { %v10036_v52 = vmax.f32 %v11431_v50, 0.0  ;;  %v10034_v60 = vpop.f32.mrb[23].mxu0 }
 0x731   :  { %v10037_v40 = vmax.f32 %v11432_v9, 0.0 }
 0x733   :  { %v10040_v33 = vcombine.low %v10036_v52, %v10037_v40 }
 0x735   :  { %11408 = vst.sshfl [vmem:[#allocation2] sm:$0x33 pattern:$0x76325410] %v10040_v33 }
 0x736   :  { %12050 = shalt.err (!%p12047_p4)
}
 0x737   :  { %s12051_s14 = scalar_lea.hbm %s16452_s9, 64 }
 0x738   :  { %p12052_p5 = scmp.ne.s32.totalorder %s16452_s9, %s12051_s14  ;;  %p12055_p6 = scmp.lt.u32.totalorder %s12051_s14, %s16452_s9 }
 0x73a   :  { %p12057_p7 = pnand %p12055_p6, %p12052_p5 }
 0x73c   :  { %12060 = shalt.err (!%p12057_p7)
}
 0x73d   :  { %10059 = dma.vmem_to_hbm [thread:$0]  %s10057_s0, 64, %s16452_s9, [#allocation3]  }
 0x73e   :  { %12061 = dma.done.wait [#allocation3], 64  }
 0x73f   :  { %12062 = vsyncadd [#allocation3], 4294967232 }
 0x740   :  { %10063 = vsyncpa [#allocation3], 1 }

</bundles_post_ra>
